<compile_context>
chip_gen: v5e
topology: v5e:2x2
jax: 0.10.0
libtpu: 0.0.40
codegen_flags: <defaults>
</compile_context>

<pallas_src>
import math
import functools

import jax
import jax.numpy as jnp
from jax.experimental import pallas as pl
from jax.experimental.pallas import tpu as pltpu


# ----------------------------- small helpers --------------------------------

def _round_up(v, m):
    return (v + m - 1) // m * m


def _full_spec(shape):
    n = len(shape)
    return pl.BlockSpec(tuple(shape), lambda i, _n=n: (0,) * _n)


# ----------------------------- Pallas kernels ------------------------------

def _conv_mm_kernel(w_ref, p_ref, b_ref, o_ref, *, act):
    # out(Cout, tm) = W(Cout, K) @ P(K, tm) + shift ; optional ReLU
    y = jnp.dot(w_ref[...], p_ref[...], preferred_element_type=jnp.float32)
    y = y + b_ref[...]                       # (Cout, 1) lane-broadcast
    if act == "relu":
        y = jnp.maximum(y, 0.0)
    o_ref[...] = y.astype(o_ref.dtype)


def _conv_mm_res_kernel(w_ref, p_ref, b_ref, r_ref, o_ref):
    # second conv of a BasicBlock: fused BN shift + residual add + ReLU epilogue
    y = jnp.dot(w_ref[...], p_ref[...], preferred_element_type=jnp.float32)
    y = y + b_ref[...] + r_ref[...]
    o_ref[...] = jnp.maximum(y, 0.0).astype(o_ref.dtype)


def _max_tap_kernel(x_ref, o_ref):
    # max over the 27 pooling taps (leading axis)
    o_ref[...] = jnp.max(x_ref[...], axis=0).astype(o_ref.dtype)


def _head_kernel(x_ref, w1, b1, w2, b2, w3, b3, w4, b4, w5t, b5, o_ref):
    # fused: AdaptiveAvgPool3d((1,1,1)) + fc + relu(fc2..fc4) + relu(fc5) + sigmoid
    feat = jnp.mean(x_ref[...], axis=1)                                   # (B, C)
    h = jnp.dot(feat, w1[...], preferred_element_type=jnp.float32) + b1[...]
    h = jnp.maximum(jnp.dot(h, w2[...], preferred_element_type=jnp.float32) + b2[...], 0.0)
    h = jnp.maximum(jnp.dot(h, w3[...], preferred_element_type=jnp.float32) + b3[...], 0.0)
    h = jnp.maximum(jnp.dot(h, w4[...], preferred_element_type=jnp.float32) + b4[...], 0.0)
    h = jnp.sum(h * w5t[...], axis=1, keepdims=True) + b5[...]            # (B, 1)
    h = jnp.maximum(h, 0.0)
    h = 1.0 / (1.0 + jnp.exp(-h))                                         # sigmoid
    o_ref[...] = h.astype(o_ref.dtype)


# ----------------------------- conv lowering ---------------------------------

def _im2col_cm(x, ksize, stride, pad):
    # x: (Cin, B, D, H, W) f32 -> patches (K, M) bf16 ; K = kd*kh*kw*Cin, M = B*Do*Ho*Wo
    Cin, B, D, H, W = x.shape
    kd, kh, kw = ksize
    sd, sh, sw = stride
    pd, ph, pw = pad
    xb = x.astype(jnp.bfloat16)
    xp = jnp.pad(xb, ((0, 0), (0, 0), (pd, pd), (ph, ph), (pw, pw)))
    Do = (D + 2 * pd - kd) // sd + 1
    Ho = (H + 2 * ph - kh) // sh + 1
    Wo = (W + 2 * pw - kw) // sw + 1
    cols = []
    for a in range(kd):
        for b in range(kh):
            for c in range(kw):
                cols.append(xp[:, :, a:a + sd * (Do - 1) + 1:sd,
                                     b:b + sh * (Ho - 1) + 1:sh,
                                     c:c + sw * (Wo - 1) + 1:sw])
    pat = jnp.stack(cols, axis=0)                        # (taps, Cin, B, Do, Ho, Wo)
    K = kd * kh * kw * Cin
    M = B * Do * Ho * Wo
    return pat.reshape(K, M), (B, Do, Ho, Wo)


def conv_bn_act(x, w, bnp, stride, pad, act, residual=None):
    # x: (Cin, B, D, H, W) f32 ;  w: (Cout, Cin, kd, kh, kw) PyTorch layout, no bias
    Cout = w.shape[0]
    P, (B, Do, Ho, Wo) = _im2col_cm(x, w.shape[2:], stride, pad)
    K, M = P.shape

    # fold BN scale into weights, keep only the shift in the epilogue
    scale = bnp["g"] * jax.lax.rsqrt(bnp["v"] + 1e-5)
    shift = (bnp["b"] - bnp["m"] * scale).astype(jnp.float32).reshape(Cout, 1)
    W2 = jnp.transpose(w, (0, 2, 3, 4, 1)).reshape(Cout, K)
    W2 = (W2 * scale[:, None]).astype(jnp.bfloat16)

    # tile the lane-dense M axis
    M_pad = _round_up(M, 128)
    tm = min(512, M_pad)
    M_pad = _round_up(M_pad, tm)
    P = jnp.pad(P, ((0, 0), (0, M_pad - M)))

    args = [W2, P, shift]
    in_specs = [
        pl.BlockSpec((Cout, K), lambda i: (0, 0)),
        pl.BlockSpec((K, tm), lambda i: (0, i)),
        pl.BlockSpec((Cout, 1), lambda i: (0, 0)),
    ]
    if residual is not None:
        r2 = jnp.pad(residual.reshape(Cout, M).astype(jnp.float32),
                     ((0, 0), (0, M_pad - M)))
        args.append(r2)
        in_specs.append(pl.BlockSpec((Cout, tm), lambda i: (0, i)))
        kernel = _conv_mm_res_kernel
    else:
        kernel = functools.partial(_conv_mm_kernel, act=act)

    y = pl.pallas_call(
        kernel,
        out_shape=jax.ShapeDtypeStruct((Cout, M_pad), jnp.float32),
        grid=(M_pad // tm,),
        in_specs=in_specs,
        out_specs=pl.BlockSpec((Cout, tm), lambda i: (0, i)),
        compiler_params=pltpu.CompilerParams(
            dimension_semantics=("parallel",)),
    )(*args)
    return y[:, :M].reshape(Cout, B, Do, Ho, Wo)


def maxpool3d_cm(x, k=3, s=2, p=1):
    # x: (C, B, D, H, W) f32
    C, B, D, H, W = x.shape
    xp = jnp.pad(x, ((0, 0), (0, 0), (p, p), (p, p), (p, p)),
                 constant_values=-jnp.inf)
    Do = (D + 2 * p - k) // s + 1
    Ho = (H + 2 * p - k) // s + 1
    Wo = (W + 2 * p - k) // s + 1
    cols = []
    for a in range(k):
        for b in range(k):
            for c in range(k):
                cols.append(xp[:, :, a:a + s * (Do - 1) + 1:s,
                                     b:b + s * (Ho - 1) + 1:s,
                                     c:c + s * (Wo - 1) + 1:s])
    M = B * Do * Ho * Wo
    st = jnp.stack(cols, axis=0).reshape(k ** 3, C, M)

    M_pad = _round_up(M, 128)
    tm = min(512, M_pad)
    M_pad = _round_up(M_pad, tm)
    st = jnp.pad(st, ((0, 0), (0, 0), (0, M_pad - M)), constant_values=-jnp.inf)

    out = pl.pallas_call(
        _max_tap_kernel,
        out_shape=jax.ShapeDtypeStruct((C, M_pad), jnp.float32),
        grid=(M_pad // tm,),
        in_specs=[pl.BlockSpec((k ** 3, C, tm), lambda i: (0, 0, i))],
        out_specs=pl.BlockSpec((C, tm), lambda i: (0, i)),
        compiler_params=pltpu.CompilerParams(
            dimension_semantics=("parallel",)),
    )(st)
    return out[:, :M].reshape(C, B, Do, Ho, Wo)


def pallas_head(xt, params):
    # xt: (B, Sp, C) f32 ; fused avgpool + fc chain + sigmoid
    B, Sp, C = xt.shape
    args = [
        xt.astype(jnp.float32),
        params["fc"]["w"],  params["fc"]["b"].reshape(1, -1),
        params["fc2"]["w"], params["fc2"]["b"].reshape(1, -1),
        params["fc3"]["w"], params["fc3"]["b"].reshape(1, -1),
        params["fc4"]["w"], params["fc4"]["b"].reshape(1, -1),
        params["fc5"]["w"].T, params["fc5"]["b"].reshape(1, -1),
    ]
    in_specs = [_full_spec(a.shape) for a in args]
    return pl.pallas_call(
        _head_kernel,
        out_shape=jax.ShapeDtypeStruct((B, 1), jnp.float32),
        grid=(1,),
        in_specs=in_specs,
        out_specs=pl.BlockSpec((B, 1), lambda i: (0, 0)),
    )(*args)


# ----------------------------- parameters -----------------------------------

BLOCK_INPLANES = [8, 16, 32, 64]   # get_inplanes() scaled down (widen_factor = 0.125)
LAYERS = [1, 1, 1, 1]              # ResNet-10 (BasicBlock)
LAYER_STRIDES = [1, 2, 2, 2]
N_INPUT_CHANNELS = 3
CONV1_T_SIZE = 7
CONV1_T_STRIDE = 1
N_CLASSES = 64                     # small n_classes for the fc -> fc5 chain
MODE = "direct"


def init_params(key):
    keys = iter(jax.random.split(key, 256))

    def conv_w(cout, cin, kd, kh, kw):
        fan_out = cout * kd * kh * kw
        std = math.sqrt(2.0 / fan_out)            # kaiming_normal_ fan_out / relu
        return jax.random.normal(next(keys), (cout, cin, kd, kh, kw), jnp.float32) * std

    def bn(c):
        return dict(g=jnp.ones((c,), jnp.float32), b=jnp.zeros((c,), jnp.float32),
                    m=jnp.zeros((c,), jnp.float32), v=jnp.ones((c,), jnp.float32))

    def linear(nin, nout):
        bound = 1.0 / math.sqrt(nin)              # PyTorch default Linear init
        w = jax.random.uniform(next(keys), (nin, nout), jnp.float32, -bound, bound)
        b = jax.random.uniform(next(keys), (nout,), jnp.float32, -bound, bound)
        return dict(w=w, b=b)

    params = {}
    params["conv1"] = conv_w(BLOCK_INPLANES[0], N_INPUT_CHANNELS, CONV1_T_SIZE, 7, 7)
    params["bn1"] = bn(BLOCK_INPLANES[0])

    in_planes = BLOCK_INPLANES[0]
    layers_p = []
    for planes, stride, nblocks in zip(BLOCK_INPLANES, LAYER_STRIDES, LAYERS):
        layer = []
        for bi in range(nblocks):
            s = stride if bi == 0 else 1
            blk = {"conv1": conv_w(planes, in_planes, 3, 3, 3), "bn1": bn(planes),
                   "conv2": conv_w(planes, planes, 3, 3, 3), "bn2": bn(planes)}
            if s != 1 or in_planes != planes:     # shortcut_type='B'
                blk["ds_conv"] = conv_w(planes, in_planes, 1, 1, 1)
                blk["ds_bn"] = bn(planes)
            layer.append(blk)
            in_planes = planes
        layers_p.append(layer)
    params["layers"] = layers_p

    params["fc"] = linear(BLOCK_INPLANES[3], N_CLASSES)
    params["fc2"] = linear(N_CLASSES, N_CLASSES // 2)
    params["fc3"] = linear(N_CLASSES // 2, N_CLASSES // 4)
    params["fc4"] = linear(N_CLASSES // 4, N_CLASSES // 8)
    params["fc5"] = linear(N_CLASSES // 8, 1)
    return params


# ----------------------------- forward pass ----------------------------------

def basic_block(x, blk, stride):
    # residual path first (uses the block input x)
    if "ds_conv" in blk:
        residual = conv_bn_act(x, blk["ds_conv"], blk["ds_bn"],
                               (stride, stride, stride), (0, 0, 0), "none")
    else:
        residual = x
    out = conv_bn_act(x, blk["conv1"], blk["bn1"],
                      (stride, stride, stride), (1, 1, 1), "relu")
    # conv2 + BN + residual add + ReLU fused in one kernel epilogue
    out = conv_bn_act(out, blk["conv2"], blk["bn2"],
                      (1, 1, 1), (1, 1, 1), "none", residual=residual)
    return out


def resnet_forward(params, x_ncdhw):
    # x_ncdhw: (B, C, D, H, W) like PyTorch; internal layout is (C, B, D, H, W)
    x = jnp.transpose(x_ncdhw, (1, 0, 2, 3, 4)).astype(jnp.float32)

    x = conv_bn_act(x, params["conv1"], params["bn1"],
                    (CONV1_T_STRIDE, 2, 2), (CONV1_T_SIZE // 2, 3, 3), "relu")
    x = maxpool3d_cm(x, k=3, s=2, p=1)             # no_max_pool=False

    for layer_params, lstride in zip(params["layers"], LAYER_STRIDES):
        for bi, blk in enumerate(layer_params):
            s = lstride if bi == 0 else 1          # static Python int (not traced)
            x = basic_block(x, blk, s)

    # avgpool + flatten + fc chain (mode == 'direct'), fused into one kernel
    C, B, Do, Ho, Wo = x.shape
    xt = jnp.transpose(x.reshape(C, B, Do * Ho * Wo), (1, 2, 0))   # (B, Sp, C)
    return pallas_head(xt, params)


# ----------------------------- main ------------------------------------------

if __name__ == "__main__":
    key = jax.random.PRNGKey(0)
    pkey, xkey = jax.random.split(key)
    params = init_params(pkey)

    # Small deterministic video-like input: (batch=2, channels=3, frames=8, 16x16)
    x = jax.random.normal(xkey, (2, N_INPUT_CHANNELS, 8, 16, 16), jnp.float32)

    fwd = jax.jit(resnet_forward)
    out = jax.block_until_ready(fwd(params, x))

    assert out.shape == (2, 1), out.shape
    assert bool(jnp.all(jnp.isfinite(out)))
    print("KERNEL_OK")
</pallas_src>

<mosaic_0001>
module attributes {stable_mosaic.version = 11 : i64} {
  func.func @_conv_mm_kernel(%arg0: i32, %arg1: memref<8x1029xbf16, #tpu.memory_space<vmem>>, %arg2: memref<1029x512xbf16, #tpu.memory_space<vmem>>, %arg3: memref<8x1xf32, #tpu.memory_space<vmem>>, %arg4: memref<8x512xf32, #tpu.memory_space<vmem>>) attributes {dimension_semantics = [#tpu.dimension_semantics<parallel>], iteration_bounds = array<i64: 2>, scalar_prefetch = 0 : i64, scratch_operands = 0 : i64, tpu.core_type = #tpu.core_type<tc>, window_params = [{pipeline_mode = #tpu.pipeline_mode<synchronous>, transform_indices = @transform_0, window_bounds = array<i64: 8, 1029>}, {transform_indices = @transform_1, window_bounds = array<i64: 1029, 512>}, {pipeline_mode = #tpu.pipeline_mode<synchronous>, transform_indices = @transform_2, window_bounds = array<i64: 8, 1>}, {transform_indices = @transform_3, window_bounds = array<i64: 8, 512>}]} {
    %c0 = arith.constant 0 : index
    %c0_0 = arith.constant 0 : index
    %0 = vector.load %arg1[%c0, %c0_0] : memref<8x1029xbf16, #tpu.memory_space<vmem>>, vector<8x1029xbf16>
    %c0_1 = arith.constant 0 : index
    %c0_2 = arith.constant 0 : index
    %1 = vector.load %arg2[%c0_1, %c0_2] : memref<1029x512xbf16, #tpu.memory_space<vmem>>, vector<1029x512xbf16>
    %cst = arith.constant dense<0.000000e+00> : vector<8x512xf32>
    %2 = tpu.matmul %0, %1, %cst {dimension_numbers = #tpu.dot_dimension_numbers<[1], [0], [0], [1], [0, 0, 1, 1], [], []>} : vector<8x1029xbf16>, vector<1029x512xbf16>, vector<8x512xf32> -> vector<8x512xf32>
    %c0_3 = arith.constant 0 : index
    %c0_4 = arith.constant 0 : index
    %3 = vector.load %arg3[%c0_3, %c0_4] : memref<8x1xf32, #tpu.memory_space<vmem>>, vector<8x1xf32>
    %4 = vector.broadcast %3 : vector<8x1xf32> to vector<8x512xf32>
    %5 = arith.addf %2, %4 : vector<8x512xf32>
    %cst_5 = arith.constant 0.000000e+00 : f32
    %6 = vector.broadcast %cst_5 : f32 to vector<8x512xf32>
    %7 = arith.maximumf %5, %6 : vector<8x512xf32>
    %c0_6 = arith.constant 0 : index
    %c0_7 = arith.constant 0 : index
    %8 = vector.load %arg4[%c0_6, %c0_7] : memref<8x512xf32, #tpu.memory_space<vmem>>, vector<8x512xf32>
    tpu.vector_store %arg4[%c0_6, %c0_7], %7 {strides = array<i32>} : memref<8x512xf32, #tpu.memory_space<vmem>>, vector<8x512xf32>,
    return
  }
  func.func @transform_0(%arg0: i32) -> (i32, i32) {
    %c0_i32 = arith.constant 0 : i32
    %c0_i32_0 = arith.constant 0 : i32
    %c0_i32_1 = arith.constant 0 : i32
    return %c0_i32, %c0_i32_0 : i32, i32
  }
  func.func @transform_1(%arg0: i32) -> (i32, i32) {
    %c0_i32 = arith.constant 0 : i32
    %c0_i32_0 = arith.constant 0 : i32
    return %c0_i32, %arg0 : i32, i32
  }
  func.func @transform_2(%arg0: i32) -> (i32, i32) {
    %c0_i32 = arith.constant 0 : i32
    %c0_i32_0 = arith.constant 0 : i32
    %c0_i32_1 = arith.constant 0 : i32
    return %c0_i32, %c0_i32_0 : i32, i32
  }
  func.func @transform_3(%arg0: i32) -> (i32, i32) {
    %c0_i32 = arith.constant 0 : i32
    %c0_i32_0 = arith.constant 0 : i32
    return %c0_i32, %arg0 : i32, i32
  }
}

module attributes {stable_mosaic.version = 11 : i64} {
  func.func @_max_tap_kernel(%arg0: i32, %arg1: memref<27x8x128xf32, #tpu.memory_space<vmem>>, %arg2: memref<8x128xf32, #tpu.memory_space<vmem>>) attributes {dimension_semantics = [#tpu.dimension_semantics<parallel>], iteration_bounds = array<i64: 1>, scalar_prefetch = 0 : i64, scratch_operands = 0 : i64, tpu.core_type = #tpu.core_type<tc>, window_params = [{transform_indices = @transform_0, window_bounds = array<i64: 27, 8, 128>}, {transform_indices = @transform_1, window_bounds = array<i64: 8, 128>}]} {
    %c0 = arith.constant 0 : index
    %c0_0 = arith.constant 0 : index
    %c0_1 = arith.constant 0 : index
    %0 = vector.load %arg1[%c0, %c0_0, %c0_1] : memref<27x8x128xf32, #tpu.memory_space<vmem>>, vector<27x8x128xf32>
    %cst = arith.constant dense<0xFF800000> : vector<8x128xf32>
    %1 = vector.multi_reduction <maximumf>, %0, %cst [0] : vector<27x8x128xf32> to vector<8x128xf32>
    %c0_2 = arith.constant 0 : index
    %c0_3 = arith.constant 0 : index
    %2 = vector.load %arg2[%c0_2, %c0_3] : memref<8x128xf32, #tpu.memory_space<vmem>>, vector<8x128xf32>
    tpu.vector_store %arg2[%c0_2, %c0_3], %1 {strides = array<i32>} : memref<8x128xf32, #tpu.memory_space<vmem>>, vector<8x128xf32>,
    return
  }
  func.func @transform_0(%arg0: i32) -> (i32, i32, i32) {
    %c0_i32 = arith.constant 0 : i32
    %c0_i32_0 = arith.constant 0 : i32
    %c0_i32_1 = arith.constant 0 : i32
    return %c0_i32, %c0_i32_0, %arg0 : i32, i32, i32
  }
  func.func @transform_1(%arg0: i32) -> (i32, i32) {
    %c0_i32 = arith.constant 0 : i32
    %c0_i32_0 = arith.constant 0 : i32
    return %c0_i32, %arg0 : i32, i32
  }
}

module attributes {stable_mosaic.version = 11 : i64} {
  func.func @_conv_mm_kernel(%arg0: i32, %arg1: memref<8x216xbf16, #tpu.memory_space<vmem>>, %arg2: memref<216x128xbf16, #tpu.memory_space<vmem>>, %arg3: memref<8x1xf32, #tpu.memory_space<vmem>>, %arg4: memref<8x128xf32, #tpu.memory_space<vmem>>) attributes {dimension_semantics = [#tpu.dimension_semantics<parallel>], iteration_bounds = array<i64: 1>, scalar_prefetch = 0 : i64, scratch_operands = 0 : i64, tpu.core_type = #tpu.core_type<tc>, window_params = [{pipeline_mode = #tpu.pipeline_mode<synchronous>, transform_indices = @transform_0, window_bounds = array<i64: 8, 216>}, {transform_indices = @transform_1, window_bounds = array<i64: 216, 128>}, {pipeline_mode = #tpu.pipeline_mode<synchronous>, transform_indices = @transform_2, window_bounds = array<i64: 8, 1>}, {transform_indices = @transform_3, window_bounds = array<i64: 8, 128>}]} {
    %c0 = arith.constant 0 : index
    %c0_0 = arith.constant 0 : index
    %0 = vector.load %arg1[%c0, %c0_0] : memref<8x216xbf16, #tpu.memory_space<vmem>>, vector<8x216xbf16>
    %c0_1 = arith.constant 0 : index
    %c0_2 = arith.constant 0 : index
    %1 = vector.load %arg2[%c0_1, %c0_2] : memref<216x128xbf16, #tpu.memory_space<vmem>>, vector<216x128xbf16>
    %cst = arith.constant dense<0.000000e+00> : vector<8x128xf32>
    %2 = tpu.matmul %0, %1, %cst {dimension_numbers = #tpu.dot_dimension_numbers<[1], [0], [0], [1], [0, 0, 1, 1], [], []>} : vector<8x216xbf16>, vector<216x128xbf16>, vector<8x128xf32> -> vector<8x128xf32>
    %c0_3 = arith.constant 0 : index
    %c0_4 = arith.constant 0 : index
    %3 = vector.load %arg3[%c0_3, %c0_4] : memref<8x1xf32, #tpu.memory_space<vmem>>, vector<8x1xf32>
    %4 = vector.broadcast %3 : vector<8x1xf32> to vector<8x128xf32>
    %5 = arith.addf %2, %4 : vector<8x128xf32>
    %cst_5 = arith.constant 0.000000e+00 : f32
    %6 = vector.broadcast %cst_5 : f32 to vector<8x128xf32>
    %7 = arith.maximumf %5, %6 : vector<8x128xf32>
    %c0_6 = arith.constant 0 : index
    %c0_7 = arith.constant 0 : index
    %8 = vector.load %arg4[%c0_6, %c0_7] : memref<8x128xf32, #tpu.memory_space<vmem>>, vector<8x128xf32>
    tpu.vector_store %arg4[%c0_6, %c0_7], %7 {strides = array<i32>} : memref<8x128xf32, #tpu.memory_space<vmem>>, vector<8x128xf32>,
    return
  }
  func.func @transform_0(%arg0: i32) -> (i32, i32) {
    %c0_i32 = arith.constant 0 : i32
    %c0_i32_0 = arith.constant 0 : i32
    %c0_i32_1 = arith.constant 0 : i32
    return %c0_i32, %c0_i32_0 : i32, i32
  }
  func.func @transform_1(%arg0: i32) -> (i32, i32) {
    %c0_i32 = arith.constant 0 : i32
    %c0_i32_0 = arith.constant 0 : i32
    return %c0_i32, %arg0 : i32, i32
  }
  func.func @transform_2(%arg0: i32) -> (i32, i32) {
    %c0_i32 = arith.constant 0 : i32
    %c0_i32_0 = arith.constant 0 : i32
    %c0_i32_1 = arith.constant 0 : i32
    return %c0_i32, %c0_i32_0 : i32, i32
  }
  func.func @transform_3(%arg0: i32) -> (i32, i32) {
    %c0_i32 = arith.constant 0 : i32
    %c0_i32_0 = arith.constant 0 : i32
    return %c0_i32, %arg0 : i32, i32
  }
}

module attributes {stable_mosaic.version = 11 : i64} {
  func.func @_conv_mm_res_kernel(%arg0: i32, %arg1: memref<8x216xbf16, #tpu.memory_space<vmem>>, %arg2: memref<216x128xbf16, #tpu.memory_space<vmem>>, %arg3: memref<8x1xf32, #tpu.memory_space<vmem>>, %arg4: memref<8x128xf32, #tpu.memory_space<vmem>>, %arg5: memref<8x128xf32, #tpu.memory_space<vmem>>) attributes {dimension_semantics = [#tpu.dimension_semantics<parallel>], iteration_bounds = array<i64: 1>, scalar_prefetch = 0 : i64, scratch_operands = 0 : i64, tpu.core_type = #tpu.core_type<tc>, window_params = [{pipeline_mode = #tpu.pipeline_mode<synchronous>, transform_indices = @transform_0, window_bounds = array<i64: 8, 216>}, {transform_indices = @transform_1, window_bounds = array<i64: 216, 128>}, {pipeline_mode = #tpu.pipeline_mode<synchronous>, transform_indices = @transform_2, window_bounds = array<i64: 8, 1>}, {transform_indices = @transform_3, window_bounds = array<i64: 8, 128>}, {transform_indices = @transform_4, window_bounds = array<i64: 8, 128>}]} {
    %c0 = arith.constant 0 : index
    %c0_0 = arith.constant 0 : index
    %0 = vector.load %arg1[%c0, %c0_0] : memref<8x216xbf16, #tpu.memory_space<vmem>>, vector<8x216xbf16>
    %c0_1 = arith.constant 0 : index
    %c0_2 = arith.constant 0 : index
    %1 = vector.load %arg2[%c0_1, %c0_2] : memref<216x128xbf16, #tpu.memory_space<vmem>>, vector<216x128xbf16>
    %cst = arith.constant dense<0.000000e+00> : vector<8x128xf32>
    %2 = tpu.matmul %0, %1, %cst {dimension_numbers = #tpu.dot_dimension_numbers<[1], [0], [0], [1], [0, 0, 1, 1], [], []>} : vector<8x216xbf16>, vector<216x128xbf16>, vector<8x128xf32> -> vector<8x128xf32>
    %c0_3 = arith.constant 0 : index
    %c0_4 = arith.constant 0 : index
    %3 = vector.load %arg3[%c0_3, %c0_4] : memref<8x1xf32, #tpu.memory_space<vmem>>, vector<8x1xf32>
    %4 = vector.broadcast %3 : vector<8x1xf32> to vector<8x128xf32>
    %5 = arith.addf %2, %4 : vector<8x128xf32>
    %c0_5 = arith.constant 0 : index
    %c0_6 = arith.constant 0 : index
    %6 = vector.load %arg4[%c0_5, %c0_6] : memref<8x128xf32, #tpu.memory_space<vmem>>, vector<8x128xf32>
    %7 = arith.addf %5, %6 : vector<8x128xf32>
    %cst_7 = arith.constant 0.000000e+00 : f32
    %8 = vector.broadcast %cst_7 : f32 to vector<8x128xf32>
    %9 = arith.maximumf %7, %8 : vector<8x128xf32>
    %c0_8 = arith.constant 0 : index
    %c0_9 = arith.constant 0 : index
    %10 = vector.load %arg5[%c0_8, %c0_9] : memref<8x128xf32, #tpu.memory_space<vmem>>, vector<8x128xf32>
    tpu.vector_store %arg5[%c0_8, %c0_9], %9 {strides = array<i32>} : memref<8x128xf32, #tpu.memory_space<vmem>>, vector<8x128xf32>,
    return
  }
  func.func @transform_0(%arg0: i32) -> (i32, i32) {
    %c0_i32 = arith.constant 0 : i32
    %c0_i32_0 = arith.constant 0 : i32
    %c0_i32_1 = arith.constant 0 : i32
    return %c0_i32, %c0_i32_0 : i32, i32
  }
  func.func @transform_1(%arg0: i32) -> (i32, i32) {
    %c0_i32 = arith.constant 0 : i32
    %c0_i32_0 = arith.constant 0 : i32
    return %c0_i32, %arg0 : i32, i32
  }
  func.func @transform_2(%arg0: i32) -> (i32, i32) {
    %c0_i32 = arith.constant 0 : i32
    %c0_i32_0 = arith.constant 0 : i32
    %c0_i32_1 = arith.constant 0 : i32
    return %c0_i32, %c0_i32_0 : i32, i32
  }
  func.func @transform_3(%arg0: i32) -> (i32, i32) {
    %c0_i32 = arith.constant 0 : i32
    %c0_i32_0 = arith.constant 0 : i32
    return %c0_i32, %arg0 : i32, i32
  }
  func.func @transform_4(%arg0: i32) -> (i32, i32) {
    %c0_i32 = arith.constant 0 : i32
    %c0_i32_0 = arith.constant 0 : i32
    return %c0_i32, %arg0 : i32, i32
  }
}

module attributes {stable_mosaic.version = 11 : i64} {
  func.func @_conv_mm_kernel(%arg0: i32, %arg1: memref<16x216xbf16, #tpu.memory_space<vmem>>, %arg2: memref<216x128xbf16, #tpu.memory_space<vmem>>, %arg3: memref<16x1xf32, #tpu.memory_space<vmem>>, %arg4: memref<16x128xf32, #tpu.memory_space<vmem>>) attributes {dimension_semantics = [#tpu.dimension_semantics<parallel>], iteration_bounds = array<i64: 1>, scalar_prefetch = 0 : i64, scratch_operands = 0 : i64, tpu.core_type = #tpu.core_type<tc>, window_params = [{pipeline_mode = #tpu.pipeline_mode<synchronous>, transform_indices = @transform_0, window_bounds = array<i64: 16, 216>}, {transform_indices = @transform_1, window_bounds = array<i64: 216, 128>}, {pipeline_mode = #tpu.pipeline_mode<synchronous>, transform_indices = @transform_2, window_bounds = array<i64: 16, 1>}, {transform_indices = @transform_3, window_bounds = array<i64: 16, 128>}]} {
    %c0 = arith.constant 0 : index
    %c0_0 = arith.constant 0 : index
    %0 = vector.load %arg1[%c0, %c0_0] : memref<16x216xbf16, #tpu.memory_space<vmem>>, vector<16x216xbf16>
    %c0_1 = arith.constant 0 : index
    %c0_2 = arith.constant 0 : index
    %1 = vector.load %arg2[%c0_1, %c0_2] : memref<216x128xbf16, #tpu.memory_space<vmem>>, vector<216x128xbf16>
    %cst = arith.constant dense<0.000000e+00> : vector<16x128xf32>
    %2 = tpu.matmul %0, %1, %cst {dimension_numbers = #tpu.dot_dimension_numbers<[1], [0], [0], [1], [0, 0, 1, 1], [], []>} : vector<16x216xbf16>, vector<216x128xbf16>, vector<16x128xf32> -> vector<16x128xf32>
    %c0_3 = arith.constant 0 : index
    %c0_4 = arith.constant 0 : index
    %3 = vector.load %arg3[%c0_3, %c0_4] : memref<16x1xf32, #tpu.memory_space<vmem>>, vector<16x1xf32>
    %4 = vector.broadcast %3 : vector<16x1xf32> to vector<16x128xf32>
    %5 = arith.addf %2, %4 : vector<16x128xf32>
    %cst_5 = arith.constant 0.000000e+00 : f32
    %6 = vector.broadcast %cst_5 : f32 to vector<16x128xf32>
    %7 = arith.maximumf %5, %6 : vector<16x128xf32>
    %c0_6 = arith.constant 0 : index
    %c0_7 = arith.constant 0 : index
    %8 = vector.load %arg4[%c0_6, %c0_7] : memref<16x128xf32, #tpu.memory_space<vmem>>, vector<16x128xf32>
    tpu.vector_store %arg4[%c0_6, %c0_7], %7 {strides = array<i32>} : memref<16x128xf32, #tpu.memory_space<vmem>>, vector<16x128xf32>,
    return
  }
  func.func @transform_0(%arg0: i32) -> (i32, i32) {
    %c0_i32 = arith.constant 0 : i32
    %c0_i32_0 = arith.constant 0 : i32
    %c0_i32_1 = arith.constant 0 : i32
    return %c0_i32, %c0_i32_0 : i32, i32
  }
  func.func @transform_1(%arg0: i32) -> (i32, i32) {
    %c0_i32 = arith.constant 0 : i32
    %c0_i32_0 = arith.constant 0 : i32
    return %c0_i32, %arg0 : i32, i32
  }
  func.func @transform_2(%arg0: i32) -> (i32, i32) {
    %c0_i32 = arith.constant 0 : i32
    %c0_i32_0 = arith.constant 0 : i32
    %c0_i32_1 = arith.constant 0 : i32
    return %c0_i32, %c0_i32_0 : i32, i32
  }
  func.func @transform_3(%arg0: i32) -> (i32, i32) {
    %c0_i32 = arith.constant 0 : i32
    %c0_i32_0 = arith.constant 0 : i32
    return %c0_i32, %arg0 : i32, i32
  }
}

module attributes {stable_mosaic.version = 11 : i64} {
  func.func @_conv_mm_kernel(%arg0: i32, %arg1: memref<16x8xbf16, #tpu.memory_space<vmem>>, %arg2: memref<8x128xbf16, #tpu.memory_space<vmem>>, %arg3: memref<16x1xf32, #tpu.memory_space<vmem>>, %arg4: memref<16x128xf32, #tpu.memory_space<vmem>>) attributes {dimension_semantics = [#tpu.dimension_semantics<parallel>], iteration_bounds = array<i64: 1>, scalar_prefetch = 0 : i64, scratch_operands = 0 : i64, tpu.core_type = #tpu.core_type<tc>, window_params = [{pipeline_mode = #tpu.pipeline_mode<synchronous>, transform_indices = @transform_0, window_bounds = array<i64: 16, 8>}, {transform_indices = @transform_1, window_bounds = array<i64: 8, 128>}, {pipeline_mode = #tpu.pipeline_mode<synchronous>, transform_indices = @transform_2, window_bounds = array<i64: 16, 1>}, {transform_indices = @transform_3, window_bounds = array<i64: 16, 128>}]} {
    %c0 = arith.constant 0 : index
    %c0_0 = arith.constant 0 : index
    %0 = vector.load %arg1[%c0, %c0_0] : memref<16x8xbf16, #tpu.memory_space<vmem>>, vector<16x8xbf16>
    %c0_1 = arith.constant 0 : index
    %c0_2 = arith.constant 0 : index
    %1 = vector.load %arg2[%c0_1, %c0_2] : memref<8x128xbf16, #tpu.memory_space<vmem>>, vector<8x128xbf16>
    %cst = arith.constant dense<0.000000e+00> : vector<16x128xf32>
    %2 = tpu.matmul %0, %1, %cst {dimension_numbers = #tpu.dot_dimension_numbers<[1], [0], [0], [1], [0, 0, 1, 1], [], []>} : vector<16x8xbf16>, vector<8x128xbf16>, vector<16x128xf32> -> vector<16x128xf32>
    %c0_3 = arith.constant 0 : index
    %c0_4 = arith.constant 0 : index
    %3 = vector.load %arg3[%c0_3, %c0_4] : memref<16x1xf32, #tpu.memory_space<vmem>>, vector<16x1xf32>
    %4 = vector.broadcast %3 : vector<16x1xf32> to vector<16x128xf32>
    %5 = arith.addf %2, %4 : vector<16x128xf32>
    %c0_5 = arith.constant 0 : index
    %c0_6 = arith.constant 0 : index
    %6 = vector.load %arg4[%c0_5, %c0_6] : memref<16x128xf32, #tpu.memory_space<vmem>>, vector<16x128xf32>
    tpu.vector_store %arg4[%c0_5, %c0_6], %5 {strides = array<i32>} : memref<16x128xf32, #tpu.memory_space<vmem>>, vector<16x128xf32>,
    return
  }
  func.func @transform_0(%arg0: i32) -> (i32, i32) {
    %c0_i32 = arith.constant 0 : i32
    %c0_i32_0 = arith.constant 0 : i32
    %c0_i32_1 = arith.constant 0 : i32
    return %c0_i32, %c0_i32_0 : i32, i32
  }
  func.func @transform_1(%arg0: i32) -> (i32, i32) {
    %c0_i32 = arith.constant 0 : i32
    %c0_i32_0 = arith.constant 0 : i32
    return %c0_i32, %arg0 : i32, i32
  }
  func.func @transform_2(%arg0: i32) -> (i32, i32) {
    %c0_i32 = arith.constant 0 : i32
    %c0_i32_0 = arith.constant 0 : i32
    %c0_i32_1 = arith.constant 0 : i32
    return %c0_i32, %c0_i32_0 : i32, i32
  }
  func.func @transform_3(%arg0: i32) -> (i32, i32) {
    %c0_i32 = arith.constant 0 : i32
    %c0_i32_0 = arith.constant 0 : i32
    return %c0_i32, %arg0 : i32, i32
  }
}

module attributes {stable_mosaic.version = 11 : i64} {
  func.func @_conv_mm_res_kernel(%arg0: i32, %arg1: memref<16x432xbf16, #tpu.memory_space<vmem>>, %arg2: memref<432x128xbf16, #tpu.memory_space<vmem>>, %arg3: memref<16x1xf32, #tpu.memory_space<vmem>>, %arg4: memref<16x128xf32, #tpu.memory_space<vmem>>, %arg5: memref<16x128xf32, #tpu.memory_space<vmem>>) attributes {dimension_semantics = [#tpu.dimension_semantics<parallel>], iteration_bounds = array<i64: 1>, scalar_prefetch = 0 : i64, scratch_operands = 0 : i64, tpu.core_type = #tpu.core_type<tc>, window_params = [{pipeline_mode = #tpu.pipeline_mode<synchronous>, transform_indices = @transform_0, window_bounds = array<i64: 16, 432>}, {transform_indices = @transform_1, window_bounds = array<i64: 432, 128>}, {pipeline_mode = #tpu.pipeline_mode<synchronous>, transform_indices = @transform_2, window_bounds = array<i64: 16, 1>}, {transform_indices = @transform_3, window_bounds = array<i64: 16, 128>}, {transform_indices = @transform_4, window_bounds = array<i64: 16, 128>}]} {
    %c0 = arith.constant 0 : index
    %c0_0 = arith.constant 0 : index
    %0 = vector.load %arg1[%c0, %c0_0] : memref<16x432xbf16, #tpu.memory_space<vmem>>, vector<16x432xbf16>
    %c0_1 = arith.constant 0 : index
    %c0_2 = arith.constant 0 : index
    %1 = vector.load %arg2[%c0_1, %c0_2] : memref<432x128xbf16, #tpu.memory_space<vmem>>, vector<432x128xbf16>
    %cst = arith.constant dense<0.000000e+00> : vector<16x128xf32>
    %2 = tpu.matmul %0, %1, %cst {dimension_numbers = #tpu.dot_dimension_numbers<[1], [0], [0], [1], [0, 0, 1, 1], [], []>} : vector<16x432xbf16>, vector<432x128xbf16>, vector<16x128xf32> -> vector<16x128xf32>
    %c0_3 = arith.constant 0 : index
    %c0_4 = arith.constant 0 : index
    %3 = vector.load %arg3[%c0_3, %c0_4] : memref<16x1xf32, #tpu.memory_space<vmem>>, vector<16x1xf32>
    %4 = vector.broadcast %3 : vector<16x1xf32> to vector<16x128xf32>
    %5 = arith.addf %2, %4 : vector<16x128xf32>
    %c0_5 = arith.constant 0 : index
    %c0_6 = arith.constant 0 : index
    %6 = vector.load %arg4[%c0_5, %c0_6] : memref<16x128xf32, #tpu.memory_space<vmem>>, vector<16x128xf32>
    %7 = arith.addf %5, %6 : vector<16x128xf32>
    %cst_7 = arith.constant 0.000000e+00 : f32
    %8 = vector.broadcast %cst_7 : f32 to vector<16x128xf32>
    %9 = arith.maximumf %7, %8 : vector<16x128xf32>
    %c0_8 = arith.constant 0 : index
    %c0_9 = arith.constant 0 : index
    %10 = vector.load %arg5[%c0_8, %c0_9] : memref<16x128xf32, #tpu.memory_space<vmem>>, vector<16x128xf32>
    tpu.vector_store %arg5[%c0_8, %c0_9], %9 {strides = array<i32>} : memref<16x128xf32, #tpu.memory_space<vmem>>, vector<16x128xf32>,
    return
  }
  func.func @transform_0(%arg0: i32) -> (i32, i32) {
    %c0_i32 = arith.constant 0 : i32
    %c0_i32_0 = arith.constant 0 : i32
    %c0_i32_1 = arith.constant 0 : i32
    return %c0_i32, %c0_i32_0 : i32, i32
  }
  func.func @transform_1(%arg0: i32) -> (i32, i32) {
    %c0_i32 = arith.constant 0 : i32
    %c0_i32_0 = arith.constant 0 : i32
    return %c0_i32, %arg0 : i32, i32
  }
  func.func @transform_2(%arg0: i32) -> (i32, i32) {
    %c0_i32 = arith.constant 0 : i32
    %c0_i32_0 = arith.constant 0 : i32
    %c0_i32_1 = arith.constant 0 : i32
    return %c0_i32, %c0_i32_0 : i32, i32
  }
  func.func @transform_3(%arg0: i32) -> (i32, i32) {
    %c0_i32 = arith.constant 0 : i32
    %c0_i32_0 = arith.constant 0 : i32
    return %c0_i32, %arg0 : i32, i32
  }
  func.func @transform_4(%arg0: i32) -> (i32, i32) {
    %c0_i32 = arith.constant 0 : i32
    %c0_i32_0 = arith.constant 0 : i32
    return %c0_i32, %arg0 : i32, i32
  }
}

module attributes {stable_mosaic.version = 11 : i64} {
  func.func @_conv_mm_kernel(%arg0: i32, %arg1: memref<32x432xbf16, #tpu.memory_space<vmem>>, %arg2: memref<432x128xbf16, #tpu.memory_space<vmem>>, %arg3: memref<32x1xf32, #tpu.memory_space<vmem>>, %arg4: memref<32x128xf32, #tpu.memory_space<vmem>>) attributes {dimension_semantics = [#tpu.dimension_semantics<parallel>], iteration_bounds = array<i64: 1>, scalar_prefetch = 0 : i64, scratch_operands = 0 : i64, tpu.core_type = #tpu.core_type<tc>, window_params = [{pipeline_mode = #tpu.pipeline_mode<synchronous>, transform_indices = @transform_0, window_bounds = array<i64: 32, 432>}, {transform_indices = @transform_1, window_bounds = array<i64: 432, 128>}, {pipeline_mode = #tpu.pipeline_mode<synchronous>, transform_indices = @transform_2, window_bounds = array<i64: 32, 1>}, {transform_indices = @transform_3, window_bounds = array<i64: 32, 128>}]} {
    %c0 = arith.constant 0 : index
    %c0_0 = arith.constant 0 : index
    %0 = vector.load %arg1[%c0, %c0_0] : memref<32x432xbf16, #tpu.memory_space<vmem>>, vector<32x432xbf16>
    %c0_1 = arith.constant 0 : index
    %c0_2 = arith.constant 0 : index
    %1 = vector.load %arg2[%c0_1, %c0_2] : memref<432x128xbf16, #tpu.memory_space<vmem>>, vector<432x128xbf16>
    %cst = arith.constant dense<0.000000e+00> : vector<32x128xf32>
    %2 = tpu.matmul %0, %1, %cst {dimension_numbers = #tpu.dot_dimension_numbers<[1], [0], [0], [1], [0, 0, 1, 1], [], []>} : vector<32x432xbf16>, vector<432x128xbf16>, vector<32x128xf32> -> vector<32x128xf32>
    %c0_3 = arith.constant 0 : index
    %c0_4 = arith.constant 0 : index
    %3 = vector.load %arg3[%c0_3, %c0_4] : memref<32x1xf32, #tpu.memory_space<vmem>>, vector<32x1xf32>
    %4 = vector.broadcast %3 : vector<32x1xf32> to vector<32x128xf32>
    %5 = arith.addf %2, %4 : vector<32x128xf32>
    %cst_5 = arith.constant 0.000000e+00 : f32
    %6 = vector.broadcast %cst_5 : f32 to vector<32x128xf32>
    %7 = arith.maximumf %5, %6 : vector<32x128xf32>
    %c0_6 = arith.constant 0 : index
    %c0_7 = arith.constant 0 : index
    %8 = vector.load %arg4[%c0_6, %c0_7] : memref<32x128xf32, #tpu.memory_space<vmem>>, vector<32x128xf32>
    tpu.vector_store %arg4[%c0_6, %c0_7], %7 {strides = array<i32>} : memref<32x128xf32, #tpu.memory_space<vmem>>, vector<32x128xf32>,
    return
  }
  func.func @transform_0(%arg0: i32) -> (i32, i32) {
    %c0_i32 = arith.constant 0 : i32
    %c0_i32_0 = arith.constant 0 : i32
    %c0_i32_1 = arith.constant 0 : i32
    return %c0_i32, %c0_i32_0 : i32, i32
  }
  func.func @transform_1(%arg0: i32) -> (i32, i32) {
    %c0_i32 = arith.constant 0 : i32
    %c0_i32_0 = arith.constant 0 : i32
    return %c0_i32, %arg0 : i32, i32
  }
  func.func @transform_2(%arg0: i32) -> (i32, i32) {
    %c0_i32 = arith.constant 0 : i32
    %c0_i32_0 = arith.constant 0 : i32
    %c0_i32_1 = arith.constant 0 : i32
    return %c0_i32, %c0_i32_0 : i32, i32
  }
  func.func @transform_3(%arg0: i32) -> (i32, i32) {
    %c0_i32 = arith.constant 0 : i32
    %c0_i32_0 = arith.constant 0 : i32
    return %c0_i32, %arg0 : i32, i32
  }
}

module attributes {stable_mosaic.version = 11 : i64} {
  func.func @_conv_mm_kernel(%arg0: i32, %arg1: memref<32x16xbf16, #tpu.memory_space<vmem>>, %arg2: memref<16x128xbf16, #tpu.memory_space<vmem>>, %arg3: memref<32x1xf32, #tpu.memory_space<vmem>>, %arg4: memref<32x128xf32, #tpu.memory_space<vmem>>) attributes {dimension_semantics = [#tpu.dimension_semantics<parallel>], iteration_bounds = array<i64: 1>, scalar_prefetch = 0 : i64, scratch_operands = 0 : i64, tpu.core_type = #tpu.core_type<tc>, window_params = [{pipeline_mode = #tpu.pipeline_mode<synchronous>, transform_indices = @transform_0, window_bounds = array<i64: 32, 16>}, {transform_indices = @transform_1, window_bounds = array<i64: 16, 128>}, {pipeline_mode = #tpu.pipeline_mode<synchronous>, transform_indices = @transform_2, window_bounds = array<i64: 32, 1>}, {transform_indices = @transform_3, window_bounds = array<i64: 32, 128>}]} {
    %c0 = arith.constant 0 : index
    %c0_0 = arith.constant 0 : index
    %0 = vector.load %arg1[%c0, %c0_0] : memref<32x16xbf16, #tpu.memory_space<vmem>>, vector<32x16xbf16>
    %c0_1 = arith.constant 0 : index
    %c0_2 = arith.constant 0 : index
    %1 = vector.load %arg2[%c0_1, %c0_2] : memref<16x128xbf16, #tpu.memory_space<vmem>>, vector<16x128xbf16>
    %cst = arith.constant dense<0.000000e+00> : vector<32x128xf32>
    %2 = tpu.matmul %0, %1, %cst {dimension_numbers = #tpu.dot_dimension_numbers<[1], [0], [0], [1], [0, 0, 1, 1], [], []>} : vector<32x16xbf16>, vector<16x128xbf16>, vector<32x128xf32> -> vector<32x128xf32>
    %c0_3 = arith.constant 0 : index
    %c0_4 = arith.constant 0 : index
    %3 = vector.load %arg3[%c0_3, %c0_4] : memref<32x1xf32, #tpu.memory_space<vmem>>, vector<32x1xf32>
    %4 = vector.broadcast %3 : vector<32x1xf32> to vector<32x128xf32>
    %5 = arith.addf %2, %4 : vector<32x128xf32>
    %c0_5 = arith.constant 0 : index
    %c0_6 = arith.constant 0 : index
    %6 = vector.load %arg4[%c0_5, %c0_6] : memref<32x128xf32, #tpu.memory_space<vmem>>, vector<32x128xf32>
    tpu.vector_store %arg4[%c0_5, %c0_6], %5 {strides = array<i32>} : memref<32x128xf32, #tpu.memory_space<vmem>>, vector<32x128xf32>,
    return
  }
  func.func @transform_0(%arg0: i32) -> (i32, i32) {
    %c0_i32 = arith.constant 0 : i32
    %c0_i32_0 = arith.constant 0 : i32
    %c0_i32_1 = arith.constant 0 : i32
    return %c0_i32, %c0_i32_0 : i32, i32
  }
  func.func @transform_1(%arg0: i32) -> (i32, i32) {
    %c0_i32 = arith.constant 0 : i32
    %c0_i32_0 = arith.constant 0 : i32
    return %c0_i32, %arg0 : i32, i32
  }
  func.func @transform_2(%arg0: i32) -> (i32, i32) {
    %c0_i32 = arith.constant 0 : i32
    %c0_i32_0 = arith.constant 0 : i32
    %c0_i32_1 = arith.constant 0 : i32
    return %c0_i32, %c0_i32_0 : i32, i32
  }
  func.func @transform_3(%arg0: i32) -> (i32, i32) {
    %c0_i32 = arith.constant 0 : i32
    %c0_i32_0 = arith.constant 0 : i32
    return %c0_i32, %arg0 : i32, i32
  }
}

module attributes {stable_mosaic.version = 11 : i64} {
  func.func @_conv_mm_res_kernel(%arg0: i32, %arg1: memref<32x864xbf16, #tpu.memory_space<vmem>>, %arg2: memref<864x128xbf16, #tpu.memory_space<vmem>>, %arg3: memref<32x1xf32, #tpu.memory_space<vmem>>, %arg4: memref<32x128xf32, #tpu.memory_space<vmem>>, %arg5: memref<32x128xf32, #tpu.memory_space<vmem>>) attributes {dimension_semantics = [#tpu.dimension_semantics<parallel>], iteration_bounds = array<i64: 1>, scalar_prefetch = 0 : i64, scratch_operands = 0 : i64, tpu.core_type = #tpu.core_type<tc>, window_params = [{pipeline_mode = #tpu.pipeline_mode<synchronous>, transform_indices = @transform_0, window_bounds = array<i64: 32, 864>}, {transform_indices = @transform_1, window_bounds = array<i64: 864, 128>}, {pipeline_mode = #tpu.pipeline_mode<synchronous>, transform_indices = @transform_2, window_bounds = array<i64: 32, 1>}, {transform_indices = @transform_3, window_bounds = array<i64: 32, 128>}, {transform_indices = @transform_4, window_bounds = array<i64: 32, 128>}]} {
    %c0 = arith.constant 0 : index
    %c0_0 = arith.constant 0 : index
    %0 = vector.load %arg1[%c0, %c0_0] : memref<32x864xbf16, #tpu.memory_space<vmem>>, vector<32x864xbf16>
    %c0_1 = arith.constant 0 : index
    %c0_2 = arith.constant 0 : index
    %1 = vector.load %arg2[%c0_1, %c0_2] : memref<864x128xbf16, #tpu.memory_space<vmem>>, vector<864x128xbf16>
    %cst = arith.constant dense<0.000000e+00> : vector<32x128xf32>
    %2 = tpu.matmul %0, %1, %cst {dimension_numbers = #tpu.dot_dimension_numbers<[1], [0], [0], [1], [0, 0, 1, 1], [], []>} : vector<32x864xbf16>, vector<864x128xbf16>, vector<32x128xf32> -> vector<32x128xf32>
    %c0_3 = arith.constant 0 : index
    %c0_4 = arith.constant 0 : index
    %3 = vector.load %arg3[%c0_3, %c0_4] : memref<32x1xf32, #tpu.memory_space<vmem>>, vector<32x1xf32>
    %4 = vector.broadcast %3 : vector<32x1xf32> to vector<32x128xf32>
    %5 = arith.addf %2, %4 : vector<32x128xf32>
    %c0_5 = arith.constant 0 : index
    %c0_6 = arith.constant 0 : index
    %6 = vector.load %arg4[%c0_5, %c0_6] : memref<32x128xf32, #tpu.memory_space<vmem>>, vector<32x128xf32>
    %7 = arith.addf %5, %6 : vector<32x128xf32>
    %cst_7 = arith.constant 0.000000e+00 : f32
    %8 = vector.broadcast %cst_7 : f32 to vector<32x128xf32>
    %9 = arith.maximumf %7, %8 : vector<32x128xf32>
    %c0_8 = arith.constant 0 : index
    %c0_9 = arith.constant 0 : index
    %10 = vector.load %arg5[%c0_8, %c0_9] : memref<32x128xf32, #tpu.memory_space<vmem>>, vector<32x128xf32>
    tpu.vector_store %arg5[%c0_8, %c0_9], %9 {strides = array<i32>} : memref<32x128xf32, #tpu.memory_space<vmem>>, vector<32x128xf32>,
    return
  }
  func.func @transform_0(%arg0: i32) -> (i32, i32) {
    %c0_i32 = arith.constant 0 : i32
    %c0_i32_0 = arith.constant 0 : i32
    %c0_i32_1 = arith.constant 0 : i32
    return %c0_i32, %c0_i32_0 : i32, i32
  }
  func.func @transform_1(%arg0: i32) -> (i32, i32) {
    %c0_i32 = arith.constant 0 : i32
    %c0_i32_0 = arith.constant 0 : i32
    return %c0_i32, %arg0 : i32, i32
  }
  func.func @transform_2(%arg0: i32) -> (i32, i32) {
    %c0_i32 = arith.constant 0 : i32
    %c0_i32_0 = arith.constant 0 : i32
    %c0_i32_1 = arith.constant 0 : i32
    return %c0_i32, %c0_i32_0 : i32, i32
  }
  func.func @transform_3(%arg0: i32) -> (i32, i32) {
    %c0_i32 = arith.constant 0 : i32
    %c0_i32_0 = arith.constant 0 : i32
    return %c0_i32, %arg0 : i32, i32
  }
  func.func @transform_4(%arg0: i32) -> (i32, i32) {
    %c0_i32 = arith.constant 0 : i32
    %c0_i32_0 = arith.constant 0 : i32
    return %c0_i32, %arg0 : i32, i32
  }
}

module attributes {stable_mosaic.version = 11 : i64} {
  func.func @_conv_mm_kernel(%arg0: i32, %arg1: memref<64x864xbf16, #tpu.memory_space<vmem>>, %arg2: memref<864x128xbf16, #tpu.memory_space<vmem>>, %arg3: memref<64x1xf32, #tpu.memory_space<vmem>>, %arg4: memref<64x128xf32, #tpu.memory_space<vmem>>) attributes {dimension_semantics = [#tpu.dimension_semantics<parallel>], iteration_bounds = array<i64: 1>, scalar_prefetch = 0 : i64, scratch_operands = 0 : i64, tpu.core_type = #tpu.core_type<tc>, window_params = [{pipeline_mode = #tpu.pipeline_mode<synchronous>, transform_indices = @transform_0, window_bounds = array<i64: 64, 864>}, {transform_indices = @transform_1, window_bounds = array<i64: 864, 128>}, {pipeline_mode = #tpu.pipeline_mode<synchronous>, transform_indices = @transform_2, window_bounds = array<i64: 64, 1>}, {transform_indices = @transform_3, window_bounds = array<i64: 64, 128>}]} {
    %c0 = arith.constant 0 : index
    %c0_0 = arith.constant 0 : index
    %0 = vector.load %arg1[%c0, %c0_0] : memref<64x864xbf16, #tpu.memory_space<vmem>>, vector<64x864xbf16>
    %c0_1 = arith.constant 0 : index
    %c0_2 = arith.constant 0 : index
    %1 = vector.load %arg2[%c0_1, %c0_2] : memref<864x128xbf16, #tpu.memory_space<vmem>>, vector<864x128xbf16>
    %cst = arith.constant dense<0.000000e+00> : vector<64x128xf32>
    %2 = tpu.matmul %0, %1, %cst {dimension_numbers = #tpu.dot_dimension_numbers<[1], [0], [0], [1], [0, 0, 1, 1], [], []>} : vector<64x864xbf16>, vector<864x128xbf16>, vector<64x128xf32> -> vector<64x128xf32>
    %c0_3 = arith.constant 0 : index
    %c0_4 = arith.constant 0 : index
    %3 = vector.load %arg3[%c0_3, %c0_4] : memref<64x1xf32, #tpu.memory_space<vmem>>, vector<64x1xf32>
    %4 = vector.broadcast %3 : vector<64x1xf32> to vector<64x128xf32>
    %5 = arith.addf %2, %4 : vector<64x128xf32>
    %cst_5 = arith.constant 0.000000e+00 : f32
    %6 = vector.broadcast %cst_5 : f32 to vector<64x128xf32>
    %7 = arith.maximumf %5, %6 : vector<64x128xf32>
    %c0_6 = arith.constant 0 : index
    %c0_7 = arith.constant 0 : index
    %8 = vector.load %arg4[%c0_6, %c0_7] : memref<64x128xf32, #tpu.memory_space<vmem>>, vector<64x128xf32>
    tpu.vector_store %arg4[%c0_6, %c0_7], %7 {strides = array<i32>} : memref<64x128xf32, #tpu.memory_space<vmem>>, vector<64x128xf32>,
    return
  }
  func.func @transform_0(%arg0: i32) -> (i32, i32) {
    %c0_i32 = arith.constant 0 : i32
    %c0_i32_0 = arith.constant 0 : i32
    %c0_i32_1 = arith.constant 0 : i32
    return %c0_i32, %c0_i32_0 : i32, i32
  }
  func.func @transform_1(%arg0: i32) -> (i32, i32) {
    %c0_i32 = arith.constant 0 : i32
    %c0_i32_0 = arith.constant 0 : i32
    return %c0_i32, %arg0 : i32, i32
  }
  func.func @transform_2(%arg0: i32) -> (i32, i32) {
    %c0_i32 = arith.constant 0 : i32
    %c0_i32_0 = arith.constant 0 : i32
    %c0_i32_1 = arith.constant 0 : i32
    return %c0_i32, %c0_i32_0 : i32, i32
  }
  func.func @transform_3(%arg0: i32) -> (i32, i32) {
    %c0_i32 = arith.constant 0 : i32
    %c0_i32_0 = arith.constant 0 : i32
    return %c0_i32, %arg0 : i32, i32
  }
}

module attributes {stable_mosaic.version = 11 : i64} {
  func.func @_conv_mm_kernel(%arg0: i32, %arg1: memref<64x32xbf16, #tpu.memory_space<vmem>>, %arg2: memref<32x128xbf16, #tpu.memory_space<vmem>>, %arg3: memref<64x1xf32, #tpu.memory_space<vmem>>, %arg4: memref<64x128xf32, #tpu.memory_space<vmem>>) attributes {dimension_semantics = [#tpu.dimension_semantics<parallel>], iteration_bounds = array<i64: 1>, scalar_prefetch = 0 : i64, scratch_operands = 0 : i64, tpu.core_type = #tpu.core_type<tc>, window_params = [{pipeline_mode = #tpu.pipeline_mode<synchronous>, transform_indices = @transform_0, window_bounds = array<i64: 64, 32>}, {transform_indices = @transform_1, window_bounds = array<i64: 32, 128>}, {pipeline_mode = #tpu.pipeline_mode<synchronous>, transform_indices = @transform_2, window_bounds = array<i64: 64, 1>}, {transform_indices = @transform_3, window_bounds = array<i64: 64, 128>}]} {
    %c0 = arith.constant 0 : index
    %c0_0 = arith.constant 0 : index
    %0 = vector.load %arg1[%c0, %c0_0] : memref<64x32xbf16, #tpu.memory_space<vmem>>, vector<64x32xbf16>
    %c0_1 = arith.constant 0 : index
    %c0_2 = arith.constant 0 : index
    %1 = vector.load %arg2[%c0_1, %c0_2] : memref<32x128xbf16, #tpu.memory_space<vmem>>, vector<32x128xbf16>
    %cst = arith.constant dense<0.000000e+00> : vector<64x128xf32>
    %2 = tpu.matmul %0, %1, %cst {dimension_numbers = #tpu.dot_dimension_numbers<[1], [0], [0], [1], [0, 0, 1, 1], [], []>} : vector<64x32xbf16>, vector<32x128xbf16>, vector<64x128xf32> -> vector<64x128xf32>
    %c0_3 = arith.constant 0 : index
    %c0_4 = arith.constant 0 : index
    %3 = vector.load %arg3[%c0_3, %c0_4] : memref<64x1xf32, #tpu.memory_space<vmem>>, vector<64x1xf32>
    %4 = vector.broadcast %3 : vector<64x1xf32> to vector<64x128xf32>
    %5 = arith.addf %2, %4 : vector<64x128xf32>
    %c0_5 = arith.constant 0 : index
    %c0_6 = arith.constant 0 : index
    %6 = vector.load %arg4[%c0_5, %c0_6] : memref<64x128xf32, #tpu.memory_space<vmem>>, vector<64x128xf32>
    tpu.vector_store %arg4[%c0_5, %c0_6], %5 {strides = array<i32>} : memref<64x128xf32, #tpu.memory_space<vmem>>, vector<64x128xf32>,
    return
  }
  func.func @transform_0(%arg0: i32) -> (i32, i32) {
    %c0_i32 = arith.constant 0 : i32
    %c0_i32_0 = arith.constant 0 : i32
    %c0_i32_1 = arith.constant 0 : i32
    return %c0_i32, %c0_i32_0 : i32, i32
  }
  func.func @transform_1(%arg0: i32) -> (i32, i32) {
    %c0_i32 = arith.constant 0 : i32
    %c0_i32_0 = arith.constant 0 : i32
    return %c0_i32, %arg0 : i32, i32
  }
  func.func @transform_2(%arg0: i32) -> (i32, i32) {
    %c0_i32 = arith.constant 0 : i32
    %c0_i32_0 = arith.constant 0 : i32
    %c0_i32_1 = arith.constant 0 : i32
    return %c0_i32, %c0_i32_0 : i32, i32
  }
  func.func @transform_3(%arg0: i32) -> (i32, i32) {
    %c0_i32 = arith.constant 0 : i32
    %c0_i32_0 = arith.constant 0 : i32
    return %c0_i32, %arg0 : i32, i32
  }
}

module attributes {stable_mosaic.version = 11 : i64} {
  func.func @_conv_mm_res_kernel(%arg0: i32, %arg1: memref<64x1728xbf16, #tpu.memory_space<vmem>>, %arg2: memref<1728x128xbf16, #tpu.memory_space<vmem>>, %arg3: memref<64x1xf32, #tpu.memory_space<vmem>>, %arg4: memref<64x128xf32, #tpu.memory_space<vmem>>, %arg5: memref<64x128xf32, #tpu.memory_space<vmem>>) attributes {dimension_semantics = [#tpu.dimension_semantics<parallel>], iteration_bounds = array<i64: 1>, scalar_prefetch = 0 : i64, scratch_operands = 0 : i64, tpu.core_type = #tpu.core_type<tc>, window_params = [{pipeline_mode = #tpu.pipeline_mode<synchronous>, transform_indices = @transform_0, window_bounds = array<i64: 64, 1728>}, {transform_indices = @transform_1, window_bounds = array<i64: 1728, 128>}, {pipeline_mode = #tpu.pipeline_mode<synchronous>, transform_indices = @transform_2, window_bounds = array<i64: 64, 1>}, {transform_indices = @transform_3, window_bounds = array<i64: 64, 128>}, {transform_indices = @transform_4, window_bounds = array<i64: 64, 128>}]} {
    %c0 = arith.constant 0 : index
    %c0_0 = arith.constant 0 : index
    %0 = vector.load %arg1[%c0, %c0_0] : memref<64x1728xbf16, #tpu.memory_space<vmem>>, vector<64x1728xbf16>
    %c0_1 = arith.constant 0 : index
    %c0_2 = arith.constant 0 : index
    %1 = vector.load %arg2[%c0_1, %c0_2] : memref<1728x128xbf16, #tpu.memory_space<vmem>>, vector<1728x128xbf16>
    %cst = arith.constant dense<0.000000e+00> : vector<64x128xf32>
    %2 = tpu.matmul %0, %1, %cst {dimension_numbers = #tpu.dot_dimension_numbers<[1], [0], [0], [1], [0, 0, 1, 1], [], []>} : vector<64x1728xbf16>, vector<1728x128xbf16>, vector<64x128xf32> -> vector<64x128xf32>
    %c0_3 = arith.constant 0 : index
    %c0_4 = arith.constant 0 : index
    %3 = vector.load %arg3[%c0_3, %c0_4] : memref<64x1xf32, #tpu.memory_space<vmem>>, vector<64x1xf32>
    %4 = vector.broadcast %3 : vector<64x1xf32> to vector<64x128xf32>
    %5 = arith.addf %2, %4 : vector<64x128xf32>
    %c0_5 = arith.constant 0 : index
    %c0_6 = arith.constant 0 : index
    %6 = vector.load %arg4[%c0_5, %c0_6] : memref<64x128xf32, #tpu.memory_space<vmem>>, vector<64x128xf32>
    %7 = arith.addf %5, %6 : vector<64x128xf32>
    %cst_7 = arith.constant 0.000000e+00 : f32
    %8 = vector.broadcast %cst_7 : f32 to vector<64x128xf32>
    %9 = arith.maximumf %7, %8 : vector<64x128xf32>
    %c0_8 = arith.constant 0 : index
    %c0_9 = arith.constant 0 : index
    %10 = vector.load %arg5[%c0_8, %c0_9] : memref<64x128xf32, #tpu.memory_space<vmem>>, vector<64x128xf32>
    tpu.vector_store %arg5[%c0_8, %c0_9], %9 {strides = array<i32>} : memref<64x128xf32, #tpu.memory_space<vmem>>, vector<64x128xf32>,
    return
  }
  func.func @transform_0(%arg0: i32) -> (i32, i32) {
    %c0_i32 = arith.constant 0 : i32
    %c0_i32_0 = arith.constant 0 : i32
    %c0_i32_1 = arith.constant 0 : i32
    return %c0_i32, %c0_i32_0 : i32, i32
  }
  func.func @transform_1(%arg0: i32) -> (i32, i32) {
    %c0_i32 = arith.constant 0 : i32
    %c0_i32_0 = arith.constant 0 : i32
    return %c0_i32, %arg0 : i32, i32
  }
  func.func @transform_2(%arg0: i32) -> (i32, i32) {
    %c0_i32 = arith.constant 0 : i32
    %c0_i32_0 = arith.constant 0 : i32
    %c0_i32_1 = arith.constant 0 : i32
    return %c0_i32, %c0_i32_0 : i32, i32
  }
  func.func @transform_3(%arg0: i32) -> (i32, i32) {
    %c0_i32 = arith.constant 0 : i32
    %c0_i32_0 = arith.constant 0 : i32
    return %c0_i32, %arg0 : i32, i32
  }
  func.func @transform_4(%arg0: i32) -> (i32, i32) {
    %c0_i32 = arith.constant 0 : i32
    %c0_i32_0 = arith.constant 0 : i32
    return %c0_i32, %arg0 : i32, i32
  }
}

module attributes {stable_mosaic.version = 11 : i64} {
  func.func @_head_kernel(%arg0: i32, %arg1: memref<2x1x64xf32, #tpu.memory_space<vmem>>, %arg2: memref<64x64xf32, #tpu.memory_space<vmem>>, %arg3: memref<1x64xf32, #tpu.memory_space<vmem>>, %arg4: memref<64x32xf32, #tpu.memory_space<vmem>>, %arg5: memref<1x32xf32, #tpu.memory_space<vmem>>, %arg6: memref<32x16xf32, #tpu.memory_space<vmem>>, %arg7: memref<1x16xf32, #tpu.memory_space<vmem>>, %arg8: memref<16x8xf32, #tpu.memory_space<vmem>>, %arg9: memref<1x8xf32, #tpu.memory_space<vmem>>, %arg10: memref<1x8xf32, #tpu.memory_space<vmem>>, %arg11: memref<1x1xf32, #tpu.memory_space<vmem>>, %arg12: memref<2x1xf32, #tpu.memory_space<vmem>>) attributes {dimension_semantics = [#tpu.dimension_semantics<arbitrary>], iteration_bounds = array<i64: 1>, scalar_prefetch = 0 : i64, scratch_operands = 0 : i64, tpu.core_type = #tpu.core_type<tc>, window_params = [{pipeline_mode = #tpu.pipeline_mode<synchronous>, transform_indices = @transform_0, window_bounds = array<i64: 2, 1, 64>}, {pipeline_mode = #tpu.pipeline_mode<synchronous>, transform_indices = @transform_1, window_bounds = array<i64: 64, 64>}, {pipeline_mode = #tpu.pipeline_mode<synchronous>, transform_indices = @transform_2, window_bounds = array<i64: 1, 64>}, {pipeline_mode = #tpu.pipeline_mode<synchronous>, transform_indices = @transform_3, window_bounds = array<i64: 64, 32>}, {pipeline_mode = #tpu.pipeline_mode<synchronous>, transform_indices = @transform_4, window_bounds = array<i64: 1, 32>}, {pipeline_mode = #tpu.pipeline_mode<synchronous>, transform_indices = @transform_5, window_bounds = array<i64: 32, 16>}, {pipeline_mode = #tpu.pipeline_mode<synchronous>, transform_indices = @transform_6, window_bounds = array<i64: 1, 16>}, {pipeline_mode = #tpu.pipeline_mode<synchronous>, transform_indices = @transform_7, window_bounds = array<i64: 16, 8>}, {pipeline_mode = #tpu.pipeline_mode<synchronous>, transform_indices = @transform_8, window_bounds = array<i64: 1, 8>}, {pipeline_mode = #tpu.pipeline_mode<synchronous>, transform_indices = @transform_9, window_bounds = array<i64: 1, 8>}, {pipeline_mode = #tpu.pipeline_mode<synchronous>, transform_indices = @transform_10, window_bounds = array<i64: 1, 1>}, {pipeline_mode = #tpu.pipeline_mode<synchronous>, transform_indices = @transform_11, window_bounds = array<i64: 2, 1>}]} {
    %c0 = arith.constant 0 : index
    %c0_0 = arith.constant 0 : index
    %c0_1 = arith.constant 0 : index
    %0 = vector.load %arg1[%c0, %c0_0, %c0_1] : memref<2x1x64xf32, #tpu.memory_space<vmem>>, vector<2x1x64xf32>
    %cst = arith.constant dense<0.000000e+00> : vector<2x64xf32>
    %1 = vector.multi_reduction <add>, %0, %cst [1] : vector<2x1x64xf32> to vector<2x64xf32>
    %cst_2 = arith.constant 1.000000e+00 : f32
    %2 = vector.broadcast %cst_2 : f32 to vector<2x64xf32>
    %3 = arith.divf %1, %2 : vector<2x64xf32>
    %c0_3 = arith.constant 0 : index
    %c0_4 = arith.constant 0 : index
    %4 = vector.load %arg2[%c0_3, %c0_4] : memref<64x64xf32, #tpu.memory_space<vmem>>, vector<64x64xf32>
    %cst_5 = arith.constant dense<0.000000e+00> : vector<2x64xf32>
    %5 = tpu.matmul %3, %4, %cst_5 {dimension_numbers = #tpu.dot_dimension_numbers<[1], [0], [0], [1], [0, 0, 1, 1], [], []>} : vector<2x64xf32>, vector<64x64xf32>, vector<2x64xf32> -> vector<2x64xf32>
    %c0_6 = arith.constant 0 : index
    %c0_7 = arith.constant 0 : index
    %6 = vector.load %arg3[%c0_6, %c0_7] : memref<1x64xf32, #tpu.memory_space<vmem>>, vector<1x64xf32>
    %7 = vector.broadcast %6 : vector<1x64xf32> to vector<2x64xf32>
    %8 = arith.addf %5, %7 : vector<2x64xf32>
    %c0_8 = arith.constant 0 : index
    %c0_9 = arith.constant 0 : index
    %9 = vector.load %arg4[%c0_8, %c0_9] : memref<64x32xf32, #tpu.memory_space<vmem>>, vector<64x32xf32>
    %cst_10 = arith.constant dense<0.000000e+00> : vector<2x32xf32>
    %10 = tpu.matmul %8, %9, %cst_10 {dimension_numbers = #tpu.dot_dimension_numbers<[1], [0], [0], [1], [0, 0, 1, 1], [], []>} : vector<2x64xf32>, vector<64x32xf32>, vector<2x32xf32> -> vector<2x32xf32>
    %c0_11 = arith.constant 0 : index
    %c0_12 = arith.constant 0 : index
    %11 = vector.load %arg5[%c0_11, %c0_12] : memref<1x32xf32, #tpu.memory_space<vmem>>, vector<1x32xf32>
    %12 = vector.broadcast %11 : vector<1x32xf32> to vector<2x32xf32>
    %13 = arith.addf %10, %12 : vector<2x32xf32>
    %cst_13 = arith.constant 0.000000e+00 : f32
    %14 = vector.broadcast %cst_13 : f32 to vector<2x32xf32>
    %15 = arith.maximumf %13, %14 : vector<2x32xf32>
    %c0_14 = arith.constant 0 : index
    %c0_15 = arith.constant 0 : index
    %16 = vector.load %arg6[%c0_14, %c0_15] : memref<32x16xf32, #tpu.memory_space<vmem>>, vector<32x16xf32>
    %cst_16 = arith.constant dense<0.000000e+00> : vector<2x16xf32>
    %17 = tpu.matmul %15, %16, %cst_16 {dimension_numbers = #tpu.dot_dimension_numbers<[1], [0], [0], [1], [0, 0, 1, 1], [], []>} : vector<2x32xf32>, vector<32x16xf32>, vector<2x16xf32> -> vector<2x16xf32>
    %c0_17 = arith.constant 0 : index
    %c0_18 = arith.constant 0 : index
    %18 = vector.load %arg7[%c0_17, %c0_18] : memref<1x16xf32, #tpu.memory_space<vmem>>, vector<1x16xf32>
    %19 = vector.broadcast %18 : vector<1x16xf32> to vector<2x16xf32>
    %20 = arith.addf %17, %19 : vector<2x16xf32>
    %cst_19 = arith.constant 0.000000e+00 : f32
    %21 = vector.broadcast %cst_19 : f32 to vector<2x16xf32>
    %22 = arith.maximumf %20, %21 : vector<2x16xf32>
    %c0_20 = arith.constant 0 : index
    %c0_21 = arith.constant 0 : index
    %23 = vector.load %arg8[%c0_20, %c0_21] : memref<16x8xf32, #tpu.memory_space<vmem>>, vector<16x8xf32>
    %cst_22 = arith.constant dense<0.000000e+00> : vector<2x8xf32>
    %24 = tpu.matmul %22, %23, %cst_22 {dimension_numbers = #tpu.dot_dimension_numbers<[1], [0], [0], [1], [0, 0, 1, 1], [], []>} : vector<2x16xf32>, vector<16x8xf32>, vector<2x8xf32> -> vector<2x8xf32>
    %c0_23 = arith.constant 0 : index
    %c0_24 = arith.constant 0 : index
    %25 = vector.load %arg9[%c0_23, %c0_24] : memref<1x8xf32, #tpu.memory_space<vmem>>, vector<1x8xf32>
    %26 = vector.broadcast %25 : vector<1x8xf32> to vector<2x8xf32>
    %27 = arith.addf %24, %26 : vector<2x8xf32>
    %cst_25 = arith.constant 0.000000e+00 : f32
    %28 = vector.broadcast %cst_25 : f32 to vector<2x8xf32>
    %29 = arith.maximumf %27, %28 : vector<2x8xf32>
    %c0_26 = arith.constant 0 : index
    %c0_27 = arith.constant 0 : index
    %30 = vector.load %arg10[%c0_26, %c0_27] : memref<1x8xf32, #tpu.memory_space<vmem>>, vector<1x8xf32>
    %31 = vector.broadcast %30 : vector<1x8xf32> to vector<2x8xf32>
    %32 = arith.mulf %29, %31 : vector<2x8xf32>
    %cst_28 = arith.constant dense<0.000000e+00> : vector<2xf32>
    %33 = vector.multi_reduction <add>, %32, %cst_28 [1] : vector<2x8xf32> to vector<2xf32>
    %34 = vector.shape_cast %33 : vector<2xf32> to vector<2x1xf32>
    %c0_29 = arith.constant 0 : index
    %c0_30 = arith.constant 0 : index
    %35 = vector.load %arg11[%c0_29, %c0_30] : memref<1x1xf32, #tpu.memory_space<vmem>>, vector<1x1xf32>
    %36 = vector.broadcast %35 : vector<1x1xf32> to vector<2x1xf32>
    %37 = arith.addf %34, %36 : vector<2x1xf32>
    %cst_31 = arith.constant 0.000000e+00 : f32
    %38 = vector.broadcast %cst_31 : f32 to vector<2x1xf32>
    %39 = arith.maximumf %37, %38 : vector<2x1xf32>
    %cst_32 = arith.constant 0.000000e+00 : f32
    %40 = vector.broadcast %cst_32 : f32 to vector<2x1xf32>
    %41 = arith.subf %40, %39 : vector<2x1xf32>
    %42 = math.exp %41 : vector<2x1xf32>
    %cst_33 = arith.constant 1.000000e+00 : f32
    %43 = vector.broadcast %cst_33 : f32 to vector<2x1xf32>
    %44 = arith.addf %43, %42 : vector<2x1xf32>
    %cst_34 = arith.constant 1.000000e+00 : f32
    %45 = vector.broadcast %cst_34 : f32 to vector<2x1xf32>
    %46 = arith.divf %45, %44 : vector<2x1xf32>
    %c0_35 = arith.constant 0 : index
    %c0_36 = arith.constant 0 : index
    %47 = vector.load %arg12[%c0_35, %c0_36] : memref<2x1xf32, #tpu.memory_space<vmem>>, vector<2x1xf32>
    tpu.vector_store %arg12[%c0_35, %c0_36], %46 {strides = array<i32>} : memref<2x1xf32, #tpu.memory_space<vmem>>, vector<2x1xf32>,
    return
  }
  func.func @transform_0(%arg0: i32) -> (i32, i32, i32) {
    %c0_i32 = arith.constant 0 : i32
    %c0_i32_0 = arith.constant 0 : i32
    %c0_i32_1 = arith.constant 0 : i32
    %c0_i32_2 = arith.constant 0 : i32
    return %c0_i32, %c0_i32_0, %c0_i32_1 : i32, i32, i32
  }
  func.func @transform_1(%arg0: i32) -> (i32, i32) {
    %c0_i32 = arith.constant 0 : i32
    %c0_i32_0 = arith.constant 0 : i32
    %c0_i32_1 = arith.constant 0 : i32
    return %c0_i32, %c0_i32_0 : i32, i32
  }
  func.func @transform_2(%arg0: i32) -> (i32, i32) {
    %c0_i32 = arith.constant 0 : i32
    %c0_i32_0 = arith.constant 0 : i32
    %c0_i32_1 = arith.constant 0 : i32
    return %c0_i32, %c0_i32_0 : i32, i32
  }
  func.func @transform_3(%arg0: i32) -> (i32, i32) {
    %c0_i32 = arith.constant 0 : i32
    %c0_i32_0 = arith.constant 0 : i32
    %c0_i32_1 = arith.constant 0 : i32
    return %c0_i32, %c0_i32_0 : i32, i32
  }
  func.func @transform_4(%arg0: i32) -> (i32, i32) {
    %c0_i32 = arith.constant 0 : i32
    %c0_i32_0 = arith.constant 0 : i32
    %c0_i32_1 = arith.constant 0 : i32
    return %c0_i32, %c0_i32_0 : i32, i32
  }
  func.func @transform_5(%arg0: i32) -> (i32, i32) {
    %c0_i32 = arith.constant 0 : i32
    %c0_i32_0 = arith.constant 0 : i32
    %c0_i32_1 = arith.constant 0 : i32
    return %c0_i32, %c0_i32_0 : i32, i32
  }
  func.func @transform_6(%arg0: i32) -> (i32, i32) {
    %c0_i32 = arith.constant 0 : i32
    %c0_i32_0 = arith.constant 0 : i32
    %c0_i32_1 = arith.constant 0 : i32
    return %c0_i32, %c0_i32_0 : i32, i32
  }
  func.func @transform_7(%arg0: i32) -> (i32, i32) {
    %c0_i32 = arith.constant 0 : i32
    %c0_i32_0 = arith.constant 0 : i32
    %c0_i32_1 = arith.constant 0 : i32
    return %c0_i32, %c0_i32_0 : i32, i32
  }
  func.func @transform_8(%arg0: i32) -> (i32, i32) {
    %c0_i32 = arith.constant 0 : i32
    %c0_i32_0 = arith.constant 0 : i32
    %c0_i32_1 = arith.constant 0 : i32
    return %c0_i32, %c0_i32_0 : i32, i32
  }
  func.func @transform_9(%arg0: i32) -> (i32, i32) {
    %c0_i32 = arith.constant 0 : i32
    %c0_i32_0 = arith.constant 0 : i32
    %c0_i32_1 = arith.constant 0 : i32
    return %c0_i32, %c0_i32_0 : i32, i32
  }
  func.func @transform_10(%arg0: i32) -> (i32, i32) {
    %c0_i32 = arith.constant 0 : i32
    %c0_i32_0 = arith.constant 0 : i32
    %c0_i32_1 = arith.constant 0 : i32
    return %c0_i32, %c0_i32_0 : i32, i32
  }
  func.func @transform_11(%arg0: i32) -> (i32, i32) {
    %c0_i32 = arith.constant 0 : i32
    %c0_i32_0 = arith.constant 0 : i32
    %c0_i32_1 = arith.constant 0 : i32
    return %c0_i32, %c0_i32_0 : i32, i32
  }
}

</mosaic_0001>

<bundles_post_ra>
// kernel: resnet_forward.14
= control target key start
LH: loop header
LB: loop body
LE: loop exit
PB: predicated region body
PF: predicated region fallthrough
CT: control target
= control target key end

     0   :  { %s4227_s12 = smov 0   ;;  %s4229_s13 = smov 0   ;;  %s5450_s0 = inlined_call_operand.vmem [shape: bf16[8,1029], index: 0, kind: input, shape index: {}]   ;;  %s5451_s1 = inlined_call_operand.vmem [shape: bf16[1029,1024], index: 1, kind: input, shape index: {}]   ;;  %s5452_s2 = inlined_call_operand.vmem [shape: f32[8,1], index: 2, kind: input, shape index: {}]   ;;  %s5453_s3 = inlined_call_operand.vmem [shape: f32[8,1024], index: 3, kind: output, shape index: {}]  }
   0x1   :  { %s4231_s14 = smov 0  }
   0x2 LB: > { %s2856_s15 = sadd.s32 4294967295, %s4203_s14   ;;  %s4244_s16 = sadd.s32 1, %s4203_s14   ;;  %s4203_s14 = sphi %s4231_s14, %s5456_s14   ;;  %s4199_s13 = sphi %s4229_s13, %s5455_s13   ;;  %s4195_s12 = sphi %s4227_s12, %s5454_s12  }
   0x3   : > { %s38_s17 = ssub.s32 %s4203_s14, %s4244_s16  ;;  %s41_s18 = sadd.s32 1, %s4199_s13 }
   0x4   : > { %p39_p0 = scmp.eq.s32.totalorder %s38_s17, 0  ;;  %p48_p1 = scmp.ne.s32.totalorder %s4199_s13, %s4195_s12 }
   0x5   : > { %p49_p2 = scmp.eq.s32.totalorder %s4203_s14, 0  ;;  %p2859_p4 = scmp.ge.s32.totalorder %s4203_s14, 2 }
   0x6   : > { %s4253_s19 = scalar_select %p39_p0, %s4199_s13, %s41_s18  }
   0x7   : > { %p50_p3 = por %p49_p2, %p48_p1  ;;  %127 = sbr.rel (%p2859_p4) target bundleno = 274 (0x112), region = 24 }
   0xc   : > { %130 = sbr.rel (!%p50_p3) target bundleno = 274 (0x112), region = 28  ;;  %s132_s20 = sand.u32 (%p50_p3), 1, %s4199_s13  }
   0xd   : > { %s3895_s21 = sshll.u32 (%p50_p3), %s4203_s14, 4  ;;  %s4152_s22 = smul.u32 (%p50_p3), 2064, %s132_s20 }
   0xe   : > { %s4261_s25 = scalar_lea.vmem (%p50_p3), %s5451_s1, %s3895_s21 }
   0xf   : > { %v150_v0 = vld [vmem:[%s4261_s25] sm:$0xff] (%p50_p3)  ;;  %v152_v1 = vld [vmem:[%s4261_s25 + $0x8] sm:$0xff] (%p50_p3)  ;;  %s4266_s26 = scalar_lea.vmem (%p50_p3), [#allocation2], %s4152_s22 }
  0x10   : > { %v154_v2 = vld [vmem:[%s4261_s25 + $0x20] sm:$0xff] (%p50_p3)  ;;  %151 = vst [vmem:[%s4266_s26] sm:$0xff] (%p50_p3), %v150_v0  ;;  %v156_v3 = vld [vmem:[%s4261_s25 + $0x28] sm:$0xff] (%p50_p3) }
  0x11   : > { %153 = vst [vmem:[%s4266_s26 + $0x8] sm:$0xff] %v152_v1  ;;  %v158_v4 = vld [vmem:[%s4261_s25 + $0x40] sm:$0xff]  ;;  %v160_v5 = vld [vmem:[%s4261_s25 + $0x48] sm:$0xff] }
  0x12   : > { %155 = vst [vmem:[%s4266_s26 + $0x10] sm:$0xff] %v154_v2  ;;  %v162_v6 = vld [vmem:[%s4261_s25 + $0x60] sm:$0xff]  ;;  %v164_v7 = vld [vmem:[%s4261_s25 + $0x68] sm:$0xff] }
  0x13   : > { %157 = vst [vmem:[%s4266_s26 + $0x18] sm:$0xff] %v156_v3  ;;  %v166_v8 = vld [vmem:[%s4261_s25 + $0x80] sm:$0xff]  ;;  %v168_v9 = vld [vmem:[%s4261_s25 + $0x88] sm:$0xff] }
  0x14   : > { %159 = vst [vmem:[%s4266_s26 + $0x20] sm:$0xff] %v158_v4  ;;  %v170_v10 = vld [vmem:[%s4261_s25 + $0xa0] sm:$0xff]  ;;  %v172_v11 = vld [vmem:[%s4261_s25 + $0xa8] sm:$0xff] }
  0x15   : > { %161 = vst [vmem:[%s4266_s26 + $0x28] sm:$0xff] %v160_v5  ;;  %v174_v12 = vld [vmem:[%s4261_s25 + $0xc0] sm:$0xff]  ;;  %v176_v13 = vld [vmem:[%s4261_s25 + $0xc8] sm:$0xff] }
  0x16   : > { %163 = vst [vmem:[%s4266_s26 + $0x30] sm:$0xff] %v162_v6  ;;  %v178_v14 = vld [vmem:[%s4261_s25 + $0xe0] sm:$0xff]  ;;  %v180_v15 = vld [vmem:[%s4261_s25 + $0xe8] sm:$0xff] }
  0x17   : > { %165 = vst [vmem:[%s4266_s26 + $0x38] sm:$0xff] %v164_v7  ;;  %v182_v16 = vld [vmem:[%s4261_s25 + $0x100] sm:$0xff]  ;;  %v184_v17 = vld [vmem:[%s4261_s25 + $0x108] sm:$0xff] }
  0x18   : > { %167 = vst [vmem:[%s4266_s26 + $0x40] sm:$0xff] %v166_v8  ;;  %v186_v18 = vld [vmem:[%s4261_s25 + $0x120] sm:$0xff]  ;;  %v188_v19 = vld [vmem:[%s4261_s25 + $0x128] sm:$0xff] }
  0x19   : > { %169 = vst [vmem:[%s4266_s26 + $0x48] sm:$0xff] %v168_v9  ;;  %v190_v20 = vld [vmem:[%s4261_s25 + $0x140] sm:$0xff]  ;;  %v192_v21 = vld [vmem:[%s4261_s25 + $0x148] sm:$0xff] }
  0x1a   : > { %171 = vst [vmem:[%s4266_s26 + $0x50] sm:$0xff] %v170_v10  ;;  %v194_v22 = vld [vmem:[%s4261_s25 + $0x160] sm:$0xff]  ;;  %v196_v23 = vld [vmem:[%s4261_s25 + $0x168] sm:$0xff] }
  0x1b   : > { %173 = vst [vmem:[%s4266_s26 + $0x58] sm:$0xff] %v172_v11  ;;  %v198_v24 = vld [vmem:[%s4261_s25 + $0x180] sm:$0xff]  ;;  %v200_v25 = vld [vmem:[%s4261_s25 + $0x188] sm:$0xff] }
  0x1c   : > { %175 = vst [vmem:[%s4266_s26 + $0x60] sm:$0xff] %v174_v12  ;;  %v202_v26 = vld [vmem:[%s4261_s25 + $0x1a0] sm:$0xff]  ;;  %v204_v27 = vld [vmem:[%s4261_s25 + $0x1a8] sm:$0xff] }
  0x1d   : > { %177 = vst [vmem:[%s4266_s26 + $0x68] sm:$0xff] %v176_v13  ;;  %v206_v28 = vld [vmem:[%s4261_s25 + $0x1c0] sm:$0xff]  ;;  %v208_v29 = vld [vmem:[%s4261_s25 + $0x1c8] sm:$0xff] }
  0x1e   : > { %179 = vst [vmem:[%s4266_s26 + $0x70] sm:$0xff] %v178_v14  ;;  %v210_v30 = vld [vmem:[%s4261_s25 + $0x1e0] sm:$0xff]  ;;  %v212_v31 = vld [vmem:[%s4261_s25 + $0x1e8] sm:$0xff] }
  0x1f   : > { %181 = vst [vmem:[%s4266_s26 + $0x78] sm:$0xff] %v180_v15  ;;  %v214_v32 = vld [vmem:[%s4261_s25 + $0x200] sm:$0xff]  ;;  %v216_v33 = vld [vmem:[%s4261_s25 + $0x208] sm:$0xff] }
  0x20   : > { %183 = vst [vmem:[%s4266_s26 + $0x80] sm:$0xff] %v182_v16  ;;  %v218_v34 = vld [vmem:[%s4261_s25 + $0x220] sm:$0xff]  ;;  %v220_v35 = vld [vmem:[%s4261_s25 + $0x228] sm:$0xff] }
  0x21   : > { %185 = vst [vmem:[%s4266_s26 + $0x88] sm:$0xff] %v184_v17  ;;  %v222_v36 = vld [vmem:[%s4261_s25 + $0x240] sm:$0xff]  ;;  %v224_v37 = vld [vmem:[%s4261_s25 + $0x248] sm:$0xff] }
  0x22   : > { %187 = vst [vmem:[%s4266_s26 + $0x90] sm:$0xff] %v186_v18  ;;  %v226_v38 = vld [vmem:[%s4261_s25 + $0x260] sm:$0xff]  ;;  %v228_v39 = vld [vmem:[%s4261_s25 + $0x268] sm:$0xff] }
  0x23   : > { %189 = vst [vmem:[%s4266_s26 + $0x98] sm:$0xff] %v188_v19  ;;  %v230_v40 = vld [vmem:[%s4261_s25 + $0x280] sm:$0xff]  ;;  %v232_v41 = vld [vmem:[%s4261_s25 + $0x288] sm:$0xff] }
  0x24   : > { %191 = vst [vmem:[%s4266_s26 + $0xa0] sm:$0xff] %v190_v20  ;;  %v234_v42 = vld [vmem:[%s4261_s25 + $0x2a0] sm:$0xff]  ;;  %v236_v43 = vld [vmem:[%s4261_s25 + $0x2a8] sm:$0xff] }
  0x25   : > { %193 = vst [vmem:[%s4266_s26 + $0xa8] sm:$0xff] %v192_v21  ;;  %v238_v44 = vld [vmem:[%s4261_s25 + $0x2c0] sm:$0xff]  ;;  %v240_v45 = vld [vmem:[%s4261_s25 + $0x2c8] sm:$0xff] }
  0x26   : > { %195 = vst [vmem:[%s4266_s26 + $0xb0] sm:$0xff] %v194_v22  ;;  %v242_v46 = vld [vmem:[%s4261_s25 + $0x2e0] sm:$0xff]  ;;  %v244_v47 = vld [vmem:[%s4261_s25 + $0x2e8] sm:$0xff] }
  0x27   : > { %197 = vst [vmem:[%s4266_s26 + $0xb8] sm:$0xff] %v196_v23  ;;  %v246_v48 = vld [vmem:[%s4261_s25 + $0x300] sm:$0xff]  ;;  %v248_v49 = vld [vmem:[%s4261_s25 + $0x308] sm:$0xff] }
  0x28   : > { %199 = vst [vmem:[%s4266_s26 + $0xc0] sm:$0xff] %v198_v24  ;;  %v250_v50 = vld [vmem:[%s4261_s25 + $0x320] sm:$0xff]  ;;  %v252_v51 = vld [vmem:[%s4261_s25 + $0x328] sm:$0xff] }
  0x29   : > { %201 = vst [vmem:[%s4266_s26 + $0xc8] sm:$0xff] %v200_v25  ;;  %v254_v52 = vld [vmem:[%s4261_s25 + $0x340] sm:$0xff]  ;;  %v256_v53 = vld [vmem:[%s4261_s25 + $0x348] sm:$0xff] }
  0x2a   : > { %203 = vst [vmem:[%s4266_s26 + $0xd0] sm:$0xff] %v202_v26  ;;  %v258_v54 = vld [vmem:[%s4261_s25 + $0x360] sm:$0xff]  ;;  %v260_v55 = vld [vmem:[%s4261_s25 + $0x368] sm:$0xff] }
  0x2b   : > { %205 = vst [vmem:[%s4266_s26 + $0xd8] sm:$0xff] %v204_v27  ;;  %v262_v56 = vld [vmem:[%s4261_s25 + $0x380] sm:$0xff]  ;;  %v264_v57 = vld [vmem:[%s4261_s25 + $0x388] sm:$0xff] }
  0x2c   : > { %207 = vst [vmem:[%s4266_s26 + $0xe0] sm:$0xff] %v206_v28  ;;  %v266_v58 = vld [vmem:[%s4261_s25 + $0x3a0] sm:$0xff]  ;;  %v268_v59 = vld [vmem:[%s4261_s25 + $0x3a8] sm:$0xff] }
  0x2d   : > { %209 = vst [vmem:[%s4266_s26 + $0xe8] sm:$0xff] %v208_v29  ;;  %v270_v60 = vld [vmem:[%s4261_s25 + $0x3c0] sm:$0xff]  ;;  %v272_v61 = vld [vmem:[%s4261_s25 + $0x3c8] sm:$0xff] }
  0x2e   : > { %211 = vst [vmem:[%s4266_s26 + $0xf0] sm:$0xff] %v210_v30  ;;  %v274_v62 = vld [vmem:[%s4261_s25 + $0x3e0] sm:$0xff]  ;;  %v276_v63 = vld [vmem:[%s4261_s25 + $0x3e8] sm:$0xff] }
  0x2f   : > { %213 = vst [vmem:[%s4266_s26 + $0xf8] sm:$0xff] %v212_v31  ;;  %v278_v0 = vld [vmem:[%s4261_s25 + $0x400] sm:$0xff]  ;;  %v280_v1 = vld [vmem:[%s4261_s25 + $0x408] sm:$0xff] }
  0x30   : > { %215 = vst [vmem:[%s4266_s26 + $0x100] sm:$0xff] %v214_v32  ;;  %v282_v2 = vld [vmem:[%s4261_s25 + $0x420] sm:$0xff]  ;;  %v284_v3 = vld [vmem:[%s4261_s25 + $0x428] sm:$0xff] }
  0x31   : > { %217 = vst [vmem:[%s4266_s26 + $0x108] sm:$0xff] %v216_v33  ;;  %v286_v4 = vld [vmem:[%s4261_s25 + $0x440] sm:$0xff]  ;;  %v288_v5 = vld [vmem:[%s4261_s25 + $0x448] sm:$0xff] }
  0x32   : > { %219 = vst [vmem:[%s4266_s26 + $0x110] sm:$0xff] %v218_v34  ;;  %v290_v6 = vld [vmem:[%s4261_s25 + $0x460] sm:$0xff]  ;;  %v292_v7 = vld [vmem:[%s4261_s25 + $0x468] sm:$0xff] }
  0x33   : > { %221 = vst [vmem:[%s4266_s26 + $0x118] sm:$0xff] %v220_v35  ;;  %v294_v8 = vld [vmem:[%s4261_s25 + $0x480] sm:$0xff]  ;;  %v296_v9 = vld [vmem:[%s4261_s25 + $0x488] sm:$0xff] }
  0x34   : > { %223 = vst [vmem:[%s4266_s26 + $0x120] sm:$0xff] %v222_v36  ;;  %v298_v10 = vld [vmem:[%s4261_s25 + $0x4a0] sm:$0xff]  ;;  %v300_v11 = vld [vmem:[%s4261_s25 + $0x4a8] sm:$0xff] }
  0x35   : > { %225 = vst [vmem:[%s4266_s26 + $0x128] sm:$0xff] %v224_v37  ;;  %v302_v12 = vld [vmem:[%s4261_s25 + $0x4c0] sm:$0xff]  ;;  %v304_v13 = vld [vmem:[%s4261_s25 + $0x4c8] sm:$0xff] }
  0x36   : > { %227 = vst [vmem:[%s4266_s26 + $0x130] sm:$0xff] %v226_v38  ;;  %v306_v14 = vld [vmem:[%s4261_s25 + $0x4e0] sm:$0xff]  ;;  %v308_v15 = vld [vmem:[%s4261_s25 + $0x4e8] sm:$0xff] }
  0x37   : > { %229 = vst [vmem:[%s4266_s26 + $0x138] sm:$0xff] %v228_v39  ;;  %v310_v16 = vld [vmem:[%s4261_s25 + $0x500] sm:$0xff]  ;;  %v312_v17 = vld [vmem:[%s4261_s25 + $0x508] sm:$0xff] }
  0x38   : > { %231 = vst [vmem:[%s4266_s26 + $0x140] sm:$0xff] %v230_v40  ;;  %v314_v18 = vld [vmem:[%s4261_s25 + $0x520] sm:$0xff]  ;;  %v316_v19 = vld [vmem:[%s4261_s25 + $0x528] sm:$0xff] }
  0x39   : > { %233 = vst [vmem:[%s4266_s26 + $0x148] sm:$0xff] %v232_v41  ;;  %v318_v20 = vld [vmem:[%s4261_s25 + $0x540] sm:$0xff]  ;;  %v320_v21 = vld [vmem:[%s4261_s25 + $0x548] sm:$0xff] }
  0x3a   : > { %235 = vst [vmem:[%s4266_s26 + $0x150] sm:$0xff] %v234_v42  ;;  %v322_v22 = vld [vmem:[%s4261_s25 + $0x560] sm:$0xff]  ;;  %v324_v23 = vld [vmem:[%s4261_s25 + $0x568] sm:$0xff] }
  0x3b   : > { %237 = vst [vmem:[%s4266_s26 + $0x158] sm:$0xff] %v236_v43  ;;  %v326_v24 = vld [vmem:[%s4261_s25 + $0x580] sm:$0xff]  ;;  %v328_v25 = vld [vmem:[%s4261_s25 + $0x588] sm:$0xff] }
  0x3c   : > { %239 = vst [vmem:[%s4266_s26 + $0x160] sm:$0xff] %v238_v44  ;;  %v330_v26 = vld [vmem:[%s4261_s25 + $0x5a0] sm:$0xff]  ;;  %v332_v27 = vld [vmem:[%s4261_s25 + $0x5a8] sm:$0xff] }
  0x3d   : > { %241 = vst [vmem:[%s4266_s26 + $0x168] sm:$0xff] %v240_v45  ;;  %v334_v28 = vld [vmem:[%s4261_s25 + $0x5c0] sm:$0xff]  ;;  %v336_v29 = vld [vmem:[%s4261_s25 + $0x5c8] sm:$0xff] }
  0x3e   : > { %243 = vst [vmem:[%s4266_s26 + $0x170] sm:$0xff] %v242_v46  ;;  %v338_v30 = vld [vmem:[%s4261_s25 + $0x5e0] sm:$0xff]  ;;  %v340_v31 = vld [vmem:[%s4261_s25 + $0x5e8] sm:$0xff] }
  0x3f   : > { %245 = vst [vmem:[%s4266_s26 + $0x178] sm:$0xff] %v244_v47  ;;  %v342_v32 = vld [vmem:[%s4261_s25 + $0x600] sm:$0xff]  ;;  %v344_v33 = vld [vmem:[%s4261_s25 + $0x608] sm:$0xff] }
  0x40   : > { %247 = vst [vmem:[%s4266_s26 + $0x180] sm:$0xff] %v246_v48  ;;  %v346_v34 = vld [vmem:[%s4261_s25 + $0x620] sm:$0xff]  ;;  %v348_v35 = vld [vmem:[%s4261_s25 + $0x628] sm:$0xff] }
  0x41   : > { %249 = vst [vmem:[%s4266_s26 + $0x188] sm:$0xff] %v248_v49  ;;  %v350_v36 = vld [vmem:[%s4261_s25 + $0x640] sm:$0xff]  ;;  %v352_v37 = vld [vmem:[%s4261_s25 + $0x648] sm:$0xff] }
  0x42   : > { %251 = vst [vmem:[%s4266_s26 + $0x190] sm:$0xff] %v250_v50  ;;  %v354_v38 = vld [vmem:[%s4261_s25 + $0x660] sm:$0xff]  ;;  %v356_v39 = vld [vmem:[%s4261_s25 + $0x668] sm:$0xff] }
  0x43   : > { %253 = vst [vmem:[%s4266_s26 + $0x198] sm:$0xff] %v252_v51  ;;  %v358_v40 = vld [vmem:[%s4261_s25 + $0x680] sm:$0xff]  ;;  %v360_v41 = vld [vmem:[%s4261_s25 + $0x688] sm:$0xff] }
  0x44   : > { %255 = vst [vmem:[%s4266_s26 + $0x1a0] sm:$0xff] %v254_v52  ;;  %v362_v42 = vld [vmem:[%s4261_s25 + $0x6a0] sm:$0xff]  ;;  %v364_v43 = vld [vmem:[%s4261_s25 + $0x6a8] sm:$0xff] }
  0x45   : > { %257 = vst [vmem:[%s4266_s26 + $0x1a8] sm:$0xff] %v256_v53  ;;  %v366_v44 = vld [vmem:[%s4261_s25 + $0x6c0] sm:$0xff]  ;;  %v368_v45 = vld [vmem:[%s4261_s25 + $0x6c8] sm:$0xff] }
  0x46   : > { %259 = vst [vmem:[%s4266_s26 + $0x1b0] sm:$0xff] %v258_v54  ;;  %v370_v46 = vld [vmem:[%s4261_s25 + $0x6e0] sm:$0xff]  ;;  %v372_v47 = vld [vmem:[%s4261_s25 + $0x6e8] sm:$0xff] }
  0x47   : > { %261 = vst [vmem:[%s4266_s26 + $0x1b8] sm:$0xff] %v260_v55  ;;  %v374_v48 = vld [vmem:[%s4261_s25 + $0x700] sm:$0xff]  ;;  %v376_v49 = vld [vmem:[%s4261_s25 + $0x708] sm:$0xff] }
  0x48   : > { %263 = vst [vmem:[%s4266_s26 + $0x1c0] sm:$0xff] %v262_v56  ;;  %v378_v50 = vld [vmem:[%s4261_s25 + $0x720] sm:$0xff]  ;;  %v380_v51 = vld [vmem:[%s4261_s25 + $0x728] sm:$0xff] }
  0x49   : > { %265 = vst [vmem:[%s4266_s26 + $0x1c8] sm:$0xff] %v264_v57  ;;  %v382_v52 = vld [vmem:[%s4261_s25 + $0x740] sm:$0xff]  ;;  %v384_v53 = vld [vmem:[%s4261_s25 + $0x748] sm:$0xff] }
  0x4a   : > { %267 = vst [vmem:[%s4266_s26 + $0x1d0] sm:$0xff] %v266_v58  ;;  %v386_v54 = vld [vmem:[%s4261_s25 + $0x760] sm:$0xff]  ;;  %v388_v55 = vld [vmem:[%s4261_s25 + $0x768] sm:$0xff] }
  0x4b   : > { %269 = vst [vmem:[%s4266_s26 + $0x1d8] sm:$0xff] %v268_v59  ;;  %v390_v56 = vld [vmem:[%s4261_s25 + $0x780] sm:$0xff]  ;;  %v392_v57 = vld [vmem:[%s4261_s25 + $0x788] sm:$0xff] }
  0x4c   : > { %271 = vst [vmem:[%s4266_s26 + $0x1e0] sm:$0xff] %v270_v60  ;;  %v394_v58 = vld [vmem:[%s4261_s25 + $0x7a0] sm:$0xff]  ;;  %v396_v59 = vld [vmem:[%s4261_s25 + $0x7a8] sm:$0xff] }
  0x4d   : > { %273 = vst [vmem:[%s4266_s26 + $0x1e8] sm:$0xff] %v272_v61  ;;  %v398_v60 = vld [vmem:[%s4261_s25 + $0x7c0] sm:$0xff]  ;;  %v400_v61 = vld [vmem:[%s4261_s25 + $0x7c8] sm:$0xff] }
  0x4e   : > { %275 = vst [vmem:[%s4266_s26 + $0x1f0] sm:$0xff] %v274_v62  ;;  %v402_v62 = vld [vmem:[%s4261_s25 + $0x7e0] sm:$0xff] }
  0x4f   : > { %277 = vst [vmem:[%s4266_s26 + $0x1f8] sm:$0xff] %v276_v63  ;;  %v404_v63 = vld [vmem:[%s4261_s25 + $0x7e8] sm:$0xff] }
  0x50   : > { %279 = vst [vmem:[%s4266_s26 + $0x200] sm:$0xff] %v278_v0  ;;  %v406_v0 = vld [vmem:[%s4261_s25 + $0x800] sm:$0xff] }
  0x51   : > { %281 = vst [vmem:[%s4266_s26 + $0x208] sm:$0xff] %v280_v1  ;;  %v408_v1 = vld [vmem:[%s4261_s25 + $0x808] sm:$0xff] }
  0x52   : > { %283 = vst [vmem:[%s4266_s26 + $0x210] sm:$0xff] %v282_v2  ;;  %v410_v2 = vld [vmem:[%s4261_s25 + $0x820] sm:$0xff] }
  0x53   : > { %285 = vst [vmem:[%s4266_s26 + $0x218] sm:$0xff] %v284_v3  ;;  %v412_v3 = vld [vmem:[%s4261_s25 + $0x828] sm:$0xff] }
  0x54   : > { %287 = vst [vmem:[%s4266_s26 + $0x220] sm:$0xff] %v286_v4  ;;  %v414_v4 = vld [vmem:[%s4261_s25 + $0x840] sm:$0xff] }
  0x55   : > { %289 = vst [vmem:[%s4266_s26 + $0x228] sm:$0xff] %v288_v5  ;;  %v416_v5 = vld [vmem:[%s4261_s25 + $0x848] sm:$0xff] }
  0x56   : > { %291 = vst [vmem:[%s4266_s26 + $0x230] sm:$0xff] %v290_v6  ;;  %v418_v6 = vld [vmem:[%s4261_s25 + $0x860] sm:$0xff] }
  0x57   : > { %293 = vst [vmem:[%s4266_s26 + $0x238] sm:$0xff] %v292_v7  ;;  %v420_v7 = vld [vmem:[%s4261_s25 + $0x868] sm:$0xff] }
  0x58   : > { %295 = vst [vmem:[%s4266_s26 + $0x240] sm:$0xff] %v294_v8  ;;  %v422_v8 = vld [vmem:[%s4261_s25 + $0x880] sm:$0xff] }
  0x59   : > { %297 = vst [vmem:[%s4266_s26 + $0x248] sm:$0xff] %v296_v9  ;;  %v424_v9 = vld [vmem:[%s4261_s25 + $0x888] sm:$0xff] }
  0x5a   : > { %299 = vst [vmem:[%s4266_s26 + $0x250] sm:$0xff] %v298_v10  ;;  %v426_v10 = vld [vmem:[%s4261_s25 + $0x8a0] sm:$0xff] }
  0x5b   : > { %301 = vst [vmem:[%s4266_s26 + $0x258] sm:$0xff] %v300_v11  ;;  %v428_v11 = vld [vmem:[%s4261_s25 + $0x8a8] sm:$0xff] }
  0x5c   : > { %303 = vst [vmem:[%s4266_s26 + $0x260] sm:$0xff] %v302_v12  ;;  %v430_v12 = vld [vmem:[%s4261_s25 + $0x8c0] sm:$0xff] }
  0x5d   : > { %305 = vst [vmem:[%s4266_s26 + $0x268] sm:$0xff] %v304_v13  ;;  %v432_v13 = vld [vmem:[%s4261_s25 + $0x8c8] sm:$0xff] }
  0x5e   : > { %307 = vst [vmem:[%s4266_s26 + $0x270] sm:$0xff] %v306_v14  ;;  %v434_v14 = vld [vmem:[%s4261_s25 + $0x8e0] sm:$0xff] }
  0x5f   : > { %309 = vst [vmem:[%s4266_s26 + $0x278] sm:$0xff] %v308_v15  ;;  %v436_v15 = vld [vmem:[%s4261_s25 + $0x8e8] sm:$0xff] }
  0x60   : > { %311 = vst [vmem:[%s4266_s26 + $0x280] sm:$0xff] %v310_v16  ;;  %v438_v16 = vld [vmem:[%s4261_s25 + $0x900] sm:$0xff] }
  0x61   : > { %313 = vst [vmem:[%s4266_s26 + $0x288] sm:$0xff] %v312_v17  ;;  %v440_v17 = vld [vmem:[%s4261_s25 + $0x908] sm:$0xff] }
  0x62   : > { %315 = vst [vmem:[%s4266_s26 + $0x290] sm:$0xff] %v314_v18  ;;  %v442_v18 = vld [vmem:[%s4261_s25 + $0x920] sm:$0xff] }
  0x63   : > { %317 = vst [vmem:[%s4266_s26 + $0x298] sm:$0xff] %v316_v19  ;;  %v444_v19 = vld [vmem:[%s4261_s25 + $0x928] sm:$0xff] }
  0x64   : > { %319 = vst [vmem:[%s4266_s26 + $0x2a0] sm:$0xff] %v318_v20  ;;  %v446_v20 = vld [vmem:[%s4261_s25 + $0x940] sm:$0xff] }
  0x65   : > { %321 = vst [vmem:[%s4266_s26 + $0x2a8] sm:$0xff] %v320_v21  ;;  %v448_v21 = vld [vmem:[%s4261_s25 + $0x948] sm:$0xff] }
  0x66   : > { %323 = vst [vmem:[%s4266_s26 + $0x2b0] sm:$0xff] %v322_v22  ;;  %v450_v22 = vld [vmem:[%s4261_s25 + $0x960] sm:$0xff] }
  0x67   : > { %325 = vst [vmem:[%s4266_s26 + $0x2b8] sm:$0xff] %v324_v23  ;;  %v452_v23 = vld [vmem:[%s4261_s25 + $0x968] sm:$0xff] }
  0x68   : > { %327 = vst [vmem:[%s4266_s26 + $0x2c0] sm:$0xff] %v326_v24  ;;  %v454_v24 = vld [vmem:[%s4261_s25 + $0x980] sm:$0xff] }
  0x69   : > { %329 = vst [vmem:[%s4266_s26 + $0x2c8] sm:$0xff] %v328_v25  ;;  %v456_v25 = vld [vmem:[%s4261_s25 + $0x988] sm:$0xff] }
  0x6a   : > { %331 = vst [vmem:[%s4266_s26 + $0x2d0] sm:$0xff] %v330_v26  ;;  %v458_v26 = vld [vmem:[%s4261_s25 + $0x9a0] sm:$0xff] }
  0x6b   : > { %333 = vst [vmem:[%s4266_s26 + $0x2d8] sm:$0xff] %v332_v27  ;;  %v460_v27 = vld [vmem:[%s4261_s25 + $0x9a8] sm:$0xff] }
  0x6c   : > { %335 = vst [vmem:[%s4266_s26 + $0x2e0] sm:$0xff] %v334_v28  ;;  %v462_v28 = vld [vmem:[%s4261_s25 + $0x9c0] sm:$0xff] }
  0x6d   : > { %337 = vst [vmem:[%s4266_s26 + $0x2e8] sm:$0xff] %v336_v29  ;;  %v464_v29 = vld [vmem:[%s4261_s25 + $0x9c8] sm:$0xff] }
  0x6e   : > { %339 = vst [vmem:[%s4266_s26 + $0x2f0] sm:$0xff] %v338_v30  ;;  %v466_v30 = vld [vmem:[%s4261_s25 + $0x9e0] sm:$0xff] }
  0x6f   : > { %341 = vst [vmem:[%s4266_s26 + $0x2f8] sm:$0xff] %v340_v31  ;;  %v468_v31 = vld [vmem:[%s4261_s25 + $0x9e8] sm:$0xff] }
  0x70   : > { %343 = vst [vmem:[%s4266_s26 + $0x300] sm:$0xff] %v342_v32  ;;  %v470_v32 = vld [vmem:[%s4261_s25 + $0xa00] sm:$0xff] }
  0x71   : > { %345 = vst [vmem:[%s4266_s26 + $0x308] sm:$0xff] %v344_v33  ;;  %v472_v33 = vld [vmem:[%s4261_s25 + $0xa08] sm:$0xff] }
  0x72   : > { %347 = vst [vmem:[%s4266_s26 + $0x310] sm:$0xff] %v346_v34  ;;  %v474_v34 = vld [vmem:[%s4261_s25 + $0xa20] sm:$0xff] }
  0x73   : > { %349 = vst [vmem:[%s4266_s26 + $0x318] sm:$0xff] %v348_v35  ;;  %v476_v35 = vld [vmem:[%s4261_s25 + $0xa28] sm:$0xff] }
  0x74   : > { %351 = vst [vmem:[%s4266_s26 + $0x320] sm:$0xff] %v350_v36  ;;  %v478_v36 = vld [vmem:[%s4261_s25 + $0xa40] sm:$0xff] }
  0x75   : > { %353 = vst [vmem:[%s4266_s26 + $0x328] sm:$0xff] %v352_v37  ;;  %v480_v37 = vld [vmem:[%s4261_s25 + $0xa48] sm:$0xff] }
  0x76   : > { %355 = vst [vmem:[%s4266_s26 + $0x330] sm:$0xff] %v354_v38  ;;  %v482_v38 = vld [vmem:[%s4261_s25 + $0xa60] sm:$0xff] }
  0x77   : > { %357 = vst [vmem:[%s4266_s26 + $0x338] sm:$0xff] %v356_v39  ;;  %v484_v39 = vld [vmem:[%s4261_s25 + $0xa68] sm:$0xff] }
  0x78   : > { %359 = vst [vmem:[%s4266_s26 + $0x340] sm:$0xff] %v358_v40  ;;  %v486_v40 = vld [vmem:[%s4261_s25 + $0xa80] sm:$0xff] }
  0x79   : > { %361 = vst [vmem:[%s4266_s26 + $0x348] sm:$0xff] %v360_v41  ;;  %v488_v41 = vld [vmem:[%s4261_s25 + $0xa88] sm:$0xff] }
  0x7a   : > { %363 = vst [vmem:[%s4266_s26 + $0x350] sm:$0xff] %v362_v42  ;;  %v490_v42 = vld [vmem:[%s4261_s25 + $0xaa0] sm:$0xff] }
  0x7b   : > { %365 = vst [vmem:[%s4266_s26 + $0x358] sm:$0xff] %v364_v43  ;;  %v492_v43 = vld [vmem:[%s4261_s25 + $0xaa8] sm:$0xff] }
  0x7c   : > { %367 = vst [vmem:[%s4266_s26 + $0x360] sm:$0xff] %v366_v44  ;;  %v494_v44 = vld [vmem:[%s4261_s25 + $0xac0] sm:$0xff] }
  0x7d   : > { %369 = vst [vmem:[%s4266_s26 + $0x368] sm:$0xff] %v368_v45  ;;  %v496_v45 = vld [vmem:[%s4261_s25 + $0xac8] sm:$0xff] }
  0x7e   : > { %371 = vst [vmem:[%s4266_s26 + $0x370] sm:$0xff] %v370_v46  ;;  %v498_v46 = vld [vmem:[%s4261_s25 + $0xae0] sm:$0xff] }
  0x7f   : > { %373 = vst [vmem:[%s4266_s26 + $0x378] sm:$0xff] %v372_v47  ;;  %v500_v47 = vld [vmem:[%s4261_s25 + $0xae8] sm:$0xff] }
  0x80   : > { %375 = vst [vmem:[%s4266_s26 + $0x380] sm:$0xff] %v374_v48  ;;  %v502_v48 = vld [vmem:[%s4261_s25 + $0xb00] sm:$0xff] }
  0x81   : > { %377 = vst [vmem:[%s4266_s26 + $0x388] sm:$0xff] %v376_v49  ;;  %v504_v49 = vld [vmem:[%s4261_s25 + $0xb08] sm:$0xff] }
  0x82   : > { %379 = vst [vmem:[%s4266_s26 + $0x390] sm:$0xff] %v378_v50  ;;  %v506_v50 = vld [vmem:[%s4261_s25 + $0xb20] sm:$0xff] }
  0x83   : > { %381 = vst [vmem:[%s4266_s26 + $0x398] sm:$0xff] %v380_v51  ;;  %v508_v51 = vld [vmem:[%s4261_s25 + $0xb28] sm:$0xff] }
  0x84   : > { %383 = vst [vmem:[%s4266_s26 + $0x3a0] sm:$0xff] %v382_v52  ;;  %v510_v52 = vld [vmem:[%s4261_s25 + $0xb40] sm:$0xff] }
  0x85   : > { %385 = vst [vmem:[%s4266_s26 + $0x3a8] sm:$0xff] %v384_v53  ;;  %v512_v53 = vld [vmem:[%s4261_s25 + $0xb48] sm:$0xff] }
  0x86   : > { %387 = vst [vmem:[%s4266_s26 + $0x3b0] sm:$0xff] %v386_v54  ;;  %v514_v54 = vld [vmem:[%s4261_s25 + $0xb60] sm:$0xff] }
  0x87   : > { %389 = vst [vmem:[%s4266_s26 + $0x3b8] sm:$0xff] %v388_v55  ;;  %v516_v55 = vld [vmem:[%s4261_s25 + $0xb68] sm:$0xff] }
  0x88   : > { %391 = vst [vmem:[%s4266_s26 + $0x3c0] sm:$0xff] %v390_v56  ;;  %v518_v56 = vld [vmem:[%s4261_s25 + $0xb80] sm:$0xff] }
  0x89   : > { %393 = vst [vmem:[%s4266_s26 + $0x3c8] sm:$0xff] %v392_v57  ;;  %v520_v57 = vld [vmem:[%s4261_s25 + $0xb88] sm:$0xff] }
  0x8a   : > { %395 = vst [vmem:[%s4266_s26 + $0x3d0] sm:$0xff] %v394_v58  ;;  %v522_v58 = vld [vmem:[%s4261_s25 + $0xba0] sm:$0xff] }
  0x8b   : > { %397 = vst [vmem:[%s4266_s26 + $0x3d8] sm:$0xff] %v396_v59  ;;  %v524_v59 = vld [vmem:[%s4261_s25 + $0xba8] sm:$0xff] }
  0x8c   : > { %399 = vst [vmem:[%s4266_s26 + $0x3e0] sm:$0xff] %v398_v60  ;;  %v526_v60 = vld [vmem:[%s4261_s25 + $0xbc0] sm:$0xff] }
  0x8d   : > { %401 = vst [vmem:[%s4266_s26 + $0x3e8] sm:$0xff] %v400_v61  ;;  %v528_v61 = vld [vmem:[%s4261_s25 + $0xbc8] sm:$0xff] }
  0x8e   : > { %403 = vst [vmem:[%s4266_s26 + $0x3f0] sm:$0xff] %v402_v62  ;;  %v530_v62 = vld [vmem:[%s4261_s25 + $0xbe0] sm:$0xff] }
  0x8f   : > { %405 = vst [vmem:[%s4266_s26 + $0x3f8] sm:$0xff] %v404_v63  ;;  %v532_v63 = vld [vmem:[%s4261_s25 + $0xbe8] sm:$0xff] }
  0x90   : > { %407 = vst [vmem:[%s4266_s26 + $0x400] sm:$0xff] %v406_v0  ;;  %v534_v0 = vld [vmem:[%s4261_s25 + $0xc00] sm:$0xff] }
  0x91   : > { %409 = vst [vmem:[%s4266_s26 + $0x408] sm:$0xff] %v408_v1  ;;  %v536_v1 = vld [vmem:[%s4261_s25 + $0xc08] sm:$0xff] }
  0x92   : > { %411 = vst [vmem:[%s4266_s26 + $0x410] sm:$0xff] %v410_v2  ;;  %v538_v2 = vld [vmem:[%s4261_s25 + $0xc20] sm:$0xff] }
  0x93   : > { %413 = vst [vmem:[%s4266_s26 + $0x418] sm:$0xff] %v412_v3  ;;  %v540_v3 = vld [vmem:[%s4261_s25 + $0xc28] sm:$0xff] }
  0x94   : > { %415 = vst [vmem:[%s4266_s26 + $0x420] sm:$0xff] %v414_v4  ;;  %v542_v4 = vld [vmem:[%s4261_s25 + $0xc40] sm:$0xff] }
  0x95   : > { %417 = vst [vmem:[%s4266_s26 + $0x428] sm:$0xff] %v416_v5  ;;  %v544_v5 = vld [vmem:[%s4261_s25 + $0xc48] sm:$0xff] }
  0x96   : > { %419 = vst [vmem:[%s4266_s26 + $0x430] sm:$0xff] %v418_v6  ;;  %v546_v6 = vld [vmem:[%s4261_s25 + $0xc60] sm:$0xff] }
  0x97   : > { %421 = vst [vmem:[%s4266_s26 + $0x438] sm:$0xff] %v420_v7  ;;  %v548_v7 = vld [vmem:[%s4261_s25 + $0xc68] sm:$0xff] }
  0x98   : > { %423 = vst [vmem:[%s4266_s26 + $0x440] sm:$0xff] %v422_v8  ;;  %v550_v8 = vld [vmem:[%s4261_s25 + $0xc80] sm:$0xff] }
  0x99   : > { %425 = vst [vmem:[%s4266_s26 + $0x448] sm:$0xff] %v424_v9  ;;  %v552_v9 = vld [vmem:[%s4261_s25 + $0xc88] sm:$0xff] }
  0x9a   : > { %427 = vst [vmem:[%s4266_s26 + $0x450] sm:$0xff] %v426_v10  ;;  %v554_v10 = vld [vmem:[%s4261_s25 + $0xca0] sm:$0xff] }
  0x9b   : > { %429 = vst [vmem:[%s4266_s26 + $0x458] sm:$0xff] %v428_v11  ;;  %v556_v11 = vld [vmem:[%s4261_s25 + $0xca8] sm:$0xff] }
  0x9c   : > { %431 = vst [vmem:[%s4266_s26 + $0x460] sm:$0xff] %v430_v12  ;;  %v558_v12 = vld [vmem:[%s4261_s25 + $0xcc0] sm:$0xff] }
  0x9d   : > { %433 = vst [vmem:[%s4266_s26 + $0x468] sm:$0xff] %v432_v13  ;;  %v560_v13 = vld [vmem:[%s4261_s25 + $0xcc8] sm:$0xff] }
  0x9e   : > { %435 = vst [vmem:[%s4266_s26 + $0x470] sm:$0xff] %v434_v14  ;;  %v562_v14 = vld [vmem:[%s4261_s25 + $0xce0] sm:$0xff] }
  0x9f   : > { %437 = vst [vmem:[%s4266_s26 + $0x478] sm:$0xff] %v436_v15  ;;  %v564_v15 = vld [vmem:[%s4261_s25 + $0xce8] sm:$0xff] }
  0xa0   : > { %439 = vst [vmem:[%s4266_s26 + $0x480] sm:$0xff] %v438_v16  ;;  %v566_v16 = vld [vmem:[%s4261_s25 + $0xd00] sm:$0xff] }
  0xa1   : > { %441 = vst [vmem:[%s4266_s26 + $0x488] sm:$0xff] %v440_v17  ;;  %v568_v17 = vld [vmem:[%s4261_s25 + $0xd08] sm:$0xff] }
  0xa2   : > { %443 = vst [vmem:[%s4266_s26 + $0x490] sm:$0xff] %v442_v18  ;;  %v570_v18 = vld [vmem:[%s4261_s25 + $0xd20] sm:$0xff] }
  0xa3   : > { %445 = vst [vmem:[%s4266_s26 + $0x498] sm:$0xff] %v444_v19  ;;  %v572_v19 = vld [vmem:[%s4261_s25 + $0xd28] sm:$0xff] }
  0xa4   : > { %447 = vst [vmem:[%s4266_s26 + $0x4a0] sm:$0xff] %v446_v20  ;;  %v574_v20 = vld [vmem:[%s4261_s25 + $0xd40] sm:$0xff] }
  0xa5   : > { %449 = vst [vmem:[%s4266_s26 + $0x4a8] sm:$0xff] %v448_v21  ;;  %v576_v21 = vld [vmem:[%s4261_s25 + $0xd48] sm:$0xff] }
  0xa6   : > { %451 = vst [vmem:[%s4266_s26 + $0x4b0] sm:$0xff] %v450_v22  ;;  %v578_v22 = vld [vmem:[%s4261_s25 + $0xd60] sm:$0xff] }
  0xa7   : > { %453 = vst [vmem:[%s4266_s26 + $0x4b8] sm:$0xff] %v452_v23  ;;  %v580_v23 = vld [vmem:[%s4261_s25 + $0xd68] sm:$0xff] }
  0xa8   : > { %455 = vst [vmem:[%s4266_s26 + $0x4c0] sm:$0xff] %v454_v24  ;;  %v582_v24 = vld [vmem:[%s4261_s25 + $0xd80] sm:$0xff] }
  0xa9   : > { %457 = vst [vmem:[%s4266_s26 + $0x4c8] sm:$0xff] %v456_v25  ;;  %v584_v25 = vld [vmem:[%s4261_s25 + $0xd88] sm:$0xff] }
  0xaa   : > { %459 = vst [vmem:[%s4266_s26 + $0x4d0] sm:$0xff] %v458_v26  ;;  %v586_v26 = vld [vmem:[%s4261_s25 + $0xda0] sm:$0xff] }
  0xab   : > { %461 = vst [vmem:[%s4266_s26 + $0x4d8] sm:$0xff] %v460_v27  ;;  %v588_v27 = vld [vmem:[%s4261_s25 + $0xda8] sm:$0xff] }
  0xac   : > { %463 = vst [vmem:[%s4266_s26 + $0x4e0] sm:$0xff] %v462_v28  ;;  %v590_v28 = vld [vmem:[%s4261_s25 + $0xdc0] sm:$0xff] }
  0xad   : > { %465 = vst [vmem:[%s4266_s26 + $0x4e8] sm:$0xff] %v464_v29  ;;  %v592_v29 = vld [vmem:[%s4261_s25 + $0xdc8] sm:$0xff] }
  0xae   : > { %467 = vst [vmem:[%s4266_s26 + $0x4f0] sm:$0xff] %v466_v30  ;;  %v594_v30 = vld [vmem:[%s4261_s25 + $0xde0] sm:$0xff] }
  0xaf   : > { %469 = vst [vmem:[%s4266_s26 + $0x4f8] sm:$0xff] %v468_v31  ;;  %v596_v31 = vld [vmem:[%s4261_s25 + $0xde8] sm:$0xff] }
  0xb0   : > { %471 = vst [vmem:[%s4266_s26 + $0x500] sm:$0xff] %v470_v32  ;;  %v598_v32 = vld [vmem:[%s4261_s25 + $0xe00] sm:$0xff] }
  0xb1   : > { %473 = vst [vmem:[%s4266_s26 + $0x508] sm:$0xff] %v472_v33  ;;  %v600_v33 = vld [vmem:[%s4261_s25 + $0xe08] sm:$0xff] }
  0xb2   : > { %475 = vst [vmem:[%s4266_s26 + $0x510] sm:$0xff] %v474_v34  ;;  %v602_v34 = vld [vmem:[%s4261_s25 + $0xe20] sm:$0xff] }
  0xb3   : > { %477 = vst [vmem:[%s4266_s26 + $0x518] sm:$0xff] %v476_v35  ;;  %v604_v35 = vld [vmem:[%s4261_s25 + $0xe28] sm:$0xff] }
  0xb4   : > { %479 = vst [vmem:[%s4266_s26 + $0x520] sm:$0xff] %v478_v36  ;;  %v606_v36 = vld [vmem:[%s4261_s25 + $0xe40] sm:$0xff] }
  0xb5   : > { %481 = vst [vmem:[%s4266_s26 + $0x528] sm:$0xff] %v480_v37  ;;  %v608_v37 = vld [vmem:[%s4261_s25 + $0xe48] sm:$0xff] }
  0xb6   : > { %483 = vst [vmem:[%s4266_s26 + $0x530] sm:$0xff] %v482_v38  ;;  %v610_v38 = vld [vmem:[%s4261_s25 + $0xe60] sm:$0xff] }
  0xb7   : > { %485 = vst [vmem:[%s4266_s26 + $0x538] sm:$0xff] %v484_v39  ;;  %v612_v39 = vld [vmem:[%s4261_s25 + $0xe68] sm:$0xff] }
  0xb8   : > { %487 = vst [vmem:[%s4266_s26 + $0x540] sm:$0xff] %v486_v40  ;;  %v614_v40 = vld [vmem:[%s4261_s25 + $0xe80] sm:$0xff] }
  0xb9   : > { %489 = vst [vmem:[%s4266_s26 + $0x548] sm:$0xff] %v488_v41  ;;  %v616_v41 = vld [vmem:[%s4261_s25 + $0xe88] sm:$0xff] }
  0xba   : > { %491 = vst [vmem:[%s4266_s26 + $0x550] sm:$0xff] %v490_v42  ;;  %v618_v42 = vld [vmem:[%s4261_s25 + $0xea0] sm:$0xff] }
  0xbb   : > { %493 = vst [vmem:[%s4266_s26 + $0x558] sm:$0xff] %v492_v43  ;;  %v620_v43 = vld [vmem:[%s4261_s25 + $0xea8] sm:$0xff] }
  0xbc   : > { %495 = vst [vmem:[%s4266_s26 + $0x560] sm:$0xff] %v494_v44  ;;  %v622_v44 = vld [vmem:[%s4261_s25 + $0xec0] sm:$0xff] }
  0xbd   : > { %497 = vst [vmem:[%s4266_s26 + $0x568] sm:$0xff] %v496_v45  ;;  %v624_v45 = vld [vmem:[%s4261_s25 + $0xec8] sm:$0xff] }
  0xbe   : > { %499 = vst [vmem:[%s4266_s26 + $0x570] sm:$0xff] %v498_v46  ;;  %v626_v46 = vld [vmem:[%s4261_s25 + $0xee0] sm:$0xff] }
  0xbf   : > { %501 = vst [vmem:[%s4266_s26 + $0x578] sm:$0xff] %v500_v47  ;;  %v628_v47 = vld [vmem:[%s4261_s25 + $0xee8] sm:$0xff] }
  0xc0   : > { %503 = vst [vmem:[%s4266_s26 + $0x580] sm:$0xff] %v502_v48  ;;  %v630_v48 = vld [vmem:[%s4261_s25 + $0xf00] sm:$0xff] }
  0xc1   : > { %505 = vst [vmem:[%s4266_s26 + $0x588] sm:$0xff] %v504_v49  ;;  %v632_v49 = vld [vmem:[%s4261_s25 + $0xf08] sm:$0xff] }
  0xc2   : > { %507 = vst [vmem:[%s4266_s26 + $0x590] sm:$0xff] %v506_v50  ;;  %v634_v50 = vld [vmem:[%s4261_s25 + $0xf20] sm:$0xff] }
  0xc3   : > { %509 = vst [vmem:[%s4266_s26 + $0x598] sm:$0xff] %v508_v51  ;;  %v636_v51 = vld [vmem:[%s4261_s25 + $0xf28] sm:$0xff] }
  0xc4   : > { %511 = vst [vmem:[%s4266_s26 + $0x5a0] sm:$0xff] %v510_v52  ;;  %v638_v52 = vld [vmem:[%s4261_s25 + $0xf40] sm:$0xff] }
  0xc5   : > { %513 = vst [vmem:[%s4266_s26 + $0x5a8] sm:$0xff] %v512_v53  ;;  %v640_v53 = vld [vmem:[%s4261_s25 + $0xf48] sm:$0xff] }
  0xc6   : > { %515 = vst [vmem:[%s4266_s26 + $0x5b0] sm:$0xff] %v514_v54  ;;  %v642_v54 = vld [vmem:[%s4261_s25 + $0xf60] sm:$0xff] }
  0xc7   : > { %517 = vst [vmem:[%s4266_s26 + $0x5b8] sm:$0xff] %v516_v55  ;;  %v644_v55 = vld [vmem:[%s4261_s25 + $0xf68] sm:$0xff] }
  0xc8   : > { %519 = vst [vmem:[%s4266_s26 + $0x5c0] sm:$0xff] %v518_v56  ;;  %v646_v56 = vld [vmem:[%s4261_s25 + $0xf80] sm:$0xff] }
  0xc9   : > { %521 = vst [vmem:[%s4266_s26 + $0x5c8] sm:$0xff] %v520_v57  ;;  %v648_v57 = vld [vmem:[%s4261_s25 + $0xf88] sm:$0xff] }
  0xca   : > { %523 = vst [vmem:[%s4266_s26 + $0x5d0] sm:$0xff] %v522_v58  ;;  %v650_v58 = vld [vmem:[%s4261_s25 + $0xfa0] sm:$0xff] }
  0xcb   : > { %525 = vst [vmem:[%s4266_s26 + $0x5d8] sm:$0xff] %v524_v59  ;;  %v652_v59 = vld [vmem:[%s4261_s25 + $0xfa8] sm:$0xff] }
  0xcc   : > { %527 = vst [vmem:[%s4266_s26 + $0x5e0] sm:$0xff] %v526_v60  ;;  %v654_v60 = vld [vmem:[%s4261_s25 + $0xfc0] sm:$0xff] }
  0xcd   : > { %529 = vst [vmem:[%s4266_s26 + $0x5e8] sm:$0xff] %v528_v61  ;;  %v656_v61 = vld [vmem:[%s4261_s25 + $0xfc8] sm:$0xff] }
  0xce   : > { %531 = vst [vmem:[%s4266_s26 + $0x5f0] sm:$0xff] %v530_v62  ;;  %v658_v62 = vld [vmem:[%s4261_s25 + $0xfe0] sm:$0xff] }
  0xcf   : > { %533 = vst [vmem:[%s4266_s26 + $0x5f8] sm:$0xff] %v532_v63  ;;  %v660_v63 = vld [vmem:[%s4261_s25 + $0xfe8] sm:$0xff] }
  0xd0   : > { %535 = vst [vmem:[%s4266_s26 + $0x600] sm:$0xff] %v534_v0  ;;  %v662_v0 = vld [vmem:[%s4261_s25 + $0x1000] sm:$0xff] }
  0xd1   : > { %537 = vst [vmem:[%s4266_s26 + $0x608] sm:$0xff] %v536_v1  ;;  %v664_v1 = vld [vmem:[%s4261_s25 + $0x1008] sm:$0xff] }
  0xd2   : > { %539 = vst [vmem:[%s4266_s26 + $0x610] sm:$0xff] %v538_v2 }
  0xd3   : > { %541 = vst [vmem:[%s4266_s26 + $0x618] sm:$0xff] %v540_v3 }
  0xd4   : > { %543 = vst [vmem:[%s4266_s26 + $0x620] sm:$0xff] %v542_v4 }
  0xd5   : > { %545 = vst [vmem:[%s4266_s26 + $0x628] sm:$0xff] %v544_v5 }
  0xd6   : > { %547 = vst [vmem:[%s4266_s26 + $0x630] sm:$0xff] %v546_v6 }
  0xd7   : > { %549 = vst [vmem:[%s4266_s26 + $0x638] sm:$0xff] %v548_v7 }
  0xd8   : > { %551 = vst [vmem:[%s4266_s26 + $0x640] sm:$0xff] %v550_v8 }
  0xd9   : > { %553 = vst [vmem:[%s4266_s26 + $0x648] sm:$0xff] %v552_v9 }
  0xda   : > { %555 = vst [vmem:[%s4266_s26 + $0x650] sm:$0xff] %v554_v10 }
  0xdb   : > { %557 = vst [vmem:[%s4266_s26 + $0x658] sm:$0xff] %v556_v11 }
  0xdc   : > { %559 = vst [vmem:[%s4266_s26 + $0x660] sm:$0xff] %v558_v12 }
  0xdd   : > { %561 = vst [vmem:[%s4266_s26 + $0x668] sm:$0xff] %v560_v13 }
  0xde   : > { %563 = vst [vmem:[%s4266_s26 + $0x670] sm:$0xff] %v562_v14 }
  0xdf   : > { %565 = vst [vmem:[%s4266_s26 + $0x678] sm:$0xff] %v564_v15 }
  0xe0   : > { %567 = vst [vmem:[%s4266_s26 + $0x680] sm:$0xff] %v566_v16 }
  0xe1   : > { %569 = vst [vmem:[%s4266_s26 + $0x688] sm:$0xff] %v568_v17 }
  0xe2   : > { %571 = vst [vmem:[%s4266_s26 + $0x690] sm:$0xff] %v570_v18 }
  0xe3   : > { %573 = vst [vmem:[%s4266_s26 + $0x698] sm:$0xff] %v572_v19 }
  0xe4   : > { %575 = vst [vmem:[%s4266_s26 + $0x6a0] sm:$0xff] %v574_v20 }
  0xe5   : > { %577 = vst [vmem:[%s4266_s26 + $0x6a8] sm:$0xff] %v576_v21 }
  0xe6   : > { %579 = vst [vmem:[%s4266_s26 + $0x6b0] sm:$0xff] %v578_v22 }
  0xe7   : > { %581 = vst [vmem:[%s4266_s26 + $0x6b8] sm:$0xff] %v580_v23 }
  0xe8   : > { %583 = vst [vmem:[%s4266_s26 + $0x6c0] sm:$0xff] %v582_v24 }
  0xe9   : > { %585 = vst [vmem:[%s4266_s26 + $0x6c8] sm:$0xff] %v584_v25 }
  0xea   : > { %587 = vst [vmem:[%s4266_s26 + $0x6d0] sm:$0xff] %v586_v26 }
  0xeb   : > { %589 = vst [vmem:[%s4266_s26 + $0x6d8] sm:$0xff] %v588_v27 }
  0xec   : > { %591 = vst [vmem:[%s4266_s26 + $0x6e0] sm:$0xff] %v590_v28 }
  0xed   : > { %593 = vst [vmem:[%s4266_s26 + $0x6e8] sm:$0xff] %v592_v29 }
  0xee   : > { %595 = vst [vmem:[%s4266_s26 + $0x6f0] sm:$0xff] %v594_v30 }
  0xef   : > { %597 = vst [vmem:[%s4266_s26 + $0x6f8] sm:$0xff] %v596_v31 }
  0xf0   : > { %599 = vst [vmem:[%s4266_s26 + $0x700] sm:$0xff] %v598_v32 }
  0xf1   : > { %601 = vst [vmem:[%s4266_s26 + $0x708] sm:$0xff] %v600_v33 }
  0xf2   : > { %603 = vst [vmem:[%s4266_s26 + $0x710] sm:$0xff] %v602_v34 }
  0xf3   : > { %605 = vst [vmem:[%s4266_s26 + $0x718] sm:$0xff] %v604_v35 }
  0xf4   : > { %607 = vst [vmem:[%s4266_s26 + $0x720] sm:$0xff] %v606_v36 }
  0xf5   : > { %609 = vst [vmem:[%s4266_s26 + $0x728] sm:$0xff] %v608_v37 }
  0xf6   : > { %611 = vst [vmem:[%s4266_s26 + $0x730] sm:$0xff] %v610_v38 }
  0xf7   : > { %613 = vst [vmem:[%s4266_s26 + $0x738] sm:$0xff] %v612_v39 }
  0xf8   : > { %615 = vst [vmem:[%s4266_s26 + $0x740] sm:$0xff] %v614_v40 }
  0xf9   : > { %617 = vst [vmem:[%s4266_s26 + $0x748] sm:$0xff] %v616_v41 }
  0xfa   : > { %619 = vst [vmem:[%s4266_s26 + $0x750] sm:$0xff] %v618_v42 }
  0xfb   : > { %621 = vst [vmem:[%s4266_s26 + $0x758] sm:$0xff] %v620_v43 }
  0xfc   : > { %623 = vst [vmem:[%s4266_s26 + $0x760] sm:$0xff] %v622_v44 }
  0xfd   : > { %625 = vst [vmem:[%s4266_s26 + $0x768] sm:$0xff] %v624_v45 }
  0xfe   : > { %627 = vst [vmem:[%s4266_s26 + $0x770] sm:$0xff] %v626_v46 }
  0xff   : > { %629 = vst [vmem:[%s4266_s26 + $0x778] sm:$0xff] %v628_v47 }
 0x100   : > { %631 = vst [vmem:[%s4266_s26 + $0x780] sm:$0xff] %v630_v48 }
 0x101   : > { %633 = vst [vmem:[%s4266_s26 + $0x788] sm:$0xff] %v632_v49 }
 0x102   : > { %635 = vst [vmem:[%s4266_s26 + $0x790] sm:$0xff] %v634_v50 }
 0x103   : > { %637 = vst [vmem:[%s4266_s26 + $0x798] sm:$0xff] %v636_v51 }
 0x104   : > { %639 = vst [vmem:[%s4266_s26 + $0x7a0] sm:$0xff] %v638_v52 }
 0x105   : > { %641 = vst [vmem:[%s4266_s26 + $0x7a8] sm:$0xff] %v640_v53 }
 0x106   : > { %643 = vst [vmem:[%s4266_s26 + $0x7b0] sm:$0xff] %v642_v54 }
 0x107   : > { %645 = vst [vmem:[%s4266_s26 + $0x7b8] sm:$0xff] %v644_v55 }
 0x108   : > { %647 = vst [vmem:[%s4266_s26 + $0x7c0] sm:$0xff] %v646_v56 }
 0x109   : > { %649 = vst [vmem:[%s4266_s26 + $0x7c8] sm:$0xff] %v648_v57 }
 0x10a   : > { %651 = vst [vmem:[%s4266_s26 + $0x7d0] sm:$0xff] %v650_v58 }
 0x10b   : > { %653 = vst [vmem:[%s4266_s26 + $0x7d8] sm:$0xff] %v652_v59 }
 0x10c   : > { %655 = vst [vmem:[%s4266_s26 + $0x7e0] sm:$0xff] %v654_v60 }
 0x10d   : > { %657 = vst [vmem:[%s4266_s26 + $0x7e8] sm:$0xff] %v656_v61 }
 0x10e   : > { %659 = vst [vmem:[%s4266_s26 + $0x7f0] sm:$0xff] %v658_v62 }
 0x10f   : > { %661 = vst [vmem:[%s4266_s26 + $0x7f8] sm:$0xff] %v660_v63 }
 0x110   : > { %663 = vst [vmem:[%s4266_s26 + $0x800] sm:$0xff] %v662_v0 }
 0x111   : > { %665 = vst [vmem:[%s4266_s26 + $0x808] sm:$0xff] %v664_v1 }
 0x112 PF: > { %p2862_p5 = scmp.ge.s32.totalorder %s4203_s14, 1  ;;  %p670_p6 = scmp.lt.s32.totalorder %s4203_s14, 3 }
 0x114   : > { %p671_p7 = pnand %p2862_p5, %p670_p6 }
 0x115   : > { %s677_s27 = sand.u32 (!%p671_p7), 1, %s4195_s12   ;;  %s5309_s20 = sshll.u32 (!%p671_p7), %s2856_s15, 2 }
 0x116   : > { %674 = sbr.rel (%p671_p7) target bundleno = 703 (0x2bf), region = 51  ;;  %p702_p8 = scmp.lt.s32.totalorder (!%p671_p7), %s5309_s20, 7 }
 0x117   : > { %s4153_s28 = smul.u32 (!%p671_p7), 2064, %s677_s27 }
 0x119   : > { %s4784_s29 = scalar_lea.vmem (!%p671_p7), [#allocation2], %s4153_s28 }
 0x11b   : > { %v2979_v2 = vld [vmem:[%s4784_s29 + $0xe0] sm:$0xf]  ;;  %v3926_v3 = vld [vmem:[%s4784_s29 + $0xec] sm:$0xf0]  ;;  %vm2302_vm0 = vcmask 1041408   ;;  %vm2303_vm1 = vcmask 1042432  }
 0x11c   : > { %v3107_v4 = vld [vmem:[%s4784_s29 + $0x1e0] sm:$0xf]  ;;  %v2980_v5 = vor.u32 %v3926_v3, %v2979_v2  ;;  %v3958_v6 = vld [vmem:[%s4784_s29 + $0x1ec] sm:$0xf0]  ;;  %vm2298_vm2 = vcmask 39936   ;;  %s5458_s20 = smov (!%p702_p8, %s5309_s20), 7 }
 0x11d   : > { %v3235_v7 = vld [vmem:[%s4784_s29 + $0x2e0] sm:$0xf]  ;;  %v3990_v8 = vld [vmem:[%s4784_s29 + $0x2ec] sm:$0xf0]  ;;  %v3108_v9 = vor.u32 %v3958_v6, %v3107_v4  ;;  %s2864_s14 = sshll.u32 %s5458_s20, 3 }
 0x11e   : > { %v3236_v10 = vor.u32 %v3990_v8, %v3235_v7  ;;  %v3363_v11 = vld [vmem:[%s4784_s29 + $0x3e0] sm:$0xf]  ;;  %v4022_v12 = vld [vmem:[%s4784_s29 + $0x3ec] sm:$0xf0]  ;;  %2318 = vmatpush.bf16.msra.mxu0 %v2980_v5  ;;  %s5356_s22 = scalar_lea.vmem %s5453_s3, %s2864_s14 }
 0x11f   : > { %v2963_v13 = vld [vmem:[%s4784_s29 + $0xc0] sm:$0xf]  ;;  %v3364_v14 = vor.u32 %v4022_v12, %v3363_v11  ;;  %v3922_v15 = vld [vmem:[%s4784_s29 + $0xcc] sm:$0xf0]  ;;  %2331 = vmatpush.bf16.msra.mxu1 %v3108_v9 }
 0x120   : > { %v3091_v16 = vld [vmem:[%s4784_s29 + $0x1c0] sm:$0xf]  ;;  %v3954_v17 = vld [vmem:[%s4784_s29 + $0x1cc] sm:$0xf0]  ;;  %2344 = vmatpush.bf16.msra.mxu2 %v3236_v10  ;;  %v2964_v18 = vor.u32 %v3922_v15, %v2963_v13 }
 0x121   : > { %v3092_v19 = vor.u32 %v3954_v17, %v3091_v16  ;;  %v3219_v20 = vld [vmem:[%s4784_s29 + $0x2c0] sm:$0xf]  ;;  %v3986_v21 = vld [vmem:[%s4784_s29 + $0x2cc] sm:$0xf0]  ;;  %2357 = vmatpush.bf16.msra.mxu3 %v3364_v14 }
 0x122   : > { %v3347_v22 = vld [vmem:[%s4784_s29 + $0x3c0] sm:$0xf]  ;;  %v3220_v23 = vor.u32 %v3986_v21, %v3219_v20  ;;  %v4018_v24 = vld [vmem:[%s4784_s29 + $0x3cc] sm:$0xf0]  ;;  %2319 = vmatpush.bf16.msra.mxu0 %v2964_v18 }
 0x123   : > { %v2947_v25 = vld [vmem:[%s4784_s29 + $0xa0] sm:$0xf]  ;;  %v3918_v26 = vld [vmem:[%s4784_s29 + $0xac] sm:$0xf0]  ;;  %v3348_v27 = vor.u32 %v4018_v24, %v3347_v22  ;;  %2332 = vmatpush.bf16.msra.mxu1 %v3092_v19 }
 0x124   : > { %v3075_v28 = vld [vmem:[%s4784_s29 + $0x1a0] sm:$0xf]  ;;  %v3950_v29 = vld [vmem:[%s4784_s29 + $0x1ac] sm:$0xf0]  ;;  %v2948_v31 = vor.u32 %v3918_v26, %v2947_v25  ;;  %2345 = vmatpush.bf16.msra.mxu2 %v3220_v23 }
 0x125   : > { %v3203_v30 = vld [vmem:[%s4784_s29 + $0x2a0] sm:$0xf]  ;;  %v3982_v32 = vld [vmem:[%s4784_s29 + $0x2ac] sm:$0xf0]  ;;  %v3076_v35 = vor.u32 %v3950_v29, %v3075_v28  ;;  %2358 = vmatpush.bf16.msra.mxu3 %v3348_v27 }
 0x126   : > { %v3331_v33 = vld [vmem:[%s4784_s29 + $0x3a0] sm:$0xf]  ;;  %v4014_v34 = vld [vmem:[%s4784_s29 + $0x3ac] sm:$0xf0]  ;;  %v3204_v36 = vor.u32 %v3982_v32, %v3203_v30  ;;  %2320 = vmatpush.bf16.msra.mxu0 %v2948_v31 }
 0x127   : > { %v2931_v37 = vld [vmem:[%s4784_s29 + $0x80] sm:$0xf]  ;;  %v3914_v38 = vld [vmem:[%s4784_s29 + $0x8c] sm:$0xf0]  ;;  %v3332_v40 = vor.u32 %v4014_v34, %v3331_v33  ;;  %2333 = vmatpush.bf16.msra.mxu1 %v3076_v35 }
 0x128   : > { %v3059_v39 = vld [vmem:[%s4784_s29 + $0x180] sm:$0xf]  ;;  %v3946_v41 = vld [vmem:[%s4784_s29 + $0x18c] sm:$0xf0]  ;;  %v2932_v46 = vor.u32 %v3914_v38, %v2931_v37  ;;  %2346 = vmatpush.bf16.msra.mxu2 %v3204_v36 }
 0x129   : > { %v3187_v42 = vld [vmem:[%s4784_s29 + $0x280] sm:$0xf]  ;;  %v3978_v43 = vld [vmem:[%s4784_s29 + $0x28c] sm:$0xf0]  ;;  %v3060_v47 = vor.u32 %v3946_v41, %v3059_v39  ;;  %2359 = vmatpush.bf16.msra.mxu3 %v3332_v40 }
 0x12a   : > { %v3315_v44 = vld [vmem:[%s4784_s29 + $0x380] sm:$0xf]  ;;  %v4010_v45 = vld [vmem:[%s4784_s29 + $0x38c] sm:$0xf0]  ;;  %v3188_v48 = vor.u32 %v3978_v43, %v3187_v42  ;;  %2321 = vmatpush.bf16.msra.mxu0 %v2932_v46 }
 0x12b   : > { %v2915_v49 = vld [vmem:[%s4784_s29 + $0x60] sm:$0xf]  ;;  %v3910_v50 = vld [vmem:[%s4784_s29 + $0x6c] sm:$0xf0]  ;;  %v3316_v52 = vor.u32 %v4010_v45, %v3315_v44  ;;  %2334 = vmatpush.bf16.msra.mxu1 %v3060_v47 }
 0x12c   : > { %v3043_v51 = vld [vmem:[%s4784_s29 + $0x160] sm:$0xf]  ;;  %v3942_v53 = vld [vmem:[%s4784_s29 + $0x16c] sm:$0xf0]  ;;  %v2916_v58 = vor.u32 %v3910_v50, %v2915_v49  ;;  %2347 = vmatpush.bf16.msra.mxu2 %v3188_v48 }
 0x12d   : > { %v3171_v54 = vld [vmem:[%s4784_s29 + $0x260] sm:$0xf]  ;;  %v3974_v55 = vld [vmem:[%s4784_s29 + $0x26c] sm:$0xf0]  ;;  %v3044_v59 = vor.u32 %v3942_v53, %v3043_v51  ;;  %2360 = vmatpush.bf16.msra.mxu3 %v3316_v52 }
 0x12e   : > { %v3299_v56 = vld [vmem:[%s4784_s29 + $0x360] sm:$0xf]  ;;  %v4006_v57 = vld [vmem:[%s4784_s29 + $0x36c] sm:$0xf0]  ;;  %v3172_v60 = vor.u32 %v3974_v55, %v3171_v54  ;;  %2322 = vmatpush.bf16.msra.mxu0 %v2916_v58 }
 0x12f   : > { %v2899_v61 = vld [vmem:[%s4784_s29 + $0x40] sm:$0xf]  ;;  %v3906_v62 = vld [vmem:[%s4784_s29 + $0x4c] sm:$0xf0]  ;;  %v3300_v0 = vor.u32 %v4006_v57, %v3299_v56  ;;  %2335 = vmatpush.bf16.msra.mxu1 %v3044_v59 }
 0x130   : > { %v3027_v63 = vld [vmem:[%s4784_s29 + $0x140] sm:$0xf]  ;;  %v3938_v1 = vld [vmem:[%s4784_s29 + $0x14c] sm:$0xf0]  ;;  %v2900_v6 = vor.u32 %v3906_v62, %v2899_v61  ;;  %2348 = vmatpush.bf16.msra.mxu2 %v3172_v60 }
 0x131   : > { %v3155_v2 = vld [vmem:[%s4784_s29 + $0x240] sm:$0xf]  ;;  %v3970_v3 = vld [vmem:[%s4784_s29 + $0x24c] sm:$0xf0]  ;;  %v3028_v7 = vor.u32 %v3938_v1, %v3027_v63  ;;  %2361 = vmatpush.bf16.msra.mxu3 %v3300_v0 }
 0x132   : > { %v3283_v4 = vld [vmem:[%s4784_s29 + $0x340] sm:$0xf]  ;;  %v4002_v5 = vld [vmem:[%s4784_s29 + $0x34c] sm:$0xf0]  ;;  %v3156_v8 = vor.u32 %v3970_v3, %v3155_v2  ;;  %2323 = vmatpush.bf16.msra.mxu0 %v2900_v6 }
 0x133   : > { %v2883_v9 = vld [vmem:[%s4784_s29 + $0x20] sm:$0xf]  ;;  %v3902_v10 = vld [vmem:[%s4784_s29 + $0x2c] sm:$0xf0]  ;;  %v3284_v12 = vor.u32 %v4002_v5, %v3283_v4  ;;  %2336 = vmatpush.bf16.msra.mxu1 %v3028_v7  ;;  %v709_v4 = vld [vmem:[%s5450_s0 + $0x8] sm:$0xff] }
 0x134   : > { %v3011_v11 = vld [vmem:[%s4784_s29 + $0x120] sm:$0xf]  ;;  %v3934_v13 = vld [vmem:[%s4784_s29 + $0x12c] sm:$0xf0]  ;;  %v2884_v18 = vor.u32 %v3902_v10, %v2883_v9  ;;  %2349 = vmatpush.bf16.msra.mxu2 %v3156_v8  ;;  %v984_v8 = vunpack.c.l.b16 %v709_v4  ;;  %v985_v9 = vunpack.c.h.b16 %v709_v4 }
 0x135   : > { %v3139_v14 = vld [vmem:[%s4784_s29 + $0x220] sm:$0xf]  ;;  %v3966_v15 = vld [vmem:[%s4784_s29 + $0x22c] sm:$0xf0]  ;;  %v3012_v21 = vor.u32 %v3934_v13, %v3011_v11  ;;  %2362 = vmatpush.bf16.msra.mxu3 %v3284_v12 }
 0x136   : > { %v3267_v16 = vld [vmem:[%s4784_s29 + $0x320] sm:$0xf]  ;;  %v3998_v17 = vld [vmem:[%s4784_s29 + $0x32c] sm:$0xf0]  ;;  %v3140_v22 = vor.u32 %v3966_v15, %v3139_v14  ;;  %2324 = vmatpush.bf16.msra.mxu0 %v2884_v18 }
 0x137   : > { %v2867_v19 = vld [vmem:[%s4784_s29] sm:$0xf]  ;;  %v3898_v20 = vld [vmem:[%s4784_s29 + $0xc] sm:$0xf0]  ;;  %v3268_v26 = vor.u32 %v3998_v17, %v3267_v16  ;;  %2337 = vmatpush.bf16.msra.mxu1 %v3012_v21  ;;  %v4888_v16 = vpack.c.b16 %v984_v8, %v984_v8  ;;  %v4894_v21 = vpack.c.b16 %v985_v9, %v985_v9 }
 0x138   : > { %v2995_v23 = vld [vmem:[%s4784_s29 + $0x100] sm:$0xf]  ;;  %v3930_v24 = vld [vmem:[%s4784_s29 + $0x10c] sm:$0xf0]  ;;  %v2868_v33 = vor.u32 %v3898_v20, %v2867_v19  ;;  %2350 = vmatpush.bf16.msra.mxu2 %v3140_v22 }
 0x139   : > { %v3123_v25 = vld [vmem:[%s4784_s29 + $0x200] sm:$0xf]  ;;  %v3962_v27 = vld [vmem:[%s4784_s29 + $0x20c] sm:$0xf0]  ;;  %v2996_v37 = vor.u32 %v3930_v24, %v2995_v23  ;;  %2363 = vmatpush.bf16.msra.mxu3 %v3268_v26 }
 0x13a   : > { %v3251_v28 = vld [vmem:[%s4784_s29 + $0x300] sm:$0xf]  ;;  %v3994_v29 = vld [vmem:[%s4784_s29 + $0x30c] sm:$0xf0]  ;;  %v3124_v38 = vor.u32 %v3962_v27, %v3123_v25  ;;  %2325 = vmatpush.bf16.msra.mxu0 %v2868_v33 }
 0x13b   : > { %v3491_v30 = vld [vmem:[%s4784_s29 + $0x4e0] sm:$0xf]  ;;  %v4054_v31 = vld [vmem:[%s4784_s29 + $0x4ec] sm:$0xf0]  ;;  %v3252_v41 = vor.u32 %v3994_v29, %v3251_v28  ;;  %2338 = vmatpush.bf16.msra.mxu1 %v2996_v37 }
 0x13c   : > { %v3619_v32 = vld [vmem:[%s4784_s29 + $0x5e0] sm:$0xf]  ;;  %v4086_v34 = vld [vmem:[%s4784_s29 + $0x5ec] sm:$0xf0]  ;;  %v3492_v42 = vor.u32 %v4054_v31, %v3491_v30  ;;  %2351 = vmatpush.bf16.msra.mxu2 %v3124_v38 }
 0x13d   : > { %v3747_v35 = vld [vmem:[%s4784_s29 + $0x6e0] sm:$0xf]  ;;  %v4118_v36 = vld [vmem:[%s4784_s29 + $0x6ec] sm:$0xf0]  ;;  %v3620_v43 = vor.u32 %v4086_v34, %v3619_v32  ;;  %2364 = vmatpush.bf16.msra.mxu3 %v3252_v41 }
 0x13e   : > { %v3875_v39 = vld [vmem:[%s4784_s29 + $0x7e0] sm:$0xf]  ;;  %v4150_v40 = vld [vmem:[%s4784_s29 + $0x7ec] sm:$0xf0]  ;;  %v3748_v44 = vor.u32 %v4118_v36, %v3747_v35  ;;  %2370 = vmatpush.bf16.msrb.mxu0 %v3492_v42 }
 0x13f   : > { %v3475_v45 = vld [vmem:[%s4784_s29 + $0x4c0] sm:$0xf]  ;;  %v4050_v46 = vld [vmem:[%s4784_s29 + $0x4cc] sm:$0xf0]  ;;  %v3876_v48 = vor.u32 %v4150_v40, %v3875_v39  ;;  %2383 = vmatpush.bf16.msrb.mxu1 %v3620_v43  ;;  %2352 = vmatmul.bf16.vlgmr.msra.gmra.mxu2 %v4888_v16 }
 0x140   : > { %v3603_v47 = vld [vmem:[%s4784_s29 + $0x5c0] sm:$0xf]  ;;  %v4082_v49 = vld [vmem:[%s4784_s29 + $0x5cc] sm:$0xf0]  ;;  %v3476_v55 = vor.u32 %v4050_v46, %v3475_v45  ;;  %2396 = vmatpush.bf16.msrb.mxu2 %v3748_v44  ;;  %2365 = vmatmul.bf16.vlgmr.msra.gmra.mxu3 %v4894_v21 }
 0x141   : > { %v3731_v50 = vld [vmem:[%s4784_s29 + $0x6c0] sm:$0xf]  ;;  %v4114_v51 = vld [vmem:[%s4784_s29 + $0x6cc] sm:$0xf0]  ;;  %v3604_v59 = vor.u32 %v4082_v49, %v3603_v47  ;;  %2409 = vmatpush.bf16.msrb.mxu3 %v3876_v48 }
 0x142   : > { %v3859_v52 = vld [vmem:[%s4784_s29 + $0x7c0] sm:$0xf]  ;;  %v4146_v53 = vld [vmem:[%s4784_s29 + $0x7cc] sm:$0xf0]  ;;  %v3732_v60 = vor.u32 %v4114_v51, %v3731_v50  ;;  %2371 = vmatpush.bf16.msrb.mxu0 %v3476_v55 }
 0x143   : > { %v708_v54 = vld [vmem:[%s5450_s0] sm:$0xff]  ;;  %v3860_v0 = vor.u32 %v4146_v53, %v3859_v52  ;;  %2384 = vmatpush.bf16.msrb.mxu1 %v3604_v59 }
 0x144   : > { %v3459_v56 = vld [vmem:[%s4784_s29 + $0x4a0] sm:$0xf]  ;;  %v982_v57 = vunpack.c.l.b16 %v708_v54  ;;  %v983_v58 = vunpack.c.h.b16 %v708_v54  ;;  %v4046_v61 = vld [vmem:[%s4784_s29 + $0x4ac] sm:$0xf0]  ;;  %2397 = vmatpush.bf16.msrb.mxu2 %v3732_v60 }
 0x145   : > { %v3587_v62 = vld [vmem:[%s4784_s29 + $0x5a0] sm:$0xf]  ;;  %v4078_v63 = vld [vmem:[%s4784_s29 + $0x5ac] sm:$0xf0]  ;;  %v3460_v10 = vor.u32 %v4046_v61, %v3459_v56  ;;  %2410 = vmatpush.bf16.msrb.mxu3 %v3860_v0  ;;  %v4205_v61 = vmov 0  }
 0x146   : > { %v3715_v1 = vld [vmem:[%s4784_s29 + $0x6a0] sm:$0xf]  ;;  %v4110_v2 = vld [vmem:[%s4784_s29 + $0x6ac] sm:$0xf0]  ;;  %v4875_v3 = vpack.c.b16 %v982_v57, %v982_v57  ;;  %v4880_v5 = vpack.c.b16 %v983_v58, %v983_v58  ;;  %v3588_v11 = vor.u32 %v4078_v63, %v3587_v62  ;;  %4180 = vset.pattern.permute.xlu0 %v4205_v61  ;;  %v3077_v61 = vld [vmem:[%s4784_s29 + $0x1b0] sm:$0xf0] }
 0x147   : > { %v3843_v6 = vld [vmem:[%s4784_s29 + $0x7a0] sm:$0xf]  ;;  %v4142_v7 = vld [vmem:[%s4784_s29 + $0x7ac] sm:$0xf0]  ;;  %v3716_v12 = vor.u32 %v4110_v2, %v3715_v1  ;;  %2372 = vmatpush.bf16.msrb.mxu0 %v3460_v10 }
 0x148   : > { %2339 = vmatmul.bf16.vlgmr.msra.gmra.mxu1 %v4880_v5  ;;  %v3443_v13 = vld [vmem:[%s4784_s29 + $0x480] sm:$0xf]  ;;  %v4042_v14 = vld [vmem:[%s4784_s29 + $0x48c] sm:$0xf0]  ;;  %v3844_v17 = vor.u32 %v4142_v7, %v3843_v6  ;;  %2326 = vmatmul.bf16.vlgmr.msra.gmra.mxu0 %v4875_v3 }
 0x149   : > { %v3571_v15 = vld [vmem:[%s4784_s29 + $0x580] sm:$0xf]  ;;  %v4074_v18 = vld [vmem:[%s4784_s29 + $0x58c] sm:$0xf0]  ;;  %v3444_v24 = vor.u32 %v4042_v14, %v3443_v13  ;;  %2385 = vmatpush.bf16.msrb.mxu1 %v3588_v11  ;;  %2398 = vmatpush.bf16.msrb.mxu2 %v3716_v12  ;;  %v711_v11 = vld [vmem:[%s5450_s0 + $0x18] sm:$0xff] }
 0x14a   : > { %v3699_v19 = vld [vmem:[%s4784_s29 + $0x680] sm:$0xf]  ;;  %v4106_v20 = vld [vmem:[%s4784_s29 + $0x68c] sm:$0xf0]  ;;  %v3572_v25 = vor.u32 %v4074_v18, %v3571_v15  ;;  %2411 = vmatpush.bf16.msrb.mxu3 %v3844_v17  ;;  %v3924_v17 = vld [vmem:[%s4784_s29 + $0xe4] sm:$0xf] }
 0x14b   : > { %v3827_v22 = vld [vmem:[%s4784_s29 + $0x780] sm:$0xf]  ;;  %v4138_v23 = vld [vmem:[%s4784_s29 + $0x78c] sm:$0xf0]  ;;  %v3700_v26 = vor.u32 %v4106_v20, %v3699_v19  ;;  %2373 = vmatpush.bf16.msrb.mxu0 %v3444_v24  ;;  %v2981_v18 = vld [vmem:[%s4784_s29 + $0xf0] sm:$0xf0] }
 0x14c   : > { %v3427_v27 = vld [vmem:[%s4784_s29 + $0x460] sm:$0xf]  ;;  %v4038_v28 = vld [vmem:[%s4784_s29 + $0x46c] sm:$0xf0]  ;;  %v3828_v30 = vor.u32 %v4138_v23, %v3827_v22  ;;  %v3956_v19 = vld [vmem:[%s4784_s29 + $0x1e4] sm:$0xf] }
 0x14d   : > { %v3555_v29 = vld [vmem:[%s4784_s29 + $0x560] sm:$0xf]  ;;  %v4070_v31 = vld [vmem:[%s4784_s29 + $0x56c] sm:$0xf0]  ;;  %v3428_v36 = vor.u32 %v4038_v28, %v3427_v27  ;;  %2386 = vmatpush.bf16.msrb.mxu1 %v3572_v25  ;;  %2399 = vmatpush.bf16.msrb.mxu2 %v3700_v26  ;;  %v4206_v20 = vmov 65535   ;;  %v988_v28 = vunpack.c.l.b16 %v711_v11 }
 0x14e   : > { %v3683_v32 = vld [vmem:[%s4784_s29 + $0x660] sm:$0xf]  ;;  %v4102_v33 = vld [vmem:[%s4784_s29 + $0x66c] sm:$0xf0]  ;;  %v3556_v37 = vor.u32 %v4070_v31, %v3555_v29  ;;  %2412 = vmatpush.bf16.msrb.mxu3 %v3828_v30  ;;  %v2304_v22 = vsel %vm2302_vm0, 4294967295, %v4206_v20 }
 0x14f   : > { %v3811_v34 = vld [vmem:[%s4784_s29 + $0x760] sm:$0xf]  ;;  %v4134_v35 = vld [vmem:[%s4784_s29 + $0x76c] sm:$0xf0]  ;;  %v3684_v38 = vor.u32 %v4102_v33, %v3683_v32  ;;  %2374 = vmatpush.bf16.msrb.mxu0 %v3428_v36  ;;  %v3109_v24 = vld [vmem:[%s4784_s29 + $0x1f0] sm:$0xf0]  ;;  %v989_v32 = vunpack.c.h.b16 %v711_v11 }
 0x150   : > { %v3411_v39 = vld [vmem:[%s4784_s29 + $0x440] sm:$0xf]  ;;  %v4034_v40 = vld [vmem:[%s4784_s29 + $0x44c] sm:$0xf0]  ;;  %v3812_v42 = vor.u32 %v4134_v35, %v3811_v34  ;;  %v3988_v25 = vld [vmem:[%s4784_s29 + $0x2e4] sm:$0xf]  ;;  %v2984_v34 = vor.u32 %v3924_v17, %v2981_v18 }
 0x151   : > { %v3539_v41 = vld [vmem:[%s4784_s29 + $0x540] sm:$0xf]  ;;  %v4066_v43 = vld [vmem:[%s4784_s29 + $0x54c] sm:$0xf0]  ;;  %v3412_v48 = vor.u32 %v4034_v40, %v3411_v39  ;;  %2387 = vmatpush.bf16.msrb.mxu1 %v3556_v37  ;;  %2400 = vmatpush.bf16.msrb.mxu2 %v3684_v38  ;;  %v3237_v26 = vld [vmem:[%s4784_s29 + $0x2f0] sm:$0xf0]  ;;  %v3112_v38 = vor.u32 %v3956_v19, %v3109_v24 }
 0x152   : > { %v3667_v44 = vld [vmem:[%s4784_s29 + $0x640] sm:$0xf]  ;;  %v4098_v45 = vld [vmem:[%s4784_s29 + $0x64c] sm:$0xf0]  ;;  %v3540_v52 = vor.u32 %v4066_v43, %v3539_v41  ;;  %2413 = vmatpush.bf16.msrb.mxu3 %v3812_v42  ;;  %v3920_v35 = vld [vmem:[%s4784_s29 + $0xc4] sm:$0xf]  ;;  %v3240_v39 = vor.u32 %v3988_v25, %v3237_v26 }
 0x153   : > { %v3795_v46 = vld [vmem:[%s4784_s29 + $0x740] sm:$0xf]  ;;  %v4130_v47 = vld [vmem:[%s4784_s29 + $0x74c] sm:$0xf0]  ;;  %v3668_v53 = vor.u32 %v4098_v45, %v3667_v44  ;;  %2375 = vmatpush.bf16.msrb.mxu0 %v3412_v48  ;;  %v2965_v36 = vld [vmem:[%s4784_s29 + $0xd0] sm:$0xf0] }
 0x154   : > { %v3395_v49 = vld [vmem:[%s4784_s29 + $0x420] sm:$0xf]  ;;  %v4030_v50 = vld [vmem:[%s4784_s29 + $0x42c] sm:$0xf0]  ;;  %v3796_v57 = vor.u32 %v4130_v47, %v3795_v46  ;;  %v4958_v37 = vsel %vm2303_vm1, %v2304_v22, 0  ;;  %v4968_v47 = vpack.c.b16 %v988_v28, %v988_v28 }
 0x155   : > { %v971_v51 = vld [vmem:[%s5452_s2] sm:$0xff]  ;;  %v3396_v1 = vor.u32 %v4030_v50, %v3395_v49  ;;  %2388 = vmatpush.bf16.msrb.mxu1 %v3540_v52  ;;  %2401 = vmatpush.bf16.msrb.mxu2 %v3668_v53  ;;  %v4939_v10 = vld [vmem:[%s5450_s0 + $0x10] sm:$0xff]  ;;  %v4972_v50 = vpack.c.b16 %v989_v32, %v989_v32 }
 0x156   : > { %v3523_v54 = vld [vmem:[%s4784_s29 + $0x520] sm:$0xf]  ;;  %v4062_v55 = vld [vmem:[%s4784_s29 + $0x52c] sm:$0xf0]  ;;  %974 = vperm.xlu0 %4180, %v971_v51   ;;  %2414 = vmatpush.bf16.msrb.mxu3 %v3796_v57  ;;  %v986_v27 = vunpack.c.l.b16 %v4939_v10  ;;  %v3952_v40 = vld [vmem:[%s4784_s29 + $0x1c4] sm:$0xf]  ;;  %v987_v48 = vunpack.c.h.b16 %v4939_v10  ;;  %v2968_v51 = vor.u32 %v3920_v35, %v2965_v36 }
 0x157   : > { %v3651_v56 = vld [vmem:[%s4784_s29 + $0x620] sm:$0xf]  ;;  %v4094_v58 = vld [vmem:[%s4784_s29 + $0x62c] sm:$0xf0]  ;;  %v3524_v7 = vor.u32 %v4062_v55, %v3523_v54  ;;  %2376 = vmatpush.bf16.msrb.mxu0 %v3396_v1  ;;  %v4020_v41 = vld [vmem:[%s4784_s29 + $0x3e4] sm:$0xf] }
 0x158   : > { %v3779_v59 = vld [vmem:[%s4784_s29 + $0x720] sm:$0xf]  ;;  %v4126_v62 = vld [vmem:[%s4784_s29 + $0x72c] sm:$0xf0]  ;;  %v3652_v8 = vor.u32 %v4094_v58, %v3651_v56  ;;  %v3365_v42 = vld [vmem:[%s4784_s29 + $0x3f0] sm:$0xf0]  ;;  %v4963_v43 = vpack.c.b16 %v986_v27, %v986_v27 }
 0x159   : > { %v4927_v60 = vld [vmem:[%s4784_s29 + $0x800] sm:$0x77]  ;;  %v4026_v0 = vld [vmem:[%s4784_s29 + $0x40c] sm:$0xf0]  ;;  %v3780_v13 = vor.u32 %v4126_v62, %v3779_v59  ;;  %2389 = vmatpush.bf16.msrb.mxu1 %v3524_v7  ;;  %v3093_v44 = vld [vmem:[%s4784_s29 + $0x1d0] sm:$0xf0]  ;;  %v3368_v54 = vor.u32 %v4020_v41, %v3365_v42 }
 0x15a   : > { %v3379_v63 = vld [vmem:[%s4784_s29 + $0x400] sm:$0xf]  ;;  %v4058_v4 = vld [vmem:[%s4784_s29 + $0x50c] sm:$0xf0]  ;;  %v1778_v12 = vunpack.c.l.b16 %v4927_v60  ;;  %2402 = vmatpush.bf16.msrb.mxu2 %v3652_v8  ;;  %v3984_v45 = vld [vmem:[%s4784_s29 + $0x2c4] sm:$0xf]  ;;  %v3096_v55 = vor.u32 %v3952_v40, %v3093_v44 }
 0x15b   : > { %v3507_v2 = vld [vmem:[%s4784_s29 + $0x500] sm:$0xf]  ;;  %v4090_v9 = vld [vmem:[%s4784_s29 + $0x60c] sm:$0xf0]  ;;  %v3380_v23 = vor.u32 %v4026_v0, %v3379_v63  ;;  %2415 = vmatpush.bf16.msrb.mxu3 %v3780_v13  ;;  %v3221_v46 = vld [vmem:[%s4784_s29 + $0x2d0] sm:$0xf0]  ;;  %v4984_v0 = vpack.c.b16 %v987_v48, %v987_v48 }
 0x15c   : > { %v3635_v6 = vld [vmem:[%s4784_s29 + $0x600] sm:$0xf]  ;;  %v4122_v15 = vld [vmem:[%s4784_s29 + $0x70c] sm:$0xf0]  ;;  %v3508_v29 = vor.u32 %v4058_v4, %v3507_v2  ;;  %v2038_v31 = vpack.c.b16 %v1778_v12, %v1778_v12  ;;  %v3916_v52 = vld [vmem:[%s4784_s29 + $0xa4] sm:$0xf]  ;;  %v3224_v56 = vor.u32 %v3984_v45, %v3221_v46 }
 0x15d   : > { %v3763_v14 = vld [vmem:[%s4784_s29 + $0x700] sm:$0xf]  ;;  %v3636_v30 = vor.u32 %v4090_v9, %v3635_v6  ;;  %2377 = vmatpush.bf16.msrb.mxu0 %v3380_v23  ;;  %v2949_v53 = vld [vmem:[%s4784_s29 + $0xb0] sm:$0xf0]  ;;  %v3948_v57 = vld [vmem:[%s4784_s29 + $0x1a4] sm:$0xf] }
 0x15e   : > { %v3764_v33 = vor.u32 %v4122_v15, %v3763_v14  ;;  %2390 = vmatpush.bf16.msrb.mxu1 %v3508_v29  ;;  %v2307_v49 = vand.u32 %v4958_v37, %v2038_v31  ;;  %v4016_v58 = vld [vmem:[%s4784_s29 + $0x3c4] sm:$0xf]  ;;  %v3349_v59 = vld [vmem:[%s4784_s29 + $0x3d0] sm:$0xf0]  ;;  %v2952_v1 = vor.u32 %v3916_v52, %v2949_v53  ;;  %v3080_v7 = vor.u32 %v3948_v57, %v3077_v61  ;;  %v712_v15 = vld [vmem:[%s5450_s0 + $0x20] sm:$0xf] }
 0x15f   : > { %2403 = vmatpush.bf16.msrb.mxu2 %v3636_v30  ;;  %v3980_v62 = vld [vmem:[%s4784_s29 + $0x2a4] sm:$0xf]  ;;  %v3205_v63 = vld [vmem:[%s4784_s29 + $0x2b0] sm:$0xf0]  ;;  %v3352_v6 = vor.u32 %v4016_v58, %v3349_v59  ;;  %v990_v30 = vunpack.c.l.b16 %v712_v15 }
 0x160   : > { %2416 = vmatpush.bf16.msrb.mxu3 %v3764_v33  ;;  %2378 = vmatmul.bf16.vlgmr.msrb.gmra.mxu0 %v4963_v43  ;;  %v3912_v2 = vld [vmem:[%s4784_s29 + $0x84] sm:$0xf]  ;;  %v2933_v4 = vld [vmem:[%s4784_s29 + $0x90] sm:$0xf0]  ;;  %v3208_v8 = vor.u32 %v3980_v62, %v3205_v63 }
 0x161   : > { %2429 = vmatpush.bf16.msra.mxu0 %v2307_v49  ;;  %v3944_v9 = vld [vmem:[%s4784_s29 + $0x184] sm:$0xf]  ;;  %v3333_v11 = vld [vmem:[%s4784_s29 + $0x3b0] sm:$0xf0]  ;;  %2391 = vmatmul.bf16.vlgmr.msrb.gmra.mxu1 %v4984_v0  ;;  %v2936_v17 = vor.u32 %v3912_v2, %v2933_v4  ;;  %v5012_v41 = vpack.c.b16 %v990_v30, %v990_v30 }
 0x162   : > { %2435 = vmatpush.bf16.msra.mxu1 %v2984_v34  ;;  %2404 = vmatmul.bf16.vlgmr.msrb.gmra.mxu2 %v4968_v47  ;;  %v4012_v10 = vld [vmem:[%s4784_s29 + $0x3a4] sm:$0xf]  ;;  %v3061_v12 = vld [vmem:[%s4784_s29 + $0x190] sm:$0xf0] }
 0x163   : > { %2448 = vmatpush.bf16.msra.mxu2 %v3112_v38  ;;  %2417 = vmatmul.bf16.vlgmr.msrb.gmra.mxu3 %v4972_v50  ;;  %v3976_v13 = vld [vmem:[%s4784_s29 + $0x284] sm:$0xf]  ;;  %v3189_v14 = vld [vmem:[%s4784_s29 + $0x290] sm:$0xf0]  ;;  %v3336_v20 = vor.u32 %v4012_v10, %v3333_v11  ;;  %v3064_v22 = vor.u32 %v3944_v9, %v3061_v12 }
 0x164   : > { %2461 = vmatpush.bf16.msra.mxu3 %v3240_v39  ;;  %v3908_v18 = vld [vmem:[%s4784_s29 + $0x64] sm:$0xf]  ;;  %v2917_v19 = vld [vmem:[%s4784_s29 + $0x70] sm:$0xf0]  ;;  %v3192_v23 = vor.u32 %v3976_v13, %v3189_v14 }
 0x165   : > { %2474 = vmatpush.bf16.msrb.mxu0 %v3368_v54  ;;  %v3940_v24 = vld [vmem:[%s4784_s29 + $0x164] sm:$0xf]  ;;  %v3317_v26 = vld [vmem:[%s4784_s29 + $0x390] sm:$0xf0]  ;;  %v2920_v31 = vor.u32 %v3908_v18, %v2917_v19 }
 0x166   : > { %2436 = vmatpush.bf16.msra.mxu1 %v2968_v51  ;;  %v4008_v25 = vld [vmem:[%s4784_s29 + $0x384] sm:$0xf]  ;;  %v3045_v27 = vld [vmem:[%s4784_s29 + $0x170] sm:$0xf0] }
 0x167   : > { %2449 = vmatpush.bf16.msra.mxu2 %v3096_v55  ;;  %v3972_v28 = vld [vmem:[%s4784_s29 + $0x264] sm:$0xf]  ;;  %v3173_v29 = vld [vmem:[%s4784_s29 + $0x270] sm:$0xf0]  ;;  %v3320_v34 = vor.u32 %v4008_v25, %v3317_v26  ;;  %v3048_v35 = vor.u32 %v3940_v24, %v3045_v27 }
 0x168   : > { %2462 = vmatpush.bf16.msra.mxu3 %v3224_v56  ;;  %v3904_v32 = vld [vmem:[%s4784_s29 + $0x44] sm:$0xf]  ;;  %v2901_v33 = vld [vmem:[%s4784_s29 + $0x50] sm:$0xf0]  ;;  %v3176_v36 = vor.u32 %v3972_v28, %v3173_v29 }
 0x169   : > { %2475 = vmatpush.bf16.msrb.mxu0 %v3352_v6  ;;  %v3936_v38 = vld [vmem:[%s4784_s29 + $0x144] sm:$0xf]  ;;  %v3301_v40 = vld [vmem:[%s4784_s29 + $0x370] sm:$0xf0]  ;;  %v2904_v46 = vor.u32 %v3904_v32, %v2901_v33 }
 0x16a   : > { %2437 = vmatpush.bf16.msra.mxu1 %v2952_v1  ;;  %v4004_v39 = vld [vmem:[%s4784_s29 + $0x364] sm:$0xf]  ;;  %v3029_v42 = vld [vmem:[%s4784_s29 + $0x150] sm:$0xf0] }
 0x16b   : > { %2450 = vmatpush.bf16.msra.mxu2 %v3080_v7  ;;  %v3968_v44 = vld [vmem:[%s4784_s29 + $0x244] sm:$0xf]  ;;  %v3157_v45 = vld [vmem:[%s4784_s29 + $0x250] sm:$0xf0]  ;;  %v3304_v51 = vor.u32 %v4004_v39, %v3301_v40  ;;  %v3032_v52 = vor.u32 %v3936_v38, %v3029_v42 }
 0x16c   : > { %2463 = vmatpush.bf16.msra.mxu3 %v3208_v8  ;;  %v3900_v48 = vld [vmem:[%s4784_s29 + $0x24] sm:$0xf]  ;;  %v2885_v49 = vld [vmem:[%s4784_s29 + $0x30] sm:$0xf0]  ;;  %v3160_v53 = vor.u32 %v3968_v44, %v3157_v45 }
 0x16d   : > { %2476 = vmatpush.bf16.msrb.mxu0 %v3336_v20  ;;  %v3932_v54 = vld [vmem:[%s4784_s29 + $0x124] sm:$0xf]  ;;  %v3285_v56 = vld [vmem:[%s4784_s29 + $0x350] sm:$0xf0]  ;;  %v2888_v61 = vor.u32 %v3900_v48, %v2885_v49 }
 0x16e   : > { %2438 = vmatpush.bf16.msra.mxu1 %v2936_v17  ;;  %v4000_v55 = vld [vmem:[%s4784_s29 + $0x344] sm:$0xf]  ;;  %v3013_v57 = vld [vmem:[%s4784_s29 + $0x130] sm:$0xf0] }
 0x16f   : > { %2451 = vmatpush.bf16.msra.mxu2 %v3064_v22  ;;  %v3964_v58 = vld [vmem:[%s4784_s29 + $0x224] sm:$0xf]  ;;  %v3141_v59 = vld [vmem:[%s4784_s29 + $0x230] sm:$0xf0]  ;;  %v3288_v2 = vor.u32 %v4000_v55, %v3285_v56  ;;  %v3016_v4 = vor.u32 %v3932_v54, %v3013_v57 }
 0x170   : > { %2464 = vmatpush.bf16.msra.mxu3 %v3192_v23  ;;  %3889 = vmatmul.msk.bf16.vlgmr.msra.gmra.mxu0 %vm2298_vm2, %v5012_v41  ;;  %v3896_v62 = vld [vmem:[%s4784_s29 + $0x4] sm:$0xf]  ;;  %v2869_v63 = vld [vmem:[%s4784_s29 + $0x10] sm:$0xf0]  ;;  %v3144_v6 = vor.u32 %v3964_v58, %v3141_v59 }
 0x171   : > { %2477 = vmatpush.bf16.msrb.mxu0 %v3320_v34  ;;  %v3928_v1 = vld [vmem:[%s4784_s29 + $0x104] sm:$0xf]  ;;  %v2997_v7 = vld [vmem:[%s4784_s29 + $0x110] sm:$0xf0]  ;;  %v2872_v17 = vor.u32 %v3896_v62, %v2869_v63 }
 0x172   : > { %2439 = vmatpush.bf16.msra.mxu1 %v2920_v31  ;;  %v3996_v8 = vld [vmem:[%s4784_s29 + $0x324] sm:$0xf]  ;;  %v3269_v9 = vld [vmem:[%s4784_s29 + $0x330] sm:$0xf0]  ;;  %v3000_v22 = vor.u32 %v3928_v1, %v2997_v7 }
 0x173   : > { %2452 = vmatpush.bf16.msra.mxu2 %v3048_v35  ;;  %v3960_v10 = vld [vmem:[%s4784_s29 + $0x204] sm:$0xf]  ;;  %v3125_v11 = vld [vmem:[%s4784_s29 + $0x210] sm:$0xf0]  ;;  %v3272_v20 = vor.u32 %v3996_v8, %v3269_v9 }
 0x174   : > { %2465 = vmatpush.bf16.msra.mxu3 %v3176_v36  ;;  %v4052_v12 = vld [vmem:[%s4784_s29 + $0x4e4] sm:$0xf]  ;;  %v3493_v13 = vld [vmem:[%s4784_s29 + $0x4f0] sm:$0xf0]  ;;  %v3128_v23 = vor.u32 %v3960_v10, %v3125_v11 }
 0x175   : > { %2478 = vmatpush.bf16.msrb.mxu0 %v3304_v51  ;;  %v4084_v14 = vld [vmem:[%s4784_s29 + $0x5e4] sm:$0xf]  ;;  %v3621_v15 = vld [vmem:[%s4784_s29 + $0x5f0] sm:$0xf0]  ;;  %v3496_v26 = vor.u32 %v4052_v12, %v3493_v13 }
 0x176   : > { %2440 = vmatpush.bf16.msra.mxu1 %v2904_v46  ;;  %v4116_v18 = vld [vmem:[%s4784_s29 + $0x6e4] sm:$0xf]  ;;  %v3749_v19 = vld [vmem:[%s4784_s29 + $0x6f0] sm:$0xf0]  ;;  %v3624_v27 = vor.u32 %v4084_v14, %v3621_v15 }
 0x177   : > { %2453 = vmatpush.bf16.msra.mxu2 %v3032_v52  ;;  %v3992_v24 = vld [vmem:[%s4784_s29 + $0x304] sm:$0xf]  ;;  %v3253_v25 = vld [vmem:[%s4784_s29 + $0x310] sm:$0xf0]  ;;  %v3752_v31 = vor.u32 %v4116_v18, %v3749_v19 }
 0x178   : > { %2466 = vmatpush.bf16.msra.mxu3 %v3160_v53  ;;  %v4048_v28 = vld [vmem:[%s4784_s29 + $0x4c4] sm:$0xf]  ;;  %v3877_v30 = vld [vmem:[%s4784_s29 + $0x7f0] sm:$0xf0]  ;;  %v3256_v38 = vor.u32 %v3992_v24, %v3253_v25 }
 0x179   : > { %2479 = vmatpush.bf16.msrb.mxu0 %v3288_v2  ;;  %v4148_v29 = vld [vmem:[%s4784_s29 + $0x7e4] sm:$0xf]  ;;  %v3477_v32 = vld [vmem:[%s4784_s29 + $0x4d0] sm:$0xf0] }
 0x17a   : > { %2441 = vmatpush.bf16.msra.mxu1 %v2888_v61  ;;  %v4080_v33 = vld [vmem:[%s4784_s29 + $0x5c4] sm:$0xf]  ;;  %v3605_v34 = vld [vmem:[%s4784_s29 + $0x5d0] sm:$0xf0]  ;;  %v3880_v39 = vor.u32 %v4148_v29, %v3877_v30  ;;  %v3480_v40 = vor.u32 %v4048_v28, %v3477_v32 }
 0x17b   : > { %2454 = vmatpush.bf16.msra.mxu2 %v3016_v4  ;;  %v4112_v35 = vld [vmem:[%s4784_s29 + $0x6c4] sm:$0xf]  ;;  %v3733_v36 = vld [vmem:[%s4784_s29 + $0x6d0] sm:$0xf0]  ;;  %v3608_v42 = vor.u32 %v4080_v33, %v3605_v34 }
 0x17c   : > { %2467 = vmatpush.bf16.msra.mxu3 %v3144_v6  ;;  %v4044_v44 = vld [vmem:[%s4784_s29 + $0x4a4] sm:$0xf]  ;;  %v3861_v46 = vld [vmem:[%s4784_s29 + $0x7d0] sm:$0xf0]  ;;  %v3736_v48 = vor.u32 %v4112_v35, %v3733_v36 }
 0x17d   : > { %2480 = vmatpush.bf16.msrb.mxu0 %v3272_v20  ;;  %v4144_v45 = vld [vmem:[%s4784_s29 + $0x7c4] sm:$0xf]  ;;  %v3461_v49 = vld [vmem:[%s4784_s29 + $0x4b0] sm:$0xf0] }
 0x17e   : > { %2442 = vmatpush.bf16.msra.mxu1 %v2872_v17  ;;  %v4076_v51 = vld [vmem:[%s4784_s29 + $0x5a4] sm:$0xf]  ;;  %v3589_v52 = vld [vmem:[%s4784_s29 + $0x5b0] sm:$0xf0]  ;;  %v3864_v55 = vor.u32 %v4144_v45, %v3861_v46  ;;  %v3464_v56 = vor.u32 %v4044_v44, %v3461_v49  ;;  %v1779_v49 = vunpack.c.h.b16 %v4927_v60 }
 0x17f   : > { %2455 = vmatpush.bf16.msra.mxu2 %v3000_v22  ;;  %v4108_v53 = vld [vmem:[%s4784_s29 + $0x6a4] sm:$0xf]  ;;  %v3717_v54 = vld [vmem:[%s4784_s29 + $0x6b0] sm:$0xf0]  ;;  %v3592_v57 = vor.u32 %v4076_v51, %v3589_v52 }
 0x180   : > { %2468 = vmatpush.bf16.msra.mxu3 %v3128_v23  ;;  %v4040_v58 = vld [vmem:[%s4784_s29 + $0x484] sm:$0xf]  ;;  %v3845_v61 = vld [vmem:[%s4784_s29 + $0x7b0] sm:$0xf0]  ;;  %v3720_v62 = vor.u32 %v4108_v53, %v3717_v54 }
 0x181   : > { %2443 = vmatmul.bf16.vlgmr.msra.gmra.mxu1 %v4875_v3  ;;  %2481 = vmatpush.bf16.msrb.mxu0 %v3256_v38  ;;  %v4140_v59 = vld [vmem:[%s4784_s29 + $0x7a4] sm:$0xf]  ;;  %v3445_v63 = vld [vmem:[%s4784_s29 + $0x490] sm:$0xf0] }
 0x182   : > { %2487 = vmatpush.bf16.msrb.mxu1 %v3496_v26  ;;  %2456 = vmatmul.bf16.vlgmr.msra.gmra.mxu2 %v4880_v5  ;;  %v4072_v1 = vld [vmem:[%s4784_s29 + $0x584] sm:$0xf]  ;;  %v3573_v2 = vld [vmem:[%s4784_s29 + $0x590] sm:$0xf0]  ;;  %v3848_v7 = vor.u32 %v4140_v59, %v3845_v61  ;;  %v3448_v8 = vor.u32 %v4040_v58, %v3445_v63  ;;  %v2987_v63 = vld [vmem:[%s4784_s29 + $0xe8] sm:$0xf] }
 0x183   : > { %2500 = vmatpush.bf16.msrb.mxu2 %v3624_v27  ;;  %2469 = vmatmul.bf16.vlgmr.msra.gmra.mxu3 %v4888_v16  ;;  %v4104_v4 = vld [vmem:[%s4784_s29 + $0x684] sm:$0xf]  ;;  %v3701_v6 = vld [vmem:[%s4784_s29 + $0x690] sm:$0xf0]  ;;  %v3576_v9 = vor.u32 %v4072_v1, %v3573_v2  ;;  %v3927_v1 = vld [vmem:[%s4784_s29 + $0xf4] sm:$0xf0]  ;;  %v2039_v2 = vpack.c.b16 %v1779_v49, %v1779_v49 }
 0x184   : > { %2513 = vmatpush.bf16.msrb.mxu3 %v3752_v31  ;;  %2482 = vmatmul.bf16.vlgmr.msrb.gmra.mxu0 %v4894_v21  ;;  %v4036_v10 = vld [vmem:[%s4784_s29 + $0x464] sm:$0xf]  ;;  %v3829_v12 = vld [vmem:[%s4784_s29 + $0x790] sm:$0xf0]  ;;  %v3704_v13 = vor.u32 %v4104_v4, %v3701_v6  ;;  %v3115_v4 = vld [vmem:[%s4784_s29 + $0x1e8] sm:$0xf] }
 0x185   : > { %2526 = vmatpush.bf16.msra.mxu0 %v3880_v39  ;;  %v4136_v11 = vld [vmem:[%s4784_s29 + $0x784] sm:$0xf]  ;;  %v3429_v14 = vld [vmem:[%s4784_s29 + $0x470] sm:$0xf0]  ;;  %v3959_v6 = vld [vmem:[%s4784_s29 + $0x1f4] sm:$0xf0] }
 0x186   : > { %2488 = vmatpush.bf16.msrb.mxu1 %v3480_v40  ;;  %v4068_v15 = vld [vmem:[%s4784_s29 + $0x564] sm:$0xf]  ;;  %v3557_v17 = vld [vmem:[%s4784_s29 + $0x570] sm:$0xf0]  ;;  %v3832_v20 = vor.u32 %v4136_v11, %v3829_v12  ;;  %v3432_v22 = vor.u32 %v4036_v10, %v3429_v14  ;;  %v2971_v10 = vld [vmem:[%s4784_s29 + $0xc8] sm:$0xf]  ;;  %v2988_v12 = vor.u32 %v3927_v1, %v2987_v63 }
 0x187   : > { %2501 = vmatpush.bf16.msrb.mxu2 %v3608_v42  ;;  %v4100_v18 = vld [vmem:[%s4784_s29 + $0x664] sm:$0xf]  ;;  %v3685_v19 = vld [vmem:[%s4784_s29 + $0x670] sm:$0xf0]  ;;  %v3560_v23 = vor.u32 %v4068_v15, %v3557_v17  ;;  %v3116_v17 = vor.u32 %v3959_v6, %v3115_v4  ;;  %v3195_v63 = vld [vmem:[%s4784_s29 + $0x288] sm:$0xf] }
 0x188   : > { %2514 = vmatpush.bf16.msrb.mxu3 %v3736_v48  ;;  %v4032_v24 = vld [vmem:[%s4784_s29 + $0x444] sm:$0xf]  ;;  %v3813_v26 = vld [vmem:[%s4784_s29 + $0x770] sm:$0xf0]  ;;  %v3688_v27 = vor.u32 %v4100_v18, %v3685_v19  ;;  %v3099_v18 = vld [vmem:[%s4784_s29 + $0x1c8] sm:$0xf] }
 0x189   : > { %2527 = vmatpush.bf16.msra.mxu0 %v3864_v55  ;;  %v4132_v25 = vld [vmem:[%s4784_s29 + $0x764] sm:$0xf]  ;;  %v3413_v28 = vld [vmem:[%s4784_s29 + $0x450] sm:$0xf0]  ;;  %v3243_v19 = vld [vmem:[%s4784_s29 + $0x2e8] sm:$0xf] }
 0x18a   : > { %2489 = vmatpush.bf16.msrb.mxu1 %v3464_v56  ;;  %v4064_v29 = vld [vmem:[%s4784_s29 + $0x544] sm:$0xf]  ;;  %v3541_v30 = vld [vmem:[%s4784_s29 + $0x550] sm:$0xf0]  ;;  %v3816_v33 = vor.u32 %v4132_v25, %v3813_v26  ;;  %v3416_v34 = vor.u32 %v4032_v24, %v3413_v28  ;;  %v3371_v24 = vld [vmem:[%s4784_s29 + $0x3e8] sm:$0xf] }
 0x18b   : > { %2502 = vmatpush.bf16.msrb.mxu2 %v3592_v57  ;;  %v4096_v31 = vld [vmem:[%s4784_s29 + $0x644] sm:$0xf]  ;;  %v3669_v32 = vld [vmem:[%s4784_s29 + $0x650] sm:$0xf0]  ;;  %v3544_v35 = vor.u32 %v4064_v29, %v3541_v30  ;;  %v4023_v25 = vld [vmem:[%s4784_s29 + $0x3f4] sm:$0xf0] }
 0x18c   : > { %2515 = vmatpush.bf16.msrb.mxu3 %v3720_v62  ;;  %v4028_v36 = vld [vmem:[%s4784_s29 + $0x424] sm:$0xf]  ;;  %v3797_v39 = vld [vmem:[%s4784_s29 + $0x750] sm:$0xf0]  ;;  %v3672_v40 = vor.u32 %v4096_v31, %v3669_v32  ;;  %v2955_v28 = vld [vmem:[%s4784_s29 + $0xa8] sm:$0xf] }
 0x18d   : > { %2528 = vmatpush.bf16.msra.mxu0 %v3848_v7  ;;  %v4128_v38 = vld [vmem:[%s4784_s29 + $0x744] sm:$0xf]  ;;  %v3397_v42 = vld [vmem:[%s4784_s29 + $0x430] sm:$0xf0]  ;;  %v3919_v29 = vld [vmem:[%s4784_s29 + $0xb4] sm:$0xf0] }
 0x18e   : > { %2490 = vmatpush.bf16.msrb.mxu1 %v3448_v8  ;;  %v4060_v44 = vld [vmem:[%s4784_s29 + $0x524] sm:$0xf]  ;;  %v3525_v45 = vld [vmem:[%s4784_s29 + $0x530] sm:$0xf0]  ;;  %v3800_v52 = vor.u32 %v4128_v38, %v3797_v39  ;;  %v3400_v53 = vor.u32 %v4028_v36, %v3397_v42  ;;  %v3083_v32 = vld [vmem:[%s4784_s29 + $0x1a8] sm:$0xf] }
 0x18f   : > { %2503 = vmatpush.bf16.msrb.mxu2 %v3576_v9  ;;  %v4092_v46 = vld [vmem:[%s4784_s29 + $0x624] sm:$0xf]  ;;  %v3653_v48 = vld [vmem:[%s4784_s29 + $0x630] sm:$0xf0]  ;;  %v3528_v54 = vor.u32 %v4060_v44, %v3525_v45  ;;  %v3951_v36 = vld [vmem:[%s4784_s29 + $0x1b4] sm:$0xf0] }
 0x190   : > { %2516 = vmatpush.bf16.msrb.mxu3 %v3704_v13  ;;  %v4024_v51 = vld [vmem:[%s4784_s29 + $0x404] sm:$0xf]  ;;  %v3381_v55 = vld [vmem:[%s4784_s29 + $0x410] sm:$0xf0]  ;;  %v3656_v58 = vor.u32 %v4092_v46, %v3653_v48  ;;  %v3923_v13 = vld [vmem:[%s4784_s29 + $0xd4] sm:$0xf0]  ;;  %v3084_v46 = vor.u32 %v3951_v36, %v3083_v32 }
 0x191   : > { %2529 = vmatpush.bf16.msra.mxu0 %v3832_v20  ;;  %v4124_v56 = vld [vmem:[%s4784_s29 + $0x724] sm:$0xf]  ;;  %v3781_v57 = vld [vmem:[%s4784_s29 + $0x730] sm:$0xf0]  ;;  %v3384_v8 = vor.u32 %v4024_v51, %v3381_v55  ;;  %v3991_v20 = vld [vmem:[%s4784_s29 + $0x2f4] sm:$0xf0] }
 0x192   : > { %2491 = vmatpush.bf16.msrb.mxu1 %v3432_v22  ;;  %v4056_v59 = vld [vmem:[%s4784_s29 + $0x504] sm:$0xf]  ;;  %v3509_v60 = vld [vmem:[%s4784_s29 + $0x510] sm:$0xf0]  ;;  %v3784_v7 = vor.u32 %v4124_v56, %v3781_v57  ;;  %v2310_v22 = vand.u32 %v4958_v37, %v2039_v2  ;;  %v3244_v30 = vor.u32 %v3991_v20, %v3243_v19  ;;  %v3355_v38 = vld [vmem:[%s4784_s29 + $0x3c8] sm:$0xf] }
 0x193   : > { %2504 = vmatpush.bf16.msrb.mxu2 %v3560_v23  ;;  %v4088_v61 = vld [vmem:[%s4784_s29 + $0x604] sm:$0xf]  ;;  %v3637_v62 = vld [vmem:[%s4784_s29 + $0x610] sm:$0xf0]  ;;  %v3512_v9 = vor.u32 %v4056_v59, %v3509_v60  ;;  %v3955_v23 = vld [vmem:[%s4784_s29 + $0x1d4] sm:$0xf0] }
 0x194   : > { %2517 = vmatpush.bf16.msrb.mxu3 %v3688_v27  ;;  %v3640_v11 = vor.u32 %v4088_v61, %v3637_v62  ;;  %v4120_v14 = vld [vmem:[%s4784_s29 + $0x704] sm:$0xf]  ;;  %v3765_v15 = vld [vmem:[%s4784_s29 + $0x710] sm:$0xf0]  ;;  %v2972_v27 = vor.u32 %v3923_v13, %v2971_v10  ;;  %v3100_v31 = vor.u32 %v3955_v23, %v3099_v18  ;;  %v4019_v39 = vld [vmem:[%s4784_s29 + $0x3d4] sm:$0xf0] }
 0x195   : > { %2530 = vmatpush.bf16.msra.mxu0 %v3816_v33  ;;  %v3768_v26 = vor.u32 %v4120_v14, %v3765_v15  ;;  %v3372_v33 = vor.u32 %v4023_v25, %v3371_v24  ;;  %v2939_v42 = vld [vmem:[%s4784_s29 + $0x88] sm:$0xf]  ;;  %v3915_v44 = vld [vmem:[%s4784_s29 + $0x94] sm:$0xf0]  ;;  %v3356_v49 = vor.u32 %v4019_v39, %v3355_v38 }
 0x196   : > { %2492 = vmatpush.bf16.msrb.mxu1 %v3416_v34  ;;  %v3227_v34 = vld [vmem:[%s4784_s29 + $0x2c8] sm:$0xf]  ;;  %v4015_v55 = vld [vmem:[%s4784_s29 + $0x3b4] sm:$0xf0]  ;;  %v2940_v56 = vor.u32 %v3915_v44, %v2939_v42 }
 0x197   : > { %2505 = vmatpush.bf16.msrb.mxu2 %v3544_v35  ;;  %v3987_v35 = vld [vmem:[%s4784_s29 + $0x2d4] sm:$0xf0]  ;;  %v3067_v48 = vld [vmem:[%s4784_s29 + $0x188] sm:$0xf] }
 0x198   : > { %2518 = vmatpush.bf16.msrb.mxu3 %v3672_v40  ;;  %v2956_v40 = vor.u32 %v3919_v29, %v2955_v28  ;;  %v3228_v45 = vor.u32 %v3987_v35, %v3227_v34  ;;  %v3211_v51 = vld [vmem:[%s4784_s29 + $0x2a8] sm:$0xf]  ;;  %v3979_v1 = vld [vmem:[%s4784_s29 + $0x294] sm:$0xf0] }
 0x199   : > { %2531 = vmatpush.bf16.msra.mxu0 %v3800_v52  ;;  %v3983_v52 = vld [vmem:[%s4784_s29 + $0x2b4] sm:$0xf0]  ;;  %v2923_v57 = vld [vmem:[%s4784_s29 + $0x68] sm:$0xf]  ;;  %v3196_v10 = vor.u32 %v3979_v1, %v3195_v63 }
 0x19a   : > { %2493 = vmatpush.bf16.msrb.mxu1 %v3400_v53  ;;  %v3947_v53 = vld [vmem:[%s4784_s29 + $0x194] sm:$0xf0]  ;;  %v3212_v59 = vor.u32 %v3983_v52, %v3211_v51  ;;  %v3051_v61 = vld [vmem:[%s4784_s29 + $0x168] sm:$0xf] }
 0x19b   : > { %2506 = vmatpush.bf16.msrb.mxu2 %v3528_v54  ;;  %v3339_v54 = vld [vmem:[%s4784_s29 + $0x3a8] sm:$0xf]  ;;  %v3068_v60 = vor.u32 %v3947_v53, %v3067_v48  ;;  %v3943_v2 = vld [vmem:[%s4784_s29 + $0x174] sm:$0xf0] }
 0x19c   : > { %2519 = vmatpush.bf16.msrb.mxu3 %v3656_v58  ;;  %v3911_v58 = vld [vmem:[%s4784_s29 + $0x74] sm:$0xf0]  ;;  %v3340_v62 = vor.u32 %v4015_v55, %v3339_v54  ;;  %v3323_v4 = vld [vmem:[%s4784_s29 + $0x388] sm:$0xf] }
 0x19d   : > { %2532 = vmatpush.bf16.msra.mxu0 %v3784_v7  ;;  %v4011_v6 = vld [vmem:[%s4784_s29 + $0x394] sm:$0xf0]  ;;  %v2924_v7 = vor.u32 %v3911_v58, %v2923_v57  ;;  %v3179_v14 = vld [vmem:[%s4784_s29 + $0x268] sm:$0xf] }
 0x19e   : > { %2494 = vmatpush.bf16.msrb.mxu1 %v3384_v8  ;;  %v2907_v8 = vld [vmem:[%s4784_s29 + $0x48] sm:$0xf]  ;;  %v3324_v13 = vor.u32 %v4011_v6, %v3323_v4  ;;  %v3975_v15 = vld [vmem:[%s4784_s29 + $0x274] sm:$0xf0] }
 0x19f   : > { %2507 = vmatpush.bf16.msrb.mxu2 %v3512_v9  ;;  %v3907_v9 = vld [vmem:[%s4784_s29 + $0x54] sm:$0xf0]  ;;  %v3307_v18 = vld [vmem:[%s4784_s29 + $0x368] sm:$0xf]  ;;  %v3180_v24 = vor.u32 %v3975_v15, %v3179_v14 }
 0x1a0   : > { %2520 = vmatpush.bf16.msrb.mxu3 %v3640_v11  ;;  %v3052_v11 = vor.u32 %v3943_v2, %v3051_v61  ;;  %v4007_v19 = vld [vmem:[%s4784_s29 + $0x374] sm:$0xf0]  ;;  %v2908_v20 = vor.u32 %v3907_v9, %v2907_v8  ;;  %v3163_v28 = vld [vmem:[%s4784_s29 + $0x248] sm:$0xf] }
 0x1a1   : > { %2495 = vmatmul.bf16.vlgmr.msrb.gmra.mxu1 %v4963_v43  ;;  %2533 = vmatpush.bf16.msra.mxu0 %v3768_v26  ;;  %v3903_v23 = vld [vmem:[%s4784_s29 + $0x34] sm:$0xf0]  ;;  %v3019_v26 = vld [vmem:[%s4784_s29 + $0x128] sm:$0xf] }
 0x1a2   : > { %2546 = vmatpush.bf16.msra.mxu1 %v2310_v22  ;;  %2508 = vmatmul.bf16.vlgmr.msrb.gmra.mxu2 %v4984_v0  ;;  %v2891_v22 = vld [vmem:[%s4784_s29 + $0x28] sm:$0xf]  ;;  %v3971_v29 = vld [vmem:[%s4784_s29 + $0x254] sm:$0xf0] }
 0x1a3   : > { %2552 = vmatpush.bf16.msra.mxu2 %v2988_v12  ;;  %2521 = vmatmul.bf16.vlgmr.msrb.gmra.mxu3 %v4968_v47  ;;  %v3035_v12 = vld [vmem:[%s4784_s29 + $0x148] sm:$0xf]  ;;  %v4003_v32 = vld [vmem:[%s4784_s29 + $0x354] sm:$0xf0]  ;;  %v3164_v38 = vor.u32 %v3971_v29, %v3163_v28 }
 0x1a4   : > { %2565 = vmatpush.bf16.msra.mxu3 %v3116_v17  ;;  %2534 = vmatmul.bf16.vlgmr.msra.gmra.mxu0 %v4972_v50  ;;  %v3939_v17 = vld [vmem:[%s4784_s29 + $0x154] sm:$0xf0]  ;;  %v2875_v34 = vld [vmem:[%s4784_s29 + $0x8] sm:$0xf] }
 0x1a5   : > { %2578 = vmatpush.bf16.msrb.mxu0 %v3244_v30  ;;  %v3036_v25 = vor.u32 %v3939_v17, %v3035_v12  ;;  %v3935_v30 = vld [vmem:[%s4784_s29 + $0x134] sm:$0xf0]  ;;  %v3003_v36 = vld [vmem:[%s4784_s29 + $0x108] sm:$0xf] }
 0x1a6   : > { %2591 = vmatpush.bf16.msrb.mxu1 %v3372_v33  ;;  %v2892_v33 = vor.u32 %v3903_v23, %v2891_v22  ;;  %v3899_v35 = vld [vmem:[%s4784_s29 + $0x14] sm:$0xf0]  ;;  %v3020_v39 = vor.u32 %v3935_v30, %v3019_v26  ;;  %v3147_v44 = vld [vmem:[%s4784_s29 + $0x228] sm:$0xf] }
 0x1a7   : > { %2553 = vmatpush.bf16.msra.mxu2 %v2972_v27  ;;  %v3308_v27 = vor.u32 %v4007_v19, %v3307_v18  ;;  %v4055_v48 = vld [vmem:[%s4784_s29 + $0x4f4] sm:$0xf0]  ;;  %v3275_v52 = vld [vmem:[%s4784_s29 + $0x328] sm:$0xf]  ;;  %v2876_v54 = vor.u32 %v3899_v35, %v2875_v34 }
 0x1a8   : > { %2566 = vmatpush.bf16.msra.mxu3 %v3100_v31  ;;  %v3291_v31 = vld [vmem:[%s4784_s29 + $0x348] sm:$0xf]  ;;  %v4087_v51 = vld [vmem:[%s4784_s29 + $0x5f4] sm:$0xf0] }
 0x1a9   : > { %2579 = vmatpush.bf16.msrb.mxu0 %v3228_v45  ;;  %v3292_v42 = vor.u32 %v4003_v32, %v3291_v31  ;;  %v3967_v45 = vld [vmem:[%s4784_s29 + $0x234] sm:$0xf0]  ;;  %v3611_v63 = vld [vmem:[%s4784_s29 + $0x5c8] sm:$0xf] }
 0x1aa   : > { %2592 = vmatpush.bf16.msrb.mxu1 %v3356_v49  ;;  %v3627_v49 = vld [vmem:[%s4784_s29 + $0x5e8] sm:$0xf]  ;;  %v3999_v53 = vld [vmem:[%s4784_s29 + $0x334] sm:$0xf0]  ;;  %v3148_v55 = vor.u32 %v3967_v45, %v3147_v44 }
 0x1ab   : > { %2554 = vmatpush.bf16.msra.mxu2 %v2956_v40  ;;  %v3931_v40 = vld [vmem:[%s4784_s29 + $0x114] sm:$0xf0]  ;;  %v3276_v1 = vor.u32 %v3999_v53, %v3275_v52  ;;  %v3755_v2 = vld [vmem:[%s4784_s29 + $0x6e8] sm:$0xf] }
 0x1ac   : > { %2567 = vmatpush.bf16.msra.mxu3 %v3084_v46  ;;  %v3499_v46 = vld [vmem:[%s4784_s29 + $0x4e8] sm:$0xf]  ;;  %v3004_v57 = vor.u32 %v3931_v40, %v3003_v36  ;;  %v3963_v61 = vld [vmem:[%s4784_s29 + $0x214] sm:$0xf0] }
 0x1ad   : > { %2580 = vmatpush.bf16.msrb.mxu0 %v3212_v59  ;;  %v3500_v58 = vor.u32 %v4055_v48, %v3499_v46  ;;  %v4051_v59 = vld [vmem:[%s4784_s29 + $0x4d4] sm:$0xf0]  ;;  %v3739_v19 = vld [vmem:[%s4784_s29 + $0x6c8] sm:$0xf] }
 0x1ae   : > { %2593 = vmatpush.bf16.msrb.mxu1 %v3340_v62  ;;  %v3628_v62 = vor.u32 %v4087_v51, %v3627_v49  ;;  %v4119_v4 = vld [vmem:[%s4784_s29 + $0x6f4] sm:$0xf0]  ;;  %v3595_v22 = vld [vmem:[%s4784_s29 + $0x5a8] sm:$0xf] }
 0x1af   : > { %2555 = vmatpush.bf16.msra.mxu2 %v2940_v56  ;;  %v3483_v56 = vld [vmem:[%s4784_s29 + $0x4c8] sm:$0xf]  ;;  %v4083_v6 = vld [vmem:[%s4784_s29 + $0x5d4] sm:$0xf0]  ;;  %v3756_v14 = vor.u32 %v4119_v4, %v3755_v2 }
 0x1b0   : > { %2568 = vmatpush.bf16.msra.mxu3 %v3068_v60  ;;  %v3131_v60 = vld [vmem:[%s4784_s29 + $0x208] sm:$0xf]  ;;  %v3995_v8 = vld [vmem:[%s4784_s29 + $0x314] sm:$0xf0]  ;;  %v3484_v12 = vor.u32 %v4051_v59, %v3483_v56  ;;  %v3612_v15 = vor.u32 %v4083_v6, %v3611_v63 }
 0x1b1   : > { %2581 = vmatpush.bf16.msrb.mxu0 %v3196_v10  ;;  %3890 = vmatmul.msk.bf16.vlgmr.msra.gmra.mxu1 %vm2298_vm2, %v5012_v41  ;;  %v3132_v9 = vor.u32 %v3963_v61, %v3131_v60  ;;  %v3883_v10 = vld [vmem:[%s4784_s29 + $0x7e8] sm:$0xf]  ;;  %v4047_v17 = vld [vmem:[%s4784_s29 + $0x4b4] sm:$0xf0] }
 0x1b2   : > { %2594 = vmatpush.bf16.msrb.mxu1 %v3324_v13  ;;  %v3467_v13 = vld [vmem:[%s4784_s29 + $0x4a8] sm:$0xf]  ;;  %v4079_v23 = vld [vmem:[%s4784_s29 + $0x5b4] sm:$0xf0] }
 0x1b3   : > { %2556 = vmatpush.bf16.msra.mxu2 %v2924_v7  ;;  %v3259_v7 = vld [vmem:[%s4784_s29 + $0x308] sm:$0xf]  ;;  %v4147_v26 = vld [vmem:[%s4784_s29 + $0x7d4] sm:$0xf0]  ;;  %v3596_v30 = vor.u32 %v4079_v23, %v3595_v22 }
 0x1b4   : > { %2569 = vmatpush.bf16.msra.mxu3 %v3052_v11  ;;  %v4151_v11 = vld [vmem:[%s4784_s29 + $0x7f4] sm:$0xf0]  ;;  %v3260_v18 = vor.u32 %v3995_v8, %v3259_v7  ;;  %v3451_v28 = vld [vmem:[%s4784_s29 + $0x488] sm:$0xf] }
 0x1b5   : > { %2582 = vmatpush.bf16.msrb.mxu0 %v3180_v24  ;;  %v3884_v24 = vor.u32 %v4151_v11, %v3883_v10  ;;  %v4043_v31 = vld [vmem:[%s4784_s29 + $0x494] sm:$0xf0]  ;;  %v3723_v32 = vld [vmem:[%s4784_s29 + $0x6a8] sm:$0xf] }
 0x1b6   : > { %2595 = vmatpush.bf16.msrb.mxu1 %v3308_v27  ;;  %v3468_v27 = vor.u32 %v4047_v17, %v3467_v13  ;;  %v3579_v34 = vld [vmem:[%s4784_s29 + $0x588] sm:$0xf]  ;;  %v4075_v35 = vld [vmem:[%s4784_s29 + $0x594] sm:$0xf0]  ;;  %v3452_v40 = vor.u32 %v4043_v31, %v3451_v28 }
 0x1b7   : > { %2557 = vmatpush.bf16.msra.mxu2 %v2908_v20  ;;  %v4115_v20 = vld [vmem:[%s4784_s29 + $0x6d4] sm:$0xf0]  ;;  %v3580_v45 = vor.u32 %v4075_v35, %v3579_v34  ;;  %v3707_v48 = vld [vmem:[%s4784_s29 + $0x688] sm:$0xf] }
 0x1b8   : > { %2570 = vmatpush.bf16.msra.mxu3 %v3036_v25  ;;  %v3867_v25 = vld [vmem:[%s4784_s29 + $0x7c8] sm:$0xf]  ;;  %v3740_v29 = vor.u32 %v4115_v20, %v3739_v19  ;;  %v4039_v46 = vld [vmem:[%s4784_s29 + $0x474] sm:$0xf0] }
 0x1b9   : > { %2583 = vmatpush.bf16.msrb.mxu0 %v3164_v38  ;;  %v3868_v36 = vor.u32 %v4147_v26, %v3867_v25  ;;  %v3851_v38 = vld [vmem:[%s4784_s29 + $0x7a8] sm:$0xf]  ;;  %v4107_v49 = vld [vmem:[%s4784_s29 + $0x694] sm:$0xf0] }
 0x1ba   : > { %2596 = vmatpush.bf16.msrb.mxu1 %v3292_v42  ;;  %v3435_v42 = vld [vmem:[%s4784_s29 + $0x468] sm:$0xf]  ;;  %v4071_v52 = vld [vmem:[%s4784_s29 + $0x574] sm:$0xf0]  ;;  %v3708_v59 = vor.u32 %v4107_v49, %v3707_v48 }
 0x1bb   : > { %2558 = vmatpush.bf16.msra.mxu2 %v2892_v33  ;;  %v4111_v33 = vld [vmem:[%s4784_s29 + $0x6b4] sm:$0xf0]  ;;  %v3563_v51 = vld [vmem:[%s4784_s29 + $0x568] sm:$0xf] }
 0x1bc   : > { %2571 = vmatpush.bf16.msra.mxu3 %v3020_v39  ;;  %v4143_v39 = vld [vmem:[%s4784_s29 + $0x7b4] sm:$0xf0]  ;;  %v3724_v44 = vor.u32 %v4111_v33, %v3723_v32  ;;  %v3564_v60 = vor.u32 %v4071_v52, %v3563_v51  ;;  %v3691_v63 = vld [vmem:[%s4784_s29 + $0x668] sm:$0xf]  ;;  %v4021_v52 = vld [vmem:[%s4784_s29 + $0x3ec] sm:$0xf] }
 0x1bd   : > { %2584 = vmatpush.bf16.msrb.mxu0 %v3148_v55  ;;  %v3852_v53 = vor.u32 %v4143_v39, %v3851_v38  ;;  %v4139_v55 = vld [vmem:[%s4784_s29 + $0x794] sm:$0xf0]  ;;  %v3547_v2 = vld [vmem:[%s4784_s29 + $0x548] sm:$0xf] }
 0x1be   : > { %2597 = vmatpush.bf16.msrb.mxu1 %v3276_v1  ;;  %v4035_v61 = vld [vmem:[%s4784_s29 + $0x454] sm:$0xf0]  ;;  %v5228_v7 = vld [vmem:[%s4784_s29 + $0x808] sm:$0x77] }
 0x1bf   : > { %2559 = vmatpush.bf16.msra.mxu2 %v2876_v54  ;;  %v3835_v54 = vld [vmem:[%s4784_s29 + $0x788] sm:$0xf]  ;;  %v4103_v1 = vld [vmem:[%s4784_s29 + $0x674] sm:$0xf0] }
 0x1c0   : > { %2572 = vmatpush.bf16.msra.mxu3 %v3004_v57  ;;  %v3436_v57 = vor.u32 %v4039_v46, %v3435_v42  ;;  %v4067_v4 = vld [vmem:[%s4784_s29 + $0x554] sm:$0xf0]  ;;  %v3836_v6 = vor.u32 %v4139_v55, %v3835_v54  ;;  %v3819_v8 = vld [vmem:[%s4784_s29 + $0x768] sm:$0xf]  ;;  %v3373_v55 = vld [vmem:[%s4784_s29 + $0x3f8] sm:$0xf0] }
 0x1c1   : > { %2585 = vmatpush.bf16.msrb.mxu0 %v3132_v9  ;;  %v4135_v9 = vld [vmem:[%s4784_s29 + $0x774] sm:$0xf0]  ;;  %v3403_v11 = vld [vmem:[%s4784_s29 + $0x428] sm:$0xf]  ;;  %v3548_v13 = vor.u32 %v4067_v4, %v3547_v2  ;;  %v2973_v4 = vld [vmem:[%s4784_s29 + $0xd8] sm:$0xf0] }
 0x1c2   : > { %2560 = vmatmul.bf16.vlgmr.msra.gmra.mxu2 %v4875_v3  ;;  %2598 = vmatpush.bf16.msrb.mxu1 %v3260_v18  ;;  %v4099_v17 = vld [vmem:[%s4784_s29 + $0x654] sm:$0xf0]  ;;  %v1780_v18 = vunpack.c.l.b16 %v5228_v7  ;;  %v3531_v19 = vld [vmem:[%s4784_s29 + $0x528] sm:$0xf]  ;;  %v3820_v22 = vor.u32 %v4135_v9, %v3819_v8  ;;  %v3376_v9 = vor.u32 %v4021_v52, %v3373_v55  ;;  %v3069_v55 = vld [vmem:[%s4784_s29 + $0x198] sm:$0xf0] }
 0x1c3   : > { %2604 = vmatpush.bf16.msrb.mxu2 %v3500_v58  ;;  %2573 = vmatmul.bf16.vlgmr.msra.gmra.mxu3 %v4880_v5  ;;  %v3419_v58 = vld [vmem:[%s4784_s29 + $0x448] sm:$0xf]  ;;  %v4063_v20 = vld [vmem:[%s4784_s29 + $0x534] sm:$0xf0] }
 0x1c4   : > { %2617 = vmatpush.bf16.msrb.mxu3 %v3628_v62  ;;  %2586 = vmatmul.bf16.vlgmr.msrb.gmra.mxu0 %v4888_v16  ;;  %v3420_v10 = vor.u32 %v4035_v61, %v3419_v58  ;;  %v3803_v23 = vld [vmem:[%s4784_s29 + $0x748] sm:$0xf]  ;;  %v4027_v31 = vld [vmem:[%s4784_s29 + $0x414] sm:$0xf0]  ;;  %v2040_v35 = vpack.c.b16 %v1780_v18, %v1780_v18 }
 0x1c5   : > { %2630 = vmatpush.bf16.msra.mxu0 %v3756_v14  ;;  %2599 = vmatmul.bf16.vlgmr.msrb.gmra.mxu1 %v4894_v21  ;;  %v5217_v56 = vpop.f32.mrf.mxu1  ;;  %v5221_v62 = vpop.f32.mrf.mxu0  ;;  %v4031_v14 = vld [vmem:[%s4784_s29 + $0x434] sm:$0xf0]  ;;  %v3659_v33 = vld [vmem:[%s4784_s29 + $0x628] sm:$0xf] }
 0x1c6   : > { %2643 = vmatpush.bf16.msra.mxu1 %v3884_v24  ;;  %v4131_v24 = vld [vmem:[%s4784_s29 + $0x754] sm:$0xf0]  ;;  %v3404_v26 = vor.u32 %v4031_v14, %v3403_v11  ;;  %v3515_v38 = vld [vmem:[%s4784_s29 + $0x508] sm:$0xf]  ;;  %v2313_v54 = vand.u32 %v4958_v37, %v2040_v35  ;;  %v3989_v11 = vld [vmem:[%s4784_s29 + $0x2ec] sm:$0xf] }
 0x1c7   : > { %2605 = vmatpush.bf16.msrb.mxu2 %v3484_v12  ;;  %v3692_v12 = vor.u32 %v4103_v1, %v3691_v63  ;;  %v4095_v34 = vld [vmem:[%s4784_s29 + $0x634] sm:$0xf0]  ;;  %v3804_v42 = vor.u32 %v4131_v24, %v3803_v23  ;;  %v3957_v63 = vld [vmem:[%s4784_s29 + $0x1ec] sm:$0xf]  ;;  %v3117_v1 = vld [vmem:[%s4784_s29 + $0x1f8] sm:$0xf0] }
 0x1c8   : > { %2618 = vmatpush.bf16.msrb.mxu3 %v3612_v15  ;;  %v3675_v15 = vld [vmem:[%s4784_s29 + $0x648] sm:$0xf]  ;;  %v4059_v39 = vld [vmem:[%s4784_s29 + $0x514] sm:$0xf0]  ;;  %v5255_v48 = vpop.permute.xlu0 %974  ;;  %v3660_v51 = vor.u32 %v4095_v34, %v3659_v33  ;;  %v3120_v14 = vor.u32 %v3957_v63, %v3117_v1  ;;  %v3101_v23 = vld [vmem:[%s4784_s29 + $0x1d8] sm:$0xf0] }
 0x1c9   : > { %2631 = vmatpush.bf16.msra.mxu0 %v3740_v29  ;;  %v3676_v28 = vor.u32 %v4099_v17, %v3675_v15  ;;  %v5242_v29 = vpop.f32.mrf.mxu2  ;;  %v4127_v46 = vld [vmem:[%s4784_s29 + $0x734] sm:$0xf0]  ;;  %v2328_v2 = vadd.f32 %v5221_v62, %v5255_v48  ;;  %v4017_v15 = vld [vmem:[%s4784_s29 + $0x3cc] sm:$0xf]  ;;  %v3357_v17 = vld [vmem:[%s4784_s29 + $0x3d8] sm:$0xf0] }
 0x1ca   : > { %2644 = vmatpush.bf16.msra.mxu1 %v3868_v36  ;;  %v5247_v36 = vpop.f32.mrf.mxu3  ;;  %v4091_v58 = vld [vmem:[%s4784_s29 + $0x614] sm:$0xf0]  ;;  %v3917_v24 = vld [vmem:[%s4784_s29 + $0xac] sm:$0xf]  ;;  %v3197_v1 = vld [vmem:[%s4784_s29 + $0x298] sm:$0xf0] }
 0x1cb   : > { %2606 = vmatpush.bf16.msrb.mxu2 %v3468_v27  ;;  %v3387_v27 = vld [vmem:[%s4784_s29 + $0x408] sm:$0xf]  ;;  %v4123_v8 = vld [vmem:[%s4784_s29 + $0x714] sm:$0xf0]  ;;  %v3949_v35 = vld [vmem:[%s4784_s29 + $0x1ac] sm:$0xf] }
 0x1cc   : > { %2619 = vmatpush.bf16.msrb.mxu3 %v3596_v30  ;;  %v3532_v30 = vor.u32 %v4063_v20, %v3531_v19  ;;  %v3388_v49 = vor.u32 %v4027_v31, %v3387_v27  ;;  %v2341_v19 = vadd.f32 %v5217_v56, %v2328_v2  ;;  %v3360_v27 = vor.u32 %v4017_v15, %v3357_v17  ;;  %v4013_v31 = vld [vmem:[%s4784_s29 + $0x3ac] sm:$0xf] }
 0x1cd   : > { %2632 = vmatpush.bf16.msra.mxu0 %v3724_v44  ;;  %v2342_v25 = vpop.f32.mrf.mxu1  ;;  %v2329_v32 = vpop.f32.mrf.mxu0  ;;  %v2989_v44 = vld [vmem:[%s4784_s29 + $0xf8] sm:$0xf0]  ;;  %v3977_v63 = vld [vmem:[%s4784_s29 + $0x28c] sm:$0xf] }
 0x1ce   : > { %2645 = vmatpush.bf16.msra.mxu1 %v3852_v53  ;;  %v3516_v53 = vor.u32 %v4059_v39, %v3515_v38  ;;  %v2957_v25 = vld [vmem:[%s4784_s29 + $0xb8] sm:$0xf0]  ;;  %v2354_v34 = vadd.f32 %v5242_v29, %v2341_v19  ;;  %v3913_v39 = vld [vmem:[%s4784_s29 + $0x8c] sm:$0xf] }
 0x1cf   : > { %2607 = vmatpush.bf16.msrb.mxu2 %v3452_v40  ;;  %v3925_v40 = vld [vmem:[%s4784_s29 + $0xec] sm:$0xf]  ;;  %v3341_v32 = vld [vmem:[%s4784_s29 + $0x3b8] sm:$0xf0]  ;;  %v2960_v33 = vor.u32 %v3917_v24, %v2957_v25 }
 0x1d0   : > { %2620 = vmatpush.bf16.msrb.mxu3 %v3580_v45  ;;  %v3787_v45 = vld [vmem:[%s4784_s29 + $0x728] sm:$0xf]  ;;  %v3085_v38 = vld [vmem:[%s4784_s29 + $0x1b8] sm:$0xf0]  ;;  %v4009_v29 = vld [vmem:[%s4784_s29 + $0x38c] sm:$0xf]  ;;  %v2367_v52 = vadd.f32 %v5247_v36, %v2354_v34 }
 0x1d1   : > { %2633 = vmatpush.bf16.msra.mxu0 %v3708_v59  ;;  %v2992_v59 = vor.u32 %v3925_v40, %v2989_v44  ;;  %v3788_v61 = vor.u32 %v4127_v46, %v3787_v45  ;;  %v2941_v40 = vld [vmem:[%s4784_s29 + $0x98] sm:$0xf0]  ;;  %v3344_v44 = vor.u32 %v4013_v31, %v3341_v32  ;;  %v3981_v45 = vld [vmem:[%s4784_s29 + $0x2ac] sm:$0xf] }
 0x1d2   : > { %2646 = vmatpush.bf16.msra.mxu1 %v3836_v6  ;;  %v3771_v6 = vld [vmem:[%s4784_s29 + $0x708] sm:$0xf]  ;;  %v2368_v62 = vpop.f32.mrf.mxu3  ;;  %v3213_v46 = vld [vmem:[%s4784_s29 + $0x2b8] sm:$0xf0]  ;;  %v4005_v2 = vld [vmem:[%s4784_s29 + $0x36c] sm:$0xf] }
 0x1d3   : > { %2608 = vmatpush.bf16.msrb.mxu2 %v3436_v57  ;;  %v3643_v57 = vld [vmem:[%s4784_s29 + $0x608] sm:$0xf]  ;;  %v3772_v20 = vor.u32 %v4123_v8, %v3771_v6  ;;  %v3973_v17 = vld [vmem:[%s4784_s29 + $0x26c] sm:$0xf]  ;;  %v3181_v62 = vld [vmem:[%s4784_s29 + $0x278] sm:$0xf0] }
 0x1d4   : > { %2621 = vmatpush.bf16.msrb.mxu3 %v3564_v60  ;;  %v3921_v60 = vld [vmem:[%s4784_s29 + $0xcc] sm:$0xf]  ;;  %v3184_v31 = vor.u32 %v3973_v17, %v3181_v62  ;;  %v3165_v34 = vld [vmem:[%s4784_s29 + $0x258] sm:$0xf0] }
 0x1d5   : > { %2634 = vmatpush.bf16.msra.mxu0 %v3692_v12  ;;  %v3245_v12 = vld [vmem:[%s4784_s29 + $0x2f8] sm:$0xf0]  ;;  %v2976_v18 = vor.u32 %v3921_v60, %v2973_v4  ;;  %v3216_v60 = vor.u32 %v3981_v45, %v3213_v46  ;;  %v3897_v46 = vld [vmem:[%s4784_s29 + $0xc] sm:$0xf] }
 0x1d6   : > { %2647 = vmatpush.bf16.msra.mxu1 %v3820_v22  ;;  %v3953_v22 = vld [vmem:[%s4784_s29 + $0x1cc] sm:$0xf]  ;;  %v3309_v4 = vld [vmem:[%s4784_s29 + $0x378] sm:$0xf0] }
 0x1d7   : > { %2609 = vmatpush.bf16.msrb.mxu2 %v3420_v10  ;;  %v3644_v10 = vor.u32 %v4091_v58, %v3643_v57  ;;  %v3104_v56 = vor.u32 %v3953_v22, %v3101_v23  ;;  %v3909_v58 = vld [vmem:[%s4784_s29 + $0x6c] sm:$0xf]  ;;  %v3312_v15 = vor.u32 %v4005_v2, %v3309_v4  ;;  %v3293_v22 = vld [vmem:[%s4784_s29 + $0x358] sm:$0xf0] }
 0x1d8   : > { %2622 = vmatpush.bf16.msrb.mxu3 %v3548_v13  ;;  %v2355_v13 = vpop.f32.mrf.mxu2  ;;  %v3021_v45 = vld [vmem:[%s4784_s29 + $0x138] sm:$0xf0]  ;;  %v4149_v2 = vld [vmem:[%s4784_s29 + $0x7ec] sm:$0xf] }
 0x1d9   : > { %2635 = vmatpush.bf16.msra.mxu0 %v3676_v28  ;;  %v3985_v28 = vld [vmem:[%s4784_s29 + $0x2cc] sm:$0xf]  ;;  %v2909_v13 = vld [vmem:[%s4784_s29 + $0x58] sm:$0xf0] }
 0x1da   : > { %2648 = vmatpush.bf16.msra.mxu1 %v3804_v42  ;;  %v3885_v4 = vld [vmem:[%s4784_s29 + $0x7f8] sm:$0xf0]  ;;  %v4085_v17 = vld [vmem:[%s4784_s29 + $0x5ec] sm:$0xf] }
 0x1db   : > { %2610 = vmatpush.bf16.msrb.mxu2 %v3404_v26  ;;  %v3248_v26 = vor.u32 %v3989_v11, %v3245_v12  ;;  %v3905_v12 = vld [vmem:[%s4784_s29 + $0x4c] sm:$0xf]  ;;  %v3629_v62 = vld [vmem:[%s4784_s29 + $0x5f8] sm:$0xf0] }
 0x1dc   : > { %2623 = vmatpush.bf16.msrb.mxu3 %v3532_v30  ;;  %v3229_v30 = vld [vmem:[%s4784_s29 + $0x2d8] sm:$0xf0]  ;;  %v2912_v24 = vor.u32 %v3905_v12, %v2909_v13  ;;  %v3929_v12 = vld [vmem:[%s4784_s29 + $0x10c] sm:$0xf] }
 0x1dd   : > { %2636 = vmatpush.bf16.msra.mxu0 %v3660_v51  ;;  %v3232_v42 = vor.u32 %v3985_v28, %v3229_v30  ;;  %v3325_v51 = vld [vmem:[%s4784_s29 + $0x398] sm:$0xf0]  ;;  %v2379_v57 = vpop.f32.mrf.mxu0  ;;  %v3901_v30 = vld [vmem:[%s4784_s29 + $0x2c] sm:$0xf] }
 0x1de   : > { %2649 = vmatpush.bf16.msra.mxu1 %v3788_v61  ;;  %v3328_v61 = vor.u32 %v4009_v29, %v3325_v51  ;;  %v2380_v6 = vadd.f32 %v2379_v57, %v2367_v52  ;;  %v2392_v11 = vpop.f32.mrf.mxu1  ;;  %v4053_v29 = vld [vmem:[%s4784_s29 + $0x4ec] sm:$0xf]  ;;  %v3149_v57 = vld [vmem:[%s4784_s29 + $0x238] sm:$0xf0] }
 0x1df   : > { %2611 = vmatpush.bf16.msrb.mxu2 %v3388_v49  ;;  %v3088_v49 = vor.u32 %v3949_v35, %v3085_v38  ;;  %v3997_v38 = vld [vmem:[%s4784_s29 + $0x32c] sm:$0xf]  ;;  %v3005_v13 = vld [vmem:[%s4784_s29 + $0x118] sm:$0xf0] }
 0x1e0   : > { %2624 = vmatpush.bf16.msrb.mxu3 %v3516_v53  ;;  %v2944_v53 = vor.u32 %v3913_v39, %v2941_v40  ;;  %v2393_v23 = vadd.f32 %v2392_v11, %v2380_v6  ;;  %v3277_v39 = vld [vmem:[%s4784_s29 + $0x338] sm:$0xf0] }
 0x1e1   : > { %2637 = vmatpush.bf16.msra.mxu0 %v3644_v10  ;;  %v3053_v10 = vld [vmem:[%s4784_s29 + $0x178] sm:$0xf0] }
 0x1e2   : > { %2612 = vmatmul.bf16.vlgmr.msrb.gmra.mxu2 %v4963_v43  ;;  %2650 = vmatpush.bf16.msra.mxu1 %v3772_v20  ;;  %v4001_v20 = vld [vmem:[%s4784_s29 + $0x34c] sm:$0xf] }
 0x1e3   : > { %2663 = vmatpush.bf16.msra.mxu2 %v2313_v54  ;;  %2625 = vmatmul.bf16.vlgmr.msrb.gmra.mxu3 %v4984_v0  ;;  %v3945_v54 = vld [vmem:[%s4784_s29 + $0x18c] sm:$0xf]  ;;  %v3296_v32 = vor.u32 %v4001_v20, %v3293_v22  ;;  %v3133_v20 = vld [vmem:[%s4784_s29 + $0x218] sm:$0xf0] }
 0x1e4   : > { %2669 = vmatpush.bf16.msra.mxu3 %v2992_v59  ;;  %2638 = vmatmul.bf16.vlgmr.msra.gmra.mxu0 %v4968_v47  ;;  %v2925_v59 = vld [vmem:[%s4784_s29 + $0x78] sm:$0xf0]  ;;  %v3072_v36 = vor.u32 %v3945_v54, %v3069_v55  ;;  %v3280_v54 = vor.u32 %v3997_v38, %v3277_v39  ;;  %v3965_v55 = vld [vmem:[%s4784_s29 + $0x22c] sm:$0xf] }
 0x1e5   : > { %2682 = vmatpush.bf16.msrb.mxu0 %v3120_v14  ;;  %2651 = vmatmul.bf16.vlgmr.msra.gmra.mxu1 %v4972_v50  ;;  %v2928_v8 = vor.u32 %v3909_v58, %v2925_v59  ;;  %v3200_v14 = vor.u32 %v3977_v63, %v3197_v1  ;;  %v2381_v28 = vpop.f32.mrf.mxu0  ;;  %v3993_v59 = vld [vmem:[%s4784_s29 + $0x30c] sm:$0xf]  ;;  %v3152_v11 = vor.u32 %v3965_v55, %v3149_v57  ;;  %v3725_v57 = vld [vmem:[%s4784_s29 + $0x6b8] sm:$0xf0] }
 0x1e6   : > { %2695 = vmatpush.bf16.msrb.mxu1 %v3248_v26  ;;  %v2418_v25 = vpop.f32.mrf.mxu3  ;;  %v3937_v26 = vld [vmem:[%s4784_s29 + $0x14c] sm:$0xf]  ;;  %v2394_v52 = vpop.f32.mrf.mxu1 }
 0x1e7   : > { %2708 = vmatpush.bf16.msrb.mxu2 %v3376_v9  ;;  %v3941_v9 = vld [vmem:[%s4784_s29 + $0x16c] sm:$0xf]  ;;  %v3597_v52 = vld [vmem:[%s4784_s29 + $0x5b8] sm:$0xf0] }
 0x1e8   : > { %2670 = vmatpush.bf16.msra.mxu3 %v2976_v18  ;;  %v2405_v18 = vpop.f32.mrf.mxu2  ;;  %v3056_v19 = vor.u32 %v3941_v9, %v3053_v10  ;;  %v3485_v10 = vld [vmem:[%s4784_s29 + $0x4d8] sm:$0xf0]  ;;  %v4117_v22 = vld [vmem:[%s4784_s29 + $0x6ec] sm:$0xf] }
 0x1e9   : > { %2683 = vmatpush.bf16.msrb.mxu0 %v3104_v56  ;;  %v2893_v56 = vld [vmem:[%s4784_s29 + $0x38] sm:$0xf0]  ;;  %v2406_v40 = vadd.f32 %v2405_v18, %v2393_v23  ;;  %v3961_v18 = vld [vmem:[%s4784_s29 + $0x20c] sm:$0xf] }
 0x1ea   : > { %2696 = vmatpush.bf16.msrb.mxu1 %v3232_v42  ;;  %v2896_v42 = vor.u32 %v3901_v30, %v2893_v56  ;;  %v3757_v23 = vld [vmem:[%s4784_s29 + $0x6f8] sm:$0xf0]  ;;  %v4045_v30 = vld [vmem:[%s4784_s29 + $0x4ac] sm:$0xf]  ;;  %v3632_v56 = vor.u32 %v4085_v17, %v3629_v62 }
 0x1eb   : > { %2709 = vmatpush.bf16.msrb.mxu2 %v3360_v27  ;;  %v3037_v27 = vld [vmem:[%s4784_s29 + $0x158] sm:$0xf0]  ;;  %v2419_v63 = vadd.f32 %v2418_v25, %v2406_v40  ;;  %v3008_v25 = vor.u32 %v3929_v12, %v3005_v13  ;;  %v4113_v39 = vld [vmem:[%s4784_s29 + $0x6cc] sm:$0xf] }
 0x1ec   : > { %2671 = vmatpush.bf16.msra.mxu3 %v2960_v33  ;;  %v3969_v33 = vld [vmem:[%s4784_s29 + $0x24c] sm:$0xf]  ;;  %v3040_v35 = vor.u32 %v3937_v26, %v3037_v27  ;;  %v3869_v27 = vld [vmem:[%s4784_s29 + $0x7d8] sm:$0xf0] }
 0x1ed   : > { %2684 = vmatpush.bf16.msrb.mxu0 %v3088_v49  ;;  %v2877_v49 = vld [vmem:[%s4784_s29 + $0x18] sm:$0xf0]  ;;  %v3168_v51 = vor.u32 %v3969_v33, %v3165_v34  ;;  %v4145_v26 = vld [vmem:[%s4784_s29 + $0x7cc] sm:$0xf] }
 0x1ee   : > { %2697 = vmatpush.bf16.msrb.mxu1 %v3216_v60  ;;  %v3261_v60 = vld [vmem:[%s4784_s29 + $0x318] sm:$0xf0]  ;;  %v2880_v1 = vor.u32 %v3897_v46, %v2877_v49  ;;  %v2420_v6 = vpop.f32.mrf.mxu3  ;;  %v4081_v33 = vld [vmem:[%s4784_s29 + $0x5cc] sm:$0xf]  ;;  %v3872_v38 = vor.u32 %v4145_v26, %v3869_v27 }
 0x1ef   : > { %2710 = vmatpush.bf16.msrb.mxu2 %v3344_v44  ;;  %v3933_v44 = vld [vmem:[%s4784_s29 + $0x12c] sm:$0xf]  ;;  %v3613_v34 = vld [vmem:[%s4784_s29 + $0x5d8] sm:$0xf0] }
 0x1f0   : > { %2672 = vmatpush.bf16.msra.mxu3 %v2944_v53  ;;  %v3501_v53 = vld [vmem:[%s4784_s29 + $0x4f8] sm:$0xf0]  ;;  %v3024_v58 = vor.u32 %v3933_v44, %v3021_v45  ;;  %v4041_v46 = vld [vmem:[%s4784_s29 + $0x48c] sm:$0xf]  ;;  %v3616_v49 = vor.u32 %v4081_v33, %v3613_v34 }
 0x1f1   : > { %2685 = vmatpush.bf16.msrb.mxu0 %v3072_v36  ;;  %v4049_v36 = vld [vmem:[%s4784_s29 + $0x4cc] sm:$0xf]  ;;  %v3504_v9 = vor.u32 %v4053_v29, %v3501_v53  ;;  %v3741_v40 = vld [vmem:[%s4784_s29 + $0x6d8] sm:$0xf0] }
 0x1f2   : > { %3891 = vmatmul.msk.bf16.vlgmr.msra.gmra.mxu2 %vm2298_vm2, %v5012_v41  ;;  %2698 = vmatpush.bf16.msrb.mxu1 %v3200_v14  ;;  %v3488_v28 = vor.u32 %v4049_v36, %v3485_v10  ;;  %v3853_v44 = vld [vmem:[%s4784_s29 + $0x7b8] sm:$0xf0]  ;;  %v3744_v53 = vor.u32 %v4113_v39, %v3741_v40  ;;  %v4109_v55 = vld [vmem:[%s4784_s29 + $0x6ac] sm:$0xf] }
 0x1f3   : > { %2711 = vmatpush.bf16.msrb.mxu2 %v3328_v61  ;;  %v2407_v61 = vpop.f32.mrf.mxu2  ;;  %v3581_v36 = vld [vmem:[%s4784_s29 + $0x598] sm:$0xf0]  ;;  %v4105_v6 = vld [vmem:[%s4784_s29 + $0x68c] sm:$0xf] }
 0x1f4   : > { %2673 = vmatpush.bf16.msra.mxu3 %v2928_v8  ;;  %v2431_v8 = vpop.f32.mrf.mxu0  ;;  %v3821_v10 = vld [vmem:[%s4784_s29 + $0x778] sm:$0xf0]  ;;  %v4033_v12 = vld [vmem:[%s4784_s29 + $0x44c] sm:$0xf] }
 0x1f5   : > { %2686 = vmatpush.bf16.msrb.mxu0 %v3056_v19  ;;  %v2432_v14 = vadd.f32 %v2431_v8, %v2419_v63  ;;  %v3888_v19 = vor.u32 %v4149_v2, %v3885_v4  ;;  %v3437_v63 = vld [vmem:[%s4784_s29 + $0x478] sm:$0xf0]  ;;  %v4125_v40 = vld [vmem:[%s4784_s29 + $0x72c] sm:$0xf] }
 0x1f6   : > { %2699 = vmatpush.bf16.msrb.mxu1 %v3184_v31  ;;  %v3469_v31 = vld [vmem:[%s4784_s29 + $0x4b8] sm:$0xf0] }
 0x1f7   : > { %2712 = vmatpush.bf16.msrb.mxu2 %v3312_v15  ;;  %v3264_v15 = vor.u32 %v3993_v59, %v3261_v60  ;;  %v3472_v45 = vor.u32 %v4045_v30, %v3469_v31  ;;  %v3837_v59 = vld [vmem:[%s4784_s29 + $0x798] sm:$0xf0]  ;;  %v4065_v30 = vld [vmem:[%s4784_s29 + $0x54c] sm:$0xf]  ;;  %v1781_v31 = vunpack.c.h.b16 %v5228_v7 }
 0x1f8   : > { %2674 = vmatpush.bf16.msra.mxu3 %v2912_v24  ;;  %v2786_v24 = vmax.f32 %v2432_v14, 0.0  ;;  %v3709_v8 = vld [vmem:[%s4784_s29 + $0x698] sm:$0xf0]  ;;  %v4069_v14 = vld [vmem:[%s4784_s29 + $0x56c] sm:$0xf] }
 0x1f9   : > { %2687 = vmatpush.bf16.msrb.mxu0 %v3040_v35  ;;  %v3760_v35 = vor.u32 %v4117_v22, %v3757_v23  ;;  %v3712_v62 = vor.u32 %v4105_v6, %v3709_v8  ;;  %v4129_v22 = vld [vmem:[%s4784_s29 + $0x74c] sm:$0xf]  ;;  %v3805_v23 = vld [vmem:[%s4784_s29 + $0x758] sm:$0xf0] }
 0x1fa   : > { %2700 = vmatpush.bf16.msrb.mxu1 %v3168_v51  ;;  %2790 = vst [vmem:[%s5356_s22] sm:$0xff] %v2786_v24  ;;  %v4077_v51 = vld [vmem:[%s4784_s29 + $0x5ac] sm:$0xf]  ;;  %v3677_v39 = vld [vmem:[%s4784_s29 + $0x658] sm:$0xf0] }
 0x1fb   : > { %2713 = vmatpush.bf16.msrb.mxu2 %v3296_v32  ;;  %v3136_v32 = vor.u32 %v3961_v18, %v3133_v20  ;;  %v3600_v61 = vor.u32 %v4077_v51, %v3597_v52  ;;  %v3693_v20 = vld [vmem:[%s4784_s29 + $0x678] sm:$0xf0]  ;;  %v4025_v7 = vld [vmem:[%s4784_s29 + $0x40c] sm:$0xf] }
 0x1fc   : > { %2675 = vmatpush.bf16.msra.mxu3 %v2896_v42  ;;  %v4141_v42 = vld [vmem:[%s4784_s29 + $0x7ac] sm:$0xf]  ;;  %v2433_v29 = vpop.f32.mrf.mxu0 }
 0x1fd   : > { %2688 = vmatpush.bf16.msrb.mxu0 %v3024_v58  ;;  %v4137_v58 = vld [vmem:[%s4784_s29 + $0x78c] sm:$0xf] }
 0x1fe   : > { %2701 = vmatpush.bf16.msrb.mxu1 %v3152_v11  ;;  %v5387_v2 = vpop.f32.mrf.mxu1  ;;  %v3840_v4 = vor.u32 %v4137_v58, %v3837_v59  ;;  %v4061_v29 = vld [vmem:[%s4784_s29 + $0x52c] sm:$0xf]  ;;  %v3773_v58 = vld [vmem:[%s4784_s29 + $0x718] sm:$0xf0] }
 0x1ff   : > { %2714 = vmatpush.bf16.msrb.mxu2 %v3280_v54  ;;  %v3856_v54 = vor.u32 %v4141_v42, %v3853_v44  ;;  %v3789_v42 = vld [vmem:[%s4784_s29 + $0x738] sm:$0xf0]  ;;  %v4089_v8 = vld [vmem:[%s4784_s29 + $0x60c] sm:$0xf] }
 0x200   : > { %2676 = vmatpush.bf16.msra.mxu3 %v2880_v1  ;;  %v4073_v1 = vld [vmem:[%s4784_s29 + $0x58c] sm:$0xf] }
 0x201   : > { %2689 = vmatpush.bf16.msrb.mxu0 %v3008_v25  ;;  %v3584_v13 = vor.u32 %v4073_v1, %v3581_v36  ;;  %v4029_v25 = vld [vmem:[%s4784_s29 + $0x42c] sm:$0xf]  ;;  %v3517_v1 = vld [vmem:[%s4784_s29 + $0x518] sm:$0xf0] }
 0x202   : > { %2702 = vmatpush.bf16.msrb.mxu1 %v3136_v32 }
 0x203   : > { %2715 = vmatpush.bf16.msrb.mxu2 %v3264_v15  ;;  %2677 = vmatmul.bf16.vlgmr.msra.gmra.mxu3 %v4875_v3  ;;  %v3453_v3 = vld [vmem:[%s4784_s29 + $0x498] sm:$0xf0] }
 0x204   : > { %2721 = vmatpush.bf16.msrb.mxu3 %v3504_v9  ;;  %2690 = vmatmul.bf16.vlgmr.msrb.gmra.mxu0 %v4880_v5  ;;  %v3456_v60 = vor.u32 %v4041_v46, %v3453_v3  ;;  %v3728_v5 = vor.u32 %v4109_v55, %v3725_v57  ;;  %v4133_v9 = vld [vmem:[%s4784_s29 + $0x76c] sm:$0xf]  ;;  %v3565_v15 = vld [vmem:[%s4784_s29 + $0x578] sm:$0xf0]  ;;  %v5398_v17 = vpop.f32.mrf.mxu0 }
 0x205   : > { %2734 = vmatpush.bf16.msra.mxu0 %v3632_v56  ;;  %2703 = vmatmul.bf16.vlgmr.msrb.gmra.mxu1 %v4888_v16  ;;  %v3421_v16 = vld [vmem:[%s4784_s29 + $0x458] sm:$0xf0]  ;;  %v3824_v18 = vor.u32 %v4133_v9, %v3821_v10  ;;  %v3568_v26 = vor.u32 %v4069_v14, %v3565_v15  ;;  %v2457_v27 = vpop.f32.mrf.mxu2  ;;  %v4121_v57 = vld [vmem:[%s4784_s29 + $0x70c] sm:$0xf] }
 0x206   : > { %2716 = vmatmul.bf16.vlgmr.msrb.gmra.mxu2 %v4894_v21  ;;  %2747 = vmatpush.bf16.msra.mxu1 %v3760_v35  ;;  %v4037_v21 = vld [vmem:[%s4784_s29 + $0x46c] sm:$0xf]  ;;  %v3424_v24 = vor.u32 %v4033_v12, %v3421_v16  ;;  %v3549_v56 = vld [vmem:[%s4784_s29 + $0x558] sm:$0xf0]  ;;  %v2446_v32 = vpop.f32.mrf.mxu1  ;;  %v2470_v33 = vpop.f32.mrf.mxu3  ;;  %v3808_v35 = vor.u32 %v4129_v22, %v3805_v23  ;;  %v3776_v6 = vor.u32 %v4121_v57, %v3773_v58 }
 0x207   : > { %2760 = vmatpush.bf16.msra.mxu2 %v3888_v19  ;;  %v3440_v11 = vor.u32 %v4037_v21, %v3437_v63  ;;  %v4101_v19 = vld [vmem:[%s4784_s29 + $0x66c] sm:$0xf]  ;;  %v3389_v46 = vld [vmem:[%s4784_s29 + $0x418] sm:$0xf0] }
 0x208   : > { %2722 = vmatpush.bf16.msrb.mxu3 %v3488_v28  ;;  %v3405_v28 = vld [vmem:[%s4784_s29 + $0x438] sm:$0xf0]  ;;  %v3696_v34 = vor.u32 %v4101_v19, %v3693_v20  ;;  %v3392_v59 = vor.u32 %v4025_v7, %v3389_v46  ;;  %v4057_v63 = vld [vmem:[%s4784_s29 + $0x50c] sm:$0xf] }
 0x209   : > { %2735 = vmatpush.bf16.msra.mxu0 %v3616_v49  ;;  %v3408_v44 = vor.u32 %v4029_v25, %v3405_v28  ;;  %v2041_v49 = vpack.c.b16 %v1781_v31, %v1781_v31  ;;  %v3533_v3 = vld [vmem:[%s4784_s29 + $0x538] sm:$0xf0]  ;;  %v3520_v10 = vor.u32 %v4057_v63, %v3517_v1 }
 0x20a   : > { %2748 = vmatpush.bf16.msra.mxu1 %v3744_v53  ;;  %v3792_v53 = vor.u32 %v4125_v40, %v3789_v42  ;;  %v3661_v55 = vld [vmem:[%s4784_s29 + $0x638] sm:$0xf0] }
 0x20b   : > { %2761 = vmatpush.bf16.msra.mxu2 %v3872_v38  ;;  %v4097_v38 = vld [vmem:[%s4784_s29 + $0x64c] sm:$0xf]  ;;  %v3645_v9 = vld [vmem:[%s4784_s29 + $0x618] sm:$0xf0] }
 0x20c   : > { %2723 = vmatpush.bf16.msrb.mxu3 %v3472_v45  ;;  %v3552_v45 = vor.u32 %v4065_v30, %v3549_v56  ;;  %v2485_v51 = vpop.f32.mrf.mxu0  ;;  %v3680_v52 = vor.u32 %v4097_v38, %v3677_v39 }
 0x20d   : > { %2736 = vmatpush.bf16.msra.mxu0 %v3600_v61  ;;  %v2459_v21 = vpop.f32.mrf.mxu2  ;;  %v2316_v61 = vand.u32 %v4958_v37, %v2041_v49  ;;  %v3648_v37 = vor.u32 %v4089_v8, %v3645_v9 }
 0x20e   : > { %2749 = vmatpush.bf16.msra.mxu1 %v3728_v5  ;;  %v2472_v36 = vpop.f32.mrf.mxu3  ;;  %v2445_v5 = vadd.f32 %v5387_v2, %v5255_v48 }
 0x20f   : > { %2762 = vmatpush.bf16.msra.mxu2 %v3856_v54  ;;  %v4093_v54 = vld [vmem:[%s4784_s29 + $0x62c] sm:$0xf] }
 0x210   : > { %2724 = vmatpush.bf16.msrb.mxu3 %v3456_v60  ;;  %v3536_v60 = vor.u32 %v4061_v29, %v3533_v3 }
 0x211   : > { %2737 = vmatpush.bf16.msra.mxu0 %v3584_v13 }
 0x212   : > { %2750 = vmatpush.bf16.msra.mxu1 %v3712_v62 }
 0x213   : > { %2763 = vmatpush.bf16.msra.mxu2 %v3840_v4  ;;  %v3664_v4 = vor.u32 %v4093_v54, %v3661_v55 }
 0x214   : > { %2725 = vmatpush.bf16.msrb.mxu3 %v3440_v11  ;;  %v2458_v11 = vadd.f32 %v2457_v27, %v2445_v5 }
 0x215   : > { %2738 = vmatpush.bf16.msra.mxu0 %v3568_v26 }
 0x216   : > { %2751 = vmatpush.bf16.msra.mxu1 %v3696_v34  ;;  %v2471_v2 = vadd.f32 %v2470_v33, %v2458_v11 }
 0x217   : > { %2764 = vmatpush.bf16.msra.mxu2 %v3824_v18 }
 0x218   : > { %2726 = vmatpush.bf16.msrb.mxu3 %v3424_v24  ;;  %v2484_v12 = vadd.f32 %v5398_v17, %v2471_v2 }
 0x219   : > { %2739 = vmatpush.bf16.msra.mxu0 %v3552_v45 }
 0x21a   : > { %2752 = vmatpush.bf16.msra.mxu1 %v3680_v52 }
 0x21b   : > { %2765 = vmatpush.bf16.msra.mxu2 %v3808_v35 }
 0x21c   : > { %2727 = vmatpush.bf16.msrb.mxu3 %v3408_v44 }
 0x21d   : > { %2740 = vmatpush.bf16.msra.mxu0 %v3536_v60 }
 0x21e   : > { %2753 = vmatpush.bf16.msra.mxu1 %v3664_v4  ;;  %v2496_v13 = vpop.f32.mrf.mxu1 }
 0x21f   : > { %2766 = vmatpush.bf16.msra.mxu2 %v3792_v53  ;;  %v2497_v16 = vadd.f32 %v2496_v13, %v2484_v12 }
 0x220   : > { %2728 = vmatpush.bf16.msrb.mxu3 %v3392_v59 }
 0x221   : > { %2741 = vmatpush.bf16.msra.mxu0 %v3520_v10  ;;  %v2535_v14 = vpop.f32.mrf.mxu0 }
 0x222   : > { %2754 = vmatpush.bf16.msra.mxu1 %v3648_v37 }
 0x223   : > { %2767 = vmatpush.bf16.msra.mxu2 %v3776_v6  ;;  %2729 = vmatmul.bf16.vlgmr.msrb.gmra.mxu3 %v4963_v43 }
 0x224   : > { %2780 = vmatpush.bf16.msra.mxu3 %v2316_v61  ;;  %2742 = vmatmul.bf16.vlgmr.msra.gmra.mxu0 %v4984_v0 }
 0x225   : > { %2755 = vmatmul.bf16.vlgmr.msra.gmra.mxu1 %v4968_v47  ;;  %v2509_v15 = vpop.f32.mrf.mxu2 }
 0x226   : > { %2768 = vmatmul.bf16.vlgmr.msra.gmra.mxu2 %v4972_v50  ;;  %v2510_v62 = vadd.f32 %v2509_v15, %v2497_v16  ;;  %v2522_v18 = vpop.f32.mrf.mxu3  ;;  %v2498_v43 = vpop.f32.mrf.mxu1 }
 0x228   : > { %v2523_v50 = vadd.f32 %v2522_v18, %v2510_v62 }
 0x229   : > { %v2537_v19 = vpop.f32.mrf.mxu0 }
 0x22a   : > { %v2536_v20 = vadd.f32 %v2535_v14, %v2523_v50 }
 0x22d   : > { %v2511_v22 = vpop.f32.mrf.mxu2 }
 0x22e   : > { %v2524_v0 = vpop.f32.mrf.mxu3  ;;  %v2548_v23 = vpop.f32.mrf.mxu1 }
 0x22f   : > { %v2549_v47 = vadd.f32 %v2548_v23, %v2536_v20 }
 0x231   : > { %v2787_v24 = vmax.f32 %v2549_v47, 0.0 }
 0x233   : > { %3892 = vmatmul.msk.bf16.vlgmr.msra.gmra.mxu3 %vm2298_vm2, %v5012_v41  ;;  %2791 = vst [vmem:[%s5356_s22 + $0x8] sm:$0xff] %v2787_v24 }
 0x236   : > { %v2550_v17 = vpop.f32.mrf.mxu1 }
 0x241   : > { %v2587_v25 = vpop.f32.mrf.mxu0 }
 0x242   : > { %v2600_v28 = vpop.f32.mrf.mxu1 }
 0x245   : > { %v2561_v26 = vpop.f32.mrf.mxu2 }
 0x246   : > { %v2574_v27 = vpop.f32.mrf.mxu3  ;;  %v2562_v41 = vadd.f32 %v2561_v26, %v5255_v48 }
 0x248   : > { %v2575_v33 = vadd.f32 %v2574_v27, %v2562_v41 }
 0x249   : > { %v2589_v30 = vpop.f32.mrf.mxu0 }
 0x24a   : > { %v2602_v32 = vpop.f32.mrf.mxu1  ;;  %v2588_v34 = vadd.f32 %v2587_v25, %v2575_v33 }
 0x24c   : > { %v2601_v38 = vadd.f32 %v2600_v28, %v2588_v34 }
 0x24d   : > { %v2563_v56 = vpop.f32.mrf.mxu2 }
 0x24e   : > { %v2576_v31 = vpop.f32.mrf.mxu3 }
 0x261   : > { %v2639_v35 = vpop.f32.mrf.mxu0 }
 0x262   : > { %v2652_v40 = vpop.f32.mrf.mxu1 }
 0x265   : > { %v2613_v39 = vpop.f32.mrf.mxu2 }
 0x266   : > { %v2626_v42 = vpop.f32.mrf.mxu3  ;;  %v2614_v44 = vadd.f32 %v2613_v39, %v2601_v38 }
 0x268   : > { %v2627_v45 = vadd.f32 %v2626_v42, %v2614_v44 }
 0x269   : > { %v2641_v7 = vpop.f32.mrf.mxu0 }
 0x26a   : > { %v2654_v49 = vpop.f32.mrf.mxu1  ;;  %v2640_v3 = vadd.f32 %v2639_v35, %v2627_v45 }
 0x26c   : > { %v2653_v51 = vadd.f32 %v2652_v40, %v2640_v3 }
 0x26d   : > { %v2615_v46 = vpop.f32.mrf.mxu2 }
 0x26e   : > { %v2628_v29 = vpop.f32.mrf.mxu3 }
 0x275   : > { %v2665_v52 = vpop.f32.mrf.mxu2 }
 0x276   : > { %v2666_v53 = vadd.f32 %v2665_v52, %v2653_v51 }
 0x278   : > { %v2788_v54 = vmax.f32 %v2666_v53, 0.0 }
 0x27a   : > { %2792 = vst [vmem:[%s5356_s22 + $0x10] sm:$0xff] %v2788_v54 }
 0x27d   : > { %v2667_v55 = vpop.f32.mrf.mxu2 }
 0x281   : > { %v2691_v57 = vpop.f32.mrf.mxu0 }
 0x282   : > { %v2704_v59 = vpop.f32.mrf.mxu1 }
 0x286   : > { %v2678_v58 = vpop.f32.mrf.mxu3 }
 0x287   : > { %v2679_v36 = vadd.f32 %v2678_v58, %v5255_v48 }
 0x289   : > { %v2717_v60 = vpop.f32.mrf.mxu2  ;;  %v2693_v21 = vpop.f32.mrf.mxu0  ;;  %v2692_v5 = vadd.f32 %v2691_v57, %v2679_v36 }
 0x28a   : > { %v2706_v63 = vpop.f32.mrf.mxu1 }
 0x28b   : > { %v2705_v4 = vadd.f32 %v2704_v59, %v2692_v5 }
 0x28d   : > { %v2718_v10 = vadd.f32 %v2717_v60, %v2705_v4 }
 0x28e   : > { %v2680_v61 = vpop.f32.mrf.mxu3 }
 0x291   : > { %v2719_v1 = vpop.f32.mrf.mxu2 }
 0x2a1   : > { %v2743_v6 = vpop.f32.mrf.mxu0 }
 0x2a2   : > { %v2756_v9 = vpop.f32.mrf.mxu1 }
 0x2a6   : > { %v2730_v8 = vpop.f32.mrf.mxu3 }
 0x2a7   : > { %v2731_v37 = vadd.f32 %v2730_v8, %v2718_v10 }
 0x2a9   : > { %v2769_v11 = vpop.f32.mrf.mxu2  ;;  %v2745_v2 = vpop.f32.mrf.mxu0  ;;  %v2744_v12 = vadd.f32 %v2743_v6, %v2731_v37 }
 0x2aa   : > { %v2758_v16 = vpop.f32.mrf.mxu1 }
 0x2ab   : > { %v2757_v15 = vadd.f32 %v2756_v9, %v2744_v12 }
 0x2ad   : > { %v2770_v62 = vadd.f32 %v2769_v11, %v2757_v15 }
 0x2ae   : > { %v2732_v13 = vpop.f32.mrf.mxu3 }
 0x2b1   : > { %v2771_v14 = vpop.f32.mrf.mxu2 }
 0x2b6   : > { %v2782_v18 = vpop.f32.mrf.mxu3 }
 0x2b7   : > { %v2783_v43 = vadd.f32 %v2782_v18, %v2770_v62 }
 0x2b9   : > { %v2789_v50 = vmax.f32 %v2783_v43, 0.0 }
 0x2bb   : > { %2793 = vst [vmem:[%s5356_s22 + $0x18] sm:$0xff] %v2789_v50 }
 0x2be   : > { %v2784_v48 = vpop.f32.mrf.mxu3 }
 0x2bf PF: > { %p10_p9 = scmp.ge.s32.totalorder %s4244_s16, 4   ;;  %s5454_s12 = smov %s4199_s13 }
 0x2c0   : > { %s5455_s13 = smov %s4253_s19  ;;  %s5456_s14 = smov %s4244_s16 }
 0x2c1   :  { %12 = sbr.rel (!%p10_p9) target bundleno = 2 (0x2), region = 90 }

// kernel: resnet_forward.15
= control target key start
LH: loop header
LB: loop body
LE: loop exit
PB: predicated region body
PF: predicated region fallthrough
CT: control target
= control target key end

     0   :  { %s160_s0 = inlined_call_operand.vmem [shape: f32[27,8,128], index: 0, kind: input, shape index: {}]   ;;  %s161_s1 = inlined_call_operand.vmem [shape: f32[8,128], index: 1, kind: output, shape index: {}]  }
   0x1   :  { %v8_v0 = vld [vmem:[%s160_s0] sm:$0xff]  ;;  %v9_v1 = vld [vmem:[%s160_s0 + $0x8] sm:$0xff]  ;;  %v10_v2 = vld [vmem:[%s160_s0 + $0x10] sm:$0xff] }
   0x2   :  { %v11_v3 = vld [vmem:[%s160_s0 + $0x18] sm:$0xff]  ;;  %v12_v4 = vld [vmem:[%s160_s0 + $0x20] sm:$0xff]  ;;  %v13_v5 = vld [vmem:[%s160_s0 + $0x28] sm:$0xff] }
   0x3   :  { %v14_v6 = vld [vmem:[%s160_s0 + $0x30] sm:$0xff]  ;;  %v15_v7 = vld [vmem:[%s160_s0 + $0x38] sm:$0xff]  ;;  %v16_v8 = vld [vmem:[%s160_s0 + $0x40] sm:$0xff]  ;;  %v35_v9 = vmax.f32 %v8_v0, %v12_v4  ;;  %v36_v10 = vmax.f32 %v9_v1, %v13_v5 }
   0x4   :  { %v17_v11 = vld [vmem:[%s160_s0 + $0x48] sm:$0xff]  ;;  %v18_v12 = vld [vmem:[%s160_s0 + $0x50] sm:$0xff]  ;;  %v19_v13 = vld [vmem:[%s160_s0 + $0x58] sm:$0xff]  ;;  %v37_v14 = vmax.f32 %v10_v2, %v14_v6  ;;  %v38_v15 = vmax.f32 %v11_v3, %v15_v7 }
   0x5   :  { %v20_v16 = vld [vmem:[%s160_s0 + $0x60] sm:$0xff]  ;;  %v21_v17 = vld [vmem:[%s160_s0 + $0x68] sm:$0xff]  ;;  %v22_v18 = vld [vmem:[%s160_s0 + $0x70] sm:$0xff]  ;;  %v39_v19 = vmax.f32 %v35_v9, %v16_v8  ;;  %v40_v20 = vmax.f32 %v36_v10, %v17_v11 }
   0x6   :  { %v23_v21 = vld [vmem:[%s160_s0 + $0x78] sm:$0xff]  ;;  %v24_v22 = vld [vmem:[%s160_s0 + $0x80] sm:$0xff]  ;;  %v25_v23 = vld [vmem:[%s160_s0 + $0x88] sm:$0xff]  ;;  %v41_v24 = vmax.f32 %v37_v14, %v18_v12  ;;  %v42_v25 = vmax.f32 %v38_v15, %v19_v13 }
   0x7   :  { %v26_v26 = vld [vmem:[%s160_s0 + $0x90] sm:$0xff]  ;;  %v27_v27 = vld [vmem:[%s160_s0 + $0x98] sm:$0xff]  ;;  %v43_v28 = vmax.f32 %v39_v19, %v20_v16  ;;  %v44_v29 = vmax.f32 %v40_v20, %v21_v17  ;;  %v28_v30 = vld [vmem:[%s160_s0 + $0xa0] sm:$0xff] }
   0x8   :  { %v29_v31 = vld [vmem:[%s160_s0 + $0xa8] sm:$0xff]  ;;  %v45_v32 = vmax.f32 %v41_v24, %v22_v18  ;;  %v46_v33 = vmax.f32 %v42_v25, %v23_v21  ;;  %v30_v34 = vld [vmem:[%s160_s0 + $0xb0] sm:$0xff]  ;;  %v31_v35 = vld [vmem:[%s160_s0 + $0xb8] sm:$0xff] }
   0x9   :  { %v47_v36 = vmax.f32 %v43_v28, %v24_v22  ;;  %v48_v37 = vmax.f32 %v44_v29, %v25_v23  ;;  %v32_v38 = vld [vmem:[%s160_s0 + $0xc0] sm:$0xff]  ;;  %v33_v39 = vld [vmem:[%s160_s0 + $0xc8] sm:$0xff]  ;;  %v34_v42 = vld [vmem:[%s160_s0 + $0xd0] sm:$0xff] }
   0xa   :  { %v49_v40 = vmax.f32 %v45_v32, %v26_v26  ;;  %v50_v41 = vmax.f32 %v46_v33, %v27_v27 }
   0xb   :  { %v51_v43 = vmax.f32 %v47_v36, %v28_v30  ;;  %v52_v44 = vmax.f32 %v48_v37, %v29_v31 }
   0xc   :  { %v53_v45 = vmax.f32 %v49_v40, %v30_v34  ;;  %v54_v46 = vmax.f32 %v50_v41, %v31_v35 }
   0xd   :  { %v55_v47 = vmax.f32 %v51_v43, %v32_v38  ;;  %v56_v48 = vmax.f32 %v52_v44, %v33_v39 }
   0xe   :  { %v57_v49 = vmax.f32 %v53_v45, %v34_v42 }
   0xf   :  { %v58_v50 = vmax.f32 %v55_v47, %v56_v48 }
  0x10   :  { %v59_v51 = vmax.f32 %v57_v49, %v54_v46 }
  0x12   :  { %v60_v52 = vmax.f32 %v58_v50, %v59_v51 }
  0x14   :  { %61 = vst [vmem:[%s161_s1] sm:$0xff] %v60_v52 }

// kernel: resnet_forward.16
= control target key start
LH: loop header
LB: loop body
LE: loop exit
PB: predicated region body
PF: predicated region fallthrough
CT: control target
= control target key end

     0   :  { %vm140_vm0 = vcmask 1043456   ;;  %v244_v4 = vmov 0   ;;  %vm136_vm1 = vcmask 719872   ;;  %s316_s1 = inlined_call_operand.vmem [shape: bf16[216,128], index: 1, kind: input, shape index: {}]   ;;  %s317_s2 = inlined_call_operand.vmem [shape: f32[8,1], index: 2, kind: input, shape index: {}]   ;;  %s318_s0 = inlined_call_operand.vmem [shape: bf16[8,216], index: 0, kind: input, shape index: {}]   ;;  %s319_s3 = inlined_call_operand.vmem [shape: f32[8,128], index: 3, kind: output, shape index: {}]  }
   0x1   :  { %v236_v0 = vld [vmem:[%s316_s1 + $0x38] sm:$0xff]  ;;  %v42_v1 = vld [vmem:[%s316_s1 + $0x68] sm:$0xf]  ;;  %v235_v3 = vld [vmem:[%s316_s1 + $0x30] sm:$0xff]  ;;  %243 = vset.pattern.permute.xlu0 %v244_v4 }
   0x2   :  { %v108_v2 = vunpack.c.l.b16 %v42_v1  ;;  %144 = vmatpush.bf16.msra.mxu0 %v236_v0  ;;  %v43_v7 = vld [vmem:[%s317_s2] sm:$0xff]  ;;  %v234_v9 = vld [vmem:[%s316_s1 + $0x28] sm:$0xff]  ;;  %v240_v10 = vld [vmem:[%s316_s1 + $0x58] sm:$0xff] }
   0x3   :  { %v241_v8 = vld [vmem:[%s316_s1 + $0x60] sm:$0xff]  ;;  %46 = vperm.xlu0 %243, %v43_v7   ;;  %v239_v12 = vld [vmem:[%s316_s1 + $0x50] sm:$0xff]  ;;  %v232_v13 = vld [vmem:[%s316_s1 + $0x18] sm:$0xff] }
   0x4   :  { %v122_v5 = vpack.c.b16 %v108_v2, %v108_v2  ;;  %v233_v11 = vld [vmem:[%s316_s1 + $0x20] sm:$0xff]  ;;  %v238_v14 = vld [vmem:[%s316_s1 + $0x48] sm:$0xff]  ;;  %v231_v15 = vld [vmem:[%s316_s1 + $0x10] sm:$0xff] }
   0x5   :  { %v15_v16 = vld [vmem:[%s318_s0] sm:$0xff]  ;;  %v230_v19 = vld [vmem:[%s316_s1 + $0x8] sm:$0xff] }
   0x6   :  { %v142_v6 = vsel %vm140_vm0, %v122_v5, 0  ;;  %145 = vmatpush.bf16.msra.mxu0 %v235_v3  ;;  %v51_v17 = vunpack.c.h.b16 %v15_v16  ;;  %v237_v18 = vld [vmem:[%s316_s1 + $0x40] sm:$0xff]  ;;  %v50_v21 = vunpack.c.l.b16 %v15_v16 }
   0x7   :  { %159 = vmatpush.bf16.msra.mxu1 %v142_v6  ;;  %v229_v22 = vld [vmem:[%s316_s1] sm:$0xff] }
   0x8   :  { %v53_v20 = vpack.c.b16 %v51_v17, %v51_v17  ;;  %v52_v23 = vpack.c.b16 %v50_v21, %v50_v21 }
   0xa   :  { %146 = vmatpush.bf16.msra.mxu0 %v234_v9 }
   0xb   :  { %160 = vmatpush.bf16.msra.mxu1 %v241_v8 }
   0xe   :  { %147 = vmatpush.bf16.msra.mxu0 %v233_v11 }
   0xf   :  { %161 = vmatpush.bf16.msra.mxu1 %v240_v10 }
  0x12   :  { %148 = vmatpush.bf16.msra.mxu0 %v232_v13 }
  0x13   :  { %162 = vmatpush.bf16.msra.mxu1 %v239_v12 }
  0x16   :  { %149 = vmatpush.bf16.msra.mxu0 %v231_v15 }
  0x17   :  { %163 = vmatpush.bf16.msra.mxu1 %v238_v14 }
  0x1a   :  { %150 = vmatpush.bf16.msra.mxu0 %v230_v19 }
  0x1b   :  { %164 = vmatpush.bf16.msra.mxu1 %v237_v18 }
  0x1e   :  { %228 = vmatmul.msk.bf16.vlgmr.msra.gmra.mxu1 %vm136_vm1, %v53_v20  ;;  %151 = vmatpush.bf16.msra.mxu0 %v229_v22 }
  0x21   :  { %152 = vmatmul.bf16.vlgmr.msra.gmra.mxu0 %v52_v23 }
  0x75   :  { %v47_v25 = vpop.permute.xlu0 %46 }
  0x9b   :  { %v166_v24 = vpop.f32.mrf.mxu1 }
  0x9e   :  { %v153_v26 = vpop.f32.mrf.mxu0 }
  0x9f   :  { %v154_v27 = vadd.f32 %v153_v26, %v47_v25 }
  0xa1   :  { %v167_v28 = vadd.f32 %v166_v24, %v154_v27 }
  0xa3   :  { %v168_v29 = vpop.f32.mrf.mxu1  ;;  %v170_v30 = vmax.f32 %v167_v28, 0.0 }
  0xa5   :  { %171 = vst [vmem:[%s319_s3] sm:$0xff] %v170_v30 }
  0xa6   :  { %v155_v31 = vpop.f32.mrf.mxu0 }

// kernel: resnet_forward.17
= control target key start
LH: loop header
LB: loop body
LE: loop exit
PB: predicated region body
PF: predicated region fallthrough
CT: control target
= control target key end

     0   :  { %vm143_vm0 = vcmask 1043456   ;;  %v249_v4 = vmov 0   ;;  %vm139_vm1 = vcmask 719872   ;;  %s329_s1 = inlined_call_operand.vmem [shape: bf16[216,128], index: 1, kind: input, shape index: {}]   ;;  %s330_s2 = inlined_call_operand.vmem [shape: f32[8,1], index: 2, kind: input, shape index: {}]   ;;  %s331_s0 = inlined_call_operand.vmem [shape: bf16[8,216], index: 0, kind: input, shape index: {}]   ;;  %s332_s3 = inlined_call_operand.vmem [shape: f32[8,128], index: 3, kind: input, shape index: {}]   ;;  %s333_s4 = inlined_call_operand.vmem [shape: f32[8,128], index: 4, kind: output, shape index: {}]  }
   0x1   :  { %v241_v0 = vld [vmem:[%s329_s1 + $0x38] sm:$0xff]  ;;  %v45_v1 = vld [vmem:[%s329_s1 + $0x68] sm:$0xf]  ;;  %v240_v3 = vld [vmem:[%s329_s1 + $0x30] sm:$0xff]  ;;  %248 = vset.pattern.permute.xlu0 %v249_v4 }
   0x2   :  { %v111_v2 = vunpack.c.l.b16 %v45_v1  ;;  %147 = vmatpush.bf16.msra.mxu0 %v241_v0  ;;  %v46_v7 = vld [vmem:[%s330_s2] sm:$0xff]  ;;  %v239_v9 = vld [vmem:[%s329_s1 + $0x28] sm:$0xff]  ;;  %v245_v10 = vld [vmem:[%s329_s1 + $0x58] sm:$0xff] }
   0x3   :  { %v246_v8 = vld [vmem:[%s329_s1 + $0x60] sm:$0xff]  ;;  %49 = vperm.xlu0 %248, %v46_v7   ;;  %v244_v12 = vld [vmem:[%s329_s1 + $0x50] sm:$0xff]  ;;  %v237_v13 = vld [vmem:[%s329_s1 + $0x18] sm:$0xff] }
   0x4   :  { %v125_v5 = vpack.c.b16 %v111_v2, %v111_v2  ;;  %v238_v11 = vld [vmem:[%s329_s1 + $0x20] sm:$0xff]  ;;  %v243_v14 = vld [vmem:[%s329_s1 + $0x48] sm:$0xff]  ;;  %v236_v15 = vld [vmem:[%s329_s1 + $0x10] sm:$0xff] }
   0x5   :  { %v18_v16 = vld [vmem:[%s331_s0] sm:$0xff]  ;;  %v235_v19 = vld [vmem:[%s329_s1 + $0x8] sm:$0xff] }
   0x6   :  { %v145_v6 = vsel %vm143_vm0, %v125_v5, 0  ;;  %148 = vmatpush.bf16.msra.mxu0 %v240_v3  ;;  %v54_v17 = vunpack.c.h.b16 %v18_v16  ;;  %v242_v18 = vld [vmem:[%s329_s1 + $0x40] sm:$0xff]  ;;  %v53_v21 = vunpack.c.l.b16 %v18_v16 }
   0x7   :  { %162 = vmatpush.bf16.msra.mxu1 %v145_v6  ;;  %v234_v22 = vld [vmem:[%s329_s1] sm:$0xff] }
   0x8   :  { %v56_v20 = vpack.c.b16 %v54_v17, %v54_v17  ;;  %v55_v23 = vpack.c.b16 %v53_v21, %v53_v21  ;;  %v173_v28 = vld [vmem:[%s332_s3] sm:$0xff] }
   0xa   :  { %149 = vmatpush.bf16.msra.mxu0 %v239_v9 }
   0xb   :  { %163 = vmatpush.bf16.msra.mxu1 %v246_v8 }
   0xe   :  { %150 = vmatpush.bf16.msra.mxu0 %v238_v11 }
   0xf   :  { %164 = vmatpush.bf16.msra.mxu1 %v245_v10 }
  0x12   :  { %151 = vmatpush.bf16.msra.mxu0 %v237_v13 }
  0x13   :  { %165 = vmatpush.bf16.msra.mxu1 %v244_v12 }
  0x16   :  { %152 = vmatpush.bf16.msra.mxu0 %v236_v15 }
  0x17   :  { %166 = vmatpush.bf16.msra.mxu1 %v243_v14 }
  0x1a   :  { %153 = vmatpush.bf16.msra.mxu0 %v235_v19 }
  0x1b   :  { %167 = vmatpush.bf16.msra.mxu1 %v242_v18 }
  0x1e   :  { %233 = vmatmul.msk.bf16.vlgmr.msra.gmra.mxu1 %vm139_vm1, %v56_v20  ;;  %154 = vmatpush.bf16.msra.mxu0 %v234_v22 }
  0x21   :  { %155 = vmatmul.bf16.vlgmr.msra.gmra.mxu0 %v55_v23 }
  0x75   :  { %v50_v25 = vpop.permute.xlu0 %49 }
  0x9b   :  { %v169_v24 = vpop.f32.mrf.mxu1 }
  0x9e   :  { %v156_v26 = vpop.f32.mrf.mxu0 }
  0x9f   :  { %v157_v27 = vadd.f32 %v156_v26, %v50_v25 }
  0xa1   :  { %v170_v29 = vadd.f32 %v169_v24, %v157_v27 }
  0xa3   :  { %v171_v30 = vpop.f32.mrf.mxu1  ;;  %v174_v31 = vadd.f32 %v173_v28, %v170_v29 }
  0xa5   :  { %v175_v32 = vmax.f32 %v174_v31, 0.0 }
  0xa6   :  { %v158_v33 = vpop.f32.mrf.mxu0 }
  0xa7   :  { %176 = vst [vmem:[%s333_s4] sm:$0xff] %v175_v32 }

// kernel: resnet_forward.19
= control target key start
LH: loop header
LB: loop body
LE: loop exit
PB: predicated region body
PF: predicated region fallthrough
CT: control target
= control target key end

     0   :  { %vm150_vm0 = vcmask 1043456   ;;  %v268_v4 = vmov 0   ;;  %vm146_vm1 = vcmask 719872   ;;  %s355_s1 = inlined_call_operand.vmem [shape: bf16[216,128], index: 1, kind: input, shape index: {}]   ;;  %s356_s2 = inlined_call_operand.vmem [shape: f32[16,1], index: 2, kind: input, shape index: {}]   ;;  %s357_s0 = inlined_call_operand.vmem [shape: bf16[16,216], index: 0, kind: input, shape index: {}]   ;;  %s358_s3 = inlined_call_operand.vmem [shape: f32[16,128], index: 3, kind: output, shape index: {}]  }
   0x1   :  { %v260_v0 = vld [vmem:[%s355_s1 + $0x38] sm:$0xff]  ;;  %v43_v1 = vld [vmem:[%s355_s1 + $0x68] sm:$0xf]  ;;  %v259_v3 = vld [vmem:[%s355_s1 + $0x30] sm:$0xff]  ;;  %267 = vset.pattern.permute.xlu0 %v268_v4 }
   0x2   :  { %v118_v2 = vunpack.c.l.b16 %v43_v1  ;;  %154 = vmatpush.bf16.msra.mxu0 %v260_v0  ;;  %v265_v7 = vld [vmem:[%s355_s1 + $0x60] sm:$0xff]  ;;  %v258_v8 = vld [vmem:[%s355_s1 + $0x28] sm:$0xff]  ;;  %v264_v10 = vld [vmem:[%s355_s1 + $0x58] sm:$0xff] }
   0x3   :  { %v44_v9 = vld [vmem:[%s356_s2] sm:$0xff]  ;;  %v45_v12 = vld [vmem:[%s356_s2 + $0x8] sm:$0xff]  ;;  %v263_v13 = vld [vmem:[%s355_s1 + $0x50] sm:$0xff] }
   0x4   :  { %v132_v5 = vpack.c.b16 %v118_v2, %v118_v2  ;;  %48 = vperm.xlu0 %267, %v44_v9   ;;  %v257_v11 = vld [vmem:[%s355_s1 + $0x20] sm:$0xff]  ;;  %v256_v14 = vld [vmem:[%s355_s1 + $0x18] sm:$0xff]  ;;  %v262_v15 = vld [vmem:[%s355_s1 + $0x48] sm:$0xff] }
   0x5   :  { %v255_v16 = vld [vmem:[%s355_s1 + $0x10] sm:$0xff]  ;;  %v261_v17 = vld [vmem:[%s355_s1 + $0x40] sm:$0xff]  ;;  %v254_v18 = vld [vmem:[%s355_s1 + $0x8] sm:$0xff] }
   0x6   :  { %v152_v6 = vsel %vm150_vm0, %v132_v5, 0  ;;  %155 = vmatpush.bf16.msra.mxu0 %v259_v3  ;;  %v251_v19 = vld [vmem:[%s357_s0 + $0x4] sm:$0xf]  ;;  %v194_v20 = vld [vmem:[%s357_s0 + $0x8] sm:$0xf0] }
   0x7   :  { %170 = vmatpush.bf16.msra.mxu1 %v152_v6  ;;  %v197_v21 = vor.u32 %v251_v19, %v194_v20  ;;  %v253_v22 = vld [vmem:[%s355_s1] sm:$0xff]  ;;  %v252_v24 = vld [vmem:[%s357_s0 + $0x4] sm:$0xf0] }
   0x8   :  { %v192_v23 = vld [vmem:[%s357_s0] sm:$0xf] }
   0x9   :  { %v193_v25 = vor.u32 %v252_v24, %v192_v23 }
   0xa   :  { %156 = vmatpush.bf16.msra.mxu0 %v258_v8 }
   0xb   :  { %171 = vmatpush.bf16.msra.mxu1 %v265_v7 }
   0xc   :  { %53 = vperm.xlu0 %267, %v45_v12  }
   0xe   :  { %157 = vmatpush.bf16.msra.mxu0 %v257_v11 }
   0xf   :  { %172 = vmatpush.bf16.msra.mxu1 %v264_v10 }
  0x12   :  { %158 = vmatpush.bf16.msra.mxu0 %v256_v14 }
  0x13   :  { %173 = vmatpush.bf16.msra.mxu1 %v263_v13 }
  0x16   :  { %159 = vmatpush.bf16.msra.mxu0 %v255_v16 }
  0x17   :  { %174 = vmatpush.bf16.msra.mxu1 %v262_v15 }
  0x1a   :  { %160 = vmatpush.bf16.msra.mxu0 %v254_v18 }
  0x1b   :  { %175 = vmatpush.bf16.msra.mxu1 %v261_v17 }
  0x1e   :  { %250 = vmatmul.msk.bf16.vlgmr.msra.gmra.mxu1 %vm146_vm1, %v197_v21  ;;  %161 = vmatpush.bf16.msra.mxu0 %v253_v22 }
  0x21   :  { %162 = vmatmul.bf16.vlgmr.msra.gmra.mxu0 %v193_v25 }
  0x76   :  { %v49_v26 = vpop.permute.xlu0 %48 }
  0x7e   :  { %v54_v32 = vpop.permute.xlu0 %53 }
  0x9b   :  { %v177_v27 = vpop.f32.mrf.mxu1 }
  0x9e   :  { %v163_v28 = vpop.f32.mrf.mxu0 }
  0x9f   :  { %v164_v29 = vadd.f32 %v163_v28, %v49_v26 }
  0xa1   :  { %v178_v30 = vadd.f32 %v177_v27, %v164_v29 }
  0xa3   :  { %v182_v31 = vmax.f32 %v178_v30, 0.0  ;;  %v179_v35 = vpop.f32.mrf.mxu1 }
  0xa5   :  { %184 = vst [vmem:[%s358_s3] sm:$0xff] %v182_v31 }
  0xa6   :  { %v165_v33 = vpop.f32.mrf.mxu0 }
  0xa7   :  { %v166_v34 = vadd.f32 %v165_v33, %v54_v32 }
  0xa9   :  { %v180_v36 = vadd.f32 %v179_v35, %v166_v34 }
  0xab   :  { %v183_v37 = vmax.f32 %v180_v36, 0.0 }
  0xad   :  { %185 = vst [vmem:[%s358_s3 + $0x8] sm:$0xff] %v183_v37 }

// kernel: resnet_forward.18
= control target key start
LH: loop header
LB: loop body
LE: loop exit
PB: predicated region body
PF: predicated region fallthrough
CT: control target
= control target key end

     0   :  { %vm39_vm0 = vcmask 1043456   ;;  %v71_v1 = vmov 0   ;;  %vm35_vm1 = vcmask 64512   ;;  %s110_s1 = inlined_call_operand.vmem [shape: bf16[8,128], index: 1, kind: input, shape index: {}]   ;;  %s111_s0 = inlined_call_operand.vmem [shape: bf16[16,8], index: 0, kind: input, shape index: {}]   ;;  %s112_s2 = inlined_call_operand.vmem [shape: f32[16,1], index: 2, kind: input, shape index: {}]   ;;  %s113_s3 = inlined_call_operand.vmem [shape: f32[16,128], index: 3, kind: output, shape index: {}]  }
   0x1   :  { %v17_v0 = vld [vmem:[%s110_s1] sm:$0xf]  ;;  %70 = vset.pattern.permute.xlu0 %v71_v1  ;;  %v19_v5 = vld [vmem:[%s112_s2 + $0x8] sm:$0xff] }
   0x2   :  { %v18_v2 = vld [vmem:[%s112_s2] sm:$0xff]  ;;  %v41_v3 = vsel %vm39_vm0, %v17_v0, 0 }
   0x3   :  { %v68_v4 = vld [vmem:[%s111_s0] sm:$0xff]  ;;  %22 = vperm.xlu0 %70, %v18_v2   ;;  %50 = vmatpush.bf16.msra.mxu0 %v41_v3 }
   0x6   :  { %67 = vmatmul.msk.bf16.vlgmr.msra.gmra.mxu0 %vm35_vm1, %v68_v4 }
   0xb   :  { %27 = vperm.xlu0 %70, %v19_v5  }
  0x75   :  { %v23_v6 = vpop.permute.xlu0 %22 }
  0x7d   :  { %v28_v9 = vpop.permute.xlu0 %27 }
  0x83   :  { %v52_v7 = vpop.f32.mrf.mxu0 }
  0x84   :  { %v53_v8 = vadd.f32 %v52_v7, %v23_v6 }
  0x86   :  { %57 = vst [vmem:[%s113_s3] sm:$0xff] %v53_v8 }
  0x8b   :  { %v54_v10 = vpop.f32.mrf.mxu0 }
  0x8c   :  { %v55_v11 = vadd.f32 %v54_v10, %v28_v9 }
  0x8e   :  { %58 = vst [vmem:[%s113_s3 + $0x8] sm:$0xff] %v55_v11 }

// kernel: resnet_forward.20
= control target key start
LH: loop header
LB: loop body
LE: loop exit
PB: predicated region body
PF: predicated region fallthrough
CT: control target
= control target key end

     0   :  { %v499_v6 = vmov 0   ;;  %vm269_vm0 = vcmask 392192   ;;  %s648_s1 = inlined_call_operand.vmem [shape: bf16[432,128], index: 1, kind: input, shape index: {}]   ;;  %s649_s2 = inlined_call_operand.vmem [shape: f32[16,1], index: 2, kind: input, shape index: {}]   ;;  %s650_s0 = inlined_call_operand.vmem [shape: bf16[16,432], index: 0, kind: input, shape index: {}]   ;;  %s651_s3 = inlined_call_operand.vmem [shape: f32[16,128], index: 3, kind: input, shape index: {}]   ;;  %s652_s4 = inlined_call_operand.vmem [shape: f32[16,128], index: 4, kind: output, shape index: {}]  }
   0x1   :  { %v477_v0 = vld [vmem:[%s648_s1 + $0x38] sm:$0xff]  ;;  %v476_v3 = vld [vmem:[%s648_s1 + $0x30] sm:$0xff]  ;;  %498 = vset.pattern.permute.xlu0 %v499_v6  ;;  %v475_v8 = vld [vmem:[%s648_s1 + $0x28] sm:$0xff] }
   0x2   :  { %v485_v1 = vld [vmem:[%s648_s1 + $0x78] sm:$0xff]  ;;  %273 = vmatpush.bf16.msra.mxu0 %v477_v0  ;;  %v484_v4 = vld [vmem:[%s648_s1 + $0x70] sm:$0xff]  ;;  %v483_v9 = vld [vmem:[%s648_s1 + $0x68] sm:$0xff] }
   0x3   :  { %v493_v2 = vld [vmem:[%s648_s1 + $0xb8] sm:$0xff]  ;;  %287 = vmatpush.bf16.msra.mxu1 %v485_v1  ;;  %v492_v5 = vld [vmem:[%s648_s1 + $0xb0] sm:$0xff]  ;;  %v491_v10 = vld [vmem:[%s648_s1 + $0xa8] sm:$0xff] }
   0x4   :  { %301 = vmatpush.bf16.msra.mxu2 %v493_v2  ;;  %v496_v7 = vld [vmem:[%s648_s1 + $0xd0] sm:$0xff]  ;;  %v495_v11 = vld [vmem:[%s648_s1 + $0xc8] sm:$0xff]  ;;  %v474_v12 = vld [vmem:[%s648_s1 + $0x20] sm:$0xff] }
   0x5   :  { %320 = vmatpush.bf16.msra.mxu3 %v496_v7  ;;  %v482_v13 = vld [vmem:[%s648_s1 + $0x60] sm:$0xff]  ;;  %v467_v17 = vld [vmem:[%s650_s0 + $0xc] sm:$0xf]  ;;  %v353_v18 = vld [vmem:[%s650_s0 + $0x18] sm:$0xf0] }
   0x6   :  { %274 = vmatpush.bf16.msra.mxu0 %v476_v3  ;;  %v490_v14 = vld [vmem:[%s648_s1 + $0xa0] sm:$0xff]  ;;  %v473_v19 = vld [vmem:[%s648_s1 + $0x18] sm:$0xff]  ;;  %v356_v22 = vor.u32 %v467_v17, %v353_v18  ;;  %v77_v23 = vld [vmem:[%s649_s2 + $0x8] sm:$0xff] }
   0x7   :  { %288 = vmatpush.bf16.msra.mxu1 %v484_v4  ;;  %v494_v15 = vld [vmem:[%s648_s1 + $0xc0] sm:$0xff]  ;;  %v481_v20 = vld [vmem:[%s648_s1 + $0x58] sm:$0xff]  ;;  %v472_v24 = vld [vmem:[%s648_s1 + $0x10] sm:$0xff] }
   0x8   :  { %302 = vmatpush.bf16.msra.mxu2 %v492_v5  ;;  %v76_v16 = vld [vmem:[%s649_s2] sm:$0xff]  ;;  %v489_v21 = vld [vmem:[%s648_s1 + $0x98] sm:$0xff]  ;;  %v480_v25 = vld [vmem:[%s648_s1 + $0x50] sm:$0xff] }
   0x9   :  { %321 = vmatpush.bf16.msra.mxu3 %v495_v11  ;;  %80 = vperm.xlu0 %498, %v76_v16   ;;  %v488_v26 = vld [vmem:[%s648_s1 + $0x90] sm:$0xff]  ;;  %v471_v27 = vld [vmem:[%s648_s1 + $0x8] sm:$0xff]  ;;  %v470_v30 = vld [vmem:[%s648_s1] sm:$0xff] }
   0xa   :  { %275 = vmatpush.bf16.msra.mxu0 %v475_v8  ;;  %v479_v28 = vld [vmem:[%s648_s1 + $0x48] sm:$0xff]  ;;  %v478_v31 = vld [vmem:[%s648_s1 + $0x40] sm:$0xff]  ;;  %v468_v33 = vld [vmem:[%s650_s0 + $0xc] sm:$0xf0] }
   0xb   :  { %289 = vmatpush.bf16.msra.mxu1 %v483_v9  ;;  %v487_v29 = vld [vmem:[%s648_s1 + $0x88] sm:$0xff]  ;;  %v343_v32 = vld [vmem:[%s650_s0] sm:$0xf]  ;;  %v466_v34 = vld [vmem:[%s650_s0 + $0x4] sm:$0xf] }
   0xc   :  { %303 = vmatpush.bf16.msra.mxu2 %v491_v10  ;;  %v345_v35 = vld [vmem:[%s650_s0 + $0x10] sm:$0xf0]  ;;  %v486_v36 = vld [vmem:[%s648_s1 + $0x80] sm:$0xff]  ;;  %v351_v37 = vld [vmem:[%s650_s0 + $0x8] sm:$0xf]  ;;  %v344_v39 = vor.u32 %v468_v33, %v343_v32 }
   0xd   :  { %322 = vmatpush.bf16.msra.mxu3 %v494_v15  ;;  %v469_v38 = vld [vmem:[%s650_s0 + $0x14] sm:$0xf0]  ;;  %v348_v40 = vor.u32 %v466_v34, %v345_v35  ;;  %v329_v52 = vld [vmem:[%s651_s3] sm:$0xff]  ;;  %v330_v62 = vld [vmem:[%s651_s3 + $0x8] sm:$0xff] }
   0xe   :  { %276 = vmatpush.bf16.msra.mxu0 %v474_v12  ;;  %v352_v41 = vor.u32 %v469_v38, %v351_v37 }
   0xf   :  { %290 = vmatpush.bf16.msra.mxu1 %v482_v13 }
  0x10   :  { %304 = vmatpush.bf16.msra.mxu2 %v490_v14  ;;  %465 = vmatmul.msk.bf16.vlgmr.msra.gmra.mxu3 %vm269_vm0, %v356_v22 }
  0x11   :  { %85 = vperm.xlu0 %498, %v77_v23  }
  0x12   :  { %277 = vmatpush.bf16.msra.mxu0 %v473_v19 }
  0x13   :  { %291 = vmatpush.bf16.msra.mxu1 %v481_v20 }
  0x14   :  { %305 = vmatpush.bf16.msra.mxu2 %v489_v21 }
  0x16   :  { %278 = vmatpush.bf16.msra.mxu0 %v472_v24 }
  0x17   :  { %292 = vmatpush.bf16.msra.mxu1 %v480_v25 }
  0x18   :  { %306 = vmatpush.bf16.msra.mxu2 %v488_v26 }
  0x1a   :  { %279 = vmatpush.bf16.msra.mxu0 %v471_v27 }
  0x1b   :  { %293 = vmatpush.bf16.msra.mxu1 %v479_v28 }
  0x1c   :  { %307 = vmatpush.bf16.msra.mxu2 %v487_v29 }
  0x1e   :  { %280 = vmatpush.bf16.msra.mxu0 %v470_v30 }
  0x1f   :  { %294 = vmatpush.bf16.msra.mxu1 %v478_v31 }
  0x20   :  { %308 = vmatpush.bf16.msra.mxu2 %v486_v36 }
  0x21   :  { %281 = vmatmul.bf16.vlgmr.msra.gmra.mxu0 %v344_v39 }
  0x22   :  { %295 = vmatmul.bf16.vlgmr.msra.gmra.mxu1 %v348_v40 }
  0x23   :  { %309 = vmatmul.bf16.vlgmr.msra.gmra.mxu2 %v352_v41 }
  0x7b   :  { %v81_v42 = vpop.permute.xlu0 %80 }
  0x83   :  { %v86_v51 = vpop.permute.xlu0 %85 }
  0x93   :  { %v324_v47 = vpop.f32.mrf.mxu3 }
  0x9b   :  { %v326_v61 = vpop.f32.mrf.mxu3 }
  0x9e   :  { %v282_v43 = vpop.f32.mrf.mxu0 }
  0x9f   :  { %v283_v44 = vadd.f32 %v282_v43, %v81_v42  ;;  %v296_v45 = vpop.f32.mrf.mxu1 }
  0xa1   :  { %v297_v46 = vadd.f32 %v296_v45, %v283_v44 }
  0xa6   :  { %v310_v48 = vpop.f32.mrf.mxu2  ;;  %v284_v50 = vpop.f32.mrf.mxu0 }
  0xa7   :  { %v311_v49 = vadd.f32 %v310_v48, %v297_v46  ;;  %v285_v54 = vadd.f32 %v284_v50, %v86_v51  ;;  %v298_v56 = vpop.f32.mrf.mxu1 }
  0xa9   :  { %v325_v53 = vadd.f32 %v324_v47, %v311_v49  ;;  %v299_v58 = vadd.f32 %v298_v56, %v285_v54 }
  0xab   :  { %v331_v55 = vadd.f32 %v329_v52, %v325_v53 }
  0xad   :  { %v333_v57 = vmax.f32 %v331_v55, 0.0 }
  0xae   :  { %v312_v59 = vpop.f32.mrf.mxu2 }
  0xaf   :  { %335 = vst [vmem:[%s652_s4] sm:$0xff] %v333_v57  ;;  %v313_v60 = vadd.f32 %v312_v59, %v299_v58 }
  0xb1   :  { %v327_v63 = vadd.f32 %v326_v61, %v313_v60 }
  0xb3   :  { %v332_v0 = vadd.f32 %v330_v62, %v327_v63 }
  0xb5   :  { %v334_v1 = vmax.f32 %v332_v0, 0.0 }
  0xb7   :  { %336 = vst [vmem:[%s652_s4 + $0x8] sm:$0xff] %v334_v1 }

// kernel: resnet_forward.22
= control target key start
LH: loop header
LB: loop body
LE: loop exit
PB: predicated region body
PF: predicated region fallthrough
CT: control target
= control target key end

     0   :  { %v576_v6 = vmov 0   ;;  %vm301_vm0 = vcmask 392192   ;;  %s752_s1 = inlined_call_operand.vmem [shape: bf16[432,128], index: 1, kind: input, shape index: {}]   ;;  %s753_s0 = inlined_call_operand.vmem [shape: bf16[32,432], index: 0, kind: input, shape index: {}]   ;;  %s754_s2 = inlined_call_operand.vmem [shape: f32[32,1], index: 2, kind: input, shape index: {}]   ;;  %s755_s3 = inlined_call_operand.vmem [shape: f32[32,128], index: 3, kind: output, shape index: {}]  }
   0x1   :  { %v553_v0 = vld [vmem:[%s752_s1 + $0x38] sm:$0xff]  ;;  %v552_v3 = vld [vmem:[%s752_s1 + $0x30] sm:$0xff]  ;;  %574 = vset.pattern.permute.xlu0 %v576_v6  ;;  %575 = vset.pattern.permute.xlu1 %v576_v6  ;;  %v551_v8 = vld [vmem:[%s752_s1 + $0x28] sm:$0xff] }
   0x2   :  { %v561_v1 = vld [vmem:[%s752_s1 + $0x78] sm:$0xff]  ;;  %308 = vmatpush.bf16.msra.mxu0 %v553_v0  ;;  %v560_v4 = vld [vmem:[%s752_s1 + $0x70] sm:$0xff]  ;;  %v559_v9 = vld [vmem:[%s752_s1 + $0x68] sm:$0xff] }
   0x3   :  { %v569_v2 = vld [vmem:[%s752_s1 + $0xb8] sm:$0xff]  ;;  %327 = vmatpush.bf16.msra.mxu1 %v561_v1  ;;  %v568_v5 = vld [vmem:[%s752_s1 + $0xb0] sm:$0xff]  ;;  %v567_v10 = vld [vmem:[%s752_s1 + $0xa8] sm:$0xff] }
   0x4   :  { %346 = vmatpush.bf16.msra.mxu2 %v569_v2  ;;  %v572_v7 = vld [vmem:[%s752_s1 + $0xd0] sm:$0xff]  ;;  %v571_v11 = vld [vmem:[%s752_s1 + $0xc8] sm:$0xff]  ;;  %v550_v12 = vld [vmem:[%s752_s1 + $0x20] sm:$0xff] }
   0x5   :  { %370 = vmatpush.bf16.msra.mxu3 %v572_v7  ;;  %v558_v13 = vld [vmem:[%s752_s1 + $0x60] sm:$0xff]  ;;  %v539_v16 = vld [vmem:[%s753_s0 + $0xc] sm:$0xf]  ;;  %v408_v17 = vld [vmem:[%s753_s0 + $0x18] sm:$0xf0] }
   0x6   :  { %309 = vmatpush.bf16.msra.mxu0 %v552_v3  ;;  %v566_v14 = vld [vmem:[%s752_s1 + $0xa0] sm:$0xff]  ;;  %v549_v19 = vld [vmem:[%s752_s1 + $0x18] sm:$0xff]  ;;  %v411_v22 = vor.u32 %v539_v16, %v408_v17  ;;  %v548_v23 = vld [vmem:[%s752_s1 + $0x10] sm:$0xff] }
   0x7   :  { %328 = vmatpush.bf16.msra.mxu1 %v560_v4  ;;  %v570_v15 = vld [vmem:[%s752_s1 + $0xc0] sm:$0xff]  ;;  %v557_v20 = vld [vmem:[%s752_s1 + $0x58] sm:$0xff]  ;;  %v556_v24 = vld [vmem:[%s752_s1 + $0x50] sm:$0xff] }
   0x8   :  { %347 = vmatpush.bf16.msra.mxu2 %v568_v5  ;;  %v77_v18 = vld [vmem:[%s754_s2] sm:$0xff]  ;;  %v565_v21 = vld [vmem:[%s752_s1 + $0x98] sm:$0xff]  ;;  %v78_v25 = vld [vmem:[%s754_s2 + $0x8] sm:$0xff] }
   0x9   :  { %371 = vmatpush.bf16.msra.mxu3 %v571_v11  ;;  %83 = vperm.xlu0 %574, %v77_v18   ;;  %v79_v26 = vld [vmem:[%s754_s2 + $0x10] sm:$0xff]  ;;  %v547_v28 = vld [vmem:[%s752_s1 + $0x8] sm:$0xff]  ;;  %v546_v31 = vld [vmem:[%s752_s1] sm:$0xff] }
   0xa   :  { %310 = vmatpush.bf16.msra.mxu0 %v551_v8  ;;  %v564_v27 = vld [vmem:[%s752_s1 + $0x90] sm:$0xff]  ;;  %93 = vperm.xlu1 %575, %v79_v26   ;;  %v555_v29 = vld [vmem:[%s752_s1 + $0x48] sm:$0xff]  ;;  %v554_v32 = vld [vmem:[%s752_s1 + $0x40] sm:$0xff] }
   0xb   :  { %329 = vmatpush.bf16.msra.mxu1 %v559_v9  ;;  %v563_v30 = vld [vmem:[%s752_s1 + $0x88] sm:$0xff]  ;;  %v398_v33 = vld [vmem:[%s753_s0] sm:$0xf]  ;;  %v80_v34 = vld [vmem:[%s754_s2 + $0x18] sm:$0xff] }
   0xc   :  { %348 = vmatpush.bf16.msra.mxu2 %v567_v10  ;;  %v540_v35 = vld [vmem:[%s753_s0 + $0xc] sm:$0xf0]  ;;  %v538_v36 = vld [vmem:[%s753_s0 + $0x4] sm:$0xf]  ;;  %v400_v37 = vld [vmem:[%s753_s0 + $0x10] sm:$0xf0] }
   0xd   :  { %372 = vmatpush.bf16.msra.mxu3 %v570_v15  ;;  %v562_v38 = vld [vmem:[%s752_s1 + $0x80] sm:$0xff]  ;;  %v406_v39 = vld [vmem:[%s753_s0 + $0x8] sm:$0xf]  ;;  %v541_v40 = vld [vmem:[%s753_s0 + $0x14] sm:$0xf0]  ;;  %v399_v43 = vor.u32 %v540_v35, %v398_v33  ;;  %v403_v44 = vor.u32 %v538_v36, %v400_v37 }
   0xe   :  { %311 = vmatpush.bf16.msra.mxu0 %v550_v12  ;;  %v543_v41 = vld [vmem:[%s753_s0 + $0x2c] sm:$0xf]  ;;  %v424_v42 = vld [vmem:[%s753_s0 + $0x38] sm:$0xf0]  ;;  %v407_v45 = vor.u32 %v541_v40, %v406_v39  ;;  %v414_v47 = vld [vmem:[%s753_s0 + $0x20] sm:$0xf] }
   0xf   :  { %330 = vmatpush.bf16.msra.mxu1 %v558_v13  ;;  %v427_v46 = vor.u32 %v543_v41, %v424_v42  ;;  %v544_v48 = vld [vmem:[%s753_s0 + $0x2c] sm:$0xf0]  ;;  %v542_v49 = vld [vmem:[%s753_s0 + $0x24] sm:$0xf]  ;;  %v416_v50 = vld [vmem:[%s753_s0 + $0x30] sm:$0xf0] }
  0x10   :  { %349 = vmatpush.bf16.msra.mxu2 %v566_v14  ;;  %536 = vmatmul.msk.bf16.vlgmr.msra.gmra.mxu3 %vm301_vm0, %v411_v22  ;;  %v422_v51 = vld [vmem:[%s753_s0 + $0x28] sm:$0xf]  ;;  %v545_v52 = vld [vmem:[%s753_s0 + $0x34] sm:$0xf0]  ;;  %v415_v53 = vor.u32 %v544_v48, %v414_v47  ;;  %v419_v54 = vor.u32 %v542_v49, %v416_v50 }
  0x11   :  { %88 = vperm.xlu0 %574, %v78_v25   ;;  %v423_v55 = vor.u32 %v545_v52, %v422_v51 }
  0x12   :  { %312 = vmatpush.bf16.msra.mxu0 %v549_v19  ;;  %98 = vperm.xlu1 %575, %v80_v34  }
  0x13   :  { %331 = vmatpush.bf16.msra.mxu1 %v557_v20 }
  0x14   :  { %350 = vmatpush.bf16.msra.mxu2 %v565_v21 }
  0x16   :  { %313 = vmatpush.bf16.msra.mxu0 %v548_v23 }
  0x17   :  { %332 = vmatpush.bf16.msra.mxu1 %v556_v24 }
  0x18   :  { %351 = vmatpush.bf16.msra.mxu2 %v564_v27 }
  0x1a   :  { %314 = vmatpush.bf16.msra.mxu0 %v547_v28 }
  0x1b   :  { %333 = vmatpush.bf16.msra.mxu1 %v555_v29 }
  0x1c   :  { %352 = vmatpush.bf16.msra.mxu2 %v563_v30 }
  0x1e   :  { %315 = vmatpush.bf16.msra.mxu0 %v546_v31 }
  0x1f   :  { %334 = vmatpush.bf16.msra.mxu1 %v554_v32 }
  0x20   :  { %353 = vmatpush.bf16.msra.mxu2 %v562_v38  ;;  %537 = vmatmul.msk.bf16.gmra.mxu3 %vm301_vm0, %v427_v46 }
  0x21   :  { %316 = vmatmul.bf16.vlgmr.msra.gmra.mxu0 %v399_v43 }
  0x22   :  { %335 = vmatmul.bf16.vlgmr.msra.gmra.mxu1 %v403_v44 }
  0x23   :  { %354 = vmatmul.bf16.vlgmr.msra.gmra.mxu2 %v407_v45 }
  0x31   :  { %321 = vmatmul.bf16.gmra.mxu0 %v415_v53 }
  0x32   :  { %340 = vmatmul.bf16.gmra.mxu1 %v419_v54 }
  0x33   :  { %359 = vmatmul.bf16.gmra.mxu2 %v423_v55 }
  0x7b   :  { %v84_v56 = vpop.permute.xlu0 %83 }
  0x7c   :  { %v94_v8 = vpop.permute.xlu1 %93 }
  0x83   :  { %v89_v63 = vpop.permute.xlu0 %88 }
  0x84   :  { %v99_v21 = vpop.permute.xlu1 %98 }
  0x93   :  { %v374_v60 = vpop.f32.mrf.mxu3 }
  0x9b   :  { %v376_v6 = vpop.f32.mrf.mxu3 }
  0x9e   :  { %v317_v57 = vpop.f32.mrf.mxu0 }
  0x9f   :  { %v336_v58 = vpop.f32.mrf.mxu1  ;;  %v318_v59 = vadd.f32 %v317_v57, %v84_v56 }
  0xa1   :  { %v337_v61 = vadd.f32 %v336_v58, %v318_v59 }
  0xa3   :  { %v379_v17 = vpop.f32.mrf.mxu3 }
  0xa6   :  { %v355_v62 = vpop.f32.mrf.mxu2  ;;  %v319_v1 = vpop.f32.mrf.mxu0 }
  0xa7   :  { %v356_v0 = vadd.f32 %v355_v62, %v337_v61  ;;  %v338_v2 = vpop.f32.mrf.mxu1  ;;  %v320_v4 = vadd.f32 %v319_v1, %v89_v63 }
  0xa9   :  { %v375_v3 = vadd.f32 %v374_v60, %v356_v0  ;;  %v339_v7 = vadd.f32 %v338_v2, %v320_v4 }
  0xab   :  { %v384_v5 = vmax.f32 %v375_v3, 0.0  ;;  %v381_v29 = vpop.f32.mrf.mxu3 }
  0xad   :  { %388 = vst [vmem:[%s755_s3] sm:$0xff] %v384_v5 }
  0xae   :  { %v357_v9 = vpop.f32.mrf.mxu2  ;;  %v322_v11 = vpop.f32.mrf.mxu0 }
  0xaf   :  { %v358_v10 = vadd.f32 %v357_v9, %v339_v7  ;;  %v323_v12 = vadd.f32 %v322_v11, %v94_v8  ;;  %v341_v14 = vpop.f32.mrf.mxu1 }
  0xb1   :  { %v377_v13 = vadd.f32 %v376_v6, %v358_v10  ;;  %v342_v16 = vadd.f32 %v341_v14, %v323_v12 }
  0xb3   :  { %v385_v15 = vmax.f32 %v377_v13, 0.0 }
  0xb5   :  { %389 = vst [vmem:[%s755_s3 + $0x8] sm:$0xff] %v385_v15 }
  0xb6   :  { %v360_v18 = vpop.f32.mrf.mxu2  ;;  %v324_v20 = vpop.f32.mrf.mxu0 }
  0xb7   :  { %v361_v19 = vadd.f32 %v360_v18, %v342_v16  ;;  %v325_v23 = vadd.f32 %v324_v20, %v99_v21  ;;  %v343_v25 = vpop.f32.mrf.mxu1 }
  0xb9   :  { %v380_v22 = vadd.f32 %v379_v17, %v361_v19  ;;  %v344_v26 = vadd.f32 %v343_v25, %v325_v23 }
  0xbb   :  { %v386_v24 = vmax.f32 %v380_v22, 0.0 }
  0xbd   :  { %390 = vst [vmem:[%s755_s3 + $0x10] sm:$0xff] %v386_v24 }
  0xbe   :  { %v362_v27 = vpop.f32.mrf.mxu2 }
  0xbf   :  { %v363_v28 = vadd.f32 %v362_v27, %v344_v26 }
  0xc1   :  { %v382_v30 = vadd.f32 %v381_v29, %v363_v28 }
  0xc3   :  { %v387_v31 = vmax.f32 %v382_v30, 0.0 }
  0xc5   :  { %391 = vst [vmem:[%s755_s3 + $0x18] sm:$0xff] %v387_v31 }

// kernel: resnet_forward.21
= control target key start
LH: loop header
LB: loop body
LE: loop exit
PB: predicated region body
PF: predicated region fallthrough
CT: control target
= control target key end

     0   :  { %v116_v2 = vmov 0   ;;  %vm61_vm0 = vcmask 130048   ;;  %s170_s1 = inlined_call_operand.vmem [shape: bf16[16,128], index: 1, kind: input, shape index: {}]   ;;  %s171_s0 = inlined_call_operand.vmem [shape: bf16[32,16], index: 0, kind: input, shape index: {}]   ;;  %s172_s2 = inlined_call_operand.vmem [shape: f32[32,1], index: 2, kind: input, shape index: {}]   ;;  %s173_s3 = inlined_call_operand.vmem [shape: f32[32,128], index: 3, kind: output, shape index: {}]  }
   0x1   :  { %v111_v0 = vld [vmem:[%s170_s1] sm:$0xff]  ;;  %115 = vset.pattern.permute.xlu1 %v116_v2  ;;  %114 = vset.pattern.permute.xlu0 %v116_v2  ;;  %v110_v3 = vld [vmem:[%s171_s0 + $0x8] sm:$0xff]  ;;  %v23_v4 = vld [vmem:[%s172_s2 + $0x10] sm:$0xff] }
   0x2   :  { %v109_v1 = vld [vmem:[%s171_s0] sm:$0xff]  ;;  %75 = vmatpush.bf16.msra.mxu0 %v111_v0  ;;  %112 = vmatpush.bf16.msra.mxu1 %v111_v0  ;;  %v24_v6 = vld [vmem:[%s172_s2 + $0x18] sm:$0xff]  ;;  %v22_v7 = vld [vmem:[%s172_s2 + $0x8] sm:$0xff] }
   0x3   :  { %v21_v5 = vld [vmem:[%s172_s2] sm:$0xff]  ;;  %37 = vperm.xlu1 %115, %v23_v4  }
   0x4   :  { %27 = vperm.xlu0 %114, %v21_v5  }
   0x5   :  { %107 = vmatmul.msk.bf16.vlgmr.msra.gmra.mxu0 %vm61_vm0, %v109_v1  ;;  %108 = vmatmul.msk.bf16.vlgmr.msra.gmra.mxu1 %vm61_vm0, %v110_v3 }
   0xb   :  { %42 = vperm.xlu1 %115, %v24_v6  }
   0xc   :  { %32 = vperm.xlu0 %114, %v22_v7  }
  0x75   :  { %v38_v8 = vpop.permute.xlu1 %37 }
  0x76   :  { %v28_v9 = vpop.permute.xlu0 %27 }
  0x7d   :  { %v43_v14 = vpop.permute.xlu1 %42 }
  0x7e   :  { %v33_v15 = vpop.permute.xlu0 %32 }
  0x82   :  { %v77_v10 = vpop.f32.mrf.mxu0  ;;  %v82_v11 = vpop.f32.mrf.mxu1 }
  0x83   :  { %v78_v12 = vadd.f32 %v77_v10, %v28_v9  ;;  %v83_v13 = vadd.f32 %v82_v11, %v38_v8 }
  0x85   :  { %87 = vst [vmem:[%s173_s3] sm:$0xff] %v78_v12 }
  0x86   :  { %89 = vst [vmem:[%s173_s3 + $0x10] sm:$0xff] %v83_v13 }
  0x8a   :  { %v79_v16 = vpop.f32.mrf.mxu0  ;;  %v84_v17 = vpop.f32.mrf.mxu1 }
  0x8b   :  { %v80_v18 = vadd.f32 %v79_v16, %v33_v15  ;;  %v85_v19 = vadd.f32 %v84_v17, %v43_v14 }
  0x8d   :  { %88 = vst [vmem:[%s173_s3 + $0x8] sm:$0xff] %v80_v18 }
  0x8e   :  { %90 = vst [vmem:[%s173_s3 + $0x18] sm:$0xff] %v85_v19 }

// kernel: resnet_forward.23
= control target key start
LH: loop header
LB: loop body
LE: loop exit
PB: predicated region body
PF: predicated region fallthrough
CT: control target
= control target key end

     0   :  { %v1073_v20 = vmov 0   ;;  %vm560_vm0 = vcmask 785408   ;;  %s1381_s1 = inlined_call_operand.vmem [shape: bf16[864,128], index: 1, kind: input, shape index: {}]   ;;  %s1382_s2 = inlined_call_operand.vmem [shape: f32[32,1], index: 2, kind: input, shape index: {}]   ;;  %s1383_s0 = inlined_call_operand.vmem [shape: bf16[32,864], index: 0, kind: input, shape index: {}]   ;;  %s1384_s3 = inlined_call_operand.vmem [shape: f32[32,128], index: 3, kind: input, shape index: {}]   ;;  %s1385_s4 = inlined_call_operand.vmem [shape: f32[32,128], index: 4, kind: output, shape index: {}]  }
   0x1   :  { %v1015_v0 = vld [vmem:[%s1381_s1 + $0x38] sm:$0xff]  ;;  %v1014_v4 = vld [vmem:[%s1381_s1 + $0x30] sm:$0xff]  ;;  %v1013_v8 = vld [vmem:[%s1381_s1 + $0x28] sm:$0xff]  ;;  %1071 = vset.pattern.permute.xlu0 %v1073_v20  ;;  %1072 = vset.pattern.permute.xlu1 %v1073_v20 }
   0x2   :  { %v1023_v1 = vld [vmem:[%s1381_s1 + $0x78] sm:$0xff]  ;;  %567 = vmatpush.bf16.msra.mxu0 %v1015_v0  ;;  %v1022_v5 = vld [vmem:[%s1381_s1 + $0x70] sm:$0xff]  ;;  %v1021_v9 = vld [vmem:[%s1381_s1 + $0x68] sm:$0xff] }
   0x3   :  { %v1031_v2 = vld [vmem:[%s1381_s1 + $0xb8] sm:$0xff]  ;;  %586 = vmatpush.bf16.msra.mxu1 %v1023_v1  ;;  %v1030_v6 = vld [vmem:[%s1381_s1 + $0xb0] sm:$0xff]  ;;  %v1029_v10 = vld [vmem:[%s1381_s1 + $0xa8] sm:$0xff] }
   0x4   :  { %v1039_v3 = vld [vmem:[%s1381_s1 + $0xf8] sm:$0xff]  ;;  %605 = vmatpush.bf16.msra.mxu2 %v1031_v2  ;;  %v1038_v7 = vld [vmem:[%s1381_s1 + $0xf0] sm:$0xff]  ;;  %v1037_v11 = vld [vmem:[%s1381_s1 + $0xe8] sm:$0xff] }
   0x5   :  { %624 = vmatpush.bf16.msra.mxu3 %v1039_v3  ;;  %v1012_v12 = vld [vmem:[%s1381_s1 + $0x20] sm:$0xff]  ;;  %v1011_v16 = vld [vmem:[%s1381_s1 + $0x18] sm:$0xff]  ;;  %v1010_v22 = vld [vmem:[%s1381_s1 + $0x10] sm:$0xff] }
   0x6   :  { %568 = vmatpush.bf16.msra.mxu0 %v1014_v4  ;;  %v1020_v13 = vld [vmem:[%s1381_s1 + $0x60] sm:$0xff]  ;;  %v1019_v17 = vld [vmem:[%s1381_s1 + $0x58] sm:$0xff]  ;;  %v1018_v23 = vld [vmem:[%s1381_s1 + $0x50] sm:$0xff] }
   0x7   :  { %587 = vmatpush.bf16.msra.mxu1 %v1022_v5  ;;  %v1028_v14 = vld [vmem:[%s1381_s1 + $0xa0] sm:$0xff]  ;;  %v1027_v18 = vld [vmem:[%s1381_s1 + $0x98] sm:$0xff]  ;;  %v1026_v24 = vld [vmem:[%s1381_s1 + $0x90] sm:$0xff] }
   0x8   :  { %606 = vmatpush.bf16.msra.mxu2 %v1030_v6  ;;  %v1036_v15 = vld [vmem:[%s1381_s1 + $0xe0] sm:$0xff]  ;;  %v1035_v19 = vld [vmem:[%s1381_s1 + $0xd8] sm:$0xff]  ;;  %v1034_v25 = vld [vmem:[%s1381_s1 + $0xd0] sm:$0xff] }
   0x9   :  { %625 = vmatpush.bf16.msra.mxu3 %v1038_v7  ;;  %v142_v21 = vld [vmem:[%s1382_s2] sm:$0xff]  ;;  %v1009_v26 = vld [vmem:[%s1381_s1 + $0x8] sm:$0xff]  ;;  %v997_v36 = vld [vmem:[%s1383_s0 + $0x18] sm:$0xf0] }
   0xa   :  { %569 = vmatpush.bf16.msra.mxu0 %v1013_v8  ;;  %148 = vperm.xlu0 %1071, %v142_v21   ;;  %v1017_v27 = vld [vmem:[%s1381_s1 + $0x48] sm:$0xff]  ;;  %v1008_v31 = vld [vmem:[%s1381_s1] sm:$0xff]  ;;  %v144_v43 = vld [vmem:[%s1382_s2 + $0x10] sm:$0xff] }
   0xb   :  { %588 = vmatpush.bf16.msra.mxu1 %v1021_v9  ;;  %v143_v28 = vld [vmem:[%s1382_s2 + $0x8] sm:$0xff]  ;;  %v1016_v32 = vld [vmem:[%s1381_s1 + $0x40] sm:$0xff]  ;;  %v1047_v45 = vld [vmem:[%s1381_s1 + $0x138] sm:$0xff]  ;;  %158 = vperm.xlu1 %1072, %v144_v43  }
   0xc   :  { %607 = vmatpush.bf16.msra.mxu2 %v1029_v10  ;;  %v1025_v29 = vld [vmem:[%s1381_s1 + $0x88] sm:$0xff]  ;;  %v1024_v33 = vld [vmem:[%s1381_s1 + $0x80] sm:$0xff]  ;;  %v1055_v50 = vld [vmem:[%s1381_s1 + $0x178] sm:$0xff] }
   0xd   :  { %626 = vmatpush.bf16.msra.mxu3 %v1037_v11  ;;  %v1033_v30 = vld [vmem:[%s1381_s1 + $0xc8] sm:$0xff]  ;;  %v1032_v34 = vld [vmem:[%s1381_s1 + $0xc0] sm:$0xff]  ;;  %v1046_v51 = vld [vmem:[%s1381_s1 + $0x130] sm:$0xff] }
   0xe   :  { %570 = vmatpush.bf16.msra.mxu0 %v1012_v12  ;;  %v722_v35 = vld [vmem:[%s1383_s0] sm:$0xf]  ;;  %v994_v37 = vld [vmem:[%s1383_s0 + $0x4] sm:$0xf]  ;;  %v730_v39 = vld [vmem:[%s1383_s0 + $0x8] sm:$0xf] }
   0xf   :  { %589 = vmatpush.bf16.msra.mxu1 %v1020_v13  ;;  %v724_v38 = vld [vmem:[%s1383_s0 + $0x1c] sm:$0xf0]  ;;  %v998_v40 = vld [vmem:[%s1383_s0 + $0x20] sm:$0xf0]  ;;  %v995_v41 = vld [vmem:[%s1383_s0 + $0xc] sm:$0xf]  ;;  %v723_v46 = vor.u32 %v997_v36, %v722_v35 }
  0x10   :  { %608 = vmatpush.bf16.msra.mxu2 %v1028_v14  ;;  %v732_v42 = vld [vmem:[%s1383_s0 + $0x24] sm:$0xf0]  ;;  %v727_v47 = vor.u32 %v994_v37, %v724_v38  ;;  %v731_v48 = vor.u32 %v998_v40, %v730_v39  ;;  %v1060_v52 = vld [vmem:[%s1381_s1 + $0x1a0] sm:$0xff]  ;;  %v1054_v53 = vld [vmem:[%s1381_s1 + $0x170] sm:$0xff] }
  0x11   :  { %627 = vmatpush.bf16.msra.mxu3 %v1036_v15  ;;  %v1061_v44 = vld [vmem:[%s1381_s1 + $0x1a8] sm:$0xff]  ;;  %v735_v49 = vor.u32 %v995_v41, %v732_v42  ;;  %v145_v54 = vld [vmem:[%s1382_s2 + $0x18] sm:$0xff]  ;;  %v1044_v58 = vld [vmem:[%s1381_s1 + $0x120] sm:$0xff] }
  0x12   :  { %571 = vmatpush.bf16.msra.mxu0 %v1011_v16  ;;  %153 = vperm.xlu0 %1071, %v143_v28   ;;  %v1045_v55 = vld [vmem:[%s1381_s1 + $0x128] sm:$0xff]  ;;  %v1059_v56 = vld [vmem:[%s1381_s1 + $0x198] sm:$0xff]  ;;  %v1058_v59 = vld [vmem:[%s1381_s1 + $0x190] sm:$0xff] }
  0x13   :  { %590 = vmatpush.bf16.msra.mxu1 %v1019_v17  ;;  %163 = vperm.xlu1 %1072, %v145_v54   ;;  %v1053_v57 = vld [vmem:[%s1381_s1 + $0x168] sm:$0xff]  ;;  %v1052_v60 = vld [vmem:[%s1381_s1 + $0x160] sm:$0xff]  ;;  %v750_v61 = vld [vmem:[%s1383_s0 + $0x38] sm:$0xf] }
  0x14   :  { %609 = vmatpush.bf16.msra.mxu2 %v1027_v18  ;;  %v1004_v62 = vld [vmem:[%s1383_s0 + $0x50] sm:$0xf0]  ;;  %v1001_v63 = vld [vmem:[%s1383_s0 + $0x3c] sm:$0xf]  ;;  %v752_v0 = vld [vmem:[%s1383_s0 + $0x54] sm:$0xf0] }
  0x15   :  { %628 = vmatpush.bf16.msra.mxu3 %v1035_v19  ;;  %v758_v1 = vld [vmem:[%s1383_s0 + $0x40] sm:$0xf]  ;;  %v1005_v2 = vld [vmem:[%s1383_s0 + $0x58] sm:$0xf0]  ;;  %v1002_v3 = vld [vmem:[%s1383_s0 + $0x44] sm:$0xf]  ;;  %v751_v7 = vor.u32 %v1004_v62, %v750_v61  ;;  %v755_v8 = vor.u32 %v1001_v63, %v752_v0 }
  0x16   :  { %572 = vmatpush.bf16.msra.mxu0 %v1010_v22  ;;  %v760_v4 = vld [vmem:[%s1383_s0 + $0x5c] sm:$0xf0]  ;;  %v1043_v5 = vld [vmem:[%s1381_s1 + $0x118] sm:$0xff]  ;;  %v1057_v6 = vld [vmem:[%s1381_s1 + $0x188] sm:$0xff]  ;;  %v759_v9 = vor.u32 %v1005_v2, %v758_v1 }
  0x17   :  { %591 = vmatpush.bf16.msra.mxu1 %v1018_v23  ;;  %v763_v10 = vor.u32 %v1002_v3, %v760_v4  ;;  %v1051_v11 = vld [vmem:[%s1381_s1 + $0x158] sm:$0xff]  ;;  %v1042_v12 = vld [vmem:[%s1381_s1 + $0x110] sm:$0xff]  ;;  %v1056_v13 = vld [vmem:[%s1381_s1 + $0x180] sm:$0xff] }
  0x18   :  { %610 = vmatpush.bf16.msra.mxu2 %v1026_v24  ;;  %v1050_v14 = vld [vmem:[%s1381_s1 + $0x150] sm:$0xff]  ;;  %v1041_v15 = vld [vmem:[%s1381_s1 + $0x108] sm:$0xff]  ;;  %v1040_v17 = vld [vmem:[%s1381_s1 + $0x100] sm:$0xff] }
  0x19   :  { %629 = vmatpush.bf16.msra.mxu3 %v1034_v25  ;;  %v1049_v16 = vld [vmem:[%s1381_s1 + $0x148] sm:$0xff]  ;;  %v1048_v18 = vld [vmem:[%s1381_s1 + $0x140] sm:$0xff]  ;;  %v738_v19 = vld [vmem:[%s1383_s0 + $0x10] sm:$0xf] }
  0x1a   :  { %573 = vmatpush.bf16.msra.mxu0 %v1009_v26  ;;  %v999_v20 = vld [vmem:[%s1383_s0 + $0x28] sm:$0xf0]  ;;  %v766_v21 = vld [vmem:[%s1383_s0 + $0x48] sm:$0xf]  ;;  %v1006_v22 = vld [vmem:[%s1383_s0 + $0x60] sm:$0xf0] }
  0x1b   :  { %592 = vmatpush.bf16.msra.mxu1 %v1017_v27  ;;  %v996_v23 = vld [vmem:[%s1383_s0 + $0x14] sm:$0xf]  ;;  %v740_v24 = vld [vmem:[%s1383_s0 + $0x2c] sm:$0xf0]  ;;  %v746_v25 = vld [vmem:[%s1383_s0 + $0x18] sm:$0xf]  ;;  %v739_v27 = vor.u32 %v999_v20, %v738_v19  ;;  %v767_v28 = vor.u32 %v1006_v22, %v766_v21 }
  0x1c   :  { %611 = vmatpush.bf16.msra.mxu2 %v1025_v29  ;;  %v1000_v26 = vld [vmem:[%s1383_s0 + $0x30] sm:$0xf0]  ;;  %v743_v29 = vor.u32 %v996_v23, %v740_v24  ;;  %v701_v19 = vld [vmem:[%s1384_s3 + $0x8] sm:$0xff] }
  0x1d   :  { %630 = vmatpush.bf16.msra.mxu3 %v1033_v30  ;;  %v747_v30 = vor.u32 %v1000_v26, %v746_v25 }
  0x1e   :  { %574 = vmatpush.bf16.msra.mxu0 %v1008_v31  ;;  %v1003_v31 = vld [vmem:[%s1383_s0 + $0x4c] sm:$0xf] }
  0x1f   :  { %593 = vmatpush.bf16.msra.mxu1 %v1016_v32  ;;  %v768_v32 = vld [vmem:[%s1383_s0 + $0x64] sm:$0xf0] }
  0x20   :  { %612 = vmatpush.bf16.msra.mxu2 %v1024_v33  ;;  %v774_v33 = vld [vmem:[%s1383_s0 + $0x50] sm:$0xf]  ;;  %v771_v35 = vor.u32 %v1003_v31, %v768_v32 }
  0x21   :  { %631 = vmatpush.bf16.msra.mxu3 %v1032_v34  ;;  %575 = vmatmul.bf16.vlgmr.msra.gmra.mxu0 %v723_v46  ;;  %v1007_v34 = vld [vmem:[%s1383_s0 + $0x68] sm:$0xf0]  ;;  %v702_v31 = vld [vmem:[%s1384_s3 + $0x10] sm:$0xff] }
  0x22   :  { %643 = vmatpush.bf16.msrb.mxu0 %v1047_v45  ;;  %594 = vmatmul.bf16.vlgmr.msra.gmra.mxu1 %v727_v47  ;;  %v775_v36 = vor.u32 %v1007_v34, %v774_v33 }
  0x23   :  { %613 = vmatmul.bf16.vlgmr.msra.gmra.mxu2 %v731_v48  ;;  %662 = vmatpush.bf16.msrb.mxu1 %v1055_v50 }
  0x24   :  { %683 = vmatpush.bf16.msrb.mxu2 %v1061_v44  ;;  %632 = vmatmul.bf16.vlgmr.msra.gmra.mxu3 %v735_v49 }
  0x25   :  { %1062 = vmatpush.bf16.msrb.mxu3 %v1047_v45 }
  0x26   :  { %644 = vmatpush.bf16.msrb.mxu0 %v1046_v51 }
  0x27   :  { %663 = vmatpush.bf16.msrb.mxu1 %v1054_v53 }
  0x28   :  { %684 = vmatpush.bf16.msrb.mxu2 %v1060_v52 }
  0x29   :  { %1063 = vmatpush.bf16.msrb.mxu3 %v1046_v51 }
  0x2a   :  { %645 = vmatpush.bf16.msrb.mxu0 %v1045_v55 }
  0x2b   :  { %664 = vmatpush.bf16.msrb.mxu1 %v1053_v57 }
  0x2c   :  { %685 = vmatpush.bf16.msrb.mxu2 %v1059_v56 }
  0x2d   :  { %1064 = vmatpush.bf16.msrb.mxu3 %v1045_v55 }
  0x2e   :  { %646 = vmatpush.bf16.msrb.mxu0 %v1044_v58 }
  0x2f   :  { %665 = vmatpush.bf16.msrb.mxu1 %v1052_v60 }
  0x30   :  { %686 = vmatpush.bf16.msrb.mxu2 %v1058_v59 }
  0x31   :  { %1065 = vmatpush.bf16.msrb.mxu3 %v1044_v58  ;;  %580 = vmatmul.bf16.gmra.mxu0 %v751_v7 }
  0x32   :  { %647 = vmatpush.bf16.msrb.mxu0 %v1043_v5  ;;  %599 = vmatmul.bf16.gmra.mxu1 %v755_v8 }
  0x33   :  { %618 = vmatmul.bf16.gmra.mxu2 %v759_v9  ;;  %666 = vmatpush.bf16.msrb.mxu1 %v1051_v11 }
  0x34   :  { %687 = vmatpush.bf16.msrb.mxu2 %v1057_v6  ;;  %637 = vmatmul.bf16.gmra.mxu3 %v763_v10 }
  0x35   :  { %1066 = vmatpush.bf16.msrb.mxu3 %v1043_v5  ;;  %v700_v5 = vld [vmem:[%s1384_s3] sm:$0xff] }
  0x36   :  { %648 = vmatpush.bf16.msrb.mxu0 %v1042_v12 }
  0x37   :  { %667 = vmatpush.bf16.msrb.mxu1 %v1050_v14 }
  0x38   :  { %688 = vmatpush.bf16.msrb.mxu2 %v1056_v13 }
  0x39   :  { %1067 = vmatpush.bf16.msrb.mxu3 %v1042_v12 }
  0x3a   :  { %649 = vmatpush.bf16.msrb.mxu0 %v1041_v15 }
  0x3b   :  { %668 = vmatpush.bf16.msrb.mxu1 %v1049_v16 }
  0x3d   :  { %1068 = vmatpush.bf16.msrb.mxu3 %v1041_v15 }
  0x3e   :  { %650 = vmatpush.bf16.msrb.mxu0 %v1040_v17 }
  0x3f   :  { %669 = vmatpush.bf16.msrb.mxu1 %v1048_v18 }
  0x41   :  { %1069 = vmatpush.bf16.msrb.mxu3 %v1040_v17  ;;  %651 = vmatmul.bf16.vlgmr.msrb.gmra.mxu0 %v739_v27 }
  0x42   :  { %670 = vmatmul.bf16.vlgmr.msrb.gmra.mxu1 %v743_v29 }
  0x43   :  { %992 = vmatmul.msk.bf16.vlgmr.msrb.gmra.mxu2 %vm560_vm0, %v747_v30 }
  0x44   :  { %656 = vmatmul.bf16.vlgmr.msrb.gmra.mxu3 %v767_v28 }
  0x52   :  { %675 = vmatmul.bf16.gmra.mxu1 %v771_v35 }
  0x53   :  { %993 = vmatmul.msk.bf16.gmra.mxu2 %vm560_vm0, %v775_v36 }
  0x7c   :  { %v149_v46 = vpop.permute.xlu0 %148 }
  0x7d   :  { %v159_v63 = vpop.permute.xlu1 %158 }
  0x84   :  { %v154_v53 = vpop.permute.xlu0 %153 }
  0x85   :  { %v164_v14 = vpop.permute.xlu1 %163 }
  0x9e   :  { %v576_v37 = vpop.f32.mrf.mxu0 }
  0x9f   :  { %v595_v38 = vpop.f32.mrf.mxu1  ;;  %v577_v48 = vadd.f32 %v576_v37, %v149_v46 }
  0xa1   :  { %v596_v52 = vadd.f32 %v595_v38, %v577_v48 }
  0xa6   :  { %v614_v39 = vpop.f32.mrf.mxu2  ;;  %v578_v41 = vpop.f32.mrf.mxu0 }
  0xa7   :  { %v633_v40 = vpop.f32.mrf.mxu3  ;;  %v597_v42 = vpop.f32.mrf.mxu1  ;;  %v615_v55 = vadd.f32 %v614_v39, %v596_v52  ;;  %v579_v56 = vadd.f32 %v578_v41, %v154_v53  ;;  %v703_v41 = vld [vmem:[%s1384_s3 + $0x18] sm:$0xff] }
  0xa9   :  { %v634_v59 = vadd.f32 %v633_v40, %v615_v55  ;;  %v598_v61 = vadd.f32 %v597_v42, %v579_v56 }
  0xae   :  { %v616_v43 = vpop.f32.mrf.mxu2  ;;  %v581_v44 = vpop.f32.mrf.mxu0 }
  0xaf   :  { %v600_v45 = vpop.f32.mrf.mxu1  ;;  %v635_v47 = vpop.f32.mrf.mxu3  ;;  %v617_v0 = vadd.f32 %v616_v43, %v598_v61  ;;  %v582_v2 = vadd.f32 %v581_v44, %v159_v63 }
  0xb1   :  { %v636_v7 = vadd.f32 %v635_v47, %v617_v0  ;;  %v601_v10 = vadd.f32 %v600_v45, %v582_v2 }
  0xb6   :  { %v619_v49 = vpop.f32.mrf.mxu2  ;;  %v583_v50 = vpop.f32.mrf.mxu0 }
  0xb7   :  { %v602_v51 = vpop.f32.mrf.mxu1  ;;  %v638_v54 = vpop.f32.mrf.mxu3  ;;  %v620_v15 = vadd.f32 %v619_v49, %v601_v10  ;;  %v584_v20 = vadd.f32 %v583_v50, %v164_v14 }
  0xb9   :  { %v639_v23 = vadd.f32 %v638_v54, %v620_v15  ;;  %v603_v25 = vadd.f32 %v602_v51, %v584_v20 }
  0xbe   :  { %v621_v57 = vpop.f32.mrf.mxu2  ;;  %v652_v58 = vpop.f32.mrf.mxu0 }
  0xbf   :  { %v671_v60 = vpop.f32.mrf.mxu1  ;;  %v653_v62 = vadd.f32 %v652_v58, %v634_v59  ;;  %v640_v1 = vpop.f32.mrf.mxu3  ;;  %v622_v28 = vadd.f32 %v621_v57, %v603_v25 }
  0xc1   :  { %v672_v3 = vadd.f32 %v671_v60, %v653_v62  ;;  %v641_v34 = vadd.f32 %v640_v1, %v622_v28 }
  0xc6   :  { %v690_v4 = vpop.f32.mrf.mxu2  ;;  %v654_v6 = vpop.f32.mrf.mxu0 }
  0xc7   :  { %v691_v8 = vadd.f32 %v690_v4, %v672_v3  ;;  %v673_v9 = vpop.f32.mrf.mxu1  ;;  %v655_v12 = vadd.f32 %v654_v6, %v636_v7  ;;  %v657_v17 = vpop.f32.mrf.mxu3 }
  0xc8   :  { %v658_v26 = vadd.f32 %v657_v17, %v639_v23 }
  0xc9   :  { %v704_v11 = vadd.f32 %v700_v5, %v691_v8  ;;  %v674_v16 = vadd.f32 %v673_v9, %v655_v12 }
  0xcb   :  { %v708_v13 = vmax.f32 %v704_v11, 0.0 }
  0xcd   :  { %712 = vst [vmem:[%s1385_s4] sm:$0xff] %v708_v13 }
  0xce   :  { %v692_v18 = vpop.f32.mrf.mxu2 }
  0xcf   :  { %v693_v21 = vadd.f32 %v692_v18, %v674_v16  ;;  %v676_v22 = vpop.f32.mrf.mxu1  ;;  %v659_v33 = vpop.f32.mrf.mxu3 }
  0xd0   :  { %v677_v29 = vadd.f32 %v676_v22, %v658_v26  ;;  %v660_v37 = vadd.f32 %v659_v33, %v641_v34 }
  0xd1   :  { %v705_v24 = vadd.f32 %v701_v19, %v693_v21 }
  0xd3   :  { %v709_v27 = vmax.f32 %v705_v24, 0.0 }
  0xd5   :  { %713 = vst [vmem:[%s1385_s4 + $0x8] sm:$0xff] %v709_v27 }
  0xd6   :  { %v695_v30 = vpop.f32.mrf.mxu2 }
  0xd7   :  { %v696_v32 = vadd.f32 %v695_v30, %v677_v29  ;;  %v678_v36 = vpop.f32.mrf.mxu1 }
  0xd8   :  { %v679_v39 = vadd.f32 %v678_v36, %v660_v37 }
  0xd9   :  { %v706_v35 = vadd.f32 %v702_v31, %v696_v32 }
  0xdb   :  { %v710_v38 = vmax.f32 %v706_v35, 0.0 }
  0xdd   :  { %714 = vst [vmem:[%s1385_s4 + $0x10] sm:$0xff] %v710_v38 }
  0xde   :  { %v697_v40 = vpop.f32.mrf.mxu2 }
  0xdf   :  { %v698_v42 = vadd.f32 %v697_v40, %v679_v39 }
  0xe1   :  { %v707_v43 = vadd.f32 %v703_v41, %v698_v42 }
  0xe3   :  { %v711_v44 = vmax.f32 %v707_v43, 0.0 }
  0xe5   :  { %715 = vst [vmem:[%s1385_s4 + $0x18] sm:$0xff] %v711_v44 }

// kernel: resnet_forward.25
= control target key start
LH: loop header
LB: loop body
LE: loop exit
PB: predicated region body
PF: predicated region fallthrough
CT: control target
= control target key end

     0   :  { %v1343_v12 = vmov 0   ;;  %vm667_vm0 = vcmask 785408   ;;  %s1822_s1 = inlined_call_operand.vmem [shape: bf16[864,128], index: 1, kind: input, shape index: {}]   ;;  %s1823_s2 = inlined_call_operand.vmem [shape: f32[64,1], index: 2, kind: input, shape index: {}]   ;;  %s1824_s0 = inlined_call_operand.vmem [shape: bf16[64,864], index: 0, kind: input, shape index: {}]   ;;  %s1825_s3 = inlined_call_operand.vmem [shape: f32[64,128], index: 3, kind: output, shape index: {}]  }
   0x1   :  { %v1270_v0 = vld [vmem:[%s1822_s1 + $0x38] sm:$0xff]  ;;  %v1269_v3 = vld [vmem:[%s1822_s1 + $0x30] sm:$0xff]  ;;  %v1268_v6 = vld [vmem:[%s1822_s1 + $0x28] sm:$0xff]  ;;  %1340 = vset.pattern.permute.xlu0 %v1343_v12  ;;  %1341 = vset.pattern.permute.xlu1 %v1343_v12 }
   0x2   :  { %v1278_v1 = vld [vmem:[%s1822_s1 + $0x78] sm:$0xff]  ;;  %680 = vmatpush.bf16.msra.mxu0 %v1270_v0  ;;  %1317 = vmatpush.bf16.msra.mxu3 %v1270_v0  ;;  %v1277_v4 = vld [vmem:[%s1822_s1 + $0x70] sm:$0xff]  ;;  %v1276_v7 = vld [vmem:[%s1822_s1 + $0x68] sm:$0xff] }
   0x3   :  { %v1286_v2 = vld [vmem:[%s1822_s1 + $0xb8] sm:$0xff]  ;;  %709 = vmatpush.bf16.msra.mxu1 %v1278_v1  ;;  %v1285_v5 = vld [vmem:[%s1822_s1 + $0xb0] sm:$0xff]  ;;  %v1284_v8 = vld [vmem:[%s1822_s1 + $0xa8] sm:$0xff]  ;;  %1342 = vset.pattern.permute.xlu2 %v1343_v12 }
   0x4   :  { %738 = vmatpush.bf16.msra.mxu2 %v1286_v2  ;;  %v1267_v9 = vld [vmem:[%s1822_s1 + $0x20] sm:$0xff]  ;;  %v1266_v14 = vld [vmem:[%s1822_s1 + $0x18] sm:$0xff]  ;;  %v1265_v17 = vld [vmem:[%s1822_s1 + $0x10] sm:$0xff] }
   0x5   :  { %v1275_v10 = vld [vmem:[%s1822_s1 + $0x60] sm:$0xff]  ;;  %v1274_v15 = vld [vmem:[%s1822_s1 + $0x58] sm:$0xff]  ;;  %v1273_v18 = vld [vmem:[%s1822_s1 + $0x50] sm:$0xff] }
   0x6   :  { %681 = vmatpush.bf16.msra.mxu0 %v1269_v3  ;;  %1318 = vmatpush.bf16.msra.mxu3 %v1269_v3  ;;  %v1283_v11 = vld [vmem:[%s1822_s1 + $0xa0] sm:$0xff]  ;;  %v1282_v16 = vld [vmem:[%s1822_s1 + $0x98] sm:$0xff]  ;;  %v1281_v19 = vld [vmem:[%s1822_s1 + $0x90] sm:$0xff] }
   0x7   :  { %710 = vmatpush.bf16.msra.mxu1 %v1277_v4  ;;  %v155_v13 = vld [vmem:[%s1823_s2] sm:$0xff]  ;;  %v156_v20 = vld [vmem:[%s1823_s2 + $0x8] sm:$0xff]  ;;  %v157_v25 = vld [vmem:[%s1823_s2 + $0x10] sm:$0xff] }
   0x8   :  { %739 = vmatpush.bf16.msra.mxu2 %v1285_v5  ;;  %165 = vperm.xlu0 %1340, %v155_v13   ;;  %v1264_v21 = vld [vmem:[%s1822_s1 + $0x8] sm:$0xff]  ;;  %v1263_v24 = vld [vmem:[%s1822_s1] sm:$0xff]  ;;  %v1238_v29 = vld [vmem:[%s1824_s0 + $0x18] sm:$0xf0] }
   0x9   :  { %v1272_v22 = vld [vmem:[%s1822_s1 + $0x48] sm:$0xff]  ;;  %v1271_v26 = vld [vmem:[%s1822_s1 + $0x40] sm:$0xff]  ;;  %175 = vperm.xlu1 %1341, %v157_v25   ;;  %v961_v30 = vld [vmem:[%s1824_s0 + $0x70] sm:$0xf] }
   0xa   :  { %682 = vmatpush.bf16.msra.mxu0 %v1268_v6  ;;  %1319 = vmatpush.bf16.msra.mxu3 %v1268_v6  ;;  %v1280_v23 = vld [vmem:[%s1822_s1 + $0x88] sm:$0xff]  ;;  %v1279_v27 = vld [vmem:[%s1822_s1 + $0x80] sm:$0xff]  ;;  %v1294_v36 = vld [vmem:[%s1822_s1 + $0xf8] sm:$0xff] }
   0xb   :  { %711 = vmatpush.bf16.msra.mxu1 %v1276_v7  ;;  %v905_v28 = vld [vmem:[%s1824_s0] sm:$0xf]  ;;  %v1252_v31 = vld [vmem:[%s1824_s0 + $0x88] sm:$0xf0]  ;;  %v1235_v32 = vld [vmem:[%s1824_s0 + $0x4] sm:$0xf] }
   0xc   :  { %740 = vmatpush.bf16.msra.mxu2 %v1284_v8  ;;  %v907_v33 = vld [vmem:[%s1824_s0 + $0x1c] sm:$0xf0]  ;;  %v913_v34 = vld [vmem:[%s1824_s0 + $0x8] sm:$0xf]  ;;  %v1239_v35 = vld [vmem:[%s1824_s0 + $0x20] sm:$0xf0]  ;;  %v906_v38 = vor.u32 %v1238_v29, %v905_v28  ;;  %v962_v39 = vor.u32 %v1252_v31, %v961_v30 }
   0xd   :  { %v1475_v37 = vld [vmem:[%s1822_s1 + $0x1a8] sm:$0xff]  ;;  %v910_v40 = vor.u32 %v1235_v32, %v907_v33  ;;  %v914_v41 = vor.u32 %v1239_v35, %v913_v34  ;;  %v1302_v42 = vld [vmem:[%s1822_s1 + $0x138] sm:$0xff]  ;;  %v1293_v44 = vld [vmem:[%s1822_s1 + $0xf0] sm:$0xff] }
   0xe   :  { %683 = vmatpush.bf16.msra.mxu0 %v1267_v9  ;;  %1320 = vmatpush.bf16.msra.mxu3 %v1267_v9  ;;  %v1483_v43 = vld [vmem:[%s1822_s1 + $0x178] sm:$0xff]  ;;  %v1492_v45 = vld [vmem:[%s1822_s1 + $0x1a0] sm:$0xff]  ;;  %v1301_v46 = vld [vmem:[%s1822_s1 + $0x130] sm:$0xff] }
   0xf   :  { %712 = vmatpush.bf16.msra.mxu1 %v1275_v10  ;;  %v1501_v47 = vld [vmem:[%s1822_s1 + $0x170] sm:$0xff]  ;;  %v158_v48 = vld [vmem:[%s1823_s2 + $0x18] sm:$0xff]  ;;  %v1292_v50 = vld [vmem:[%s1822_s1 + $0xe8] sm:$0xff] }
  0x10   :  { %741 = vmatpush.bf16.msra.mxu2 %v1283_v11  ;;  %170 = vperm.xlu0 %1340, %v156_v20   ;;  %v161_v49 = vld [vmem:[%s1823_s2 + $0x30] sm:$0xff]  ;;  %v1516_v51 = vld [vmem:[%s1822_s1 + $0x198] sm:$0xff]  ;;  %v159_v52 = vld [vmem:[%s1823_s2 + $0x20] sm:$0xff] }
  0x11   :  { %180 = vperm.xlu1 %1341, %v158_v48   ;;  %185 = vperm.xlu2 %1342, %v159_v52   ;;  %v1300_v53 = vld [vmem:[%s1822_s1 + $0x128] sm:$0xff]  ;;  %v1291_v55 = vld [vmem:[%s1822_s1 + $0xe0] sm:$0xff]  ;;  %v933_v56 = vld [vmem:[%s1824_s0 + $0x38] sm:$0xf] }
  0x12   :  { %684 = vmatpush.bf16.msra.mxu0 %v1266_v14  ;;  %1321 = vmatpush.bf16.msra.mxu3 %v1266_v14  ;;  %v1528_v54 = vld [vmem:[%s1822_s1 + $0x168] sm:$0xff]  ;;  %v1540_v57 = vld [vmem:[%s1822_s1 + $0x190] sm:$0xff]  ;;  %v1299_v58 = vld [vmem:[%s1822_s1 + $0x120] sm:$0xff] }
  0x13   :  { %713 = vmatpush.bf16.msra.mxu1 %v1274_v15  ;;  %v1245_v59 = vld [vmem:[%s1824_s0 + $0x50] sm:$0xf0]  ;;  %v989_v60 = vld [vmem:[%s1824_s0 + $0xa8] sm:$0xf]  ;;  %v1259_v61 = vld [vmem:[%s1824_s0 + $0xc0] sm:$0xf0] }
  0x14   :  { %742 = vmatpush.bf16.msra.mxu2 %v1282_v16  ;;  %v1242_v62 = vld [vmem:[%s1824_s0 + $0x3c] sm:$0xf]  ;;  %v935_v63 = vld [vmem:[%s1824_s0 + $0x54] sm:$0xf0]  ;;  %v941_v1 = vld [vmem:[%s1824_s0 + $0x40] sm:$0xf]  ;;  %v934_v6 = vor.u32 %v1245_v59, %v933_v56  ;;  %v990_v7 = vor.u32 %v1259_v61, %v989_v60 }
  0x15   :  { %v162_v0 = vld [vmem:[%s1823_s2 + $0x38] sm:$0xff]  ;;  %v1573_v3 = vld [vmem:[%s1822_s1 + $0x160] sm:$0xff]  ;;  %v1582_v5 = vld [vmem:[%s1822_s1 + $0x188] sm:$0xff]  ;;  %v938_v8 = vor.u32 %v1242_v62, %v935_v63 }
  0x16   :  { %685 = vmatpush.bf16.msra.mxu0 %v1265_v17  ;;  %1322 = vmatpush.bf16.msra.mxu3 %v1265_v17  ;;  %v1246_v2 = vld [vmem:[%s1824_s0 + $0x58] sm:$0xf0]  ;;  %v1289_v12 = vld [vmem:[%s1822_s1 + $0xd0] sm:$0xff]  ;;  %v160_v15 = vld [vmem:[%s1823_s2 + $0x28] sm:$0xff] }
  0x17   :  { %714 = vmatpush.bf16.msra.mxu1 %v1273_v18  ;;  %v1290_v4 = vld [vmem:[%s1822_s1 + $0xd8] sm:$0xff]  ;;  %v942_v9 = vor.u32 %v1246_v2, %v941_v1  ;;  %v1297_v13 = vld [vmem:[%s1822_s1 + $0x110] sm:$0xff]  ;;  %v1311_v16 = vld [vmem:[%s1822_s1 + $0x180] sm:$0xff] }
  0x18   :  { %743 = vmatpush.bf16.msra.mxu2 %v1281_v19  ;;  %195 = vperm.xlu0 %1340, %v161_v49   ;;  %v1298_v10 = vld [vmem:[%s1822_s1 + $0x118] sm:$0xff]  ;;  %v1305_v14 = vld [vmem:[%s1822_s1 + $0x150] sm:$0xff]  ;;  %v1288_v17 = vld [vmem:[%s1822_s1 + $0xc8] sm:$0xff] }
  0x19   :  { %200 = vperm.xlu1 %1341, %v162_v0   ;;  %v1591_v11 = vld [vmem:[%s1822_s1 + $0x158] sm:$0xff]  ;;  %190 = vperm.xlu2 %1342, %v160_v15   ;;  %v1296_v18 = vld [vmem:[%s1822_s1 + $0x108] sm:$0xff]  ;;  %v1287_v20 = vld [vmem:[%s1822_s1 + $0xc0] sm:$0xff] }
  0x1a   :  { %686 = vmatpush.bf16.msra.mxu0 %v1264_v21  ;;  %1323 = vmatpush.bf16.msra.mxu3 %v1264_v21  ;;  %v1304_v19 = vld [vmem:[%s1822_s1 + $0x148] sm:$0xff]  ;;  %v1295_v21 = vld [vmem:[%s1822_s1 + $0x100] sm:$0xff]  ;;  %v921_v29 = vld [vmem:[%s1824_s0 + $0x10] sm:$0xf] }
  0x1b   :  { %715 = vmatpush.bf16.msra.mxu1 %v1272_v22  ;;  %v1249_v22 = vld [vmem:[%s1824_s0 + $0x74] sm:$0xf]  ;;  %v915_v25 = vld [vmem:[%s1824_s0 + $0x24] sm:$0xf0]  ;;  %v1303_v28 = vld [vmem:[%s1822_s1 + $0x140] sm:$0xff] }
  0x1c   :  { %744 = vmatpush.bf16.msra.mxu2 %v1280_v23  ;;  %v963_v23 = vld [vmem:[%s1824_s0 + $0x8c] sm:$0xf0]  ;;  %v1240_v30 = vld [vmem:[%s1824_s0 + $0x28] sm:$0xf0]  ;;  %v971_v48 = vld [vmem:[%s1824_s0 + $0x94] sm:$0xf0] }
  0x1d   :  { %v966_v32 = vor.u32 %v1249_v22, %v963_v23  ;;  %v922_v34 = vor.u32 %v1240_v30, %v921_v29  ;;  %v1256_v35 = vld [vmem:[%s1824_s0 + $0xac] sm:$0xf]  ;;  %v1241_v52 = vld [vmem:[%s1824_s0 + $0x30] sm:$0xf0]  ;;  %v999_v60 = vld [vmem:[%s1824_s0 + $0xcc] sm:$0xf0] }
  0x1e   :  { %687 = vmatpush.bf16.msra.mxu0 %v1263_v24  ;;  %1324 = vmatpush.bf16.msra.mxu3 %v1263_v24  ;;  %v1236_v24 = vld [vmem:[%s1824_s0 + $0xc] sm:$0xf]  ;;  %v1257_v59 = vld [vmem:[%s1824_s0 + $0xb4] sm:$0xf]  ;;  %v1251_v61 = vld [vmem:[%s1824_s0 + $0x84] sm:$0xf] }
  0x1f   :  { %716 = vmatpush.bf16.msra.mxu1 %v1271_v26  ;;  %v969_v26 = vld [vmem:[%s1824_s0 + $0x78] sm:$0xf]  ;;  %v918_v31 = vor.u32 %v1236_v24, %v915_v25  ;;  %v1244_v49 = vld [vmem:[%s1824_s0 + $0x4c] sm:$0xf]  ;;  %v979_v62 = vld [vmem:[%s1824_s0 + $0x9c] sm:$0xf0] }
  0x20   :  { %745 = vmatpush.bf16.msra.mxu2 %v1279_v27  ;;  %v1253_v27 = vld [vmem:[%s1824_s0 + $0x90] sm:$0xf0]  ;;  %v957_v63 = vld [vmem:[%s1824_s0 + $0x50] sm:$0xf]  ;;  %v1248_v0 = vld [vmem:[%s1824_s0 + $0x68] sm:$0xf0] }
  0x21   :  { %688 = vmatmul.bf16.vlgmr.msra.gmra.mxu0 %v906_v38  ;;  %698 = vmatmul.bf16.vlgmr.msra.gmra.mxu3 %v962_v39  ;;  %v970_v33 = vor.u32 %v1253_v27, %v969_v26  ;;  %v991_v38 = vld [vmem:[%s1824_s0 + $0xc4] sm:$0xf0]  ;;  %v997_v39 = vld [vmem:[%s1824_s0 + $0xb0] sm:$0xf]  ;;  %v1005_v1 = vld [vmem:[%s1824_s0 + $0xb8] sm:$0xf] }
  0x22   :  { %767 = vmatpush.bf16.msrb.mxu3 %v1294_v36  ;;  %717 = vmatmul.bf16.vlgmr.msra.gmra.mxu1 %v910_v40  ;;  %v1243_v36 = vld [vmem:[%s1824_s0 + $0x44] sm:$0xf]  ;;  %v1260_v40 = vld [vmem:[%s1824_s0 + $0xc8] sm:$0xf0]  ;;  %v1261_v2 = vld [vmem:[%s1824_s0 + $0xd0] sm:$0xf0] }
  0x23   :  { %746 = vmatmul.bf16.vlgmr.msra.gmra.mxu2 %v914_v41  ;;  %796 = vmatpush.bf16.msrb.mxu0 %v1302_v42  ;;  %v949_v41 = vld [vmem:[%s1824_s0 + $0x48] sm:$0xf]  ;;  %v1247_v42 = vld [vmem:[%s1824_s0 + $0x60] sm:$0xf0] }
  0x24   :  { %856 = vmatpush.bf16.msrb.mxu2 %v1475_v37  ;;  %1325 = vmatpush.bf16.msrb.mxu1 %v1483_v43 }
  0x26   :  { %768 = vmatpush.bf16.msrb.mxu3 %v1293_v44  ;;  %v994_v44 = vor.u32 %v1256_v35, %v991_v38 }
  0x27   :  { %797 = vmatpush.bf16.msrb.mxu0 %v1301_v46  ;;  %v950_v46 = vor.u32 %v1247_v42, %v949_v41 }
  0x28   :  { %857 = vmatpush.bf16.msrb.mxu2 %v1492_v45  ;;  %1326 = vmatpush.bf16.msrb.mxu1 %v1501_v47 }
  0x2a   :  { %769 = vmatpush.bf16.msrb.mxu3 %v1292_v50  ;;  %v951_v50 = vld [vmem:[%s1824_s0 + $0x64] sm:$0xf0] }
  0x2b   :  { %798 = vmatpush.bf16.msrb.mxu0 %v1300_v53  ;;  %v977_v53 = vld [vmem:[%s1824_s0 + $0x80] sm:$0xf]  ;;  %v954_v56 = vor.u32 %v1244_v49, %v951_v50 }
  0x2c   :  { %858 = vmatpush.bf16.msrb.mxu2 %v1516_v51  ;;  %1327 = vmatpush.bf16.msrb.mxu1 %v1528_v54 }
  0x2e   :  { %770 = vmatpush.bf16.msrb.mxu3 %v1291_v55 }
  0x2f   :  { %799 = vmatpush.bf16.msrb.mxu0 %v1299_v58 }
  0x30   :  { %859 = vmatpush.bf16.msrb.mxu2 %v1540_v57  ;;  %1328 = vmatpush.bf16.msrb.mxu1 %v1573_v3 }
  0x31   :  { %693 = vmatmul.bf16.gmra.mxu0 %v934_v6  ;;  %703 = vmatmul.bf16.gmra.mxu3 %v990_v7  ;;  %v1006_v6 = vor.u32 %v1261_v2, %v1005_v1  ;;  %v1258_v7 = vld [vmem:[%s1824_s0 + $0xbc] sm:$0xf] }
  0x32   :  { %771 = vmatpush.bf16.msrb.mxu3 %v1290_v4  ;;  %722 = vmatmul.bf16.gmra.mxu1 %v938_v8  ;;  %v982_v4 = vor.u32 %v1251_v61, %v979_v62  ;;  %v1013_v8 = vld [vmem:[%s1824_s0 + $0xc0] sm:$0xf] }
  0x33   :  { %751 = vmatmul.bf16.gmra.mxu2 %v942_v9  ;;  %800 = vmatpush.bf16.msrb.mxu0 %v1298_v10  ;;  %v1262_v9 = vld [vmem:[%s1824_s0 + $0xd8] sm:$0xf0]  ;;  %v1007_v10 = vld [vmem:[%s1824_s0 + $0xd4] sm:$0xf0] }
  0x34   :  { %860 = vmatpush.bf16.msrb.mxu2 %v1582_v5  ;;  %1329 = vmatpush.bf16.msrb.mxu1 %v1591_v11  ;;  %v1014_v15 = vor.u32 %v1262_v9, %v1013_v8 }
  0x36   :  { %772 = vmatpush.bf16.msrb.mxu3 %v1289_v12  ;;  %v1255_v12 = vld [vmem:[%s1824_s0 + $0xa0] sm:$0xf0] }
  0x37   :  { %801 = vmatpush.bf16.msrb.mxu0 %v1297_v13  ;;  %v1237_v13 = vld [vmem:[%s1824_s0 + $0x14] sm:$0xf] }
  0x38   :  { %861 = vmatpush.bf16.msrb.mxu2 %v1311_v16  ;;  %1330 = vmatpush.bf16.msrb.mxu1 %v1305_v14 }
  0x3a   :  { %773 = vmatpush.bf16.msrb.mxu3 %v1288_v17 }
  0x3b   :  { %802 = vmatpush.bf16.msrb.mxu0 %v1296_v18 }
  0x3c   :  { %1331 = vmatpush.bf16.msrb.mxu1 %v1304_v19 }
  0x3e   :  { %774 = vmatpush.bf16.msrb.mxu3 %v1287_v20 }
  0x3f   :  { %803 = vmatpush.bf16.msrb.mxu0 %v1295_v21 }
  0x40   :  { %1332 = vmatpush.bf16.msrb.mxu1 %v1303_v28 }
  0x41   :  { %775 = vmatmul.bf16.vlgmr.msrb.gmra.mxu3 %v918_v31 }
  0x42   :  { %1333 = vmatpush.bf16.msra.mxu3 %v1475_v37  ;;  %727 = vmatmul.bf16.gmra.mxu1 %v966_v32  ;;  %v943_v37 = vld [vmem:[%s1824_s0 + $0x5c] sm:$0xf0] }
  0x43   :  { %825 = vmatpush.bf16.msra.mxu0 %v1483_v43  ;;  %756 = vmatmul.bf16.gmra.mxu2 %v970_v33  ;;  %v946_v43 = vor.u32 %v1243_v36, %v943_v37 }
  0x44   :  { %804 = vmatmul.bf16.vlgmr.msrb.gmra.mxu0 %v922_v34 }
  0x46   :  { %1334 = vmatpush.bf16.msra.mxu3 %v1492_v45  ;;  %v998_v45 = vor.u32 %v1260_v40, %v997_v39 }
  0x47   :  { %826 = vmatpush.bf16.msra.mxu0 %v1501_v47  ;;  %v1250_v47 = vld [vmem:[%s1824_s0 + $0x7c] sm:$0xf] }
  0x48   :  { %v974_v55 = vor.u32 %v1250_v47, %v971_v48 }
  0x4a   :  { %1335 = vmatpush.bf16.msra.mxu3 %v1516_v51  ;;  %v929_v51 = vld [vmem:[%s1824_s0 + $0x18] sm:$0xf] }
  0x4b   :  { %827 = vmatpush.bf16.msra.mxu0 %v1528_v54  ;;  %v1254_v54 = vld [vmem:[%s1824_s0 + $0x98] sm:$0xf0] }
  0x4c   :  { %v978_v58 = vor.u32 %v1254_v54, %v977_v53 }
  0x4e   :  { %1336 = vmatpush.bf16.msra.mxu3 %v1540_v57  ;;  %v930_v57 = vor.u32 %v1241_v52, %v929_v51 }
  0x4f   :  { %828 = vmatpush.bf16.msra.mxu0 %v1573_v3  ;;  %v1002_v3 = vor.u32 %v1257_v59, %v999_v60 }
  0x51   :  { %780 = vmatmul.bf16.gmra.mxu3 %v946_v43 }
  0x52   :  { %1337 = vmatpush.bf16.msra.mxu3 %v1582_v5  ;;  %732 = vmatmul.bf16.gmra.mxu1 %v994_v44  ;;  %v958_v5 = vor.u32 %v1248_v0, %v957_v63 }
  0x53   :  { %829 = vmatpush.bf16.msra.mxu0 %v1591_v11  ;;  %761 = vmatmul.bf16.gmra.mxu2 %v998_v45  ;;  %v985_v11 = vld [vmem:[%s1824_s0 + $0x88] sm:$0xf] }
  0x54   :  { %809 = vmatmul.bf16.gmra.mxu0 %v950_v46  ;;  %v986_v17 = vor.u32 %v1255_v12, %v985_v11 }
  0x56   :  { %1338 = vmatpush.bf16.msra.mxu3 %v1311_v16  ;;  %v1010_v16 = vor.u32 %v1258_v7, %v1007_v10 }
  0x57   :  { %830 = vmatpush.bf16.msra.mxu0 %v1305_v14  ;;  %v923_v14 = vld [vmem:[%s1824_s0 + $0x2c] sm:$0xf0] }
  0x58   :  { %v926_v18 = vor.u32 %v1237_v13, %v923_v14 }
  0x5b   :  { %831 = vmatpush.bf16.msra.mxu0 %v1304_v19 }
  0x5f   :  { %832 = vmatpush.bf16.msra.mxu0 %v1303_v28 }
  0x61   :  { %785 = vmatmul.bf16.gmra.mxu3 %v974_v55 }
  0x62   :  { %838 = vmatmul.bf16.vlgmr.msrb.gmra.mxu1 %v954_v56 }
  0x63   :  { %1231 = vmatmul.msk.bf16.vlgmr.msrb.gmra.mxu2 %vm667_vm0, %v930_v57 }
  0x64   :  { %814 = vmatmul.bf16.gmra.mxu0 %v978_v58 }
  0x6b   :  { %v186_v14 = vpop.permute.xlu2 %185 }
  0x71   :  { %790 = vmatmul.bf16.gmra.mxu3 %v1002_v3 }
  0x72   :  { %843 = vmatmul.bf16.gmra.mxu1 %v982_v4 }
  0x73   :  { %1232 = vmatmul.msk.bf16.gmra.mxu2 %vm667_vm0, %v958_v5 }
  0x74   :  { %819 = vmatmul.bf16.gmra.mxu0 %v1006_v6 }
  0x7a   :  { %v166_v19 = vpop.permute.xlu0 %165 }
  0x7b   :  { %v176_v61 = vpop.permute.xlu1 %175 }
  0x81   :  { %1234 = vmatmul.msk.bf16.vlgmr.msra.gmra.mxu3 %vm667_vm0, %v1014_v15 }
  0x82   :  { %848 = vmatmul.bf16.gmra.mxu1 %v1010_v16  ;;  %v171_v25 = vpop.permute.xlu0 %170 }
  0x83   :  { %1233 = vmatmul.msk.bf16.gmra.mxu2 %vm667_vm0, %v986_v17  ;;  %v181_v6 = vpop.permute.xlu1 %180 }
  0x84   :  { %833 = vmatmul.bf16.vlgmr.msra.gmra.mxu0 %v926_v18 }
  0x8a   :  { %v196_v15 = vpop.permute.xlu0 %195 }
  0x9e   :  { %v689_v20 = vpop.f32.mrf.mxu0 }
  0x9f   :  { %v690_v21 = vadd.f32 %v689_v20, %v166_v19  ;;  %v718_v22 = vpop.f32.mrf.mxu1 }
  0xa1   :  { %v719_v23 = vadd.f32 %v718_v22, %v690_v21 }
  0xa4   :  { %v1762_v24 = vpop.f32.mrf.mxu3 }
  0xa6   :  { %v747_v26 = vpop.f32.mrf.mxu2  ;;  %v691_v28 = vpop.f32.mrf.mxu0 }
  0xa7   :  { %v1764_v27 = vadd.f32 %v747_v26, %v719_v23  ;;  %v692_v29 = vadd.f32 %v691_v28, %v171_v25  ;;  %v720_v30 = vpop.f32.mrf.mxu1  ;;  %v700_v25 = vadd.f32 %v1762_v24, %v186_v14 }
  0xa9   :  { %v721_v31 = vadd.f32 %v720_v30, %v692_v29 }
  0xac   :  { %v1766_v32 = vpop.f32.mrf.mxu3 }
  0xae   :  { %v749_v33 = vpop.f32.mrf.mxu2  ;;  %v694_v35 = vpop.f32.mrf.mxu0 }
  0xaf   :  { %v1768_v34 = vadd.f32 %v749_v33, %v721_v31  ;;  %v723_v36 = vpop.f32.mrf.mxu1  ;;  %v695_v62 = vadd.f32 %v694_v35, %v176_v61 }
  0xb1   :  { %v724_v2 = vadd.f32 %v723_v36, %v695_v62  ;;  %v201_v36 = vpop.permute.xlu1 %200 }
  0xb4   :  { %v704_v37 = vpop.f32.mrf.mxu3 }
  0xb5   :  { %v705_v22 = vadd.f32 %v704_v37, %v196_v15  ;;  %v191_v37 = vpop.permute.xlu2 %190 }
  0xb6   :  { %v752_v38 = vpop.f32.mrf.mxu2  ;;  %v696_v39 = vpop.f32.mrf.mxu0 }
  0xb7   :  { %v725_v40 = vpop.f32.mrf.mxu1  ;;  %v753_v4 = vadd.f32 %v752_v38, %v724_v2  ;;  %v697_v8 = vadd.f32 %v696_v39, %v181_v6 }
  0xb9   :  { %v726_v12 = vadd.f32 %v725_v40, %v697_v8 }
  0xbc   :  { %v1770_v41 = vpop.f32.mrf.mxu3 }
  0xbe   :  { %v754_v42 = vpop.f32.mrf.mxu2 }
  0xbf   :  { %v728_v43 = vpop.f32.mrf.mxu1  ;;  %v755_v16 = vadd.f32 %v754_v42, %v726_v12 }
  0xc0   :  { %v729_v30 = vadd.f32 %v728_v43, %v700_v25 }
  0xc1   :  { %v1772_v44 = vpop.f32.mrf.mxu0 }
  0xc4   :  { %v776_v45 = vpop.f32.mrf.mxu3 }
  0xc5   :  { %v777_v33 = vadd.f32 %v776_v45, %v1764_v27 }
  0xc6   :  { %v757_v46 = vpop.f32.mrf.mxu2 }
  0xc7   :  { %v1774_v47 = vpop.f32.mrf.mxu1  ;;  %v758_v38 = vadd.f32 %v757_v46, %v729_v30  ;;  %v806_v43 = vadd.f32 %v1772_v44, %v777_v33 }
  0xc9   :  { %v1776_v48 = vpop.f32.mrf.mxu0 }
  0xcc   :  { %v1778_v49 = vpop.f32.mrf.mxu3 }
  0xce   :  { %v1780_v50 = vpop.f32.mrf.mxu2 }
  0xcf   :  { %v733_v51 = vpop.f32.mrf.mxu1 }
  0xd0   :  { %v734_v29 = vadd.f32 %v733_v51, %v705_v22  ;;  %v707_v51 = vadd.f32 %v1770_v41, %v201_v36  ;;  %v779_v41 = vadd.f32 %v1778_v49, %v1768_v34 }
  0xd1   :  { %v810_v52 = vpop.f32.mrf.mxu0 }
  0xd2   :  { %v808_v34 = vadd.f32 %v1776_v48, %v779_v41 }
  0xd4   :  { %v781_v53 = vpop.f32.mrf.mxu3 }
  0xd5   :  { %v782_v9 = vadd.f32 %v781_v53, %v753_v4 }
  0xd6   :  { %v762_v54 = vpop.f32.mrf.mxu2 }
  0xd7   :  { %v735_v55 = vpop.f32.mrf.mxu1  ;;  %v811_v13 = vadd.f32 %v810_v52, %v782_v9  ;;  %v763_v35 = vadd.f32 %v762_v54, %v734_v29 }
  0xd8   :  { %v736_v27 = vadd.f32 %v735_v55, %v707_v51 }
  0xd9   :  { %v812_v56 = vpop.f32.mrf.mxu0 }
  0xdc   :  { %v783_v57 = vpop.f32.mrf.mxu3 }
  0xdd   :  { %v784_v20 = vadd.f32 %v783_v57, %v755_v16  ;;  %v702_v57 = vadd.f32 %v1766_v32, %v191_v37 }
  0xde   :  { %v764_v58 = vpop.f32.mrf.mxu2 }
  0xdf   :  { %v839_v59 = vpop.f32.mrf.mxu1  ;;  %v813_v31 = vadd.f32 %v812_v56, %v784_v20  ;;  %v731_v46 = vadd.f32 %v1774_v47, %v702_v57 }
  0xe0   :  { %v840_v17 = vadd.f32 %v839_v59, %v811_v13 }
  0xe1   :  { %v815_v60 = vpop.f32.mrf.mxu0  ;;  %v760_v32 = vadd.f32 %v1780_v50, %v731_v46 }
  0xe4   :  { %v786_v63 = vpop.f32.mrf.mxu3 }
  0xe5   :  { %v787_v24 = vadd.f32 %v786_v63, %v758_v38  ;;  %v765_v63 = vadd.f32 %v764_v58, %v736_v27 }
  0xe6   :  { %v863_v0 = vpop.f32.mrf.mxu2 }
  0xe7   :  { %v841_v1 = vpop.f32.mrf.mxu1  ;;  %v816_v62 = vadd.f32 %v815_v60, %v787_v24 }
  0xe8   :  { %v842_v39 = vadd.f32 %v841_v1, %v813_v31 }
  0xe9   :  { %v1782_v3 = vpop.f32.mrf.mxu0 }
  0xec   :  { %v788_v5 = vpop.f32.mrf.mxu3 }
  0xed   :  { %v789_v47 = vadd.f32 %v788_v5, %v760_v32 }
  0xee   :  { %v1784_v7 = vpop.f32.mrf.mxu2 }
  0xef   :  { %v844_v10 = vpop.f32.mrf.mxu1  ;;  %v818_v12 = vadd.f32 %v1782_v3, %v789_v47 }
  0xf0   :  { %v845_v2 = vadd.f32 %v844_v10, %v816_v62 }
  0xf1   :  { %v820_v11 = vpop.f32.mrf.mxu0 }
  0xf4   :  { %v791_v18 = vpop.f32.mrf.mxu3 }
  0xf5   :  { %v792_v42 = vadd.f32 %v791_v18, %v763_v35 }
  0xf6   :  { %v868_v19 = vpop.f32.mrf.mxu2 }
  0xf7   :  { %v869_v21 = vadd.f32 %v868_v19, %v840_v17  ;;  %v846_v23 = vpop.f32.mrf.mxu1  ;;  %v821_v54 = vadd.f32 %v820_v11, %v792_v42 }
  0xf8   :  { %v847_v14 = vadd.f32 %v846_v23, %v818_v12 }
  0xf9   :  { %v885_v26 = vmax.f32 %v869_v21, 0.0  ;;  %v822_v28 = vpop.f32.mrf.mxu0 }
  0xfb   :  { %893 = vst [vmem:[%s1825_s3 + $0x10] sm:$0xff] %v885_v26 }
  0xfc   :  { %v793_v40 = vpop.f32.mrf.mxu3 }
  0xfd   :  { %v794_v55 = vadd.f32 %v793_v40, %v765_v63 }
  0xfe   :  { %v870_v52 = vpop.f32.mrf.mxu2 }
  0xff   :  { %v871_v53 = vadd.f32 %v870_v52, %v842_v39  ;;  %v849_v56 = vpop.f32.mrf.mxu1  ;;  %v823_v10 = vadd.f32 %v822_v28, %v794_v55 }
 0x100   :  { %v850_v1 = vadd.f32 %v849_v56, %v821_v54 }
 0x101   :  { %v886_v59 = vmax.f32 %v871_v53, 0.0  ;;  %v834_v61 = vpop.f32.mrf.mxu0 }
 0x102   :  { %v835_v45 = vadd.f32 %v834_v61, %v806_v43 }
 0x103   :  { %894 = vst [vmem:[%s1825_s3 + $0x18] sm:$0xff] %v886_v59 }
 0x104   :  { %v864_v44 = vadd.f32 %v863_v0, %v835_v45  ;;  %v878_v4 = vpop.f32.mrf.mxu3 }
 0x105   :  { %v879_v9 = vadd.f32 %v878_v4, %v850_v1 }
 0x106   :  { %v883_v6 = vmax.f32 %v864_v44, 0.0  ;;  %v873_v8 = vpop.f32.mrf.mxu2 }
 0x107   :  { %v874_v60 = vadd.f32 %v873_v8, %v845_v2  ;;  %v889_v11 = vmax.f32 %v879_v9, 0.0  ;;  %v851_v0 = vpop.f32.mrf.mxu1 }
 0x108   :  { %891 = vst [vmem:[%s1825_s3] sm:$0xff] %v883_v6  ;;  %v852_v13 = vadd.f32 %v851_v0, %v823_v10 }
 0x109   :  { %v887_v49 = vmax.f32 %v874_v60, 0.0  ;;  %v836_v58 = vpop.f32.mrf.mxu0  ;;  %897 = vst [vmem:[%s1825_s3 + $0x30] sm:$0xff] %v889_v11 }
 0x10a   :  { %v837_v50 = vadd.f32 %v836_v58, %v808_v34 }
 0x10b   :  { %895 = vst [vmem:[%s1825_s3 + $0x20] sm:$0xff] %v887_v49 }
 0x10c   :  { %v866_v5 = vadd.f32 %v1784_v7, %v837_v50  ;;  %v880_v48 = vpop.f32.mrf.mxu3 }
 0x10d   :  { %v881_v17 = vadd.f32 %v880_v48, %v852_v13 }
 0x10e   :  { %v884_v15 = vmax.f32 %v866_v5, 0.0  ;;  %v875_v16 = vpop.f32.mrf.mxu2 }
 0x10f   :  { %v876_v18 = vadd.f32 %v875_v16, %v847_v14  ;;  %v890_v19 = vmax.f32 %v881_v17, 0.0 }
 0x110   :  { %892 = vst [vmem:[%s1825_s3 + $0x8] sm:$0xff] %v884_v15 }
 0x111   :  { %v888_v20 = vmax.f32 %v876_v18, 0.0  ;;  %898 = vst [vmem:[%s1825_s3 + $0x38] sm:$0xff] %v890_v19 }
 0x113   :  { %896 = vst [vmem:[%s1825_s3 + $0x28] sm:$0xff] %v888_v20 }

// kernel: resnet_forward.24
= control target key start
LH: loop header
LB: loop body
LE: loop exit
PB: predicated region body
PF: predicated region fallthrough
CT: control target
= control target key end

     0   :  { %v205_v0 = vmov 0   ;;  %vm107_vm0 = vcmask 261120   ;;  %s292_s2 = inlined_call_operand.vmem [shape: f32[64,1], index: 2, kind: input, shape index: {}]   ;;  %s293_s1 = inlined_call_operand.vmem [shape: bf16[32,128], index: 1, kind: input, shape index: {}]   ;;  %s294_s0 = inlined_call_operand.vmem [shape: bf16[64,32], index: 0, kind: input, shape index: {}]   ;;  %s295_s3 = inlined_call_operand.vmem [shape: f32[64,128], index: 3, kind: output, shape index: {}]  }
   0x1   :  { %203 = vset.pattern.permute.xlu1 %v205_v0  ;;  %202 = vset.pattern.permute.xlu0 %v205_v0  ;;  %v29_v1 = vld [vmem:[%s292_s2 + $0x10] sm:$0xff]  ;;  %v27_v2 = vld [vmem:[%s292_s2] sm:$0xff]  ;;  %v194_v3 = vld [vmem:[%s293_s1 + $0x8] sm:$0xff] }
   0x2   :  { %47 = vperm.xlu1 %203, %v29_v1   ;;  %37 = vperm.xlu0 %202, %v27_v2   ;;  %v193_v4 = vld [vmem:[%s293_s1] sm:$0xff]  ;;  %v190_v7 = vld [vmem:[%s294_s0 + $0x8] sm:$0xff]  ;;  %v191_v8 = vld [vmem:[%s294_s0 + $0x10] sm:$0xff] }
   0x3   :  { %126 = vmatpush.bf16.msra.mxu0 %v194_v3  ;;  %195 = vmatpush.bf16.msra.mxu1 %v194_v3  ;;  %v31_v5 = vld [vmem:[%s292_s2 + $0x20] sm:$0xff]  ;;  %v192_v9 = vld [vmem:[%s294_s0 + $0x18] sm:$0xff]  ;;  %v28_v11 = vld [vmem:[%s292_s2 + $0x8] sm:$0xff] }
   0x4   :  { %196 = vmatpush.bf16.msra.mxu2 %v194_v3  ;;  %197 = vmatpush.bf16.msra.mxu3 %v194_v3  ;;  %v189_v6 = vld [vmem:[%s294_s0] sm:$0xff]  ;;  %v30_v10 = vld [vmem:[%s292_s2 + $0x18] sm:$0xff]  ;;  %v32_v12 = vld [vmem:[%s292_s2 + $0x28] sm:$0xff] }
   0x5   :  { %204 = vset.pattern.permute.xlu2 %v205_v0  ;;  %v34_v13 = vld [vmem:[%s292_s2 + $0x38] sm:$0xff]  ;;  %v33_v14 = vld [vmem:[%s292_s2 + $0x30] sm:$0xff] }
   0x6   :  { %57 = vperm.xlu2 %204, %v31_v5  }
   0x7   :  { %127 = vmatpush.bf16.msra.mxu0 %v193_v4  ;;  %198 = vmatpush.bf16.msra.mxu1 %v193_v4 }
   0x8   :  { %199 = vmatpush.bf16.msra.mxu2 %v193_v4  ;;  %200 = vmatpush.bf16.msra.mxu3 %v193_v4 }
   0xa   :  { %185 = vmatmul.msk.bf16.vlgmr.msra.gmra.mxu0 %vm107_vm0, %v189_v6  ;;  %186 = vmatmul.msk.bf16.vlgmr.msra.gmra.mxu1 %vm107_vm0, %v190_v7 }
   0xb   :  { %187 = vmatmul.msk.bf16.vlgmr.msra.gmra.mxu2 %vm107_vm0, %v191_v8  ;;  %188 = vmatmul.msk.bf16.vlgmr.msra.gmra.mxu3 %vm107_vm0, %v192_v9 }
   0xc   :  { %52 = vperm.xlu1 %203, %v30_v10   ;;  %42 = vperm.xlu0 %202, %v28_v11  }
   0xe   :  { %62 = vperm.xlu2 %204, %v32_v12  }
  0x14   :  { %72 = vperm.xlu1 %203, %v34_v13   ;;  %67 = vperm.xlu0 %202, %v33_v14  }
  0x60   :  { %v58_v23 = vpop.permute.xlu2 %57 }
  0x68   :  { %v63_v34 = vpop.permute.xlu2 %62 }
  0x74   :  { %v38_v15 = vpop.permute.xlu0 %37  ;;  %v48_v16 = vpop.permute.xlu1 %47 }
  0x7e   :  { %v43_v17 = vpop.permute.xlu0 %42  ;;  %v53_v22 = vpop.permute.xlu1 %52 }
  0x86   :  { %v68_v24 = vpop.permute.xlu0 %67  ;;  %v73_v33 = vpop.permute.xlu1 %72 }
  0x87   :  { %v129_v18 = vpop.f32.mrf.mxu0  ;;  %v134_v19 = vpop.f32.mrf.mxu1 }
  0x88   :  { %v130_v20 = vadd.f32 %v129_v18, %v38_v15  ;;  %v135_v21 = vadd.f32 %v134_v19, %v48_v16 }
  0x8a   :  { %149 = vst [vmem:[%s295_s3] sm:$0xff] %v130_v20 }
  0x8b   :  { %151 = vst [vmem:[%s295_s3 + $0x10] sm:$0xff] %v135_v21 }
  0x8e   :  { %v139_v25 = vpop.f32.mrf.mxu2  ;;  %v144_v26 = vpop.f32.mrf.mxu3 }
  0x8f   :  { %v140_v27 = vadd.f32 %v139_v25, %v58_v23  ;;  %v145_v28 = vadd.f32 %v144_v26, %v68_v24  ;;  %v131_v29 = vpop.f32.mrf.mxu0  ;;  %v136_v30 = vpop.f32.mrf.mxu1 }
  0x90   :  { %v132_v31 = vadd.f32 %v131_v29, %v43_v17  ;;  %v137_v32 = vadd.f32 %v136_v30, %v53_v22 }
  0x91   :  { %153 = vst [vmem:[%s295_s3 + $0x20] sm:$0xff] %v140_v27 }
  0x92   :  { %155 = vst [vmem:[%s295_s3 + $0x30] sm:$0xff] %v145_v28 }
  0x93   :  { %150 = vst [vmem:[%s295_s3 + $0x8] sm:$0xff] %v132_v31 }
  0x94   :  { %152 = vst [vmem:[%s295_s3 + $0x18] sm:$0xff] %v137_v32 }
  0x96   :  { %v141_v35 = vpop.f32.mrf.mxu2  ;;  %v146_v36 = vpop.f32.mrf.mxu3 }
  0x97   :  { %v142_v37 = vadd.f32 %v141_v35, %v63_v34  ;;  %v147_v38 = vadd.f32 %v146_v36, %v73_v33 }
  0x99   :  { %154 = vst [vmem:[%s295_s3 + $0x28] sm:$0xff] %v142_v37 }
  0x9a   :  { %156 = vst [vmem:[%s295_s3 + $0x38] sm:$0xff] %v147_v38 }

// kernel: resnet_forward.26
= control target key start
LH: loop header
LB: loop body
LE: loop exit
PB: predicated region body
PF: predicated region fallthrough
CT: control target
= control target key end

     0   :  { %v2561_v8 = vmov 0   ;;  %vm1262_vm0 = vcmask 523264   ;;  %s3422_s1 = inlined_call_operand.vmem [shape: bf16[1728,128], index: 1, kind: input, shape index: {}]   ;;  %s3423_s2 = inlined_call_operand.vmem [shape: f32[64,1], index: 2, kind: input, shape index: {}]   ;;  %s3424_s0 = inlined_call_operand.vmem [shape: bf16[64,1728], index: 0, kind: input, shape index: {}]   ;;  %s3425_s3 = inlined_call_operand.vmem [shape: f32[64,128], index: 3, kind: input, shape index: {}]   ;;  %s3426_s4 = inlined_call_operand.vmem [shape: f32[64,128], index: 4, kind: output, shape index: {}]  }
   0x1   :  { %v2440_v0 = vld [vmem:[%s3422_s1 + $0x38] sm:$0xff]  ;;  %v2439_v2 = vld [vmem:[%s3422_s1 + $0x30] sm:$0xff]  ;;  %v2438_v4 = vld [vmem:[%s3422_s1 + $0x28] sm:$0xff]  ;;  %2558 = vset.pattern.permute.xlu0 %v2561_v8  ;;  %2559 = vset.pattern.permute.xlu1 %v2561_v8 }
   0x2   :  { %v2448_v1 = vld [vmem:[%s3422_s1 + $0x78] sm:$0xff]  ;;  %2541 = vmatpush.bf16.msra.mxu2 %v2440_v0  ;;  %v2447_v3 = vld [vmem:[%s3422_s1 + $0x70] sm:$0xff]  ;;  %1275 = vmatpush.bf16.msra.mxu0 %v2440_v0  ;;  %v2446_v5 = vld [vmem:[%s3422_s1 + $0x68] sm:$0xff] }
   0x3   :  { %2549 = vmatpush.bf16.msra.mxu3 %v2448_v1  ;;  %1304 = vmatpush.bf16.msra.mxu1 %v2448_v1  ;;  %v2437_v6 = vld [vmem:[%s3422_s1 + $0x20] sm:$0xff]  ;;  %v2436_v10 = vld [vmem:[%s3422_s1 + $0x18] sm:$0xff]  ;;  %v2435_v12 = vld [vmem:[%s3422_s1 + $0x10] sm:$0xff] }
   0x4   :  { %v2445_v7 = vld [vmem:[%s3422_s1 + $0x60] sm:$0xff]  ;;  %2560 = vset.pattern.permute.xlu2 %v2561_v8  ;;  %v2444_v11 = vld [vmem:[%s3422_s1 + $0x58] sm:$0xff]  ;;  %v2443_v13 = vld [vmem:[%s3422_s1 + $0x50] sm:$0xff] }
   0x5   :  { %v290_v9 = vld [vmem:[%s3423_s2] sm:$0xff]  ;;  %v291_v14 = vld [vmem:[%s3423_s2 + $0x8] sm:$0xff]  ;;  %v292_v17 = vld [vmem:[%s3423_s2 + $0x10] sm:$0xff] }
   0x6   :  { %2542 = vmatpush.bf16.msra.mxu2 %v2439_v2  ;;  %1276 = vmatpush.bf16.msra.mxu0 %v2439_v2  ;;  %v2434_v15 = vld [vmem:[%s3422_s1 + $0x8] sm:$0xff]  ;;  %v2433_v18 = vld [vmem:[%s3422_s1] sm:$0xff]  ;;  %v2412_v21 = vld [vmem:[%s3424_s0 + $0x114] sm:$0xf0] }
   0x7   :  { %2550 = vmatpush.bf16.msra.mxu3 %v2447_v3  ;;  %1305 = vmatpush.bf16.msra.mxu1 %v2447_v3  ;;  %v2442_v16 = vld [vmem:[%s3422_s1 + $0x48] sm:$0xff]  ;;  %v2441_v19 = vld [vmem:[%s3422_s1 + $0x40] sm:$0xff]  ;;  %v1833_v23 = vld [vmem:[%s3424_s0 + $0x118] sm:$0xf0] }
   0x8   :  { %300 = vperm.xlu0 %2558, %v290_v9   ;;  %v1831_v20 = vld [vmem:[%s3424_s0 + $0xe0] sm:$0xf]  ;;  %310 = vperm.xlu1 %2559, %v292_v17   ;;  %v2405_v22 = vld [vmem:[%s3424_s0 + $0xe4] sm:$0xf]  ;;  %v2456_v24 = vld [vmem:[%s3422_s1 + $0xb8] sm:$0xff] }
   0x9   :  { %v1719_v25 = vld [vmem:[%s3424_s0] sm:$0xf]  ;;  %v2384_v26 = vld [vmem:[%s3424_s0 + $0x34] sm:$0xf0]  ;;  %v2377_v28 = vld [vmem:[%s3424_s0 + $0x4] sm:$0xf]  ;;  %v1832_v30 = vor.u32 %v2412_v21, %v1831_v20  ;;  %v1836_v31 = vor.u32 %v2405_v22, %v1833_v23 }
   0xa   :  { %2543 = vmatpush.bf16.msra.mxu2 %v2438_v4  ;;  %1277 = vmatpush.bf16.msra.mxu0 %v2438_v4  ;;  %v2464_v27 = vld [vmem:[%s3422_s1 + $0xf8] sm:$0xff]  ;;  %v1720_v32 = vor.u32 %v2384_v26, %v1719_v25  ;;  %v2455_v36 = vld [vmem:[%s3422_s1 + $0xb0] sm:$0xff]  ;;  %v294_v42 = vld [vmem:[%s3423_s2 + $0x20] sm:$0xff] }
   0xb   :  { %2551 = vmatpush.bf16.msra.mxu3 %v2446_v5  ;;  %1306 = vmatpush.bf16.msra.mxu1 %v2446_v5  ;;  %v1721_v29 = vld [vmem:[%s3424_s0 + $0x38] sm:$0xf0]  ;;  %v2463_v37 = vld [vmem:[%s3422_s1 + $0xf0] sm:$0xff]  ;;  %v2454_v43 = vld [vmem:[%s3422_s1 + $0xa8] sm:$0xff] }
   0xc   :  { %v2480_v33 = vld [vmem:[%s3422_s1 + $0x178] sm:$0xff]  ;;  %v1724_v35 = vor.u32 %v2377_v28, %v1721_v29  ;;  %v2479_v38 = vld [vmem:[%s3422_s1 + $0x170] sm:$0xff]  ;;  %v2462_v44 = vld [vmem:[%s3422_s1 + $0xe8] sm:$0xff]  ;;  %320 = vperm.xlu2 %2560, %v294_v42  }
   0xd   :  { %v2472_v34 = vld [vmem:[%s3422_s1 + $0x138] sm:$0xff]  ;;  %v296_v40 = vld [vmem:[%s3423_s2 + $0x30] sm:$0xff]  ;;  %v2478_v45 = vld [vmem:[%s3422_s1 + $0x168] sm:$0xff] }
   0xe   :  { %2544 = vmatpush.bf16.msra.mxu2 %v2437_v6  ;;  %1278 = vmatpush.bf16.msra.mxu0 %v2437_v6  ;;  %v293_v39 = vld [vmem:[%s3423_s2 + $0x18] sm:$0xff]  ;;  %v2471_v41 = vld [vmem:[%s3422_s1 + $0x130] sm:$0xff]  ;;  %v2470_v46 = vld [vmem:[%s3422_s1 + $0x128] sm:$0xff] }
   0xf   :  { %2552 = vmatpush.bf16.msra.mxu3 %v2445_v7  ;;  %1307 = vmatpush.bf16.msra.mxu1 %v2445_v7  ;;  %v2453_v47 = vld [vmem:[%s3422_s1 + $0xa0] sm:$0xff]  ;;  %v1887_v50 = vld [vmem:[%s3424_s0 + $0x150] sm:$0xf]  ;;  %v2426_v51 = vld [vmem:[%s3424_s0 + $0x184] sm:$0xf0] }
  0x10   :  { %305 = vperm.xlu0 %2558, %v291_v14   ;;  %315 = vperm.xlu1 %2559, %v293_v39   ;;  %v2461_v48 = vld [vmem:[%s3422_s1 + $0xe0] sm:$0xff]  ;;  %v2419_v52 = vld [vmem:[%s3424_s0 + $0x154] sm:$0xf]  ;;  %v1889_v53 = vld [vmem:[%s3424_s0 + $0x188] sm:$0xf0]  ;;  %v1888_v62 = vor.u32 %v2426_v51, %v1887_v50 }
  0x11   :  { %v2469_v49 = vld [vmem:[%s3422_s1 + $0x120] sm:$0xff]  ;;  %v297_v55 = vld [vmem:[%s3423_s2 + $0x38] sm:$0xff]  ;;  %v1775_v57 = vld [vmem:[%s3424_s0 + $0x70] sm:$0xf]  ;;  %v1892_v63 = vor.u32 %v2419_v52, %v1889_v53 }
  0x12   :  { %2545 = vmatpush.bf16.msra.mxu2 %v2436_v10  ;;  %1279 = vmatpush.bf16.msra.mxu0 %v2436_v10  ;;  %v2477_v54 = vld [vmem:[%s3422_s1 + $0x160] sm:$0xff]  ;;  %v2452_v56 = vld [vmem:[%s3422_s1 + $0x98] sm:$0xff]  ;;  %v2398_v58 = vld [vmem:[%s3424_s0 + $0xa4] sm:$0xf0] }
  0x13   :  { %2553 = vmatpush.bf16.msra.mxu3 %v2444_v11  ;;  %1308 = vmatpush.bf16.msra.mxu1 %v2444_v11  ;;  %v2460_v59 = vld [vmem:[%s3422_s1 + $0xd8] sm:$0xff]  ;;  %v2391_v60 = vld [vmem:[%s3424_s0 + $0x74] sm:$0xf]  ;;  %v1777_v61 = vld [vmem:[%s3424_s0 + $0xa8] sm:$0xf0]  ;;  %v1776_v0 = vor.u32 %v2398_v58, %v1775_v57 }
  0x14   :  { %v2476_v1 = vld [vmem:[%s3422_s1 + $0x158] sm:$0xff]  ;;  %v1780_v3 = vor.u32 %v2391_v60, %v1777_v61  ;;  %v2451_v4 = vld [vmem:[%s3422_s1 + $0x90] sm:$0xff]  ;;  %v295_v7 = vld [vmem:[%s3423_s2 + $0x28] sm:$0xff] }
  0x15   :  { %v2468_v2 = vld [vmem:[%s3422_s1 + $0x118] sm:$0xff]  ;;  %v2459_v5 = vld [vmem:[%s3422_s1 + $0xd0] sm:$0xff]  ;;  %v2450_v9 = vld [vmem:[%s3422_s1 + $0x88] sm:$0xff]  ;;  %325 = vperm.xlu2 %2560, %v295_v7  }
  0x16   :  { %2546 = vmatpush.bf16.msra.mxu2 %v2435_v12  ;;  %1280 = vmatpush.bf16.msra.mxu0 %v2435_v12  ;;  %v2475_v6 = vld [vmem:[%s3422_s1 + $0x150] sm:$0xff]  ;;  %v2458_v10 = vld [vmem:[%s3422_s1 + $0xc8] sm:$0xff]  ;;  %v2457_v14 = vld [vmem:[%s3422_s1 + $0xc0] sm:$0xff] }
  0x17   :  { %2554 = vmatpush.bf16.msra.mxu3 %v2443_v13  ;;  %1309 = vmatpush.bf16.msra.mxu1 %v2443_v13  ;;  %v2467_v8 = vld [vmem:[%s3422_s1 + $0x110] sm:$0xff]  ;;  %v2474_v11 = vld [vmem:[%s3422_s1 + $0x148] sm:$0xff]  ;;  %v2449_v13 = vld [vmem:[%s3422_s1 + $0x80] sm:$0xff] }
  0x18   :  { %330 = vperm.xlu0 %2558, %v296_v40   ;;  %335 = vperm.xlu1 %2559, %v297_v55   ;;  %v2466_v12 = vld [vmem:[%s3422_s1 + $0x108] sm:$0xff]  ;;  %v2385_v17 = vld [vmem:[%s3424_s0 + $0x3c] sm:$0xf0]  ;;  %v1729_v21 = vld [vmem:[%s3424_s0 + $0x40] sm:$0xf0] }
  0x19   :  { %v2378_v20 = vld [vmem:[%s3424_s0 + $0xc] sm:$0xf]  ;;  %v2473_v22 = vld [vmem:[%s3422_s1 + $0x140] sm:$0xff]  ;;  %v1735_v23 = vld [vmem:[%s3424_s0 + $0x10] sm:$0xf] }
  0x1a   :  { %2547 = vmatpush.bf16.msra.mxu2 %v2434_v15  ;;  %1281 = vmatpush.bf16.msra.mxu0 %v2434_v15  ;;  %v1727_v15 = vld [vmem:[%s3424_s0 + $0x8] sm:$0xf]  ;;  %v2512_v25 = vld [vmem:[%s3422_s1 + $0x278] sm:$0xff]  ;;  %v2379_v26 = vld [vmem:[%s3424_s0 + $0x14] sm:$0xf] }
  0x1b   :  { %2555 = vmatpush.bf16.msra.mxu3 %v2442_v16  ;;  %1310 = vmatpush.bf16.msra.mxu1 %v2442_v16  ;;  %v2465_v16 = vld [vmem:[%s3422_s1 + $0x100] sm:$0xff]  ;;  %v2504_v28 = vld [vmem:[%s3422_s1 + $0x238] sm:$0xff]  ;;  %v1728_v29 = vor.u32 %v2385_v17, %v1727_v15  ;;  %v2502_v39 = vld [vmem:[%s3422_s1 + $0x228] sm:$0xff] }
  0x1c   :  { %v2510_v40 = vld [vmem:[%s3422_s1 + $0x268] sm:$0xff]  ;;  %v2493_v42 = vld [vmem:[%s3422_s1 + $0x1e0] sm:$0xff]  ;;  %v2484_v50 = vld [vmem:[%s3422_s1 + $0x198] sm:$0xff] }
  0x1d   :  { %v2400_v51 = vld [vmem:[%s3424_s0 + $0xb4] sm:$0xf0]  ;;  %v2393_v52 = vld [vmem:[%s3424_s0 + $0x84] sm:$0xf]  ;;  %v2483_v60 = vld [vmem:[%s3422_s1 + $0x190] sm:$0xff] }
  0x1e   :  { %2548 = vmatpush.bf16.msra.mxu2 %v2433_v18  ;;  %1282 = vmatpush.bf16.msra.mxu0 %v2433_v18  ;;  %v2488_v18 = vld [vmem:[%s3422_s1 + $0x1b8] sm:$0xff]  ;;  %v2497_v7 = vld [vmem:[%s3422_s1 + $0x200] sm:$0xff]  ;;  %v1849_v15 = vld [vmem:[%s3424_s0 + $0x128] sm:$0xf0] }
  0x1f   :  { %2556 = vmatpush.bf16.msra.mxu3 %v2441_v19  ;;  %1311 = vmatpush.bf16.msra.mxu1 %v2441_v19  ;;  %v2496_v19 = vld [vmem:[%s3422_s1 + $0x1f8] sm:$0xff] }
  0x20   :  { %v2492_v53 = vld [vmem:[%s3422_s1 + $0x1d8] sm:$0xff] }
  0x21   :  { %1293 = vmatmul.bf16.vlgmr.msra.gmra.mxu2 %v1832_v30  ;;  %1283 = vmatmul.bf16.vlgmr.msra.gmra.mxu0 %v1720_v32  ;;  %v1732_v30 = vor.u32 %v2378_v20, %v1729_v21  ;;  %v2487_v32 = vld [vmem:[%s3422_s1 + $0x1b0] sm:$0xff]  ;;  %v2500_v55 = vld [vmem:[%s3422_s1 + $0x218] sm:$0xff]  ;;  %v2505_v20 = vld [vmem:[%s3422_s1 + $0x240] sm:$0xff] }
  0x22   :  { %1333 = vmatpush.bf16.msrb.mxu2 %v2456_v24  ;;  %1322 = vmatmul.bf16.vlgmr.msra.gmra.mxu3 %v1836_v31  ;;  %v2386_v24 = vld [vmem:[%s3424_s0 + $0x44] sm:$0xf0]  ;;  %v2520_v21 = vld [vmem:[%s3422_s1 + $0x2b8] sm:$0xff] }
  0x23   :  { %1362 = vmatpush.bf16.msrb.mxu3 %v2464_v27  ;;  %1420 = vmatpush.bf16.msrb.mxu1 %v2480_v33  ;;  %v1737_v27 = vld [vmem:[%s3424_s0 + $0x48] sm:$0xf0]  ;;  %v1736_v31 = vor.u32 %v2386_v24, %v1735_v23  ;;  %v2519_v23 = vld [vmem:[%s3422_s1 + $0x2b0] sm:$0xff]  ;;  %v2536_v24 = vld [vmem:[%s3422_s1 + $0x338] sm:$0xff] }
  0x24   :  { %1391 = vmatpush.bf16.msrb.mxu0 %v2472_v34  ;;  %1312 = vmatmul.bf16.vlgmr.msra.gmra.mxu1 %v1724_v35  ;;  %v1740_v33 = vor.u32 %v2379_v26, %v1737_v27  ;;  %v2495_v34 = vld [vmem:[%s3422_s1 + $0x1f0] sm:$0xff]  ;;  %v2540_v26 = vld [vmem:[%s3422_s1 + $0x358] sm:$0xff] }
  0x25   :  { %v2503_v35 = vld [vmem:[%s3422_s1 + $0x230] sm:$0xff]  ;;  %v1895_v27 = vld [vmem:[%s3424_s0 + $0x158] sm:$0xf] }
  0x26   :  { %1334 = vmatpush.bf16.msrb.mxu2 %v2455_v36  ;;  %v2511_v36 = vld [vmem:[%s3422_s1 + $0x270] sm:$0xff] }
  0x27   :  { %1363 = vmatpush.bf16.msrb.mxu3 %v2463_v37  ;;  %1421 = vmatpush.bf16.msrb.mxu1 %v2479_v38  ;;  %v2486_v37 = vld [vmem:[%s3422_s1 + $0x1a8] sm:$0xff] }
  0x28   :  { %1392 = vmatpush.bf16.msrb.mxu0 %v2471_v41  ;;  %v2494_v38 = vld [vmem:[%s3422_s1 + $0x1e8] sm:$0xff]  ;;  %v2485_v41 = vld [vmem:[%s3422_s1 + $0x1a0] sm:$0xff] }
  0x2a   :  { %1335 = vmatpush.bf16.msrb.mxu2 %v2454_v43  ;;  %v2501_v43 = vld [vmem:[%s3422_s1 + $0x220] sm:$0xff] }
  0x2b   :  { %1364 = vmatpush.bf16.msrb.mxu3 %v2462_v44  ;;  %1422 = vmatpush.bf16.msrb.mxu1 %v2478_v45  ;;  %v2509_v44 = vld [vmem:[%s3422_s1 + $0x260] sm:$0xff]  ;;  %v1783_v45 = vld [vmem:[%s3424_s0 + $0x78] sm:$0xf] }
  0x2c   :  { %1393 = vmatpush.bf16.msrb.mxu0 %v2470_v46  ;;  %v2399_v46 = vld [vmem:[%s3424_s0 + $0xac] sm:$0xf0] }
  0x2d   :  { %v1784_v57 = vor.u32 %v2399_v46, %v1783_v45  ;;  %v2539_v45 = vld [vmem:[%s3422_s1 + $0x350] sm:$0xff]  ;;  %v1743_v46 = vld [vmem:[%s3424_s0 + $0x18] sm:$0xf] }
  0x2e   :  { %1336 = vmatpush.bf16.msrb.mxu2 %v2453_v47  ;;  %v2392_v47 = vld [vmem:[%s3424_s0 + $0x7c] sm:$0xf] }
  0x2f   :  { %1365 = vmatpush.bf16.msrb.mxu3 %v2461_v48  ;;  %1423 = vmatpush.bf16.msrb.mxu1 %v2477_v54  ;;  %v1785_v48 = vld [vmem:[%s3424_s0 + $0xb0] sm:$0xf0]  ;;  %v1793_v54 = vld [vmem:[%s3424_s0 + $0xb8] sm:$0xf0] }
  0x30   :  { %1394 = vmatpush.bf16.msrb.mxu0 %v2469_v49  ;;  %v1791_v49 = vld [vmem:[%s3424_s0 + $0x80] sm:$0xf]  ;;  %v1788_v58 = vor.u32 %v2392_v47, %v1785_v48  ;;  %v1796_v61 = vor.u32 %v2393_v52, %v1793_v54  ;;  %v2387_v47 = vld [vmem:[%s3424_s0 + $0x4c] sm:$0xf0]  ;;  %v2380_v48 = vld [vmem:[%s3424_s0 + $0x1c] sm:$0xf] }
  0x31   :  { %1298 = vmatmul.bf16.gmra.mxu2 %v1888_v62  ;;  %1288 = vmatmul.bf16.gmra.mxu0 %v1776_v0  ;;  %v2491_v62 = vld [vmem:[%s3422_s1 + $0x1d0] sm:$0xff]  ;;  %v2381_v52 = vld [vmem:[%s3424_s0 + $0x24] sm:$0xf]  ;;  %v1744_v54 = vor.u32 %v2387_v47, %v1743_v46 }
  0x32   :  { %1337 = vmatpush.bf16.msrb.mxu2 %v2452_v56  ;;  %1327 = vmatmul.bf16.gmra.mxu3 %v1892_v63  ;;  %v2508_v56 = vld [vmem:[%s3422_s1 + $0x258] sm:$0xff]  ;;  %v2482_v63 = vld [vmem:[%s3422_s1 + $0x188] sm:$0xff]  ;;  %v2499_v0 = vld [vmem:[%s3422_s1 + $0x210] sm:$0xff] }
  0x33   :  { %1366 = vmatpush.bf16.msrb.mxu3 %v2460_v59  ;;  %1424 = vmatpush.bf16.msrb.mxu1 %v2476_v1  ;;  %v1792_v59 = vor.u32 %v2400_v51, %v1791_v49  ;;  %v2490_v1 = vld [vmem:[%s3422_s1 + $0x1c8] sm:$0xff]  ;;  %v1745_v49 = vld [vmem:[%s3424_s0 + $0x50] sm:$0xf0]  ;;  %v2388_v51 = vld [vmem:[%s3424_s0 + $0x54] sm:$0xf0] }
  0x34   :  { %1395 = vmatpush.bf16.msrb.mxu0 %v2468_v2  ;;  %1317 = vmatmul.bf16.gmra.mxu1 %v1780_v3  ;;  %v2507_v2 = vld [vmem:[%s3422_s1 + $0x250] sm:$0xff]  ;;  %v2498_v3 = vld [vmem:[%s3422_s1 + $0x208] sm:$0xff] }
  0x36   :  { %1338 = vmatpush.bf16.msrb.mxu2 %v2451_v4  ;;  %v2506_v4 = vld [vmem:[%s3422_s1 + $0x248] sm:$0xff] }
  0x37   :  { %1367 = vmatpush.bf16.msrb.mxu3 %v2459_v5  ;;  %1425 = vmatpush.bf16.msrb.mxu1 %v2475_v6  ;;  %v2481_v5 = vld [vmem:[%s3422_s1 + $0x180] sm:$0xff] }
  0x38   :  { %1396 = vmatpush.bf16.msrb.mxu0 %v2467_v8  ;;  %v2489_v6 = vld [vmem:[%s3422_s1 + $0x1c0] sm:$0xff]  ;;  %v1839_v8 = vld [vmem:[%s3424_s0 + $0xe8] sm:$0xf] }
  0x3a   :  { %1339 = vmatpush.bf16.msrb.mxu2 %v2450_v9  ;;  %v2413_v9 = vld [vmem:[%s3424_s0 + $0x11c] sm:$0xf0] }
  0x3b   :  { %1368 = vmatpush.bf16.msrb.mxu3 %v2458_v10  ;;  %1426 = vmatpush.bf16.msrb.mxu1 %v2474_v11  ;;  %v2406_v10 = vld [vmem:[%s3424_s0 + $0xec] sm:$0xf]  ;;  %v1841_v11 = vld [vmem:[%s3424_s0 + $0x120] sm:$0xf0] }
  0x3c   :  { %1397 = vmatpush.bf16.msrb.mxu0 %v2466_v12  ;;  %v1847_v12 = vld [vmem:[%s3424_s0 + $0xf0] sm:$0xf]  ;;  %v1844_v17 = vor.u32 %v2406_v10, %v1841_v11 }
  0x3e   :  { %1340 = vmatpush.bf16.msrb.mxu2 %v2449_v13  ;;  %v2414_v13 = vld [vmem:[%s3424_s0 + $0x124] sm:$0xf0] }
  0x3f   :  { %1369 = vmatpush.bf16.msrb.mxu3 %v2457_v14  ;;  %1427 = vmatpush.bf16.msrb.mxu1 %v2473_v22  ;;  %v2407_v14 = vld [vmem:[%s3424_s0 + $0xf4] sm:$0xf]  ;;  %v2528_v22 = vld [vmem:[%s3422_s1 + $0x2f8] sm:$0xff] }
  0x40   :  { %1398 = vmatpush.bf16.msrb.mxu0 %v2465_v16  ;;  %v1840_v16 = vor.u32 %v2413_v9, %v1839_v8 }
  0x41   :  { %1341 = vmatmul.bf16.vlgmr.msrb.gmra.mxu2 %v1728_v29  ;;  %v2420_v29 = vld [vmem:[%s3424_s0 + $0x15c] sm:$0xf] }
  0x42   :  { %1449 = vmatpush.bf16.msra.mxu2 %v2488_v18  ;;  %1370 = vmatmul.bf16.vlgmr.msrb.gmra.mxu3 %v1732_v30  ;;  %v1848_v18 = vor.u32 %v2414_v13, %v1847_v12  ;;  %v1897_v30 = vld [vmem:[%s3424_s0 + $0x190] sm:$0xf0]  ;;  %v2538_v12 = vld [vmem:[%s3422_s1 + $0x348] sm:$0xff] }
  0x43   :  { %1478 = vmatpush.bf16.msra.mxu3 %v2496_v19  ;;  %1536 = vmatpush.bf16.msra.mxu1 %v2512_v25  ;;  %v1852_v19 = vor.u32 %v2407_v14, %v1849_v15  ;;  %v2527_v25 = vld [vmem:[%s3422_s1 + $0x2f0] sm:$0xff]  ;;  %v2514_v13 = vld [vmem:[%s3422_s1 + $0x288] sm:$0xff] }
  0x44   :  { %1507 = vmatpush.bf16.msra.mxu0 %v2504_v28  ;;  %1428 = vmatmul.bf16.vlgmr.msrb.gmra.mxu1 %v1740_v33  ;;  %v2427_v28 = vld [vmem:[%s3424_s0 + $0x18c] sm:$0xf0]  ;;  %v2421_v33 = vld [vmem:[%s3424_s0 + $0x164] sm:$0xf]  ;;  %v2522_v14 = vld [vmem:[%s3422_s1 + $0x2c8] sm:$0xff] }
  0x45   :  { %1399 = vmatmul.bf16.vlgmr.msrb.gmra.mxu0 %v1736_v31  ;;  %v1903_v31 = vld [vmem:[%s3424_s0 + $0x160] sm:$0xf]  ;;  %v2531_v15 = vld [vmem:[%s3422_s1 + $0x310] sm:$0xff] }
  0x46   :  { %1450 = vmatpush.bf16.msra.mxu2 %v2487_v32  ;;  %v2428_v32 = vld [vmem:[%s3424_s0 + $0x194] sm:$0xf0] }
  0x47   :  { %1479 = vmatpush.bf16.msra.mxu3 %v2495_v34  ;;  %1537 = vmatpush.bf16.msra.mxu1 %v2511_v36  ;;  %v1905_v34 = vld [vmem:[%s3424_s0 + $0x198] sm:$0xf0]  ;;  %v1900_v36 = vor.u32 %v2420_v29, %v1897_v30 }
  0x48   :  { %1508 = vmatpush.bf16.msra.mxu0 %v2503_v35  ;;  %v1896_v35 = vor.u32 %v2427_v28, %v1895_v27  ;;  %v1865_v27 = vld [vmem:[%s3424_s0 + $0x138] sm:$0xf0] }
  0x4a   :  { %1451 = vmatpush.bf16.msra.mxu2 %v2486_v37  ;;  %v1904_v37 = vor.u32 %v2428_v32, %v1903_v31  ;;  %v2529_v31 = vld [vmem:[%s3422_s1 + $0x300] sm:$0xff] }
  0x4b   :  { %1480 = vmatpush.bf16.msra.mxu3 %v2494_v38  ;;  %1538 = vmatpush.bf16.msra.mxu1 %v2510_v40  ;;  %v1908_v38 = vor.u32 %v2421_v33, %v1905_v34  ;;  %v2526_v40 = vld [vmem:[%s3422_s1 + $0x2e8] sm:$0xff]  ;;  %v2537_v34 = vld [vmem:[%s3422_s1 + $0x340] sm:$0xff] }
  0x4c   :  { %1509 = vmatpush.bf16.msra.mxu0 %v2502_v39  ;;  %v2518_v39 = vld [vmem:[%s3422_s1 + $0x2a8] sm:$0xff] }
  0x4e   :  { %1452 = vmatpush.bf16.msra.mxu2 %v2485_v41  ;;  %v2535_v41 = vld [vmem:[%s3422_s1 + $0x330] sm:$0xff] }
  0x4f   :  { %1481 = vmatpush.bf16.msra.mxu3 %v2493_v42  ;;  %1539 = vmatpush.bf16.msra.mxu1 %v2509_v44  ;;  %v2517_v42 = vld [vmem:[%s3422_s1 + $0x2a0] sm:$0xff]  ;;  %v2534_v44 = vld [vmem:[%s3422_s1 + $0x328] sm:$0xff] }
  0x50   :  { %1510 = vmatpush.bf16.msra.mxu0 %v2501_v43  ;;  %v2525_v43 = vld [vmem:[%s3422_s1 + $0x2e0] sm:$0xff] }
  0x51   :  { %1346 = vmatmul.bf16.gmra.mxu2 %v1784_v57 }
  0x52   :  { %1453 = vmatpush.bf16.msra.mxu2 %v2484_v50  ;;  %1375 = vmatmul.bf16.gmra.mxu3 %v1788_v58  ;;  %v1751_v50 = vld [vmem:[%s3424_s0 + $0x20] sm:$0xf]  ;;  %v2516_v58 = vld [vmem:[%s3422_s1 + $0x298] sm:$0xff] }
  0x53   :  { %1482 = vmatpush.bf16.msra.mxu3 %v2492_v53  ;;  %1540 = vmatpush.bf16.msra.mxu1 %v2508_v56  ;;  %v1753_v53 = vld [vmem:[%s3424_s0 + $0x58] sm:$0xf0]  ;;  %v1752_v56 = vor.u32 %v2388_v51, %v1751_v50  ;;  %v2429_v51 = vld [vmem:[%s3424_s0 + $0x19c] sm:$0xf0] }
  0x54   :  { %1511 = vmatpush.bf16.msra.mxu0 %v2500_v55  ;;  %1433 = vmatmul.bf16.gmra.mxu1 %v1796_v61  ;;  %v1748_v55 = vor.u32 %v2380_v48, %v1745_v49  ;;  %v1756_v57 = vor.u32 %v2381_v52, %v1753_v53  ;;  %v2515_v61 = vld [vmem:[%s3422_s1 + $0x290] sm:$0xff]  ;;  %v1911_v48 = vld [vmem:[%s3424_s0 + $0x168] sm:$0xf]  ;;  %v2422_v52 = vld [vmem:[%s3424_s0 + $0x16c] sm:$0xf] }
  0x55   :  { %1404 = vmatmul.bf16.gmra.mxu0 %v1792_v59  ;;  %v2524_v59 = vld [vmem:[%s3422_s1 + $0x2d8] sm:$0xff]  ;;  %v1913_v53 = vld [vmem:[%s3424_s0 + $0x1a0] sm:$0xf0] }
  0x56   :  { %1454 = vmatpush.bf16.msra.mxu2 %v2483_v60  ;;  %v2533_v60 = vld [vmem:[%s3422_s1 + $0x320] sm:$0xff] }
  0x57   :  { %1483 = vmatpush.bf16.msra.mxu3 %v2491_v62  ;;  %1541 = vmatpush.bf16.msra.mxu1 %v2507_v2  ;;  %v1799_v62 = vld [vmem:[%s3424_s0 + $0x88] sm:$0xf]  ;;  %v2523_v2 = vld [vmem:[%s3422_s1 + $0x2d0] sm:$0xff] }
  0x58   :  { %1512 = vmatpush.bf16.msra.mxu0 %v2499_v0  ;;  %v2394_v0 = vld [vmem:[%s3424_s0 + $0x8c] sm:$0xf] }
  0x5a   :  { %1455 = vmatpush.bf16.msra.mxu2 %v2482_v63  ;;  %v2401_v63 = vld [vmem:[%s3424_s0 + $0xbc] sm:$0xf0] }
  0x5b   :  { %1484 = vmatpush.bf16.msra.mxu3 %v2490_v1  ;;  %1542 = vmatpush.bf16.msra.mxu1 %v2506_v4  ;;  %v1801_v1 = vld [vmem:[%s3424_s0 + $0xc0] sm:$0xf0]  ;;  %v1807_v4 = vld [vmem:[%s3424_s0 + $0x90] sm:$0xf]  ;;  %v1800_v8 = vor.u32 %v2401_v63, %v1799_v62  ;;  %v1916_v62 = vor.u32 %v2422_v52, %v1913_v53 }
  0x5c   :  { %1513 = vmatpush.bf16.msra.mxu0 %v2498_v3  ;;  %v2532_v3 = vld [vmem:[%s3422_s1 + $0x318] sm:$0xff]  ;;  %v1804_v9 = vor.u32 %v2394_v0, %v1801_v1  ;;  %v2397_v53 = vld [vmem:[%s3424_s0 + $0xa4] sm:$0xf] }
  0x5e   :  { %1456 = vmatpush.bf16.msra.mxu2 %v2481_v5  ;;  %v2402_v5 = vld [vmem:[%s3424_s0 + $0xc4] sm:$0xf0] }
  0x5f   :  { %1485 = vmatpush.bf16.msra.mxu3 %v2489_v6  ;;  %1543 = vmatpush.bf16.msra.mxu1 %v2505_v20  ;;  %v2395_v6 = vld [vmem:[%s3424_s0 + $0x94] sm:$0xf]  ;;  %v1808_v10 = vor.u32 %v2402_v5, %v1807_v4 }
  0x60   :  { %1514 = vmatpush.bf16.msra.mxu0 %v2497_v7  ;;  %v1809_v7 = vld [vmem:[%s3424_s0 + $0xc8] sm:$0xf0]  ;;  %v1857_v20 = vld [vmem:[%s3424_s0 + $0x130] sm:$0xf0] }
  0x61   :  { %1351 = vmatmul.bf16.gmra.mxu2 %v1840_v16  ;;  %v1812_v11 = vor.u32 %v2395_v6, %v1809_v7  ;;  %v2513_v16 = vld [vmem:[%s3422_s1 + $0x280] sm:$0xff] }
  0x62   :  { %1380 = vmatmul.bf16.gmra.mxu3 %v1844_v17  ;;  %1565 = vmatpush.bf16.msrb.mxu2 %v2520_v21  ;;  %v1855_v17 = vld [vmem:[%s3424_s0 + $0xf8] sm:$0xf]  ;;  %v2521_v21 = vld [vmem:[%s3422_s1 + $0x2c0] sm:$0xff] }
  0x63   :  { %1594 = vmatpush.bf16.msrb.mxu3 %v2528_v22  ;;  %1656 = vmatpush.bf16.msrb.mxu1 %v2540_v26  ;;  %v2530_v22 = vld [vmem:[%s3422_s1 + $0x308] sm:$0xff]  ;;  %v2409_v26 = vld [vmem:[%s3424_s0 + $0x104] sm:$0xf] }
  0x64   :  { %1438 = vmatmul.bf16.gmra.mxu1 %v1852_v19  ;;  %1623 = vmatpush.bf16.msrb.mxu0 %v2536_v24  ;;  %v2408_v19 = vld [vmem:[%s3424_s0 + $0xfc] sm:$0xf]  ;;  %v1863_v24 = vld [vmem:[%s3424_s0 + $0x100] sm:$0xf]  ;;  %v1868_v33 = vor.u32 %v2409_v26, %v1865_v27  ;;  %v1769_v26 = vld [vmem:[%s3424_s0 + $0x68] sm:$0xf0] }
  0x65   :  { %1409 = vmatmul.bf16.gmra.mxu0 %v1848_v18  ;;  %v2415_v18 = vld [vmem:[%s3424_s0 + $0x12c] sm:$0xf0]  ;;  %v1860_v29 = vor.u32 %v2408_v19, %v1857_v20  ;;  %v2382_v19 = vld [vmem:[%s3424_s0 + $0x2c] sm:$0xf]  ;;  %v1761_v20 = vld [vmem:[%s3424_s0 + $0x60] sm:$0xf0] }
  0x66   :  { %1566 = vmatpush.bf16.msrb.mxu2 %v2519_v23  ;;  %v1856_v28 = vor.u32 %v2415_v18, %v1855_v17  ;;  %v2389_v18 = vld [vmem:[%s3424_s0 + $0x5c] sm:$0xf0] }
  0x67   :  { %1595 = vmatpush.bf16.msrb.mxu3 %v2527_v25  ;;  %1657 = vmatpush.bf16.msrb.mxu1 %v2539_v45  ;;  %v2416_v25 = vld [vmem:[%s3424_s0 + $0x134] sm:$0xf0] }
  0x68   :  { %1624 = vmatpush.bf16.msrb.mxu0 %v2535_v41  ;;  %v1864_v30 = vor.u32 %v2416_v25, %v1863_v24  ;;  %v2383_v25 = vld [vmem:[%s3424_s0 + $0x34] sm:$0xf] }
  0x6a   :  { %1567 = vmatpush.bf16.msrb.mxu2 %v2518_v39 }
  0x6b   :  { %1596 = vmatpush.bf16.msrb.mxu3 %v2526_v40  ;;  %1658 = vmatpush.bf16.msrb.mxu1 %v2538_v12 }
  0x6c   :  { %1625 = vmatpush.bf16.msrb.mxu0 %v2534_v44 }
  0x6e   :  { %1568 = vmatpush.bf16.msrb.mxu2 %v2517_v42 }
  0x6f   :  { %1597 = vmatpush.bf16.msrb.mxu3 %v2525_v43  ;;  %1659 = vmatpush.bf16.msrb.mxu1 %v2537_v34 }
  0x70   :  { %1626 = vmatpush.bf16.msrb.mxu0 %v2533_v60 }
  0x71   :  { %1356 = vmatmul.bf16.gmra.mxu2 %v1896_v35 }
  0x72   :  { %1385 = vmatmul.bf16.gmra.mxu3 %v1900_v36  ;;  %1569 = vmatpush.bf16.msrb.mxu2 %v2516_v58  ;;  %v2423_v58 = vld [vmem:[%s3424_s0 + $0x174] sm:$0xf] }
  0x73   :  { %1598 = vmatpush.bf16.msrb.mxu3 %v2524_v59  ;;  %v1921_v59 = vld [vmem:[%s3424_s0 + $0x1a8] sm:$0xf0] }
  0x74   :  { %1443 = vmatmul.bf16.gmra.mxu1 %v1908_v38  ;;  %1627 = vmatpush.bf16.msrb.mxu0 %v2532_v3 }
  0x75   :  { %1414 = vmatmul.bf16.gmra.mxu0 %v1904_v37  ;;  %v321_v37 = vpop.permute.xlu2 %320 }
  0x76   :  { %1570 = vmatpush.bf16.msrb.mxu2 %v2515_v61  ;;  %v1912_v61 = vor.u32 %v2429_v51, %v1911_v48  ;;  %v2404_v48 = vld [vmem:[%s3424_s0 + $0xd4] sm:$0xf0] }
  0x77   :  { %1599 = vmatpush.bf16.msrb.mxu3 %v2523_v2  ;;  %v1924_v2 = vor.u32 %v2423_v58, %v1921_v59 }
  0x78   :  { %1628 = vmatpush.bf16.msrb.mxu0 %v2531_v15  ;;  %v1759_v15 = vld [vmem:[%s3424_s0 + $0x28] sm:$0xf] }
  0x7a   :  { %1571 = vmatpush.bf16.msrb.mxu2 %v2514_v13  ;;  %v301_v23 = vpop.permute.xlu0 %300  ;;  %v311_v43 = vpop.permute.xlu1 %310 }
  0x7b   :  { %1600 = vmatpush.bf16.msrb.mxu3 %v2522_v14 }
  0x7c   :  { %1629 = vmatpush.bf16.msrb.mxu0 %v2530_v22  ;;  %v2390_v22 = vld [vmem:[%s3424_s0 + $0x64] sm:$0xf0] }
  0x7d   :  { %v326_v50 = vpop.permute.xlu2 %325 }
  0x7e   :  { %1572 = vmatpush.bf16.msrb.mxu2 %v2513_v16 }
  0x7f   :  { %1601 = vmatpush.bf16.msrb.mxu3 %v2521_v21  ;;  %v1767_v21 = vld [vmem:[%s3424_s0 + $0x30] sm:$0xf] }
  0x80   :  { %1630 = vmatpush.bf16.msrb.mxu0 %v2529_v31 }
  0x81   :  { %1457 = vmatmul.bf16.vlgmr.msra.gmra.mxu2 %v1744_v54  ;;  %v1919_v54 = vld [vmem:[%s3424_s0 + $0x170] sm:$0xf] }
  0x82   :  { %1486 = vmatmul.bf16.vlgmr.msra.gmra.mxu3 %v1748_v55  ;;  %v306_v42 = vpop.permute.xlu0 %305  ;;  %v2430_v55 = vld [vmem:[%s3424_s0 + $0x1a4] sm:$0xf0]  ;;  %v316_v5 = vpop.permute.xlu1 %315 }
  0x83   :  { %v1920_v63 = vor.u32 %v2430_v55, %v1919_v54  ;;  %v1825_v54 = vld [vmem:[%s3424_s0 + $0xd8] sm:$0xf0] }
  0x84   :  { %1544 = vmatmul.bf16.vlgmr.msra.gmra.mxu1 %v1756_v57 }
  0x85   :  { %1515 = vmatmul.bf16.vlgmr.msra.gmra.mxu0 %v1752_v56 }
  0x8a   :  { %v331_v7 = vpop.permute.xlu0 %330  ;;  %v336_v17 = vpop.permute.xlu1 %335 }
  0x91   :  { %1462 = vmatmul.bf16.gmra.mxu2 %v1800_v8 }
  0x92   :  { %1491 = vmatmul.bf16.gmra.mxu3 %v1804_v9 }
  0x94   :  { %1549 = vmatmul.bf16.gmra.mxu1 %v1812_v11 }
  0x95   :  { %1520 = vmatmul.bf16.gmra.mxu0 %v1808_v10 }
  0x9e   :  { %v1284_v32 = vpop.f32.mrf.mxu0 }
  0x9f   :  { %v1285_v35 = vadd.f32 %v1284_v32, %v301_v23 }
  0xa1   :  { %v1313_v36 = vpop.f32.mrf.mxu1  ;;  %1467 = vmatmul.bf16.gmra.mxu2 %v1856_v28  ;;  %v1760_v28 = vor.u32 %v2389_v18, %v1759_v15 }
  0xa2   :  { %1496 = vmatmul.bf16.gmra.mxu3 %v1860_v29  ;;  %v3151_v38 = vadd.f32 %v1313_v36, %v1285_v35  ;;  %v1764_v29 = vor.u32 %v2382_v19, %v1761_v20  ;;  %v2411_v19 = vld [vmem:[%s3424_s0 + $0x114] sm:$0xf]  ;;  %v1881_v20 = vld [vmem:[%s3424_s0 + $0x148] sm:$0xf0] }
  0xa4   :  { %1554 = vmatmul.bf16.gmra.mxu1 %v1868_v33  ;;  %v1294_v39 = vpop.f32.mrf.mxu2  ;;  %v1772_v33 = vor.u32 %v2383_v25, %v1769_v26 }
  0xa5   :  { %1525 = vmatmul.bf16.gmra.mxu0 %v1864_v30  ;;  %v1323_v40 = vpop.f32.mrf.mxu3  ;;  %v1295_v41 = vadd.f32 %v1294_v39, %v321_v37  ;;  %v1768_v30 = vor.u32 %v2390_v22, %v1767_v21 }
  0xa6   :  { %v1286_v45 = vpop.f32.mrf.mxu0 }
  0xa7   :  { %v3153_v44 = vadd.f32 %v1323_v40, %v1295_v41  ;;  %v1287_v46 = vadd.f32 %v1286_v45, %v306_v42  ;;  %v2403_v45 = vld [vmem:[%s3424_s0 + $0xcc] sm:$0xf0] }
  0xa9   :  { %v1315_v47 = vpop.f32.mrf.mxu1 }
  0xaa   :  { %v3158_v49 = vadd.f32 %v1315_v47, %v1287_v46  ;;  %v2396_v46 = vld [vmem:[%s3424_s0 + $0x9c] sm:$0xf]  ;;  %v1823_v47 = vld [vmem:[%s3424_s0 + $0xa0] sm:$0xf] }
  0xab   :  { %v1824_v58 = vor.u32 %v2404_v48, %v1823_v47  ;;  %v2425_v47 = vld [vmem:[%s3424_s0 + $0x184] sm:$0xf]  ;;  %v1937_v48 = vld [vmem:[%s3424_s0 + $0x1b8] sm:$0xf0] }
  0xac   :  { %v1296_v56 = vpop.f32.mrf.mxu2 }
  0xad   :  { %v1325_v57 = vpop.f32.mrf.mxu3  ;;  %v1297_v60 = vadd.f32 %v1296_v56, %v326_v50 }
  0xae   :  { %v1289_v1 = vpop.f32.mrf.mxu0 }
  0xaf   :  { %v3181_v0 = vadd.f32 %v1325_v57, %v1297_v60  ;;  %v1290_v3 = vadd.f32 %v1289_v1, %v311_v43  ;;  %v1815_v43 = vld [vmem:[%s3424_s0 + $0x98] sm:$0xf] }
  0xb0   :  { %v1816_v56 = vor.u32 %v2403_v45, %v1815_v43  ;;  %v2432_v43 = vld [vmem:[%s3424_s0 + $0x1b4] sm:$0xf0] }
  0xb1   :  { %v1318_v4 = vpop.f32.mrf.mxu1  ;;  %1472 = vmatmul.bf16.gmra.mxu2 %v1912_v61  ;;  %v1828_v61 = vor.u32 %v2397_v53, %v1825_v54 }
  0xb2   :  { %1501 = vmatmul.bf16.gmra.mxu3 %v1916_v62  ;;  %v3183_v6 = vadd.f32 %v1318_v4, %v1290_v3 }
  0xb4   :  { %1559 = vmatmul.bf16.gmra.mxu1 %v1924_v2  ;;  %v1299_v8 = vpop.f32.mrf.mxu2 }
  0xb5   :  { %1530 = vmatmul.bf16.gmra.mxu0 %v1920_v63  ;;  %v1328_v9 = vpop.f32.mrf.mxu3  ;;  %v1300_v10 = vadd.f32 %v1299_v8, %v331_v7 }
  0xb6   :  { %v1291_v12 = vpop.f32.mrf.mxu0 }
  0xb7   :  { %v3185_v11 = vadd.f32 %v1328_v9, %v1300_v10  ;;  %v1292_v13 = vadd.f32 %v1291_v12, %v316_v5  ;;  %v1871_v9 = vld [vmem:[%s3424_s0 + $0x108] sm:$0xf]  ;;  %v2417_v10 = vld [vmem:[%s3424_s0 + $0x13c] sm:$0xf0]  ;;  %v2410_v12 = vld [vmem:[%s3424_s0 + $0x10c] sm:$0xf] }
  0xb8   :  { %v1872_v22 = vor.u32 %v2417_v10, %v1871_v9 }
  0xb9   :  { %v1320_v14 = vpop.f32.mrf.mxu1 }
  0xba   :  { %v3190_v16 = vadd.f32 %v1320_v14, %v1292_v13  ;;  %v1879_v13 = vld [vmem:[%s3424_s0 + $0x110] sm:$0xf]  ;;  %v2418_v14 = vld [vmem:[%s3424_s0 + $0x144] sm:$0xf0] }
  0xbc   :  { %v1301_v23 = vpop.f32.mrf.mxu2 }
  0xbd   :  { %v1330_v24 = vpop.f32.mrf.mxu3  ;;  %v1302_v27 = vadd.f32 %v1301_v23, %v336_v17 }
  0xbf   :  { %v3213_v31 = vadd.f32 %v1330_v24, %v1302_v27  ;;  %v1880_v24 = vor.u32 %v2418_v14, %v1879_v13  ;;  %v1884_v27 = vor.u32 %v2411_v19, %v1881_v20 }
  0xc1   :  { %v1429_v34 = vpop.f32.mrf.mxu1  ;;  %1573 = vmatmul.bf16.vlgmr.msrb.gmra.mxu2 %v1760_v28 }
  0xc2   :  { %v1400_v32 = vpop.f32.mrf.mxu0  ;;  %1602 = vmatmul.bf16.vlgmr.msrb.gmra.mxu3 %v1764_v29 }
  0xc4   :  { %2373 = vmatmul.msk.bf16.vlgmr.msrb.gmra.mxu1 %vm1262_vm0, %v1772_v33  ;;  %v1342_v35 = vpop.f32.mrf.mxu2 }
  0xc5   :  { %1631 = vmatmul.bf16.vlgmr.msrb.gmra.mxu0 %v1768_v30  ;;  %v1371_v36 = vpop.f32.mrf.mxu3  ;;  %v1343_v37 = vadd.f32 %v1342_v35, %v3151_v38  ;;  %v1817_v38 = vld [vmem:[%s3424_s0 + $0xd0] sm:$0xf0] }
  0xc6   :  { %v1820_v57 = vor.u32 %v2396_v46, %v1817_v38 }
  0xc7   :  { %v1372_v39 = vadd.f32 %v1371_v36, %v1343_v37 }
  0xc9   :  { %v1431_v41 = vpop.f32.mrf.mxu1  ;;  %v1401_v42 = vadd.f32 %v1400_v32, %v1372_v39  ;;  %v1927_v39 = vld [vmem:[%s3424_s0 + $0x178] sm:$0xf] }
  0xca   :  { %v1402_v40 = vpop.f32.mrf.mxu0 }
  0xcb   :  { %v3235_v50 = vadd.f32 %v1429_v34, %v1401_v42  ;;  %v1935_v42 = vld [vmem:[%s3424_s0 + $0x180] sm:$0xf] }
  0xcc   :  { %v1344_v51 = vpop.f32.mrf.mxu2  ;;  %v1936_v54 = vor.u32 %v2432_v43, %v1935_v42 }
  0xcd   :  { %v1373_v52 = vpop.f32.mrf.mxu3  ;;  %v1345_v55 = vadd.f32 %v1344_v51, %v3158_v49 }
  0xcf   :  { %v1374_v59 = vadd.f32 %v1373_v52, %v1345_v55 }
  0xd1   :  { %v1434_v62 = vpop.f32.mrf.mxu1  ;;  %v1403_v63 = vadd.f32 %v1402_v40, %v1374_v59  ;;  %1578 = vmatmul.bf16.gmra.mxu2 %v1816_v56  ;;  %v2431_v40 = vld [vmem:[%s3424_s0 + $0x1ac] sm:$0xf0] }
  0xd2   :  { %v1405_v60 = vpop.f32.mrf.mxu0  ;;  %1607 = vmatmul.bf16.gmra.mxu3 %v1820_v57  ;;  %v1928_v52 = vor.u32 %v2431_v40, %v1927_v39  ;;  %v1940_v57 = vor.u32 %v2425_v47, %v1937_v48 }
  0xd3   :  { %v3245_v1 = vadd.f32 %v1431_v41, %v1403_v63  ;;  %v2424_v41 = vld [vmem:[%s3424_s0 + $0x17c] sm:$0xf] }
  0xd4   :  { %2374 = vmatmul.msk.bf16.gmra.mxu1 %vm1262_vm0, %v1828_v61  ;;  %v1347_v2 = vpop.f32.mrf.mxu2 }
  0xd5   :  { %1636 = vmatmul.bf16.gmra.mxu0 %v1824_v58  ;;  %v1376_v3 = vpop.f32.mrf.mxu3  ;;  %v1348_v4 = vadd.f32 %v1347_v2, %v3183_v6  ;;  %v1873_v6 = vld [vmem:[%s3424_s0 + $0x140] sm:$0xf0] }
  0xd6   :  { %v1876_v23 = vor.u32 %v2410_v12, %v1873_v6 }
  0xd7   :  { %v1377_v49 = vadd.f32 %v1376_v3, %v1348_v4 }
  0xd9   :  { %v1436_v7 = vpop.f32.mrf.mxu1  ;;  %v1406_v8 = vadd.f32 %v1405_v60, %v1377_v49 }
  0xda   :  { %v1407_v5 = vpop.f32.mrf.mxu0 }
  0xdb   :  { %v3266_v15 = vadd.f32 %v1434_v62, %v1406_v8 }
  0xdc   :  { %v1349_v17 = vpop.f32.mrf.mxu2 }
  0xdd   :  { %v1378_v18 = vpop.f32.mrf.mxu3  ;;  %v1350_v21 = vadd.f32 %v1349_v17, %v3190_v16 }
  0xdf   :  { %v1379_v25 = vadd.f32 %v1378_v18, %v1350_v21 }
  0xe1   :  { %v1439_v28 = vpop.f32.mrf.mxu1  ;;  %v1408_v29 = vadd.f32 %v1407_v5, %v1379_v25  ;;  %1583 = vmatmul.bf16.gmra.mxu2 %v1872_v22 }
  0xe2   :  { %v1410_v26 = vpop.f32.mrf.mxu0  ;;  %1612 = vmatmul.bf16.gmra.mxu3 %v1876_v23 }
  0xe3   :  { %v3276_v30 = vadd.f32 %v1436_v7, %v1408_v29 }
  0xe4   :  { %2375 = vmatmul.msk.bf16.gmra.mxu1 %vm1262_vm0, %v1884_v27  ;;  %v1352_v32 = vpop.f32.mrf.mxu2 }
  0xe5   :  { %1641 = vmatmul.bf16.gmra.mxu0 %v1880_v24  ;;  %v1381_v33 = vpop.f32.mrf.mxu3  ;;  %v1353_v34 = vadd.f32 %v1352_v32, %v3153_v44  ;;  %v1929_v44 = vld [vmem:[%s3424_s0 + $0x1b0] sm:$0xf0] }
  0xe6   :  { %v1932_v53 = vor.u32 %v2424_v41, %v1929_v44 }
  0xe7   :  { %v1382_v16 = vadd.f32 %v1381_v33, %v1353_v34 }
  0xe9   :  { %v1441_v36 = vpop.f32.mrf.mxu1  ;;  %v1411_v37 = vadd.f32 %v1410_v26, %v1382_v16 }
  0xea   :  { %v1412_v35 = vpop.f32.mrf.mxu0 }
  0xeb   :  { %v3297_v45 = vadd.f32 %v1439_v28, %v1411_v37 }
  0xec   :  { %v1354_v46 = vpop.f32.mrf.mxu2 }
  0xed   :  { %v1383_v38 = vpop.f32.mrf.mxu3  ;;  %v1355_v51 = vadd.f32 %v1354_v46, %v3181_v0 }
  0xef   :  { %v1384_v55 = vadd.f32 %v1383_v38, %v1355_v51 }
  0xf1   :  { %v1444_v58 = vpop.f32.mrf.mxu1  ;;  %v1413_v59 = vadd.f32 %v1412_v35, %v1384_v55  ;;  %1588 = vmatmul.bf16.gmra.mxu2 %v1928_v52 }
  0xf2   :  { %v1415_v56 = vpop.f32.mrf.mxu0  ;;  %1617 = vmatmul.bf16.gmra.mxu3 %v1932_v53 }
  0xf3   :  { %v3307_v60 = vadd.f32 %v1441_v36, %v1413_v59 }
  0xf4   :  { %2376 = vmatmul.msk.bf16.gmra.mxu1 %vm1262_vm0, %v1940_v57  ;;  %v1357_v61 = vpop.f32.mrf.mxu2 }
  0xf5   :  { %1646 = vmatmul.bf16.gmra.mxu0 %v1936_v54  ;;  %v1386_v62 = vpop.f32.mrf.mxu3  ;;  %v1358_v63 = vadd.f32 %v1357_v61, %v3185_v11 }
  0xf7   :  { %v1387_v0 = vadd.f32 %v1386_v62, %v1358_v63 }
  0xf9   :  { %v1446_v3 = vpop.f32.mrf.mxu1  ;;  %v1416_v4 = vadd.f32 %v1415_v56, %v1387_v0 }
  0xfa   :  { %v1417_v2 = vpop.f32.mrf.mxu0 }
  0xfb   :  { %v3310_v49 = vadd.f32 %v1444_v58, %v1416_v4 }
  0xfc   :  { %v1359_v5 = vpop.f32.mrf.mxu2 }
  0xfd   :  { %v1388_v7 = vpop.f32.mrf.mxu3  ;;  %v1360_v8 = vadd.f32 %v1359_v5, %v3213_v31 }
  0xff   :  { %v1389_v9 = vadd.f32 %v1388_v7, %v1360_v8 }
 0x101   :  { %v1545_v12 = vpop.f32.mrf.mxu1  ;;  %v1418_v6 = vadd.f32 %v1417_v2, %v1389_v9  ;;  %v1681_v2 = vld [vmem:[%s3425_s3] sm:$0xff] }
 0x102   :  { %v1516_v10 = vpop.f32.mrf.mxu0 }
 0x103   :  { %v3313_v13 = vadd.f32 %v1446_v3, %v1418_v6 }
 0x104   :  { %v1458_v14 = vpop.f32.mrf.mxu2 }
 0x105   :  { %v1487_v17 = vpop.f32.mrf.mxu3  ;;  %v1459_v44 = vadd.f32 %v1458_v14, %v3235_v50 }
 0x107   :  { %v1488_v46 = vadd.f32 %v1487_v17, %v1459_v44 }
 0x109   :  { %v1547_v11 = vpop.f32.mrf.mxu1  ;;  %v1517_v48 = vadd.f32 %v1516_v10, %v1488_v46 }
 0x10a   :  { %v1518_v18 = vpop.f32.mrf.mxu0 }
 0x10b   :  { %v1546_v55 = vadd.f32 %v1545_v12, %v1517_v48 }
 0x10c   :  { %v1460_v19 = vpop.f32.mrf.mxu2 }
 0x10d   :  { %v1489_v20 = vpop.f32.mrf.mxu3  ;;  %v1461_v51 = vadd.f32 %v1460_v19, %v3245_v1 }
 0x10f   :  { %v1490_v54 = vadd.f32 %v1489_v20, %v1461_v51 }
 0x111   :  { %v1550_v22 = vpop.f32.mrf.mxu1  ;;  %v1519_v50 = vadd.f32 %v1518_v18, %v1490_v54 }
 0x112   :  { %v1521_v21 = vpop.f32.mrf.mxu0 }
 0x113   :  { %v1548_v4 = vadd.f32 %v1547_v11, %v1519_v50  ;;  %v1682_v11 = vld [vmem:[%s3425_s3 + $0x8] sm:$0xff] }
 0x114   :  { %v1463_v23 = vpop.f32.mrf.mxu2 }
 0x115   :  { %v1492_v24 = vpop.f32.mrf.mxu3  ;;  %v1464_v59 = vadd.f32 %v1463_v23, %v3266_v15 }
 0x117   :  { %v1493_v3 = vadd.f32 %v1492_v24, %v1464_v59 }
 0x119   :  { %v3317_v26 = vpop.f32.mrf.mxu1  ;;  %v1522_v10 = vadd.f32 %v1521_v21, %v1493_v3 }
 0x11a   :  { %v3315_v25 = vpop.f32.mrf.mxu0 }
 0x11b   :  { %v1551_v23 = vadd.f32 %v1550_v22, %v1522_v10  ;;  %v1683_v22 = vld [vmem:[%s3425_s3 + $0x10] sm:$0xff] }
 0x11c   :  { %v1465_v31 = vpop.f32.mrf.mxu2 }
 0x11d   :  { %v1494_v27 = vpop.f32.mrf.mxu3  ;;  %v1466_v12 = vadd.f32 %v1465_v31, %v3276_v30 }
 0x11f   :  { %v1495_v19 = vadd.f32 %v1494_v27, %v1466_v12 }
 0x121   :  { %v3321_v29 = vpop.f32.mrf.mxu1  ;;  %v1524_v31 = vadd.f32 %v3315_v25, %v1495_v19 }
 0x122   :  { %v3319_v28 = vpop.f32.mrf.mxu0 }
 0x123   :  { %v1553_v25 = vadd.f32 %v3317_v26, %v1524_v31  ;;  %v1684_v26 = vld [vmem:[%s3425_s3 + $0x18] sm:$0xff] }
 0x124   :  { %v1468_v32 = vpop.f32.mrf.mxu2 }
 0x125   :  { %v3323_v33 = vpop.f32.mrf.mxu3  ;;  %v1469_v46 = vadd.f32 %v1468_v32, %v3297_v45 }
 0x127   :  { %v1498_v27 = vadd.f32 %v3323_v33, %v1469_v46 }
 0x129   :  { %v3327_v16 = vpop.f32.mrf.mxu1 }
 0x12a   :  { %v3325_v34 = vpop.f32.mrf.mxu0 }
 0x12c   :  { %v3329_v35 = vpop.f32.mrf.mxu2 }
 0x12d   :  { %v3331_v36 = vpop.f32.mrf.mxu3  ;;  %v1471_v50 = vadd.f32 %v3329_v35, %v3307_v60 }
 0x131   :  { %v3335_v39 = vpop.f32.mrf.mxu1 }
 0x132   :  { %v3333_v37 = vpop.f32.mrf.mxu0 }
 0x134   :  { %v3337_v40 = vpop.f32.mrf.mxu2 }
 0x135   :  { %v3339_v41 = vpop.f32.mrf.mxu3 }
 0x139   :  { %v3344_v43 = vpop.f32.mrf.mxu1 }
 0x13a   :  { %v3342_v42 = vpop.f32.mrf.mxu0 }
 0x13c   :  { %v3346_v38 = vpop.f32.mrf.mxu2 }
 0x13d   :  { %v3348_v47 = vpop.f32.mrf.mxu3 }
 0x141   :  { %v1661_v53 = vpop.f32.mrf.mxu1 }
 0x142   :  { %v1632_v52 = vpop.f32.mrf.mxu0 }
 0x144   :  { %v1574_v56 = vpop.f32.mrf.mxu2 }
 0x145   :  { %v1603_v57 = vpop.f32.mrf.mxu3  ;;  %v1575_v58 = vadd.f32 %v1574_v56, %v1546_v55 }
 0x147   :  { %v1604_v61 = vadd.f32 %v1603_v57, %v1575_v58  ;;  %v1527_v58 = vadd.f32 %v3319_v28, %v1498_v27 }
 0x149   :  { %v1663_v63 = vpop.f32.mrf.mxu1  ;;  %v1633_v0 = vadd.f32 %v1632_v52, %v1604_v61  ;;  %v1556_v28 = vadd.f32 %v3321_v29, %v1527_v58  ;;  %v1685_v29 = vld [vmem:[%s3425_s3 + $0x20] sm:$0xff] }
 0x14a   :  { %v1634_v62 = vpop.f32.mrf.mxu0 }
 0x14b   :  { %v1662_v1 = vadd.f32 %v1661_v53, %v1633_v0 }
 0x14c   :  { %v1576_v5 = vpop.f32.mrf.mxu2 }
 0x14d   :  { %v1605_v7 = vpop.f32.mrf.mxu3  ;;  %v1689_v8 = vadd.f32 %v1681_v2, %v1662_v1  ;;  %v1577_v9 = vadd.f32 %v1576_v5, %v1548_v4  ;;  %v1474_v5 = vadd.f32 %v3337_v40, %v3310_v49 }
 0x14f   :  { %v1697_v6 = vmax.f32 %v1689_v8, 0.0  ;;  %v1606_v15 = vadd.f32 %v1605_v7, %v1577_v9  ;;  %v1503_v9 = vadd.f32 %v3339_v41, %v1474_v5 }
 0x151   :  { %v1666_v17 = vpop.f32.mrf.mxu1  ;;  %1705 = vst [vmem:[%s3426_s4] sm:$0xff] %v1697_v6  ;;  %v1635_v18 = vadd.f32 %v1634_v62, %v1606_v15 }
 0x152   :  { %v1637_v14 = vpop.f32.mrf.mxu0 }
 0x153   :  { %v1664_v20 = vadd.f32 %v1663_v63, %v1635_v18  ;;  %v1500_v63 = vadd.f32 %v3331_v36, %v1471_v50  ;;  %v1476_v18 = vadd.f32 %v3346_v38, %v3313_v13 }
 0x154   :  { %v1579_v24 = vpop.f32.mrf.mxu2 }
 0x155   :  { %v1608_v21 = vpop.f32.mrf.mxu3  ;;  %v1690_v44 = vadd.f32 %v1682_v11, %v1664_v20  ;;  %v1580_v30 = vadd.f32 %v1579_v24, %v1551_v23  ;;  %v1529_v4 = vadd.f32 %v3325_v34, %v1500_v63  ;;  %v1505_v20 = vadd.f32 %v3348_v47, %v1476_v18  ;;  %v1687_v47 = vld [vmem:[%s3425_s3 + $0x30] sm:$0xff] }
 0x157   :  { %v1698_v48 = vmax.f32 %v1690_v44, 0.0  ;;  %v1609_v51 = vadd.f32 %v1608_v21, %v1580_v30  ;;  %v1558_v34 = vadd.f32 %v3327_v16, %v1529_v4  ;;  %v1686_v16 = vld [vmem:[%s3425_s3 + $0x28] sm:$0xff]  ;;  %v1534_v30 = vadd.f32 %v3342_v42, %v1505_v20 }
 0x159   :  { %1706 = vst [vmem:[%s3426_s4 + $0x8] sm:$0xff] %v1698_v48  ;;  %v1638_v53 = vadd.f32 %v1637_v14, %v1609_v51  ;;  %v1668_v54 = vpop.f32.mrf.mxu1 }
 0x15a   :  { %v1639_v52 = vpop.f32.mrf.mxu0 }
 0x15b   :  { %v1667_v55 = vadd.f32 %v1666_v17, %v1638_v53  ;;  %v1532_v17 = vadd.f32 %v3333_v37, %v1503_v9 }
 0x15c   :  { %v1581_v56 = vpop.f32.mrf.mxu2 }
 0x15d   :  { %v1610_v45 = vpop.f32.mrf.mxu3  ;;  %v1691_v32 = vadd.f32 %v1683_v22, %v1667_v55  ;;  %v1582_v57 = vadd.f32 %v1581_v56, %v1553_v25  ;;  %v1561_v24 = vadd.f32 %v3335_v39, %v1532_v17 }
 0x15f   :  { %v1699_v59 = vmax.f32 %v1691_v32, 0.0  ;;  %v1611_v61 = vadd.f32 %v1610_v45, %v1582_v57  ;;  %v1688_v32 = vld [vmem:[%s3425_s3 + $0x38] sm:$0xff] }
 0x161   :  { %1707 = vst [vmem:[%s3426_s4 + $0x10] sm:$0xff] %v1699_v59  ;;  %v1640_v62 = vadd.f32 %v1639_v52, %v1611_v61  ;;  %v1671_v2 = vpop.f32.mrf.mxu1  ;;  %v1563_v52 = vadd.f32 %v3344_v43, %v1534_v30 }
 0x162   :  { %v1642_v33 = vpop.f32.mrf.mxu0 }
 0x163   :  { %v1669_v0 = vadd.f32 %v1668_v54, %v1640_v62 }
 0x164   :  { %v1584_v3 = vpop.f32.mrf.mxu2 }
 0x165   :  { %v1613_v60 = vpop.f32.mrf.mxu3  ;;  %v1692_v35 = vadd.f32 %v1684_v26, %v1669_v0  ;;  %v1585_v1 = vadd.f32 %v1584_v3, %v1556_v28 }
 0x167   :  { %v1700_v7 = vmax.f32 %v1692_v35, 0.0  ;;  %v1614_v8 = vadd.f32 %v1613_v60, %v1585_v1 }
 0x169   :  { %1708 = vst [vmem:[%s3426_s4 + $0x18] sm:$0xff] %v1700_v7  ;;  %v1643_v36 = vadd.f32 %v1642_v33, %v1614_v8  ;;  %v1673_v14 = vpop.f32.mrf.mxu1 }
 0x16a   :  { %v1644_v12 = vpop.f32.mrf.mxu0 }
 0x16b   :  { %v1672_v10 = vadd.f32 %v1671_v2, %v1643_v36 }
 0x16c   :  { %v1586_v6 = vpop.f32.mrf.mxu2 }
 0x16d   :  { %v1615_v15 = vpop.f32.mrf.mxu3  ;;  %v1693_v49 = vadd.f32 %v1685_v29, %v1672_v10  ;;  %v1587_v40 = vadd.f32 %v1586_v6, %v1558_v34 }
 0x16f   :  { %v1701_v11 = vmax.f32 %v1693_v49, 0.0  ;;  %v1616_v19 = vadd.f32 %v1615_v15, %v1587_v40 }
 0x171   :  { %1709 = vst [vmem:[%s3426_s4 + $0x20] sm:$0xff] %v1701_v11  ;;  %v1645_v41 = vadd.f32 %v1644_v12, %v1616_v19  ;;  %v1676_v48 = vpop.f32.mrf.mxu1 }
 0x172   :  { %v1647_v38 = vpop.f32.mrf.mxu0 }
 0x173   :  { %v1674_v23 = vadd.f32 %v1673_v14, %v1645_v41 }
 0x174   :  { %v1589_v37 = vpop.f32.mrf.mxu2 }
 0x175   :  { %v1618_v21 = vpop.f32.mrf.mxu3  ;;  %v1694_v44 = vadd.f32 %v1686_v16, %v1674_v23  ;;  %v1590_v13 = vadd.f32 %v1589_v37, %v1561_v24 }
 0x177   :  { %v1702_v31 = vmax.f32 %v1694_v44, 0.0  ;;  %v1619_v46 = vadd.f32 %v1618_v21, %v1590_v13 }
 0x179   :  { %1710 = vst [vmem:[%s3426_s4 + $0x28] sm:$0xff] %v1702_v31  ;;  %v1648_v51 = vadd.f32 %v1647_v38, %v1619_v46  ;;  %v1678_v45 = vpop.f32.mrf.mxu1 }
 0x17a   :  { %v1649_v25 = vpop.f32.mrf.mxu0 }
 0x17b   :  { %v1677_v39 = vadd.f32 %v1676_v48, %v1648_v51 }
 0x17c   :  { %v1591_v53 = vpop.f32.mrf.mxu2 }
 0x17d   :  { %v1695_v54 = vadd.f32 %v1687_v47, %v1677_v39  ;;  %v1592_v22 = vadd.f32 %v1591_v53, %v1563_v52  ;;  %v1620_v27 = vpop.f32.mrf.mxu3 }
 0x17f   :  { %v1703_v42 = vmax.f32 %v1695_v54, 0.0  ;;  %v1621_v55 = vadd.f32 %v1620_v27, %v1592_v22 }
 0x181   :  { %1711 = vst [vmem:[%s3426_s4 + $0x30] sm:$0xff] %v1703_v42  ;;  %v1650_v56 = vadd.f32 %v1649_v25, %v1621_v55 }
 0x183   :  { %v1679_v57 = vadd.f32 %v1678_v45, %v1650_v56 }
 0x185   :  { %v1696_v58 = vadd.f32 %v1688_v32, %v1679_v57 }
 0x187   :  { %v1704_v43 = vmax.f32 %v1696_v58, 0.0 }
 0x189   :  { %1712 = vst [vmem:[%s3426_s4 + $0x38] sm:$0xff] %v1704_v43 }

// kernel: resnet_forward.27
= control target key start
LH: loop header
LB: loop body
LE: loop exit
PB: predicated region body
PF: predicated region fallthrough
CT: control target
= control target key end

     0   :  { %s627_s0 = inlined_call_operand.vmem [shape: f32[2,1,64], index: 0, kind: input, shape index: {}]   ;;  %s628_s1 = inlined_call_operand.hbm [shape: f32[64,64], index: 1, kind: input, shape index: {}]   ;;  %s629_s2 = inlined_call_operand.hbm [shape: f32[1,64], index: 2, kind: input, shape index: {}]   ;;  %s630_s3 = inlined_call_operand.vmem [shape: f32[64,32], index: 3, kind: input, shape index: {}]   ;;  %s631_s4 = inlined_call_operand.hbm [shape: f32[1,32], index: 4, kind: input, shape index: {}]   ;;  %s632_s5 = inlined_call_operand.vmem [shape: f32[32,16], index: 5, kind: input, shape index: {}]   ;;  %s633_s6 = inlined_call_operand.hbm [shape: f32[1,16], index: 6, kind: input, shape index: {}]   ;;  %s634_s7 = inlined_call_operand.vmem [shape: f32[16,8], index: 7, kind: input, shape index: {}]   ;;  %s635_s8 = inlined_call_operand.hbm [shape: f32[1,8], index: 8, kind: input, shape index: {}]   ;;  %s636_s9 = inlined_call_operand.hbm [shape: f32[1,8], index: 9, kind: input, shape index: {}]   ;;  %s637_s10 = inlined_call_operand.<no memory space> [shape: f32[1,1], index: 10, kind: input, shape index: {}]   ;;  %s638_s11 = inlined_call_operand.vmem [shape: f32[2,1], index: 11, kind: output, shape index: {}]  }
   0x1   :  { %v16_v0 = vstv %s637_s10 }
   0x2   :  { %17 = vst [vmem:[#allocation2] sm:$0x1] %v16_v0 }
   0x3   :  { %18 = vsyncpa [#allocation4], 0 }
   0x4   :  { %19 = vsyncpa [#allocation6], 0 }
   0x5   :  { %20 = vsyncpa [#allocation9], 0  ;;  %s42_s21 = sshll.u32 %s629_s2, 4  ;;  %s43_s21 = int_to_ptr.hbm [resolvable:$true] %s42_s21 }
   0x6   :  { %21 = vsyncpa [#allocation12], 0  ;;  %s487_s22 = smov [#allocation5]   ;;  %s68_s26 = sshll.u32 %s633_s6, 4  ;;  %s69_s26 = int_to_ptr.hbm [resolvable:$true] %s68_s26 }
   0x7   :  { %s44_s23 = sshll.u32 %s487_s22, 4  ;;  %s488_s10 = smov [#allocation8]   ;;  %s45_s23 = int_to_ptr.vmem [resolvable:$true] %s44_s23 }
   0x8   :  { %47 = dma.hbm_to_vmem [thread:$0]  %s43_s21, 16, %s45_s23, [#allocation6]  }
   0x9   :  { %s70_s27 = sshll.u32 %s488_s10, 4  ;;  %s28_s30 = sshll.u32 %s628_s1, 4  ;;  %s71_s27 = int_to_ptr.vmem [resolvable:$true] %s70_s27  ;;  %s29_s30 = int_to_ptr.hbm [resolvable:$true] %s28_s30 }
   0xa   :  { %73 = dma.hbm_to_vmem [thread:$0]  %s69_s26, 16, %s71_s27, [#allocation9]  }
   0xb   :  { %s489_s2 = smov [#allocation3]   ;;  %s55_s15 = sshll.u32 %s631_s4, 4  ;;  %s56_s15 = int_to_ptr.hbm [resolvable:$true] %s55_s15 }
   0xc   :  { %s30_s12 = sshll.u32 %s489_s2, 4  ;;  %s490_s16 = smov 128   ;;  %s31_s12 = int_to_ptr.vmem [resolvable:$true] %s30_s12 }
   0xd   :  { %s491_s6 = smov 8   ;;  %s492_s17 = smov [#allocation7]  }
   0xe   :  { %36 = dma.hbm_to_vmem [thread:$0]  %s29_s30, 1024, %s31_s12, [#allocation4], %s490_s16, %s490_s16, %s491_s6  }
   0xf   :  { %s57_s18 = sshll.u32 %s492_s17, 4  ;;  %s81_s1 = sshll.u32 %s635_s8, 4  ;;  %s58_s18 = int_to_ptr.vmem [resolvable:$true] %s57_s18  ;;  %s82_s1 = int_to_ptr.hbm [resolvable:$true] %s81_s1 }
  0x10   :  { %60 = dma.hbm_to_vmem [thread:$0]  %s56_s15, 16, %s58_s18, [#allocation6]  }
  0x11   :  { %s92_s23 = sshll.u32 %s636_s9, 4  ;;  %s493_s24 = smov [#allocation10]   ;;  %s93_s23 = int_to_ptr.hbm [resolvable:$true] %s92_s23 }
  0x12   :  { %s83_s25 = sshll.u32 %s493_s24, 4  ;;  %s494_s4 = smov [#allocation11]   ;;  %s84_s25 = int_to_ptr.vmem [resolvable:$true] %s83_s25 }
  0x13   :  { %86 = dma.hbm_to_vmem [thread:$0]  %s82_s1, 16, %s84_s25, [#allocation9]  }
  0x14   :  { %s94_s26 = sshll.u32 %s494_s4, 4  ;;  %s95_s26 = int_to_ptr.vmem [resolvable:$true] %s94_s26 }
  0x15   :  { %97 = dma.hbm_to_vmem [thread:$0]  %s93_s23, 16, %s95_s26, [#allocation12]  }
  0x16   :  { %479 = dma.done.wait [#allocation4], 1024  }
  0x17   :  { %480 = vsyncadd [#allocation4], 4294966272 }
  0x18   :  { %481 = dma.done.wait [#allocation6], 32  }
  0x19   :  { %482 = vsyncadd [#allocation6], 4294967264 }
  0x1a   :  { %483 = dma.done.wait [#allocation9], 32  }
  0x1b   :  { %484 = vsyncadd [#allocation9], 4294967264 }
  0x1c   :  { %485 = dma.done.wait [#allocation12], 16  }
  0x1d   :  { %486 = vsyncadd [#allocation12], 4294967280  ;;  %v135_v1 = vld [vmem:[#allocation3 + $0x38] sm:$0xff]  ;;  %v134_v2 = vld [vmem:[#allocation3 + $0x30] sm:$0xff]  ;;  %vm146_vm0 = vcmask 523264   ;;  %vm213_vm1 = vcmask 261120  }
  0x1e   :  { %157 = vmatpush.msra.mxu0 %v135_v1  ;;  %v133_v3 = vld [vmem:[#allocation3 + $0x28] sm:$0xff]  ;;  %v124_v4 = vld [vmem:[%s627_s0] sm:$0x1]  ;;  %v125_v5 = vld [vmem:[%s627_s0 + $0x1] sm:$0x1]  ;;  %vm244_vm2 = vcmask 130048  }
  0x1f   :  { %142 = vst [vmem:[#allocation1] ss:$9 sm:$0xff] %v124_v4  ;;  %v176_v6 = vld [vmem:[%s630_s3 + $0x38] sm:$0xff]  ;;  %v175_v7 = vld [vmem:[%s630_s3 + $0x30] sm:$0xff]  ;;  %v131_v9 = vld [vmem:[#allocation3 + $0x18] sm:$0xff]  ;;  %vm274_vm3 = vcmask 58368  }
  0x20   :  { %158 = vmatpush.msra.mxu0 %v134_v2  ;;  %v132_v8 = vld [vmem:[#allocation3 + $0x20] sm:$0xff]  ;;  %144 = vst [vmem:[#allocation1 + $0x1] ss:$9 sm:$0xff] %v125_v5  ;;  %192 = vmatpush.msra.mxu1 %v176_v6  ;;  %v173_v11 = vld [vmem:[%s630_s3 + $0x20] sm:$0xff]  ;;  %v172_v13 = vld [vmem:[%s630_s3 + $0x18] sm:$0xff]  ;;  %vm303_vm7 = vcmask 1024  }
  0x21   :  { %v174_v10 = vld [vmem:[%s630_s3 + $0x28] sm:$0xff]  ;;  %v130_v12 = vld [vmem:[#allocation3 + $0x10] sm:$0xff]  ;;  %v129_v14 = vld [vmem:[#allocation3 + $0x8] sm:$0xff] }
  0x22   :  { %159 = vmatpush.msra.mxu0 %v133_v3  ;;  %193 = vmatpush.msra.mxu1 %v175_v7  ;;  %v171_v15 = vld [vmem:[%s630_s3 + $0x10] sm:$0xff]  ;;  %v170_v18 = vld [vmem:[%s630_s3 + $0x8] sm:$0xff]  ;;  %v169_v19 = vld [vmem:[%s630_s3] sm:$0xff] }
  0x23   :  { %v128_v16 = vld [vmem:[#allocation3] sm:$0xff]  ;;  %v208_v20 = vld [vmem:[%s632_s5 + $0x18] sm:$0xff]  ;;  %v205_v26 = vld [vmem:[%s632_s5] sm:$0xff] }
  0x24   :  { %160 = vmatpush.msra.mxu0 %v132_v8  ;;  %194 = vmatpush.msra.mxu1 %v174_v10  ;;  %v325_v21 = vld [vmem:[#allocation5] ss:$0 sm:$0xff]  ;;  %v207_v24 = vld [vmem:[%s632_s5 + $0x10] sm:$0xff]  ;;  %v326_v27 = vld [vmem:[#allocation7] ss:$0 sm:$0xff] }
  0x25   :  { %229 = vmatpush.msra.mxu2 %v208_v20  ;;  %v206_v25 = vld [vmem:[%s632_s5 + $0x8] sm:$0xff]  ;;  %v238_v32 = vld [vmem:[%s634_s7] sm:$0xff]  ;;  %v329_v40 = vld [vmem:[#allocation11] ss:$0 sm:$0xff] }
  0x26   :  { %161 = vmatpush.msra.mxu0 %v131_v9  ;;  %195 = vmatpush.msra.mxu1 %v173_v11  ;;  %v239_v31 = vld [vmem:[%s634_s7 + $0x8] sm:$0xff] }
  0x27   :  { %v145_v17 = vld [vmem:[#allocation1] sm:$0xff]  ;;  %230 = vmatpush.msra.mxu2 %v207_v24  ;;  %262 = vmatpush.msra.mxu3 %v239_v31  ;;  %v327_v33 = vld [vmem:[#allocation8] ss:$0 sm:$0xff]  ;;  %v328_v37 = vld [vmem:[#allocation10] ss:$0 sm:$0xff] }
  0x28   :  { %162 = vmatpush.msra.mxu0 %v130_v12  ;;  %196 = vmatpush.msra.mxu1 %v172_v13  ;;  %v330_v44 = vld [vmem:[#allocation2] ss:$0 sm:$0xff] }
  0x29   :  { %231 = vmatpush.msra.mxu2 %v206_v25  ;;  %263 = vmatpush.msra.mxu3 %v238_v32 }
  0x2a   :  { %163 = vmatpush.msra.mxu0 %v129_v14  ;;  %197 = vmatpush.msra.mxu1 %v171_v15 }
  0x2b   :  { %232 = vmatpush.msra.mxu2 %v205_v26 }
  0x2c   :  { %164 = vmatpush.msra.mxu0 %v128_v16  ;;  %198 = vmatpush.msra.mxu1 %v170_v18 }
  0x2d   :  { %313 = vmatmul.msk.f32.vlgmr.msra.gmra.mxu0 %vm146_vm0, %v145_v17 }
  0x2e   :  { %199 = vmatpush.msra.mxu1 %v169_v19 }
  0xaa   :  { %v166_v22 = vpop.f32.mrf.mxu0 }
  0xab   :  { %v167_v23 = vadd.f32 %v325_v21, %v166_v22 }
  0xad   :  { %314 = vmatmul.msk.f32.vlgmr.msra.gmra.mxu1 %vm146_vm0, %v167_v23 }
 0x12a   :  { %v201_v28 = vpop.f32.mrf.mxu1 }
 0x12b   :  { %v202_v29 = vadd.f32 %v326_v27, %v201_v28 }
 0x12d   :  { %v204_v30 = vmax.f32 %v202_v29, 0.0 }
 0x12f   :  { %315 = vmatmul.msk.f32.vlgmr.msra.gmra.mxu2 %vm213_vm1, %v204_v30 }
 0x1b2   :  { %v234_v34 = vpop.f32.mrf.mxu2 }
 0x1b3   :  { %v235_v35 = vadd.f32 %v327_v33, %v234_v34 }
 0x1b5   :  { %v237_v36 = vmax.f32 %v235_v35, 0.0 }
 0x1b7   :  { %316 = vmatmul.msk.f32.vlgmr.msra.gmra.mxu3 %vm244_vm2, %v237_v36 }
 0x23a   :  { %v265_v38 = vpop.f32.mrf.mxu3 }
 0x23b   :  { %v266_v39 = vadd.f32 %v328_v37, %v265_v38 }
 0x23d   :  { %v268_v41 = vmax.f32 %v266_v39, 0.0 }
 0x23f   :  { %v273_v42 = vmul.f32 %v329_v40, %v268_v41 }
 0x241   :  { %v275_v43 = vsel %vm274_vm3, %v273_v42, 0.0 }
 0x242   :  { %276 = vadd.xlane.f32.xlu0 %v275_v43 }
 0x2b5   :  { %v277_v45 = vpop.xlane.xlu0 %276 }
 0x2b6   :  { %v282_v46 = vadd.f32 %v330_v44, %v277_v45 }
 0x2b8   :  { %v283_v47 = vmax.f32 %v282_v46, 0.0 }
 0x2ba   :  { %v284_v48 = vsub.f32 0.0, %v283_v47 }
 0x2bc   :  { %v285_v49 = vmul.f32 1.442695, %v284_v48 }
 0x2be   :  { %331 = vpow2.f32 %v285_v49 }
 0x2c4   :  { %v332_v50 = vpop.eup %331 }
 0x2c5   :  { %v287_v51 = vadd.f32 1.0, %v332_v50 }
 0x2c7   :  { %333 = vrcp.f32 %v287_v51  ;;  %v299_v55 = vand.u32 2147483648, %v287_v51  ;;  %v297_v57 = vand.u32 2147483647, %v287_v51  ;;  %vm293_vm5 = vweird.f32 %v287_v51 }
 0x2c9   :  { %v300_v59 = vor.u32 1.1754944e-38, %v299_v55  ;;  %vm298_vm8 = vcmp.eq.f32.partialorder %v297_v57, 8.507059e+37 }
 0x2cd   :  { %v334_v52 = vpop.eup %333 }
 0x2ce   :  { %v289_v53 = vmul.f32 %v334_v52, %v287_v51  ;;  %vm294_vm4 = vweird.f32 %v334_v52 }
 0x2cf   :  { %vm295_vm6 = vmor %vm293_vm5, %vm294_vm4 }
 0x2d0   :  { %v290_v54 = vsub.f32 1.0, %v289_v53 }
 0x2d2   :  { %v291_v56 = vmul.f32 %v334_v52, %v290_v54 }
 0x2d4   :  { %v292_v58 = vadd.f32 %v334_v52, %v291_v56 }
 0x2d6   :  { %v296_v60 = vsel %vm295_vm6, %v334_v52, %v292_v58 }
 0x2d7   :  { %v301_v61 = vsel %vm298_vm8, %v300_v59, %v296_v60 }
 0x2d8   :  { %304 = vst.msk [vmem:[%s638_s11] sm:$0x3] %vm303_vm7, %v301_v61 }
 0x2d9   :  { %309 = vsyncpa [#allocation4], 1 }
 0x2da   :  { %310 = vsyncpa [#allocation6], 1 }
 0x2db   :  { %311 = vsyncpa [#allocation9], 1 }
 0x2dc   :  { %312 = vsyncpa [#allocation12], 1 }

</bundles_post_ra>
